<compile_context>
chip_gen: v7x
topology: tpu7x:2x2x1
jax: 0.10.0
libtpu: 0.0.40
codegen_flags: <defaults>
</compile_context>

<pallas_src>
import jax
import jax.numpy as jnp
from jax.experimental import pallas as pl
from jax.experimental.pallas import tpu as pltpu


def _round_up(x, m):
    return (x + m - 1) // m * m


def _cdiv(a, b):
    return (a + b - 1) // b


def mclip_pool_proj_kernel(embs_ref, att_ref, inv_ref, w_ref, b_ref, out_ref,
                           acc_ref):
    """One (batch-tile, seq-tile) grid step of masked mean-pool + projection.

    embs_ref: [TB, TS, H] bf16  -- streamed, double-buffered (unpadded in HBM)
    att_ref:  [TB, TS]    bf16  -- streamed 0/1 mask (zero-padded to Bp, Sp)
    inv_ref:  [TB, 1]     f32   -- precomputed 1/max(count,1), per batch tile
    w_ref:    [H, Dp]     bf16  -- resident projection weight
    b_ref:    [1, Dp]     f32   -- resident bias
    out_ref:  [TB, Dp]    f32   -- written only on the last seq step
    acc_ref:  [TB, H]     f32 scratch -- masked-sum accumulator
    """
    s = pl.program_id(1)

    @pl.when(s == 0)
    def _():
        acc_ref[...] = jnp.zeros_like(acc_ref)

    att = att_ref[...]                                   # [TB, TS] bf16 (0/1)
    embs = embs_ref[...]                                  # [TB, TS, H] bf16
    # Select, not multiply: zeroes every position with att == 0, including the
    # undefined contents of partial tail blocks (embs is NOT padded in HBM),
    # so 0 * garbage can never poison the sum.  Stays bf16 on the VPU.
    masked = jnp.where(att[:, :, None] != 0, embs, 0)     # [TB, TS, H] bf16
    # f32-accumulated reduction over the seq tile into the resident scratch.
    acc_ref[...] += jnp.sum(masked.astype(jnp.float32), axis=1)   # [TB, H]

    @pl.when(s == pl.num_programs(1) - 1)
    def _():
        # bf16 MXU matmul (W resident in bf16), f32 accumulate.  The exact,
        # precomputed 1/count scales the small [TB, Dp] result, not [TB, H].
        proj = jnp.dot(acc_ref[...].astype(jnp.bfloat16), w_ref[...],
                       preferred_element_type=jnp.float32)        # [TB, Dp]
        out_ref[...] = proj * inv_ref[...] + b_ref[...]


def _select_tiles(B, S, H, vmem_cap):
    """Generation-aware (VMEM-budgeted) tile sizes (tb, ts)."""
    # Batch tile: <= 32, multiple of 8, and >= 2 batch tiles whenever B allows
    # so v7x's two TensorCores (sharded over the "parallel" axis) both work.
    tb = min(32, _round_up(B, 8))
    if B > 8:
        tb = min(tb, _round_up(_cdiv(B, 2), 8))
    tb = max(tb, 8)

    Hl = _round_up(H, 128)
    budget = int(0.6 * vmem_cap)   # v7x: ~38 MiB; v5e/v6e: ~77 MiB
    # Shrink tb first if even ts=128 can't fit (very large H).
    while tb > 8 and 8 * tb * 128 * Hl > budget:
        tb = max(8, tb // 2)

    # Legal seq tiles: multiples of 128 (lane-aligned att block) plus the
    # single-step "whole padded sequence" size.  Pick the largest whose
    # streamed working set (~8 B/elem: bf16 double buffer + one f32 temporary
    # for the select/upcast/reduce chain) fits the budget.
    s_full = _round_up(S, 8)
    cands = [c for c in (1024, 512, 256, 128) if c <= s_full]
    if s_full <= 1024:
        cands.append(s_full)
    cands = sorted(set(cands), reverse=True)
    ts = cands[-1]
    for cand in cands:
        if 8 * tb * cand * Hl <= budget:
            ts = cand
            break
    return tb, ts


def mclip_pool_proj(embs, att, weight, bias, *, tb=None, ts=None,
                    vmem_limit_bytes=None):
    """Masked mean-pool over seq + Linear projection, tiled over (B, S).

    embs:   [B, S, H] (kept bf16 in HBM, never padded/copied)
    att:    [B, S]    0/1 mask
    weight: [H, D]    (already [in, out], i.e. transposed vs. PyTorch)
    bias:   [D]
    """
    B, S, H = embs.shape
    D = weight.shape[1]

    try:
        vmem_cap = int(pltpu.get_tpu_info().vmem_capacity_bytes)
    except Exception:
        vmem_cap = 64 << 20   # conservative default: v7x per-TC VMEM

    auto_tb, auto_ts = _select_tiles(B, S, H, vmem_cap)
    tb = auto_tb if tb is None else tb
    ts = auto_ts if ts is None else ts

    nb = _cdiv(B, tb)
    ns = _cdiv(S, ts)
    Bp, Sp = nb * tb, ns * ts
    Dp = _round_up(D, 128)

    # Only the small side arrays are padded; the [B,S,H] activations are not.
    embs = embs.astype(jnp.bfloat16)
    att_f = att.astype(jnp.float32)
    counts = jnp.sum(att_f, axis=1, keepdims=True)                    # [B, 1]
    inv = 1.0 / jnp.maximum(counts, 1.0)                              # [B, 1]

    att_p = jnp.pad(att.astype(jnp.bfloat16), ((0, Bp - B), (0, Sp - S)))
    inv_p = jnp.pad(inv, ((0, Bp - B), (0, 0)))
    w_p = jnp.pad(weight.astype(jnp.bfloat16), ((0, 0), (0, Dp - D)))
    b_p = jnp.pad(bias.astype(jnp.float32).reshape(1, D), ((0, 0), (0, Dp - D)))

    # VMEM working set: double-buffered streamed tiles, resident W/bias,
    # output double buffer, f32 scratch, plus one tile-sized f32 temporary
    # for the select/upcast/reduce chain.
    Hl = _round_up(H, 128)
    tss = _round_up(ts, 16)
    need = (2 * tb * tss * Hl * 2                       # embs double buffer (bf16)
            + tb * tss * Hl * 4                         # f32 temp of reduce chain
            + 2 * _round_up(tb, 16) * _round_up(ts, 128) * 2   # att double buffer
            + 2 * _round_up(tb, 8) * 128 * 4            # inv
            + 2 * _round_up(H, 16) * Dp * 2             # resident W (bf16)
            + 2 * 8 * Dp * 4                            # resident bias
            + 2 * _round_up(tb, 8) * Dp * 4             # output double buffer
            + _round_up(tb, 8) * Hl * 4)                # acc scratch
    if vmem_limit_bytes is None:
        ceiling = min(100 << 20, int(0.75 * vmem_cap))  # ~48 MiB v7x, ~96 MiB v5e/v6e
        vmem_limit_bytes = min(ceiling, max(need + (need >> 2), 16 << 20))
    assert vmem_limit_bytes >= need, (
        f"VMEM under-provisioned: limit={vmem_limit_bytes} < need={need} "
        f"(tb={tb}, ts={ts}); shrink the tiles")

    out_p = pl.pallas_call(
        mclip_pool_proj_kernel,
        out_shape=jax.ShapeDtypeStruct((Bp, Dp), jnp.float32),
        grid_spec=pltpu.PrefetchScalarGridSpec(
            num_scalar_prefetch=0,
            grid=(nb, ns),
            in_specs=[
                pl.BlockSpec((tb, ts, H), lambda b, s: (b, s, 0)),   # embs (streamed)
                pl.BlockSpec((tb, ts), lambda b, s: (b, s)),         # att  (streamed)
                pl.BlockSpec((tb, 1), lambda b, s: (b, 0)),          # 1/count (per b-tile)
                pl.BlockSpec((H, Dp), lambda b, s: (0, 0)),          # W (resident)
                pl.BlockSpec((1, Dp), lambda b, s: (0, 0)),          # bias (resident)
            ],
            out_specs=pl.BlockSpec((tb, Dp), lambda b, s: (b, 0)),
            scratch_shapes=[pltpu.VMEM((tb, H), jnp.float32)],       # masked-sum acc
        ),
        compiler_params=pltpu.CompilerParams(
            dimension_semantics=("parallel", "arbitrary"),
            vmem_limit_bytes=int(vmem_limit_bytes),
        ),
    )(embs, att_p, inv_p, w_p, b_p)

    return out_p[:B, :D]


def mclip_forward(features, params, **tile_kwargs):
    """Mirror of MCLIP.forward(features)."""
    input_ids = features["input_ids"]
    att = features["attention_mask"]

    # Stand-in for self.model.transformer(...)[0]: bf16 token-embedding lookup.
    # Kept outside the kernel: with a real encoder embs arrives in HBM anyway.
    embs = jnp.take(params["embedding_table"], input_ids, axis=0)  # [B, S, H] bf16

    sent_emb = mclip_pool_proj(embs, att, params["lin_w"], params["lin_b"],
                               **tile_kwargs)
    out = dict(features)
    out["sentence_embedding"] = sent_emb
    return out


def _reference(features, params):
    """Pure-JAX reference (same bf16 embs, f32 math)."""
    embs = jnp.take(params["embedding_table"], features["input_ids"],
                    axis=0).astype(jnp.float32)
    att = features["attention_mask"].astype(jnp.float32)
    pooled = (embs * att[:, :, None]).sum(axis=1) / att.sum(axis=1)[:, None]
    return pooled @ params["lin_w"].astype(jnp.float32) + params["lin_b"].astype(
        jnp.float32)


if __name__ == "__main__":
    # Small synthetic config (stands in for transformerDimensions / numDims).
    # B=10, S=300 give multiple batch tiles, ragged B and S tails (exercising
    # the in-kernel tail masking) without any wrapper-side padding of embs.
    B, S, H, D, V = 10, 300, 32, 16, 64

    key = jax.random.PRNGKey(0)
    k_emb, k_w, k_b, k_ids, k_len = jax.random.split(key, 5)

    params = {
        "embedding_table": (jax.random.normal(k_emb, (V, H), dtype=jnp.float32)
                            * 0.02).astype(jnp.bfloat16),
        "lin_w": jax.random.normal(k_w, (H, D), dtype=jnp.float32) * 0.02,
        "lin_b": jax.random.normal(k_b, (D,), dtype=jnp.float32) * 0.01,
    }

    input_ids = jax.random.randint(k_ids, (B, S), 0, V, dtype=jnp.int32)
    lengths = jax.random.randint(k_len, (B,), 1, S + 1, dtype=jnp.int32)
    attention_mask = (jnp.arange(S)[None, :] < lengths[:, None]).astype(jnp.int32)

    features = {"input_ids": input_ids, "attention_mask": attention_mask}
    ref = _reference(features, params)

    # 1) Auto-selected (generation-aware) tiles.
    out = mclip_forward(features, params)
    sent = jax.block_until_ready(out["sentence_embedding"])
    assert sent.shape == (B, D), sent.shape
    assert jnp.allclose(sent, ref, atol=5e-4, rtol=1e-2), (
        "auto-tile mismatch vs reference, max abs err = %g"
        % float(jnp.max(jnp.abs(sent - ref))))

    # 2) Forced small tiles: exercises the multi-step seq accumulation and the
    #    ragged-tail masking across several seq blocks.
    out2 = mclip_forward(features, params, tb=8, ts=128)
    sent2 = jax.block_until_ready(out2["sentence_embedding"])
    assert jnp.allclose(sent2, ref, atol=5e-4, rtol=1e-2), (
        "small-tile mismatch vs reference, max abs err = %g"
        % float(jnp.max(jnp.abs(sent2 - ref))))

    print("KERNEL_OK")
</pallas_src>

<mosaic_0001>
module attributes {stable_mosaic.version = 11 : i64} {
  func.func @mclip_pool_proj_kernel(%arg0: i32, %arg1: i32, %arg2: memref<8x304x32xbf16, #tpu.memory_space<vmem>>, %arg3: memref<8x304xbf16, #tpu.memory_space<vmem>>, %arg4: memref<8x1xf32, #tpu.memory_space<vmem>>, %arg5: memref<32x128xbf16, #tpu.memory_space<vmem>>, %arg6: memref<1x128xf32, #tpu.memory_space<vmem>>, %arg7: memref<8x128xf32, #tpu.memory_space<vmem>>, %arg8: memref<8x32xf32, #tpu.memory_space<vmem>>) attributes {dimension_semantics = [#tpu.dimension_semantics<parallel>, #tpu.dimension_semantics<arbitrary>], iteration_bounds = array<i64: 2, 1>, scalar_prefetch = 0 : i64, scratch_operands = 1 : i64, tpu.core_type = #tpu.core_type<tc>, window_params = [{transform_indices = @transform_0, window_bounds = array<i64: 8, 304, 32>}, {transform_indices = @transform_1, window_bounds = array<i64: 8, 304>}, {transform_indices = @transform_2, window_bounds = array<i64: 8, 1>}, {pipeline_mode = #tpu.pipeline_mode<synchronous>, transform_indices = @transform_3, window_bounds = array<i64: 32, 128>}, {pipeline_mode = #tpu.pipeline_mode<synchronous>, transform_indices = @transform_4, window_bounds = array<i64: 1, 128>}, {transform_indices = @transform_5, window_bounds = array<i64: 8, 128>}]} {
    %c0_i32 = arith.constant 0 : i32
    %0 = arith.cmpi eq, %arg1, %c0_i32 : i32
    %1 = arith.extui %0 : i1 to i32
    %c0_i32_0 = arith.constant 0 : i32
    %2 = arith.cmpi ne, %1, %c0_i32_0 : i32
    scf.if %2 {
      %cst_13 = arith.constant 0.000000e+00 : f32
      %21 = vector.broadcast %cst_13 : f32 to vector<8x32xf32>
      %c0_14 = arith.constant 0 : index
      %c0_15 = arith.constant 0 : index
      %22 = vector.load %arg8[%c0_14, %c0_15] : memref<8x32xf32, #tpu.memory_space<vmem>>, vector<8x32xf32>
      tpu.vector_store %arg8[%c0_14, %c0_15], %21 {strides = array<i32>} : memref<8x32xf32, #tpu.memory_space<vmem>>, vector<8x32xf32>,
    } else {
    }
    %c0 = arith.constant 0 : index
    %c0_1 = arith.constant 0 : index
    %3 = vector.load %arg3[%c0, %c0_1] : memref<8x304xbf16, #tpu.memory_space<vmem>>, vector<8x304xbf16>
    %c0_2 = arith.constant 0 : index
    %c0_3 = arith.constant 0 : index
    %c0_4 = arith.constant 0 : index
    %4 = vector.load %arg2[%c0_2, %c0_3, %c0_4] : memref<8x304x32xbf16, #tpu.memory_space<vmem>>, vector<8x304x32xbf16>
    %5 = vector.shape_cast %3 : vector<8x304xbf16> to vector<8x304x1xbf16>
    %cst = arith.constant 0.000000e+00 : bf16
    %6 = vector.broadcast %cst : bf16 to vector<8x304x1xbf16>
    %7 = arith.cmpf one, %5, %6 : vector<8x304x1xbf16>
    %c0_i32_5 = arith.constant 0 : i32
    %8 = arith.sitofp %c0_i32_5 : i32 to bf16
    %9 = vector.shape_cast %7 : vector<8x304x1xi1> to vector<8x304x1xi1>
    %10 = vector.broadcast %9 : vector<8x304x1xi1> to vector<8x304x32xi1>
    %11 = vector.broadcast %8 : bf16 to vector<8x304x32xbf16>
    %12 = arith.select %10, %4, %11 : vector<8x304x32xi1>, vector<8x304x32xbf16>
    %c0_6 = arith.constant 0 : index
    %c0_7 = arith.constant 0 : index
    %13 = vector.load %arg8[%c0_6, %c0_7] : memref<8x32xf32, #tpu.memory_space<vmem>>, vector<8x32xf32>
    %14 = arith.extf %12 : vector<8x304x32xbf16> to vector<8x304x32xf32>
    %cst_8 = arith.constant dense<0.000000e+00> : vector<8x32xf32>
    %15 = vector.multi_reduction <add>, %14, %cst_8 [1] : vector<8x304x32xf32> to vector<8x32xf32>
    %16 = arith.addf %13, %15 : vector<8x32xf32>
    %c0_9 = arith.constant 0 : index
    %c0_10 = arith.constant 0 : index
    %17 = vector.load %arg8[%c0_9, %c0_10] : memref<8x32xf32, #tpu.memory_space<vmem>>, vector<8x32xf32>
    tpu.vector_store %arg8[%c0_9, %c0_10], %16 {strides = array<i32>} : memref<8x32xf32, #tpu.memory_space<vmem>>, vector<8x32xf32>,
    %c0_i32_11 = arith.constant 0 : i32
    %18 = arith.cmpi eq, %arg1, %c0_i32_11 : i32
    %19 = arith.extui %18 : i1 to i32
    %c0_i32_12 = arith.constant 0 : i32
    %20 = arith.cmpi ne, %19, %c0_i32_12 : i32
    scf.if %20 {
      %c0_13 = arith.constant 0 : index
      %c0_14 = arith.constant 0 : index
      %21 = vector.load %arg8[%c0_13, %c0_14] : memref<8x32xf32, #tpu.memory_space<vmem>>, vector<8x32xf32>
      %22 = arith.truncf %21 : vector<8x32xf32> to vector<8x32xbf16>
      %c0_15 = arith.constant 0 : index
      %c0_16 = arith.constant 0 : index
      %23 = vector.load %arg5[%c0_15, %c0_16] : memref<32x128xbf16, #tpu.memory_space<vmem>>, vector<32x128xbf16>
      %cst_17 = arith.constant dense<0.000000e+00> : vector<8x128xf32>
      %24 = tpu.matmul %22, %23, %cst_17 {dimension_numbers = #tpu.dot_dimension_numbers<[1], [0], [0], [1], [0, 0, 1, 1], [], []>} : vector<8x32xbf16>, vector<32x128xbf16>, vector<8x128xf32> -> vector<8x128xf32>
      %c0_18 = arith.constant 0 : index
      %c0_19 = arith.constant 0 : index
      %25 = vector.load %arg4[%c0_18, %c0_19] : memref<8x1xf32, #tpu.memory_space<vmem>>, vector<8x1xf32>
      %26 = vector.broadcast %25 : vector<8x1xf32> to vector<8x128xf32>
      %27 = arith.mulf %24, %26 : vector<8x128xf32>
      %c0_20 = arith.constant 0 : index
      %c0_21 = arith.constant 0 : index
      %28 = vector.load %arg6[%c0_20, %c0_21] : memref<1x128xf32, #tpu.memory_space<vmem>>, vector<1x128xf32>
      %29 = vector.broadcast %28 : vector<1x128xf32> to vector<8x128xf32>
      %30 = arith.addf %27, %29 : vector<8x128xf32>
      %c0_22 = arith.constant 0 : index
      %c0_23 = arith.constant 0 : index
      %31 = vector.load %arg7[%c0_22, %c0_23] : memref<8x128xf32, #tpu.memory_space<vmem>>, vector<8x128xf32>
      tpu.vector_store %arg7[%c0_22, %c0_23], %30 {strides = array<i32>} : memref<8x128xf32, #tpu.memory_space<vmem>>, vector<8x128xf32>,
    } else {
    }
    return
  }
  func.func @transform_0(%arg0: i32, %arg1: i32) -> (i32, i32, i32) {
    %c0_i32 = arith.constant 0 : i32
    %c0_i32_0 = arith.constant 0 : i32
    return %arg0, %arg1, %c0_i32 : i32, i32, i32
  }
  func.func @transform_1(%arg0: i32, %arg1: i32) -> (i32, i32) {
    %c0_i32 = arith.constant 0 : i32
    return %arg0, %arg1 : i32, i32
  }
  func.func @transform_2(%arg0: i32, %arg1: i32) -> (i32, i32) {
    %c0_i32 = arith.constant 0 : i32
    %c0_i32_0 = arith.constant 0 : i32
    return %arg0, %c0_i32 : i32, i32
  }
  func.func @transform_3(%arg0: i32, %arg1: i32) -> (i32, i32) {
    %c0_i32 = arith.constant 0 : i32
    %c0_i32_0 = arith.constant 0 : i32
    %c0_i32_1 = arith.constant 0 : i32
    return %c0_i32, %c0_i32_0 : i32, i32
  }
  func.func @transform_4(%arg0: i32, %arg1: i32) -> (i32, i32) {
    %c0_i32 = arith.constant 0 : i32
    %c0_i32_0 = arith.constant 0 : i32
    %c0_i32_1 = arith.constant 0 : i32
    return %c0_i32, %c0_i32_0 : i32, i32
  }
  func.func @transform_5(%arg0: i32, %arg1: i32) -> (i32, i32) {
    %c0_i32 = arith.constant 0 : i32
    %c0_i32_0 = arith.constant 0 : i32
    return %arg0, %c0_i32 : i32, i32
  }
}

</mosaic_0001>

<bundles_post_ra>
// kernel: tpu_custom_call.1
= control target key start
LH: loop header
LB: loop body
LE: loop exit
PB: predicated region body
PF: predicated region fallthrough
CT: control target
= control target key end

     0   :  { %10 = vsyncpa [#allocation4], 0  ;;  %s18285_s0 = inlined_call_operand.vmem [shape: bf16[10,300,32], index: 0, kind: input, shape index: {}]   ;;  %s18286_s1 = inlined_call_operand.vmem [shape: bf16[16,304], index: 1, kind: input, shape index: {}]   ;;  %s18287_s2 = inlined_call_operand.vmem [shape: f32[16,1], index: 2, kind: input, shape index: {}]   ;;  %s18288_s3 = inlined_call_operand.vmem [shape: bf16[32,128], index: 3, kind: input, shape index: {}]   ;;  %s18289_s4 = inlined_call_operand.vmem [shape: f32[1,128], index: 4, kind: input, shape index: {}]   ;;  %s18290_s5 = inlined_call_operand.hbm [shape: f32[16,128], index: 5, kind: output, shape index: {}]  }
   0x1   :  { %12 = vsyncpa [#allocation4 + $0x1], 0  ;;  %s8524_s18 = smov 0   ;;  %s8526_s19 = smov 0  }
   0x2   :  { %s8528_s20 = smov 0   ;;  %s8530_s21 = smov 0  }
   0x3   :  { %s8532_s22 = smov 0   ;;  %s8534_s23 = smov 0  }
   0x4 LB: > { %s8307_s24 = sadd.s32 4294967295, %s8486_s23   ;;  %s8308_s25 = sadd.s32 4294967294, %s8486_s23   ;;  %s8486_s23 = sphi %s8534_s23, %s18_s23   ;;  %s8482_s22 = sphi %s8532_s22, %s20716_s22   ;;  %s8478_s21 = sphi %s8530_s21, %s20715_s21   ;;  %s8474_s20 = sphi %s8528_s20, %s20714_s20   ;;  %s8470_s19 = sphi %s8526_s19, %s20713_s19   ;;  %s8466_s18 = sphi %s8524_s18, %s20712_s18  }
   0x5   : > { %s30_s26 = sadd.s32 1, %s8482_s22  ;;  %s161_s27 = sadd.s32 1, %s8474_s20 }
   0x6   : > { %p32_p0 = scmp.ge.s32.totalorder %s30_s26, 2  ;;  %p171_p1 = scmp.ne.s32.totalorder %s8474_s20, %s8470_s19 }
   0x7   : > { %p172_p2 = scmp.eq.s32.totalorder %s8307_s24, 1  ;;  %p177_p3 = scmp.ne.s32.totalorder %s8470_s19, %s8466_s18 }
   0x8   : > { %s20718_s26 = smov (%p32_p0, %s30_s26), 0  ;;  %p178_p5 = scmp.eq.s32.totalorder %s8308_s25, 1 }
   0x9   : > { %p8564_p4 = por %p172_p2, %p171_p1  ;;  %s158_s29 = ssub.s32 %s8482_s22, %s20718_s26 }
   0xa   : > { %p8311_p6 = scmp.ge.s32.totalorder %s8486_s23, 1  ;;  %p159_p7 = scmp.eq.s32.totalorder %s158_s29, 0 }
   0xb   : > { %p8571_p8 = por %p178_p5, %p177_p3  ;;  %p247_p9 = scmp.lt.s32.totalorder %s8486_s23, 3 }
   0xc   : > { %s8577_s6 = scalar_select %p159_p7, %s8474_s20, %s161_s27  }
   0xd   : > { %p248_p10 = pnand %p8311_p6, %p247_p9 }
   0xf   : > { %251 = sbr.rel (%p248_p10) target bundleno = 1478 (0x5c6), region = 40 }
  0x16   : > { %p321_p11 = scmp.lt.s32.totalorder %s8478_s21, 1  ;;  %v660_v0 = vlaneseq  ;;  %v18291_v1 = vmov 0   ;;  %s8313_s12 = sshll.u32 %s8478_s21, 3 }
  0x17   : > { %8402 = vset.pattern.permute.xlu1 %v18291_v1  ;;  %8401 = vset.pattern.permute.xlu0 %v18291_v1  ;;  %p11543_p12 = scmp.lt.s32.totalorder %s8313_s12, 9  ;;  %s8325_s15 = sshll.u32 %s8478_s21, 7 }
  0x18   : > { %s8583_s7 = scalar_select %p321_p11, %s8478_s21, 1  ;;  %v8586_v2 = vshrl.u32 %v660_v0, 7 }
  0x19   : > { %s20720_s12 = smov (!%p11543_p12, %s8313_s12), 9  ;;  %s18238_s27 = scalar_lea.hbm %s18290_s5, %s8325_s15 }
  0x1a   : > { %s8340_s8 = smul.u32 12, %s8583_s7  ;;  %v662_v5 = vsub.s32 0, %v8586_v2  ;;  %v847_v23 = vsub.s32 1, %v8586_v2  ;;  %v8650_v46 = vsub.s32 2, %v8586_v2  ;;  %s8316_s24 = sshll.u32 %s8583_s7, 3 }
  0x1b   : > { %s8339_s14 = smul.u32 152, %s20720_s12  ;;  %s333_s29 = scalar_lea.vmem %s18287_s2, %s8316_s24 }
  0x1c   : > { %s328_s11 = scalar_lea.vmem %s18286_s1, %s8340_s8  ;;  %s8493_s7 = smov [#allocation3]  }
  0x1d   : > { %v343_v3 = vld [vmem:[%s328_s11] sm:$0xff]  ;;  %v8405_v11 = vld [vmem:[%s328_s11 + $0x8] ss:$0 sps:$4 sm:$0xff]   ;;  %s11729_s17 = scalar_lea.vmem %s18285_s0, %s8339_s14  ;;  %s295_s11 = sand.u32 1, %s8470_s19  }
  0x1e   : > { %v8317_v4 = vcombine.low %v343_v3, %v343_v3  ;;  %v8318_v8 = vcombine.high %v343_v3, %v343_v3  ;;  %v8598_v12 = vpack.i.b16 %v8405_v11, %v8405_v11  ;;  %v827_v20 = vshrl.u32 %v8405_v11, 16  ;;  %s8312_s12 = sshll.u32 %s295_s11, 3  ;;  %s8412_s8 = sshll.u32 %s8493_s7, 4  ;;  %s8413_s8 = int_to_ptr.vmem [resolvable:$false] %s8412_s8 }
  0x1f   : > { %s297_s16 = scalar_lea.vmem [#allocation3], %s8312_s12  ;;  %s8414_s9 = scalar_lea.vmem %s8413_s8, 256 }
  0x20   : > { %v8592_v6 = vpack.i.b16 %v8317_v4, %v8317_v4  ;;  %v8595_v9 = vpack.i.b16 %v8318_v8, %v8318_v8  ;;  %v751_v13 = vshrl.u32 %v8317_v4, 16  ;;  %v739_v14 = vrot.slane %v8598_v12, %v662_v5 }
  0x21   : > { %v789_v17 = vshrl.u32 %v8318_v8, 16  ;;  %v8607_v21 = vpack.i.b16 %v827_v20, %v827_v20  ;;  %v918_v26 = vrot.slane %v8598_v12, %v847_v23 }
  0x22   : > { %v663_v7 = vrot.slane %v8592_v6, %v662_v5  ;;  %v701_v10 = vrot.slane %v8595_v9, %v662_v5  ;;  %v8601_v15 = vpack.i.b16 %v751_v13, %v751_v13  ;;  %v848_v24 = vrot.slane %v8592_v6, %v847_v23 }
  0x23   : > { %v8604_v18 = vpack.i.b16 %v789_v17, %v789_v17  ;;  %v833_v22 = vrot.slane %v8607_v21, %v662_v5  ;;  %v883_v25 = vrot.slane %v8595_v9, %v847_v23  ;;  %v1003_v43 = vrot.slane %v8607_v21, %v847_v23 }
  0x24   : > { %673 = vbcast.lane.c.b16.xlu1 %v663_v7, 288  ;;  %665 = vbcast.lane.c.b16.xlu0 %v663_v7, 256  ;;  %v757_v16 = vrot.slane %v8601_v15, %v662_v5  ;;  %v933_v27 = vrot.slane %v8601_v15, %v847_v23  ;;  %v1018_v49 = vrot.slane %v8592_v6, %v8650_v46 }
  0x25   : > { %v795_v19 = vrot.slane %v8604_v18, %v662_v5  ;;  %v968_v34 = vrot.slane %v8604_v18, %v847_v23  ;;  %v1053_v58 = vrot.slane %v8595_v9, %v8650_v46  ;;  %v1088_v5 = vrot.slane %v8598_v12, %v8650_v46 }
  0x26   : > { %v1138_v23 = vrot.slane %v8604_v18, %v8650_v46 }
  0x28   : > { %677 = vbcast.lane.c.b16.xlu1 %v663_v7, 304  ;;  %669 = vbcast.lane.c.b16.xlu0 %v663_v7, 272 }
  0x2c   : > { %685 = vbcast.lane.c.b16.xlu1 %v663_v7, 336  ;;  %681 = vbcast.lane.c.b16.xlu0 %v663_v7, 320 }
  0x30   : > { %693 = vbcast.lane.c.b16.xlu1 %v663_v7, 368  ;;  %689 = vbcast.lane.c.b16.xlu0 %v663_v7, 352 }
  0x34   : > { %707 = vbcast.lane.c.b16.xlu1 %v701_v10, 272  ;;  %703 = vbcast.lane.c.b16.xlu0 %v701_v10, 256 }
  0x38   : > { %715 = vbcast.lane.c.b16.xlu1 %v701_v10, 304  ;;  %711 = vbcast.lane.c.b16.xlu0 %v701_v10, 288 }
  0x3c   : > { %723 = vbcast.lane.c.b16.xlu1 %v701_v10, 336  ;;  %719 = vbcast.lane.c.b16.xlu0 %v701_v10, 320 }
  0x40   : > { %731 = vbcast.lane.c.b16.xlu1 %v701_v10, 368  ;;  %727 = vbcast.lane.c.b16.xlu0 %v701_v10, 352  ;;  %v1103_v10 = vrot.slane %v8601_v15, %v8650_v46 }
  0x44   : > { %745 = vbcast.lane.c.b16.xlu1 %v739_v14, 272  ;;  %741 = vbcast.lane.c.b16.xlu0 %v739_v14, 256 }
  0x48   : > { %759 = vbcast.lane.c.b16.xlu1 %v757_v16, 256  ;;  %749 = vbcast.lane.c.b16.xlu0 %v739_v14, 288 }
  0x4c   : > { %767 = vbcast.lane.c.b16.xlu1 %v757_v16, 288  ;;  %763 = vbcast.lane.c.b16.xlu0 %v757_v16, 272 }
  0x50   : > { %775 = vbcast.lane.c.b16.xlu1 %v757_v16, 320  ;;  %771 = vbcast.lane.c.b16.xlu0 %v757_v16, 304 }
  0x54   : > { %783 = vbcast.lane.c.b16.xlu1 %v757_v16, 352  ;;  %779 = vbcast.lane.c.b16.xlu0 %v757_v16, 336 }
  0x58   : > { %797 = vbcast.lane.c.b16.xlu1 %v795_v19, 256  ;;  %787 = vbcast.lane.c.b16.xlu0 %v757_v16, 368 }
  0x5c   : > { %805 = vbcast.lane.c.b16.xlu1 %v795_v19, 288  ;;  %801 = vbcast.lane.c.b16.xlu0 %v795_v19, 272 }
  0x60   : > { %813 = vbcast.lane.c.b16.xlu1 %v795_v19, 320  ;;  %809 = vbcast.lane.c.b16.xlu0 %v795_v19, 304 }
  0x64   : > { %821 = vbcast.lane.c.b16.xlu1 %v795_v19, 352  ;;  %817 = vbcast.lane.c.b16.xlu0 %v795_v19, 336 }
  0x68   : > { %835 = vbcast.lane.c.b16.xlu1 %v833_v22, 256  ;;  %825 = vbcast.lane.c.b16.xlu0 %v795_v19, 368 }
  0x6c   : > { %843 = vbcast.lane.c.b16.xlu1 %v833_v22, 288  ;;  %839 = vbcast.lane.c.b16.xlu0 %v833_v22, 272 }
  0x70   : > { %854 = vbcast.lane.c.b16.xlu1 %v848_v24, 272  ;;  %850 = vbcast.lane.c.b16.xlu0 %v848_v24, 256 }
  0x74   : > { %862 = vbcast.lane.c.b16.xlu1 %v848_v24, 304  ;;  %858 = vbcast.lane.c.b16.xlu0 %v848_v24, 288 }
  0x78   : > { %870 = vbcast.lane.c.b16.xlu1 %v848_v24, 336  ;;  %866 = vbcast.lane.c.b16.xlu0 %v848_v24, 320 }
  0x7c   : > { %878 = vbcast.lane.c.b16.xlu1 %v848_v24, 368  ;;  %874 = vbcast.lane.c.b16.xlu0 %v848_v24, 352 }
  0x80   : > { %889 = vbcast.lane.c.b16.xlu1 %v883_v25, 272  ;;  %885 = vbcast.lane.c.b16.xlu0 %v883_v25, 256 }
  0x84   : > { %897 = vbcast.lane.c.b16.xlu1 %v883_v25, 304  ;;  %893 = vbcast.lane.c.b16.xlu0 %v883_v25, 288 }
  0x88   : > { %905 = vbcast.lane.c.b16.xlu1 %v883_v25, 336  ;;  %901 = vbcast.lane.c.b16.xlu0 %v883_v25, 320 }
  0x8c   : > { %913 = vbcast.lane.c.b16.xlu1 %v883_v25, 368  ;;  %909 = vbcast.lane.c.b16.xlu0 %v883_v25, 352 }
  0x90   : > { %924 = vbcast.lane.c.b16.xlu1 %v918_v26, 272  ;;  %920 = vbcast.lane.c.b16.xlu0 %v918_v26, 256 }
  0x94   : > { %935 = vbcast.lane.c.b16.xlu1 %v933_v27, 256  ;;  %928 = vbcast.lane.c.b16.xlu0 %v918_v26, 288 }
  0x96   : > { %v8615_v28 = vpop.permute.xlu1 %673  ;;  %v8617_v29 = vpop.permute.xlu0 %665 }
  0x97   : > { %vm1355_vm0 = vcmp.ne.bf16.partialorder %v8617_v29, 0  ;;  %vm1357_vm2 = vcmp.ne.bf16.partialorder %v8615_v28, 0 }
  0x98   : > { %943 = vbcast.lane.c.b16.xlu1 %v933_v27, 288  ;;  %939 = vbcast.lane.c.b16.xlu0 %v933_v27, 272 }
  0x9a   : > { %v8619_v30 = vpop.permute.xlu1 %677  ;;  %v8621_v31 = vpop.permute.xlu0 %669 }
  0x9b   : > { %vm1356_vm1 = vcmp.ne.bf16.partialorder %v8621_v31, 0  ;;  %vm1358_vm5 = vcmp.ne.bf16.partialorder %v8619_v30, 0 }
  0x9c   : > { %951 = vbcast.lane.c.b16.xlu1 %v933_v27, 320  ;;  %947 = vbcast.lane.c.b16.xlu0 %v933_v27, 304 }
  0x9e   : > { %v8623_v32 = vpop.permute.xlu1 %685  ;;  %v8625_v33 = vpop.permute.xlu0 %681 }
  0x9f   : > { %vm1359_vm8 = vcmp.ne.bf16.partialorder %v8625_v33, 0  ;;  %vm1360_vm10 = vcmp.ne.bf16.partialorder %v8623_v32, 0 }
  0xa0   : > { %959 = vbcast.lane.c.b16.xlu1 %v933_v27, 352  ;;  %955 = vbcast.lane.c.b16.xlu0 %v933_v27, 336 }
  0xa2   : > { %v8628_v35 = vpop.permute.xlu1 %693  ;;  %v8630_v36 = vpop.permute.xlu0 %689 }
  0xa3   : > { %vm1362_vm11 = vcmp.ne.bf16.partialorder %v8628_v35, 0  ;;  %vm1361_vm13 = vcmp.ne.bf16.partialorder %v8630_v36, 0 }
  0xa4   : > { %970 = vbcast.lane.c.b16.xlu1 %v968_v34, 256  ;;  %963 = vbcast.lane.c.b16.xlu0 %v933_v27, 368 }
  0xa6   : > { %v8632_v37 = vpop.permute.xlu1 %707  ;;  %v8634_v38 = vpop.permute.xlu0 %703 }
  0xa8   : > { %978 = vbcast.lane.c.b16.xlu1 %v968_v34, 288  ;;  %974 = vbcast.lane.c.b16.xlu0 %v968_v34, 272 }
  0xaa   : > { %v8636_v39 = vpop.permute.xlu1 %715  ;;  %v8638_v40 = vpop.permute.xlu0 %711 }
  0xac   : > { %986 = vbcast.lane.c.b16.xlu1 %v968_v34, 320  ;;  %982 = vbcast.lane.c.b16.xlu0 %v968_v34, 304 }
  0xae   : > { %v8640_v41 = vpop.permute.xlu1 %723  ;;  %v8642_v42 = vpop.permute.xlu0 %719 }
  0xb0   : > { %994 = vbcast.lane.c.b16.xlu1 %v968_v34, 352  ;;  %990 = vbcast.lane.c.b16.xlu0 %v968_v34, 336 }
  0xb2   : > { %v8645_v44 = vpop.permute.xlu1 %731  ;;  %v8647_v45 = vpop.permute.xlu0 %727 }
  0xb4   : > { %1005 = vbcast.lane.c.b16.xlu1 %v1003_v43, 256  ;;  %998 = vbcast.lane.c.b16.xlu0 %v968_v34, 368 }
  0xb6   : > { %v8652_v47 = vpop.permute.xlu1 %745  ;;  %v8654_v48 = vpop.permute.xlu0 %741 }
  0xb8   : > { %1013 = vbcast.lane.c.b16.xlu1 %v1003_v43, 288  ;;  %1009 = vbcast.lane.c.b16.xlu0 %v1003_v43, 272 }
  0xba   : > { %v8658_v50 = vpop.permute.xlu1 %759  ;;  %v8660_v51 = vpop.permute.xlu0 %749 }
  0xbc   : > { %1024 = vbcast.lane.c.b16.xlu1 %v1018_v49, 272  ;;  %1020 = vbcast.lane.c.b16.xlu0 %v1018_v49, 256 }
  0xbe   : > { %v8662_v52 = vpop.permute.xlu1 %767  ;;  %v8664_v53 = vpop.permute.xlu0 %763 }
  0xc0   : > { %1032 = vbcast.lane.c.b16.xlu1 %v1018_v49, 304  ;;  %1028 = vbcast.lane.c.b16.xlu0 %v1018_v49, 288 }
  0xc2   : > { %v8666_v54 = vpop.permute.xlu1 %775  ;;  %v8668_v55 = vpop.permute.xlu0 %771 }
  0xc4   : > { %1040 = vbcast.lane.c.b16.xlu1 %v1018_v49, 336  ;;  %1036 = vbcast.lane.c.b16.xlu0 %v1018_v49, 320 }
  0xc6   : > { %v8670_v56 = vpop.permute.xlu1 %783  ;;  %v8672_v57 = vpop.permute.xlu0 %779 }
  0xc8   : > { %1048 = vbcast.lane.c.b16.xlu1 %v1018_v49, 368  ;;  %1044 = vbcast.lane.c.b16.xlu0 %v1018_v49, 352 }
  0xca   : > { %v8676_v59 = vpop.permute.xlu1 %797  ;;  %v8678_v60 = vpop.permute.xlu0 %787 }
  0xcc   : > { %1059 = vbcast.lane.c.b16.xlu1 %v1053_v58, 272  ;;  %1055 = vbcast.lane.c.b16.xlu0 %v1053_v58, 256 }
  0xce   : > { %v8680_v61 = vpop.permute.xlu1 %805  ;;  %v8682_v62 = vpop.permute.xlu0 %801 }
  0xd0   : > { %1067 = vbcast.lane.c.b16.xlu1 %v1053_v58, 304  ;;  %1063 = vbcast.lane.c.b16.xlu0 %v1053_v58, 288 }
  0xd2   : > { %v8684_v63 = vpop.permute.xlu1 %813  ;;  %v8686_v0 = vpop.permute.xlu0 %809 }
  0xd4   : > { %1075 = vbcast.lane.c.b16.xlu1 %v1053_v58, 336  ;;  %1071 = vbcast.lane.c.b16.xlu0 %v1053_v58, 320 }
  0xd6   : > { %v8688_v3 = vpop.permute.xlu1 %821  ;;  %v8690_v4 = vpop.permute.xlu0 %817 }
  0xd8   : > { %1083 = vbcast.lane.c.b16.xlu1 %v1053_v58, 368  ;;  %1079 = vbcast.lane.c.b16.xlu0 %v1053_v58, 352 }
  0xda   : > { %v8694_v7 = vpop.permute.xlu1 %835  ;;  %v8696_v8 = vpop.permute.xlu0 %825 }
  0xdc   : > { %1094 = vbcast.lane.c.b16.xlu1 %v1088_v5, 272  ;;  %1090 = vbcast.lane.c.b16.xlu0 %v1088_v5, 256 }
  0xde   : > { %v8700_v11 = vpop.permute.xlu1 %843  ;;  %v8702_v13 = vpop.permute.xlu0 %839 }
  0xe0   : > { %1105 = vbcast.lane.c.b16.xlu1 %v1103_v10, 256  ;;  %1098 = vbcast.lane.c.b16.xlu0 %v1088_v5, 288  ;;  %v1173_v5 = vrot.slane %v8607_v21, %v8650_v46 }
  0xe2   : > { %v8704_v14 = vpop.permute.xlu1 %854  ;;  %v8706_v16 = vpop.permute.xlu0 %850 }
  0xe4   : > { %1113 = vbcast.lane.c.b16.xlu1 %v1103_v10, 288  ;;  %1109 = vbcast.lane.c.b16.xlu0 %v1103_v10, 272 }
  0xe6   : > { %v8708_v17 = vpop.permute.xlu1 %862  ;;  %v8710_v19 = vpop.permute.xlu0 %858 }
  0xe8   : > { %1121 = vbcast.lane.c.b16.xlu1 %v1103_v10, 320  ;;  %1117 = vbcast.lane.c.b16.xlu0 %v1103_v10, 304 }
  0xea   : > { %v8712_v20 = vpop.permute.xlu1 %870  ;;  %v8714_v22 = vpop.permute.xlu0 %866 }
  0xeb   : > { %18624 = vst [vmem:[#allocation6_spill] sm:$0xff] %v8714_v22 }
  0xec   : > { %1129 = vbcast.lane.c.b16.xlu1 %v1103_v10, 352  ;;  %1125 = vbcast.lane.c.b16.xlu0 %v1103_v10, 336 }
  0xee   : > { %v8718_v24 = vpop.permute.xlu1 %878  ;;  %v8720_v25 = vpop.permute.xlu0 %874 }
  0xef   : > { %18625 = vst [vmem:[#allocation7_spill] sm:$0xff] %v8718_v24  ;;  %18626 = vst [vmem:[#allocation8_spill] sm:$0xff] %v8720_v25 }
  0xf0   : > { %1140 = vbcast.lane.c.b16.xlu1 %v1138_v23, 256  ;;  %1133 = vbcast.lane.c.b16.xlu0 %v1103_v10, 368 }
  0xf2   : > { %v8722_v26 = vpop.permute.xlu1 %889  ;;  %v8724_v27 = vpop.permute.xlu0 %885 }
  0xf3   : > { %18627 = vst [vmem:[#allocation9_spill] sm:$0xff] %v8722_v26  ;;  %18628 = vst [vmem:[#allocation10_spill] sm:$0xff] %v8724_v27 }
  0xf4   : > { %1148 = vbcast.lane.c.b16.xlu1 %v1138_v23, 288  ;;  %1144 = vbcast.lane.c.b16.xlu0 %v1138_v23, 272 }
  0xf6   : > { %v8726_v34 = vpop.permute.xlu1 %897  ;;  %v8728_v43 = vpop.permute.xlu0 %893 }
  0xf7   : > { %18629 = vst [vmem:[#allocation11_spill] sm:$0xff] %v8726_v34  ;;  %18630 = vst [vmem:[#allocation12_spill] sm:$0xff] %v8728_v43  ;;  %v8741_v34 = vsub.s32 3, %v8586_v2 }
  0xf8   : > { %1156 = vbcast.lane.c.b16.xlu1 %v1138_v23, 320  ;;  %1152 = vbcast.lane.c.b16.xlu0 %v1138_v23, 304 }
  0xfa   : > { %v8730_v49 = vpop.permute.xlu1 %905  ;;  %v8732_v58 = vpop.permute.xlu0 %901 }
  0xfb   : > { %18631 = vst [vmem:[#allocation13_spill] sm:$0xff] %v8730_v49  ;;  %18632 = vst [vmem:[#allocation14_spill] sm:$0xff] %v8732_v58  ;;  %v1188_v58 = vrot.slane %v8592_v6, %v8741_v34 }
  0xfc   : > { %1164 = vbcast.lane.c.b16.xlu1 %v1138_v23, 352  ;;  %1160 = vbcast.lane.c.b16.xlu0 %v1138_v23, 336 }
  0xfe   : > { %v8736_v10 = vpop.permute.xlu1 %913  ;;  %v8738_v1 = vpop.permute.xlu0 %909 }
  0xff   : > { %18633 = vst [vmem:[#allocation15_spill] sm:$0xff] %v8736_v10  ;;  %18634 = vst [vmem:[#allocation16_spill] sm:$0xff] %v8738_v1 }
 0x100   : > { %1175 = vbcast.lane.c.b16.xlu1 %v1173_v5, 256  ;;  %1168 = vbcast.lane.c.b16.xlu0 %v1138_v23, 368 }
 0x102   : > { %v8743_v43 = vpop.permute.xlu1 %924  ;;  %v8745_v27 = vpop.permute.xlu0 %920 }
 0x103   : > { %18635 = vst [vmem:[#allocation17_spill] sm:$0xff] %v8743_v43  ;;  %18636 = vst [vmem:[#allocation18_spill] sm:$0xff] %v8745_v27  ;;  %v8489_v43 = vmov 839922192   ;;  %v8490_v27 = vmov 1985246804  }
 0x104   : > { %1183 = vbcast.lane.c.b16.xlu1 %v1173_v5, 288  ;;  %1179 = vbcast.lane.c.b16.xlu0 %v1173_v5, 272  ;;  %v1660_v10 = vunpack.c.l.s4 %v8489_v43  ;;  %v1667_v26 = vunpack.c.l.s4 %v8490_v27  ;;  %v1223_v43 = vrot.slane %v8595_v9, %v8741_v34 }
 0x106   : > { %v8749_v49 = vpop.permute.xlu1 %935  ;;  %v8751_v46 = vpop.permute.xlu0 %928  ;;  %v1661_v6 = vunpack.c.0.s8 %v1660_v10 }
 0x107   : > { %18637 = vst [vmem:[#allocation19_spill] sm:$0xff] %v8749_v49  ;;  %18638 = vst [vmem:[#allocation20_spill] sm:$0xff] %v8751_v46  ;;  %v1668_v46 = vunpack.c.0.s8 %v1667_v26 }
 0x108   : > { %1194 = vbcast.lane.c.b16.xlu1 %v1188_v58, 272  ;;  %1190 = vbcast.lane.c.b16.xlu0 %v1188_v58, 256  ;;  %v8769_v27 = vsub.s32 %v1661_v6, %v8586_v2 }
 0x10a   : > { %v8753_v1 = vpop.permute.xlu1 %943  ;;  %v8755_v23 = vpop.permute.xlu0 %939 }
 0x10b   : > { %18639 = vst [vmem:[#allocation21_spill] sm:$0xff] %v8753_v1  ;;  %18640 = vst [vmem:[#allocation22_spill] sm:$0xff] %v8755_v23  ;;  %v1258_v1 = vrot.slane %v8598_v12, %v8741_v34 }
 0x10c   : > { %1202 = vbcast.lane.c.b16.xlu1 %v1188_v58, 304  ;;  %1198 = vbcast.lane.c.b16.xlu0 %v1188_v58, 288 }
 0x10e   : > { %v8757_v5 = vpop.permute.xlu1 %951  ;;  %v8759_v25 = vpop.permute.xlu0 %947 }
 0x10f   : > { %18641 = vst [vmem:[#allocation23_spill] sm:$0xff] %v8757_v5  ;;  %18642 = vst [vmem:[#allocation24_spill] sm:$0xff] %v8759_v25  ;;  %v8772_v25 = vsub.s32 %v1668_v46, %v8586_v2  ;;  %v18645_v5 = vmov 0  }
 0x110   : > { %1210 = vbcast.lane.c.b16.xlu1 %v1188_v58, 336  ;;  %1206 = vbcast.lane.c.b16.xlu0 %v1188_v58, 320  ;;  %v1507_v10 = vsel %vm1355_vm0, 65537, %v18645_v5  ;;  %v1508_v2 = vsel %vm1356_vm1, 65537, %v18645_v5  ;;  %v8865_v22 = vsel %vm1361_vm13, 65537, %v18645_v5  ;;  %vm1369_vm13 = vcmp.ne.bf16.partialorder %v8647_v45, 0 }
 0x111   : > { %v1665_v29 = vrot.slane %v1507_v10, %v8769_v27  ;;  %v1672_v9 = vrot.slane %v1507_v10, %v8772_v25  ;;  %v1679_v31 = vrot.slane %v1508_v2, %v8769_v27  ;;  %v1509_v10 = vsel %vm1357_vm2, 65537, %v18645_v5 }
 0x112   : > { %v8761_v49 = vpop.permute.xlu1 %959  ;;  %v8763_v24 = vpop.permute.xlu0 %955  ;;  %v1693_v30 = vrot.slane %v1509_v10, %v8769_v27  ;;  %vm1364_vm2 = vcmp.ne.bf16.partialorder %v8632_v37, 0 }
 0x113   : > { %18643 = vst [vmem:[#allocation25_spill] sm:$0xff] %v8761_v49  ;;  %18644 = vst [vmem:[#allocation26_spill] sm:$0xff] %v8763_v24  ;;  %vm3787_vm3 = vcmp.ne.s16.totalorder %v1665_v29, 0  ;;  %vm3788_vm4 = vcmp.ne.s16.totalorder %v1672_v9, 0  ;;  %v1686_v29 = vrot.slane %v1508_v2, %v8772_v25  ;;  %vm3789_vm6 = vcmp.ne.s16.totalorder %v1679_v31, 0 }
 0x114   : > { %1218 = vbcast.lane.c.b16.xlu1 %v1188_v58, 368  ;;  %1214 = vbcast.lane.c.b16.xlu0 %v1188_v58, 352  ;;  %v4091_v28 = vsel %vm3787_vm3, 65537, %v18645_v5  ;;  %v4093_v31 = vsel %vm3789_vm6, 65537, %v18645_v5  ;;  %vm8815_vm9 = vcmp.ne.s16.totalorder %v1693_v30, 0  ;;  %v8857_v30 = vsel %vm1360_vm10, 65537, %v18645_v5 }
 0x115   : > { %v4395_v24 = vunpack.c.l.b16 %v4091_v28  ;;  %vm8809_vm7 = vcmp.ne.s16.totalorder %v1686_v29, 0  ;;  %v1511_v28 = vsel %vm1359_vm8, 65537, %v18645_v5  ;;  %v4397_v29 = vunpack.c.l.b16 %v4093_v31 }
 0x116   : > { %v8775_v26 = vpop.permute.xlu1 %970  ;;  %v8777_v49 = vpop.permute.xlu0 %963  ;;  %v4094_v36 = vsel %vm8809_vm7, 65537, %v18645_v5  ;;  %v1721_v31 = vrot.slane %v1511_v28, %v8769_v27  ;;  %vm1363_vm3 = vcmp.ne.bf16.partialorder %v8634_v38, 0  ;;  %v1742_v33 = vrot.slane %v8857_v30, %v8772_v25 }
 0x117   : > { %18646 = vst [vmem:[#allocation27_spill] sm:$0xff] %v8775_v26  ;;  %18647 = vst [vmem:[#allocation28_spill] sm:$0xff] %v8777_v49  ;;  %vm8834_vm15 = vcmp.ne.s32.totalorder %v4395_v24, 0  ;;  %vm1365_vm6 = vcmp.ne.bf16.partialorder %v8638_v40, 0  ;;  %vm1368_vm10 = vcmp.ne.bf16.partialorder %v8640_v41, 0 }
 0x118   : > { %1229 = vbcast.lane.c.b16.xlu1 %v1223_v43, 272  ;;  %1225 = vbcast.lane.c.b16.xlu0 %v1223_v43, 256  ;;  %v8880_v35 = vsel %vm8834_vm15, 1, %v18645_v5  ;;  %vm8916_vm7 = vcmp.ne.s16.totalorder %v1721_v31, 0 }
 0x11a   : > { %v8782_v58 = vpop.permute.xlu1 %978  ;;  %v8784_v6 = vpop.permute.xlu0 %974 }
 0x11b   : > { %18648 = vst [vmem:[#allocation29_spill] sm:$0xff] %v8782_v58  ;;  %18649 = vst [vmem:[#allocation30_spill] sm:$0xff] %v8784_v6  ;;  %v4092_v6 = vsel %vm3788_vm4, 65537, %v18645_v5  ;;  %v1510_v58 = vsel %vm1358_vm5, 65537, %v18645_v5  ;;  %vm4701_vm4 = vcmp.ne.s32.totalorder %v4397_v29, 0  ;;  %vm1366_vm5 = vcmp.ne.bf16.partialorder %v8636_v39, 0 }
 0x11c   : > { %1237 = vbcast.lane.c.b16.xlu1 %v1223_v43, 304  ;;  %1233 = vbcast.lane.c.b16.xlu0 %v1223_v43, 288  ;;  %v4396_v26 = vunpack.c.l.b16 %v4092_v6  ;;  %v1707_v23 = vrot.slane %v1510_v58, %v8769_v27  ;;  %v1714_v2 = vrot.slane %v1510_v58, %v8772_v25  ;;  %v8928_v6 = vsel %vm4701_vm4, 1, %v18645_v5 }
 0x11d   : > { %v8939_v31 = vsel %vm1366_vm5, 65537, %v18645_v5  ;;  %vm1374_vm4 = vcmp.ne.bf16.partialorder %v8658_v50, 0  ;;  %vm1373_vm5 = vcmp.ne.bf16.partialorder %v8660_v51, 0  ;;  %v18693_v50 = vrot.slane %v8865_v22, %v8769_v27 }
 0x11e   : > { %v8790_v46 = vpop.permute.xlu1 %986  ;;  %v8792_v49 = vpop.permute.xlu0 %982  ;;  %vm8830_vm14 = vcmp.ne.s32.totalorder %v4396_v26, 0  ;;  %vm8846_vm0 = vcmp.ne.s16.totalorder %v1707_v23, 0  ;;  %vm8850_vm1 = vcmp.ne.s16.totalorder %v1714_v2, 0 }
 0x11f   : > { %18650 = vst [vmem:[#allocation31_spill] sm:$0xff] %v8790_v46  ;;  %18651 = vst [vmem:[#allocation32_spill] sm:$0xff] %v8792_v49  ;;  %v1700_v49 = vrot.slane %v1509_v10, %v8772_v25  ;;  %v8875_v32 = vsel %vm8830_vm14, 1, %v18645_v5  ;;  %v4097_v38 = vsel %vm8846_vm0, 65537, %v18645_v5 }
 0x120   : > { %1245 = vbcast.lane.c.b16.xlu1 %v1223_v43, 336  ;;  %1241 = vbcast.lane.c.b16.xlu0 %v1223_v43, 320 }
 0x121   : > { %vm8825_vm12 = vcmp.ne.s16.totalorder %v1700_v49, 0  ;;  %v8841_v49 = vrot.slane %v8601_v15, %v8741_v34  ;;  %v8862_v15 = vsel %vm1362_vm11, 65537, %v18645_v5  ;;  %vm1367_vm11 = vcmp.ne.bf16.partialorder %v8642_v42, 0 }
 0x122   : > { %v8800_v9 = vpop.permute.xlu1 %994  ;;  %v8802_v46 = vpop.permute.xlu0 %990  ;;  %v4096_v37 = vsel %vm8825_vm12, 65537, %v18645_v5  ;;  %vm1370_vm12 = vcmp.ne.bf16.partialorder %v8645_v44, 0 }
 0x123   : > { %18652 = vst [vmem:[#allocation33_spill] sm:$0xff] %v8802_v46 }
 0x124   : > { %1253 = vbcast.lane.c.b16.xlu1 %v1223_v43, 368  ;;  %1249 = vbcast.lane.c.b16.xlu0 %v1223_v43, 352 }
 0x126   : > { %v8821_v43 = vpop.permute.xlu1 %1005  ;;  %v8823_v12 = vpop.permute.xlu0 %998 }
 0x127   : > { %18657 = vst [vmem:[#allocation34_spill] sm:$0xff] %v8821_v43  ;;  %18658 = vst [vmem:[#allocation35_spill] sm:$0xff] %v8823_v12  ;;  %v1728_v12 = vrot.slane %v1511_v28, %v8772_v25  ;;  %v4398_v43 = vunpack.c.l.b16 %v4094_v36  ;;  %v8899_v28 = vsel %vm1364_vm2, 65537, %v18645_v5  ;;  %v8903_v36 = vsel %vm1363_vm3, 65537, %v18645_v5 }
 0x128   : > { %1264 = vbcast.lane.c.b16.xlu1 %v1258_v1, 272  ;;  %1260 = vbcast.lane.c.b16.xlu0 %v1258_v1, 256  ;;  %vm1371_vm2 = vcmp.ne.bf16.partialorder %v8654_v48, 0  ;;  %vm9020_vm3 = vcmp.ne.s16.totalorder %v1742_v33, 0  ;;  %v18720_v24 = vrot.slane %v8903_v36, %v8769_v27 }
 0x129   : > { %vm8920_vm8 = vcmp.ne.s16.totalorder %v1728_v12, 0  ;;  %v8971_v12 = vsel %vm1367_vm11, 65537, %v18645_v5  ;;  %v9053_v41 = vsel %vm1371_vm2, 65537, %v18645_v5  ;;  %v4102_v45 = vsel %vm9020_vm3, 65537, %v18645_v5 }
 0x12a   : > { %v8868_v23 = vpop.permute.xlu1 %1013  ;;  %v8870_v2 = vpop.permute.xlu0 %1009  ;;  %vm1381_vm3 = vcmp.ne.bf16.partialorder %v8678_v60, 0 }
 0x12b   : > { %18669 = vst [vmem:[#allocation36_spill] sm:$0xff] %v8868_v23  ;;  %18670 = vst [vmem:[#allocation37_spill] sm:$0xff] %v8870_v2  ;;  %v1735_v2 = vrot.slane %v8857_v30, %v8769_v27  ;;  %v4095_v30 = vsel %vm8815_vm9, 65537, %v18645_v5  ;;  %vm8930_vm9 = vcmp.ne.s32.totalorder %v4398_v43, 0  ;;  %v8949_v43 = vsel %vm1365_vm6, 65537, %v18645_v5 }
 0x12c   : > { %1275 = vbcast.lane.c.b16.xlu1 %v8841_v49, 256  ;;  %1268 = vbcast.lane.c.b16.xlu0 %v1258_v1, 288  ;;  %v4399_v58 = vunpack.c.l.b16 %v4095_v30  ;;  %v4400_v23 = vunpack.c.l.b16 %v4096_v37  ;;  %v8964_v40 = vsel %vm8930_vm9, 1, %v18645_v5  ;;  %v4098_v37 = vsel %vm8850_vm1, 65537, %v18645_v5 }
 0x12d   : > { %vm8986_vm14 = vcmp.ne.s16.totalorder %v1735_v2, 0  ;;  %v9010_v30 = vsel %vm1369_vm13, 65537, %v18645_v5  ;;  %vm1372_vm1 = vcmp.ne.bf16.partialorder %v8652_v47, 0  ;;  %v4402_v46 = vunpack.c.l.b16 %v4098_v37 }
 0x12e   : > { %v8906_v1 = vpop.permute.xlu1 %1024  ;;  %v8908_v29 = vpop.permute.xlu0 %1020  ;;  %vm8997_vm15 = vcmp.ne.s32.totalorder %v4399_v58, 0  ;;  %vm9001_vm0 = vcmp.ne.s32.totalorder %v4400_v23, 0  ;;  %v4099_v37 = vsel %vm8916_vm7, 65537, %v18645_v5  ;;  %v4100_v47 = vsel %vm8920_vm8, 65537, %v18645_v5 }
 0x12f   : > { %18671 = vst [vmem:[#allocation38_spill] sm:$0xff] %v8906_v1  ;;  %18672 = vst [vmem:[#allocation39_spill] sm:$0xff] %v8908_v29  ;;  %v8954_v29 = vsel %vm1368_vm10, 65537, %v18645_v5  ;;  %v9035_v48 = vsel %vm8997_vm15, 1, %v18645_v5  ;;  %v9040_v33 = vsel %vm9001_vm0, 1, %v18645_v5  ;;  %vm9069_vm6 = vcmp.ne.s16.totalorder %v18693_v50, 0 }
 0x130   : > { %1283 = vbcast.lane.c.b16.xlu1 %v8841_v49, 288  ;;  %1279 = vbcast.lane.c.b16.xlu0 %v8841_v49, 272  ;;  %vm1376_vm10 = vcmp.ne.bf16.partialorder %v8662_v52, 0  ;;  %vm9080_vm7 = vcmp.ne.s32.totalorder %v4402_v46, 0  ;;  %vm1375_vm8 = vcmp.ne.bf16.partialorder %v8664_v53, 0  ;;  %v9099_v46 = vsel %vm1373_vm5, 65537, %v18645_v5 }
 0x131   : > { %v4404_v39 = vunpack.c.l.b16 %v4100_v47  ;;  %v18700_v50 = vrot.slane %v8865_v22, %v8772_v25  ;;  %v9125_v22 = vsel %vm9080_vm7, 1, %v18645_v5  ;;  %vm1377_vm13 = vcmp.ne.bf16.partialorder %v8668_v55, 0 }
 0x132   : > { %v8957_v42 = vpop.permute.xlu1 %1032  ;;  %v8959_v1 = vpop.permute.xlu0 %1028  ;;  %v4101_v47 = vsel %vm8986_vm14, 65537, %v18645_v5  ;;  %vm1380_vm0 = vcmp.ne.bf16.partialorder %v8670_v56, 0  ;;  %vm1379_vm14 = vcmp.ne.bf16.partialorder %v8672_v57, 0  ;;  %vm1382_vm5 = vcmp.ne.bf16.partialorder %v8676_v59, 0 }
 0x133   : > { %18679 = vst [vmem:[#allocation40_spill] sm:$0xff] %v8957_v42  ;;  %18680 = vst [vmem:[#allocation41_spill] sm:$0xff] %v8959_v1  ;;  %v8995_v1 = vsel %vm1370_vm12, 65537, %v18645_v5  ;;  %v4401_v42 = vunpack.c.l.b16 %v4097_v38  ;;  %vm9104_vm11 = vcmp.ne.s16.totalorder %v18700_v50, 0  ;;  %v9130_v50 = vsel %vm1375_vm8, 65537, %v18645_v5 }
 0x134   : > { %1291 = vbcast.lane.c.b16.xlu1 %v8841_v49, 320  ;;  %1287 = vbcast.lane.c.b16.xlu0 %v8841_v49, 304  ;;  %vm1378_vm12 = vcmp.ne.bf16.partialorder %v8666_v54, 0  ;;  %v18706_v54 = vrot.slane %v8862_v15, %v8769_v27  ;;  %vm9159_vm2 = vcmp.ne.s32.totalorder %v4404_v39, 0  ;;  %v9216_v39 = vsel %vm1379_vm14, 65537, %v18645_v5 }
 0x135   : > { %vm9076_vm9 = vcmp.ne.s32.totalorder %v4401_v42, 0  ;;  %v4403_v42 = vunpack.c.l.b16 %v4099_v37  ;;  %v1343_v59 = vrot.slane %v8607_v21, %v8741_v34 }
 0x136   : > { %v9013_v44 = vpop.permute.xlu1 %1040  ;;  %v9015_v58 = vpop.permute.xlu0 %1036  ;;  %v9120_v37 = vsel %vm9076_vm9, 1, %v18645_v5  ;;  %vm9148_vm15 = vcmp.ne.s16.totalorder %v18706_v54, 0  ;;  %v18715_v54 = vrot.slane %v8862_v15, %v8772_v25  ;;  %v9204_v15 = vsel %vm9159_vm2, 1, %v18645_v5 }
 0x137   : > { %18687 = vst [vmem:[#allocation42_spill] sm:$0xff] %v9013_v44  ;;  %18688 = vst [vmem:[#allocation43_spill] sm:$0xff] %v9015_v58  ;;  %v9030_v58 = vrot.slane %v8604_v18, %v8741_v34  ;;  %v9049_v18 = vsel %vm1372_vm1, 65537, %v18645_v5  ;;  %vm9155_vm1 = vcmp.ne.s32.totalorder %v4403_v42, 0  ;;  %vm1384_vm9 = vcmp.ne.bf16.partialorder %v8680_v61, 0 }
 0x138   : > { %1299 = vbcast.lane.c.b16.xlu1 %v8841_v49, 352  ;;  %1295 = vbcast.lane.c.b16.xlu0 %v8841_v49, 336  ;;  %v9199_v57 = vsel %vm9155_vm1, 1, %v18645_v5  ;;  %v9271_v34 = vsel %vm1384_vm9, 65537, %v18645_v5  ;;  %v4105_v38 = vsel %vm9148_vm15, 65537, %v18645_v5  ;;  %vm1388_vm1 = vcmp.ne.bf16.partialorder %v8688_v3, 0 }
 0x139   : > { %18728 = vst [vmem:[#allocation53_spill] sm:$0xff] %v9271_v34  ;;  %vm1387_vm15 = vcmp.ne.bf16.partialorder %v8690_v4, 0  ;;  %v4409_v55 = vunpack.c.l.b16 %v4105_v38  ;;  %v18736_v34 = vrot.slane %v8899_v28, %v8772_v25  ;;  %v18740_v4 = vrot.slane %v8949_v43, %v8769_v27 }
 0x13a   : > { %v9056_v26 = vpop.permute.xlu1 %1048  ;;  %v9058_v2 = vpop.permute.xlu0 %1044 }
 0x13b   : > { %18691 = vst [vmem:[#allocation44_spill] sm:$0xff] %v9056_v26  ;;  %18692 = vst [vmem:[#allocation45_spill] sm:$0xff] %v9058_v2  ;;  %v9089_v26 = vsel %vm1374_vm4, 65537, %v18645_v5  ;;  %v9171_v2 = vsel %vm1377_vm13, 65537, %v18645_v5  ;;  %vm9186_vm4 = vcmp.ne.s16.totalorder %v18715_v54, 0  ;;  %v9237_v54 = vsel %vm1382_vm5, 65537, %v18645_v5 }
 0x13c   : > { %1310 = vbcast.lane.c.b16.xlu1 %v9030_v58, 256  ;;  %1303 = vbcast.lane.c.b16.xlu0 %v8841_v49, 368  ;;  %v9111_v49 = vsel %vm1376_vm10, 65537, %v18645_v5  ;;  %vm9228_vm10 = vcmp.ne.s16.totalorder %v18720_v24, 0  ;;  %v9247_v24 = vsel %vm1381_vm3, 65537, %v18645_v5  ;;  %vm1385_vm13 = vcmp.ne.bf16.partialorder %v8686_v0, 0 }
 0x13d   : > { %18703 = vst [vmem:[#allocation46_spill] sm:$0xff] %v9111_v49  ;;  %v4406_v49 = vunpack.c.l.b16 %v4102_v45  ;;  %v4104_v45 = vsel %vm9104_vm11, 65537, %v18645_v5  ;;  %vm9341_vm14 = vcmp.ne.s16.totalorder %v18736_v34, 0  ;;  %vm1390_vm5 = vcmp.ne.bf16.partialorder %v8694_v7, 0 }
 0x13e   : > { %v9113_v52 = vpop.permute.xlu1 %1059  ;;  %v9115_v51 = vpop.permute.xlu0 %1055  ;;  %v9361_v34 = vsel %vm1387_vm15, 65537, %v18645_v5  ;;  %vm1389_vm3 = vcmp.ne.bf16.partialorder %v8696_v8, 0  ;;  %v4107_v44 = vsel %vm9228_vm10, 65537, %v18645_v5  ;;  %vm9378_vm9 = vcmp.ne.s16.totalorder %v18740_v4, 0 }
 0x13f   : > { %18704 = vst [vmem:[#allocation47_spill] sm:$0xff] %v9113_v52  ;;  %18705 = vst [vmem:[#allocation48_spill] sm:$0xff] %v9115_v51  ;;  %v9168_v51 = vsel %vm1378_vm12, 65537, %v18645_v5  ;;  %v4405_v52 = vunpack.c.l.b16 %v4101_v47  ;;  %v4103_v47 = vsel %vm9069_vm6, 65537, %v18645_v5  ;;  %vm1383_vm6 = vcmp.ne.bf16.partialorder %v8682_v62, 0 }
 0x140   : > { %1318 = vbcast.lane.c.b16.xlu1 %v9030_v58, 288  ;;  %1314 = vbcast.lane.c.b16.xlu0 %v9030_v58, 272  ;;  %v4407_v10 = vunpack.c.l.b16 %v4103_v47  ;;  %vm4710_vm11 = vcmp.ne.s32.totalorder %v4406_v49, 0  ;;  %v9289_v21 = vsel %vm1383_vm6, 65537, %v18645_v5  ;;  %vm1386_vm12 = vcmp.ne.bf16.partialorder %v8684_v63, 0 }
 0x141   : > { %vm9240_vm7 = vcmp.ne.s32.totalorder %v4405_v52, 0  ;;  %v4408_v49 = vunpack.c.l.b16 %v4104_v45  ;;  %v18729_v62 = vrot.slane %v8899_v28, %v8769_v27  ;;  %v9310_v52 = vsel %vm4710_vm11, 1, %v18645_v5 }
 0x142   : > { %v9173_v56 = vpop.permute.xlu1 %1067  ;;  %v9175_v42 = vpop.permute.xlu0 %1063  ;;  %v9280_v23 = vsel %vm9240_vm7, 1, %v18645_v5  ;;  %vm9312_vm2 = vcmp.ne.s32.totalorder %v4407_v10, 0  ;;  %v4106_v45 = vsel %vm9186_vm4, 65537, %v18645_v5  ;;  %v9387_v38 = vsel %vm1390_vm5, 65537, %v18645_v5 }
 0x143   : > { %18713 = vst [vmem:[#allocation49_spill] sm:$0xff] %v9173_v56  ;;  %18714 = vst [vmem:[#allocation50_spill] sm:$0xff] %v9175_v42  ;;  %v9191_v56 = vsel %vm1380_vm0, 65537, %v18645_v5  ;;  %vm9302_vm0 = vcmp.ne.s16.totalorder %v18729_v62, 0  ;;  %v9321_v62 = vsel %vm1386_vm12, 65537, %v18645_v5  ;;  %v9352_v0 = vsel %vm9312_vm2, 1, %v18645_v5 }
 0x144   : > { %1326 = vbcast.lane.c.b16.xlu1 %v9030_v58, 320  ;;  %1322 = vbcast.lane.c.b16.xlu0 %v9030_v58, 304  ;;  %vm4712_vm4 = vcmp.ne.s32.totalorder %v4408_v49, 0  ;;  %v4410_v28 = vunpack.c.l.b16 %v4106_v45  ;;  %18743 = vst [vmem:[#allocation57_spill] sm:$0xff] %v9387_v38  ;;  %vm9392_vm7 = vcmp.ne.s32.totalorder %v4409_v55, 0  ;;  %vm1392_vm10 = vcmp.ne.bf16.partialorder %v8700_v11, 0 }
 0x145   : > { %v9390_v45 = vsel %vm4712_vm4, 1, %v18645_v5  ;;  %vm1391_vm6 = vcmp.ne.bf16.partialorder %v8702_v13, 0  ;;  %v4411_v55 = vunpack.c.l.b16 %v4107_v44  ;;  %v18746_v10 = vrot.slane %v8949_v43, %v8772_v25 }
 0x146   : > { %v9218_v53 = vpop.permute.xlu1 %1075  ;;  %v9220_v42 = vpop.permute.xlu0 %1071  ;;  %vm1394_vm12 = vcmp.ne.bf16.partialorder %v8704_v14, 0  ;;  %v9438_v44 = vsel %vm1392_vm10, 65537, %v18645_v5  ;;  %v9444_v60 = vsel %vm1391_vm6, 65537, %v18645_v5  ;;  %v4109_v43 = vsel %vm9302_vm0, 65537, %v18645_v5 }
 0x147   : > { %18718 = vst [vmem:[#allocation51_spill] sm:$0xff] %v9218_v53  ;;  %18719 = vst [vmem:[#allocation52_spill] sm:$0xff] %v9220_v42  ;;  %v18725_v42 = vrot.slane %v8903_v36, %v8772_v25  ;;  %vm9415_vm11 = vcmp.ne.s16.totalorder %v18746_v10, 0  ;;  %v9429_v53 = vsel %vm9392_vm7, 1, %v18645_v5  ;;  %v18751_v11 = vrot.slane %v8939_v31, %v8769_v27 }
 0x148   : > { %1334 = vbcast.lane.c.b16.xlu1 %v9030_v58, 352  ;;  %1330 = vbcast.lane.c.b16.xlu0 %v9030_v58, 336  ;;  %18749 = vst [vmem:[#allocation58_spill] sm:$0xff] %v9438_v44  ;;  %18750 = vst [vmem:[#allocation59_spill] sm:$0xff] %v9444_v60  ;;  %vm1396_vm2 = vcmp.ne.bf16.partialorder %v8708_v17, 0  ;;  %vm9467_vm15 = vcmp.ne.s32.totalorder %v4411_v55, 0  ;;  %v4413_v7 = vunpack.c.l.b16 %v4109_v43  ;;  %v18758_v36 = vrot.slane %v8939_v31, %v8772_v25 }
 0x149   : > { %vm9264_vm8 = vcmp.ne.s16.totalorder %v18725_v42, 0  ;;  %v9333_v42 = vsel %vm1385_vm13, 65537, %v18645_v5  ;;  %vm1393_vm13 = vcmp.ne.bf16.partialorder %v8706_v16, 0  ;;  %vm1395_vm0 = vcmp.ne.bf16.partialorder %v8710_v19, 0  ;;  %v18802_v44 = vld [vmem:[#allocation15_spill] sm:$0xff]  ;;  %v18813_v43 = vld [vmem:[#allocation18_spill] sm:$0xff] }
 0x14a   : > { %v9273_v61 = vpop.permute.xlu1 %1083  ;;  %v9275_v47 = vpop.permute.xlu0 %1079  ;;  %v4108_v4 = vsel %vm9264_vm8, 65537, %v18645_v5  ;;  %vm4714_vm8 = vcmp.ne.s32.totalorder %v4410_v28, 0  ;;  %vm9493_vm5 = vcmp.ne.s16.totalorder %v18758_v36, 0  ;;  %v9500_v55 = vsel %vm1396_vm2, 65537, %v18645_v5 }
 0x14b   : > { %v4412_v28 = vunpack.c.l.b16 %v4108_v4  ;;  %v4110_v4 = vsel %vm9341_vm14, 65537, %v18645_v5  ;;  %18761 = vst [vmem:[#allocation62_spill] sm:$0xff] %v9500_v55  ;;  %v9516_v36 = vsel %vm1395_vm0, 65537, %v18645_v5  ;;  %vm1398_vm4 = vcmp.ne.bf16.partialorder %v8712_v20, 0 }
 0x14c   : > { %1345 = vbcast.lane.c.b16.xlu1 %v1343_v59, 256  ;;  %1338 = vbcast.lane.c.b16.xlu0 %v9030_v58, 368  ;;  %18762 = vst [vmem:[#allocation63_spill] sm:$0xff] %v9516_v36  ;;  %v4414_v31 = vunpack.c.l.b16 %v4110_v4  ;;  %v4111_v38 = vsel %vm9378_vm9, 65537, %v18645_v5  ;;  %v18764_v19 = vrot.slane %v8971_v12, %v8769_v27  ;;  %vm9542_vm6 = vcmp.ne.s32.totalorder %v4413_v7, 0  ;;  %v18777_v7 = vld [vmem:[#allocation9_spill] sm:$0xff] }
 0x14d   : > { %vm4716_vm14 = vcmp.ne.s32.totalorder %v4412_v28, 0  ;;  %v4415_v8 = vunpack.c.l.b16 %v4111_v38  ;;  %v4112_v20 = vsel %vm9415_vm11, 65537, %v18645_v5  ;;  %v18779_v36 = vld [vmem:[#allocation10_spill] sm:$0xff]  ;;  %v18787_v4 = vld [vmem:[#allocation11_spill] sm:$0xff] }
 0x14e   : > { %v9324_v63 = vpop.permute.xlu1 %1094  ;;  %v9326_v3 = vpop.permute.xlu0 %1090  ;;  %vm9532_vm7 = vcmp.ne.s16.totalorder %v18764_v19, 0  ;;  %v9540_v10 = vsel %vm4716_vm14, 1, %v18645_v5  ;;  %v18773_v19 = vrot.slane %v8971_v12, %v8772_v25  ;;  %vm4718_vm11 = vcmp.ne.s32.totalorder %v4414_v31, 0 }
 0x14f   : > { %18734 = vst [vmem:[#allocation54_spill] sm:$0xff] %v9324_v63  ;;  %18735 = vst [vmem:[#allocation55_spill] sm:$0xff] %v9326_v3  ;;  %v9346_v3 = vsel %vm1388_vm1, 65537, %v18645_v5  ;;  %vm9454_vm1 = vcmp.ne.s16.totalorder %v18751_v11, 0  ;;  %v9476_v11 = vsel %vm1393_vm13, 65537, %v18645_v5  ;;  %v9507_v63 = vsel %vm9467_vm15, 1, %v18645_v5 }
 0x150   : > { %18739 = vst [vmem:[#allocation56_spill] sm:$0xff] %v9346_v3  ;;  %1353 = vbcast.lane.c.b16.xlu1 %v1343_v59, 288  ;;  %1349 = vbcast.lane.c.b16.xlu0 %v1343_v59, 272  ;;  %v9401_v59 = vsel %vm1389_vm3, 65537, %v18645_v5  ;;  %18757 = vst [vmem:[#allocation61_spill] sm:$0xff] %v9476_v11  ;;  %v18771_v11 = vld [vmem:[#allocation8_spill] sm:$0xff]  ;;  %v4416_v31 = vunpack.c.l.b16 %v4112_v20 }
 0x151   : > { %vm1399_vm9 = vcmp.ne.bf16.partialorder %v18771_v11, 0  ;;  %v9584_v3 = vsel %vm9542_vm6, 1, %v18645_v5  ;;  %vm1401_vm13 = vcmp.ne.bf16.partialorder %v18779_v36, 0  ;;  %v4113_v38 = vsel %vm9454_vm1, 65537, %v18645_v5 }
 0x152   : > { %v9368_v49 = vpop.permute.xlu1 %1105  ;;  %v9370_v58 = vpop.permute.xlu0 %1098  ;;  %v18780_v11 = vrot.slane %v8954_v29, %v8769_v27  ;;  %vm9622_vm15 = vcmp.ne.s32.totalorder %v4415_v8, 0  ;;  %v9631_v12 = vsel %vm1401_vm13, 65537, %v18645_v5  ;;  %vm1404_vm1 = vcmp.ne.bf16.partialorder %v18787_v4, 0 }
 0x153   : > { %18786 = vst [vmem:[#allocation64_spill] sm:$0xff] %v9631_v12  ;;  %v4114_v20 = vsel %vm9493_vm5, 65537, %v18645_v5  ;;  %vm4720_vm5 = vcmp.ne.s32.totalorder %v4416_v31, 0  ;;  %v18798_v4 = vrot.slane %v9010_v30, %v8769_v27  ;;  %vm1408_vm6 = vcmp.ne.bf16.partialorder %v18802_v44, 0  ;;  %v18812_v44 = vld [vmem:[#allocation17_spill] sm:$0xff] }
 0x154   : > { %5311 = vperm.xlu1 %8402, %v8875_v32   ;;  %5308 = vperm.xlu0 %8401, %v8880_v35   ;;  %v9461_v32 = vsel %vm1394_vm12, 65537, %v18645_v5  ;;  %vm9569_vm12 = vcmp.ne.s16.totalorder %v18773_v19, 0  ;;  %v9593_v19 = vsel %vm1399_vm9, 65537, %v18645_v5  ;;  %vm9608_vm2 = vcmp.ne.s16.totalorder %v18780_v11, 0 }
 0x155   : > { %18754 = vst [vmem:[#allocation60_spill] sm:$0xff] %v9461_v32  ;;  %v9551_v32 = vsel %vm1398_vm4, 65537, %v18645_v5  ;;  %18778 = vst [vmem:[#allocation9_spill] sm:$0xff] %v9593_v19  ;;  %v18791_v11 = vrot.slane %v8954_v29, %v8772_v25  ;;  %v4418_v29 = vunpack.c.l.b16 %v4114_v20  ;;  %v9697_v20 = vsel %vm4720_vm5, 1, %v18645_v5 }
 0x156   : > { %v9422_v35 = vpop.permute.xlu1 %1113  ;;  %v9424_v13 = vpop.permute.xlu0 %1109  ;;  %v4116_v8 = vsel %vm9569_vm12, 65537, %v18645_v5  ;;  %vm1409_vm13 = vcmp.ne.bf16.partialorder %v18813_v43, 0 }
 0x157   : > { %vm9647_vm14 = vcmp.ne.s16.totalorder %v18791_v11, 0  ;;  %vm4722_vm12 = vcmp.ne.s32.totalorder %v4418_v29, 0  ;;  %v4420_v29 = vunpack.c.l.b16 %v4116_v8 }
 0x158   : > { %5314 = vperm.xlu1 %8402, %v8928_v6   ;;  %5317 = vperm.xlu0 %8401, %v8964_v40   ;;  %v9465_v6 = vsel %vm4714_vm8, 1, %v18645_v5  ;;  %vm1402_vm8 = vcmp.ne.bf16.partialorder %v18777_v7, 0  ;;  %v4118_v8 = vsel %vm9647_vm14, 65537, %v18645_v5 }
 0x159   : > { %vm4724_vm14 = vcmp.ne.s32.totalorder %v4420_v29, 0 }
 0x15a   : > { %v9479_v14 = vpop.permute.xlu1 %1121  ;;  %v9481_v17 = vpop.permute.xlu0 %1117 }
 0x15c   : > { %5320 = vperm.xlu1 %8402, %v9035_v48   ;;  %5323 = vperm.xlu0 %8401, %v9040_v33   ;;  %v18763_v33 = vld [vmem:[#allocation6_spill] sm:$0xff]  ;;  %v18767_v48 = vld [vmem:[#allocation7_spill] sm:$0xff] }
 0x15d   : > { %vm1397_vm3 = vcmp.ne.bf16.partialorder %v18763_v33, 0  ;;  %vm1400_vm10 = vcmp.ne.bf16.partialorder %v18767_v48, 0  ;;  %18770 = vst [vmem:[#allocation6_spill] sm:$0xff] %v9551_v32  ;;  %v18790_v32 = vld [vmem:[#allocation12_spill] sm:$0xff] }
 0x15e   : > { %v9522_v40 = vpop.permute.xlu1 %1129  ;;  %v9524_v28 = vpop.permute.xlu0 %1125  ;;  %v9561_v48 = vsel %vm1397_vm3, 65537, %v18645_v5  ;;  %vm1403_vm0 = vcmp.ne.bf16.partialorder %v18790_v32, 0  ;;  %v9659_v32 = vsel %vm9622_vm15, 1, %v18645_v5 }
 0x15f   : > { %18772 = vst [vmem:[#allocation7_spill] sm:$0xff] %v9561_v48  ;;  %v4417_v48 = vunpack.c.l.b16 %v4113_v38  ;;  %v9668_v38 = vsel %vm1404_vm1, 65537, %v18645_v5  ;;  %v9674_v16 = vsel %vm1403_vm0, 65537, %v18645_v5 }
 0x160   : > { %5326 = vperm.xlu1 %8402, %v9120_v37   ;;  %5329 = vperm.xlu0 %8401, %v9125_v22   ;;  %v9574_v22 = vsel %vm1400_vm10, 65537, %v18645_v5  ;;  %18795 = vst [vmem:[#allocation12_spill] sm:$0xff] %v9668_v38  ;;  %vm9686_vm10 = vcmp.ne.s16.totalorder %v18798_v4, 0  ;;  %v18807_v4 = vrot.slane %v9010_v30, %v8772_v25  ;;  %v4117_v30 = vsel %vm9608_vm2, 65537, %v18645_v5 }
 0x161   : > { %18776 = vst [vmem:[#allocation8_spill] sm:$0xff] %v9574_v22  ;;  %vm9699_vm9 = vcmp.ne.s32.totalorder %v4417_v48, 0  ;;  %v4421_v36 = vunpack.c.l.b16 %v4117_v30 }
 0x162   : > { %v9577_v33 = vpop.permute.xlu1 %1140  ;;  %v9579_v55 = vpop.permute.xlu0 %1133  ;;  %v9739_v37 = vsel %vm9699_vm9, 1, %v18645_v5 }
 0x163   : > { %vm9854_vm9 = vcmp.ne.s32.totalorder %v4421_v36, 0 }
 0x164   : > { %5332 = vperm.xlu1 %8402, %v9199_v57   ;;  %5335 = vperm.xlu0 %8401, %v9204_v15   ;;  %v9617_v57 = vsel %vm1402_vm8, 65537, %v18645_v5  ;;  %v9620_v15 = vsel %vm4718_vm11, 1, %v18645_v5  ;;  %vm9723_vm8 = vcmp.ne.s16.totalorder %v18807_v4, 0  ;;  %vm1410_vm11 = vcmp.ne.bf16.partialorder %v18812_v44, 0 }
 0x165   : > { %18783 = vst [vmem:[#allocation10_spill] sm:$0xff] %v9617_v57  ;;  %v9891_v38 = vsel %vm9854_vm9, 1, %v18645_v5  ;;  %v18858_v4 = vrot.slane %v9049_v18, %v8772_v25 }
 0x166   : > { %v9634_v7 = vpop.permute.xlu1 %1148  ;;  %v9636_v60 = vpop.permute.xlu0 %1144 }
 0x167   : > { %18788 = vst [vmem:[#allocation11_spill] sm:$0xff] %v9634_v7  ;;  %18789 = vst [vmem:[#allocation65_spill] sm:$0xff] %v9636_v60  ;;  %v18794_v7 = vld [vmem:[#allocation13_spill] sm:$0xff]  ;;  %v4115_v60 = vsel %vm9532_vm7, 65537, %v18645_v5 }
 0x168   : > { %vm1406_vm4 = vcmp.ne.bf16.partialorder %v18794_v7, 0  ;;  %5338 = vperm.xlu1 %8402, %v9280_v23   ;;  %5341 = vperm.xlu0 %8401, %v9310_v52   ;;  %v18796_v23 = vld [vmem:[#allocation14_spill] sm:$0xff]  ;;  %18797 = vst [vmem:[#allocation13_spill] sm:$0xff] %v9674_v16  ;;  %v18806_v7 = vld [vmem:[#allocation16_spill] sm:$0xff]  ;;  %v4419_v12 = vunpack.c.l.b16 %v4115_v60  ;;  %v18817_v16 = vld [vmem:[#allocation19_spill] sm:$0xff] }
 0x169   : > { %vm1405_vm3 = vcmp.ne.bf16.partialorder %v18796_v23, 0  ;;  %v9693_v52 = vsel %vm1406_vm4, 65537, %v18645_v5  ;;  %vm1407_vm7 = vcmp.ne.bf16.partialorder %v18806_v7, 0  ;;  %v18814_v7 = vrot.slane %v8995_v1, %v8769_v27 }
 0x16a   : > { %v9676_v31 = vpop.permute.xlu1 %1156  ;;  %v9678_v11 = vpop.permute.xlu0 %1152  ;;  %18801 = vst [vmem:[#allocation14_spill] sm:$0xff] %v9693_v52  ;;  %v9708_v57 = vsel %vm1405_vm3, 65537, %v18645_v5  ;;  %vm1412_vm1 = vcmp.ne.bf16.partialorder %v18817_v16, 0  ;;  %vm9772_vm0 = vcmp.ne.s32.totalorder %v4419_v12, 0  ;;  %v18821_v52 = vld [vmem:[#allocation20_spill] sm:$0xff]  ;;  %v18828_v12 = vld [vmem:[#allocation21_spill] sm:$0xff] }
 0x16b   : > { %18805 = vst [vmem:[#allocation15_spill] sm:$0xff] %v9708_v57  ;;  %vm9762_vm15 = vcmp.ne.s16.totalorder %v18814_v7, 0  ;;  %v9781_v7 = vsel %vm1410_vm11, 65537, %v18645_v5  ;;  %vm1411_vm2 = vcmp.ne.bf16.partialorder %v18821_v52, 0  ;;  %v9793_v57 = vsel %vm1409_vm13, 65537, %v18645_v5 }
 0x16c   : > { %5344 = vperm.xlu1 %8402, %v9352_v0   ;;  %5347 = vperm.xlu0 %8401, %v9390_v45   ;;  %v9730_v45 = vsel %vm1408_vm6, 65537, %v18645_v5  ;;  %v9748_v0 = vsel %vm1407_vm7, 65537, %v18645_v5  ;;  %18820 = vst [vmem:[#allocation17_spill] sm:$0xff] %v9781_v7  ;;  %18823 = vst [vmem:[#allocation19_spill] sm:$0xff] %v9793_v57  ;;  %vm1414_vm5 = vcmp.ne.bf16.partialorder %v18828_v12, 0  ;;  %v9814_v22 = vsel %vm9772_vm0, 1, %v18645_v5 }
 0x16d   : > { %18810 = vst [vmem:[#allocation16_spill] sm:$0xff] %v9730_v45  ;;  %18811 = vst [vmem:[#allocation66_spill] sm:$0xff] %v9748_v0  ;;  %v18824_v45 = vrot.slane %v8995_v1, %v8772_v25  ;;  %v9823_v30 = vsel %vm1411_vm2, 65537, %v18645_v5  ;;  %v4422_v1 = vunpack.c.l.b16 %v4118_v8  ;;  %v18831_v52 = vrot.slane %v9053_v41, %v8769_v27  ;;  %v18838_v57 = vld [vmem:[#allocation23_spill] sm:$0xff]  ;;  %v18839_v12 = vld [vmem:[#allocation24_spill] sm:$0xff] }
 0x16e   : > { %v9732_v48 = vpop.permute.xlu1 %1164  ;;  %v9734_v60 = vpop.permute.xlu0 %1160  ;;  %18829 = vst [vmem:[#allocation21_spill] sm:$0xff] %v9823_v30  ;;  %v9849_v43 = vsel %vm1414_vm5, 65537, %v18645_v5  ;;  %v9852_v8 = vsel %vm4724_vm14, 1, %v18645_v5  ;;  %vm1415_vm7 = vcmp.ne.bf16.partialorder %v18839_v12, 0  ;;  %v18840_v7 = vrot.slane %v9053_v41, %v8772_v25 }
 0x16f   : > { %vm9801_vm4 = vcmp.ne.s16.totalorder %v18824_v45, 0  ;;  %v4119_v45 = vsel %vm9686_vm10, 65537, %v18645_v5  ;;  %vm9840_vm6 = vcmp.ne.s16.totalorder %v18831_v52, 0  ;;  %vm1416_vm10 = vcmp.ne.bf16.partialorder %v18838_v57, 0 }
 0x170   : > { %5350 = vperm.xlu1 %8402, %v9429_v53   ;;  %5353 = vperm.xlu0 %8401, %v9465_v6   ;;  %v9770_v53 = vsel %vm4722_vm12, 1, %v18645_v5  ;;  %v4423_v0 = vunpack.c.l.b16 %v4119_v45  ;;  %v4120_v52 = vsel %vm9723_vm8, 65537, %v18645_v5  ;;  %vm9877_vm12 = vcmp.ne.s16.totalorder %v18840_v7, 0 }
 0x171   : > { %vm4726_vm8 = vcmp.ne.s32.totalorder %v4422_v1, 0  ;;  %v9900_v45 = vsel %vm1416_vm10, 65537, %v18645_v5  ;;  %v9906_v23 = vsel %vm1415_vm7, 65537, %v18645_v5  ;;  %v4424_v1 = vunpack.c.l.b16 %v4120_v52 }
 0x172   : > { %v9784_v44 = vpop.permute.xlu1 %1175  ;;  %v9786_v16 = vpop.permute.xlu0 %1168  ;;  %18845 = vst [vmem:[#allocation24_spill] sm:$0xff] %v9900_v45  ;;  %v4121_v41 = vsel %vm9762_vm15, 65537, %v18645_v5  ;;  %v18848_v57 = vrot.slane %v9049_v18, %v8769_v27  ;;  %vm9927_vm2 = vcmp.ne.s32.totalorder %v4423_v0, 0  ;;  %vm9953_vm5 = vcmp.ne.s16.totalorder %v18858_v4, 0 }
 0x173   : > { %18822 = vst [vmem:[#allocation18_spill] sm:$0xff] %v9786_v16  ;;  %v9806_v16 = vsel %vm1412_vm1, 65537, %v18645_v5  ;;  %v5031_v19 = vsel %vm9927_vm2, 1, %v18645_v5 }
 0x174   : > { %18827 = vst [vmem:[#allocation20_spill] sm:$0xff] %v9806_v16  ;;  %5356 = vperm.xlu1 %8402, %v9507_v63   ;;  %5359 = vperm.xlu0 %8401, %v9540_v10   ;;  %v18830_v63 = vld [vmem:[#allocation22_spill] sm:$0xff]  ;;  %vm9916_vm1 = vcmp.ne.s16.totalorder %v18848_v57, 0  ;;  %v4122_v57 = vsel %vm9801_vm4, 65537, %v18645_v5  ;;  %vm4728_vm4 = vcmp.ne.s32.totalorder %v4424_v1, 0 }
 0x175   : > { %vm1413_vm3 = vcmp.ne.bf16.partialorder %v18830_v63, 0  ;;  %18834 = vst [vmem:[#allocation22_spill] sm:$0xff] %v9849_v43  ;;  %v4426_v18 = vunpack.c.l.b16 %v4122_v57  ;;  %v4125_v16 = vsel %vm9916_vm1, 65537, %v18645_v5 }
 0x176   : > { %v9830_v29 = vpop.permute.xlu1 %1183  ;;  %v9832_v6 = vpop.permute.xlu0 %1179  ;;  %v9863_v10 = vsel %vm1413_vm3, 65537, %v18645_v5 }
 0x177   : > { %18837 = vst [vmem:[#allocation67_spill] sm:$0xff] %v9863_v10 }
 0x178   : > { %5362 = vperm.xlu1 %8402, %v9584_v3   ;;  %5365 = vperm.xlu0 %8401, %v9620_v15   ;;  %v18843_v15 = vld [vmem:[#allocation25_spill] sm:$0xff]  ;;  %v18846_v3 = vld [vmem:[#allocation26_spill] sm:$0xff] }
 0x179   : > { %vm1418_vm11 = vcmp.ne.bf16.partialorder %v18843_v15, 0  ;;  %vm1417_vm13 = vcmp.ne.bf16.partialorder %v18846_v3, 0  ;;  %18847 = vst [vmem:[#allocation25_spill] sm:$0xff] %v9906_v23  ;;  %v18856_v15 = vld [vmem:[#allocation28_spill] sm:$0xff] }
 0x17a   : > { %v9884_v36 = vpop.permute.xlu1 %1194  ;;  %v9886_v12 = vpop.permute.xlu0 %1190  ;;  %v9923_v30 = vsel %vm1418_vm11, 65537, %v18645_v5  ;;  %v9936_v7 = vsel %vm1417_vm13, 65537, %v18645_v5  ;;  %vm1419_vm15 = vcmp.ne.bf16.partialorder %v18856_v15, 0  ;;  %v18865_v15 = vrot.slane %v9099_v46, %v8769_v27  ;;  %v18872_v23 = vld [vmem:[#allocation32_spill] sm:$0xff] }
 0x17b   : > { %18844 = vst [vmem:[#allocation23_spill] sm:$0xff] %v9886_v12  ;;  %18851 = vst [vmem:[#allocation26_spill] sm:$0xff] %v9923_v30  ;;  %v4425_v12 = vunpack.c.l.b16 %v4121_v41  ;;  %v9974_v4 = vsel %vm1419_vm15, 65537, %v18645_v5  ;;  %v4123_v41 = vsel %vm9840_vm6, 65537, %v18645_v5  ;;  %v5032_v30 = vsel %vm4728_vm4, 1, %v18645_v5 }
 0x17c   : > { %5368 = vperm.xlu1 %8402, %v9659_v32   ;;  %5371 = vperm.xlu0 %8401, %v9697_v20   ;;  %v18852_v32 = vld [vmem:[#allocation27_spill] sm:$0xff]  ;;  %v5030_v20 = vsel %vm4726_vm8, 1, %v18645_v5  ;;  %18862 = vst [vmem:[#allocation69_spill] sm:$0xff] %v9974_v4  ;;  %vm9990_vm9 = vcmp.ne.s16.totalorder %v18865_v15, 0  ;;  %vm1423_vm6 = vcmp.ne.bf16.partialorder %v18872_v23, 0  ;;  %v4427_v15 = vunpack.c.l.b16 %v4123_v41 }
 0x17d   : > { %vm1420_vm0 = vcmp.ne.bf16.partialorder %v18852_v32, 0  ;;  %18855 = vst [vmem:[#allocation27_spill] sm:$0xff] %v9936_v7  ;;  %vm9998_vm7 = vcmp.ne.s32.totalorder %v4425_v12, 0  ;;  %v18873_v12 = vrot.slane %v9099_v46, %v8772_v25  ;;  %vm1426_vm8 = vcmp.ne.bf16.partialorder %v8800_v9, 0 }
 0x17e   : > { %v9939_v43 = vpop.permute.xlu1 %1202  ;;  %v9941_v32 = vpop.permute.xlu0 %1198  ;;  %v9960_v0 = vsel %vm1420_vm0, 65537, %v18645_v5  ;;  %vm4730_vm13 = vcmp.ne.s32.totalorder %v4426_v18, 0  ;;  %v10047_v63 = vsel %vm1423_vm6, 65537, %v18645_v5  ;;  %v18880_v23 = vrot.slane %v9089_v26, %v8769_v27 }
 0x17f   : > { %18857 = vst [vmem:[#allocation28_spill] sm:$0xff] %v9941_v32  ;;  %18861 = vst [vmem:[#allocation68_spill] sm:$0xff] %v9960_v0  ;;  %v18863_v32 = vld [vmem:[#allocation29_spill] sm:$0xff]  ;;  %vm10015_vm11 = vcmp.ne.s16.totalorder %v18873_v12, 0  ;;  %vm10073_vm2 = vcmp.ne.s32.totalorder %v4427_v15, 0  ;;  %v18890_v15 = vld [vmem:[#allocation34_spill] sm:$0xff]  ;;  %v18928_v41 = vrot.slane %v9171_v2, %v8772_v25 }
 0x180   : > { %5374 = vperm.xlu1 %8402, %v9739_v37   ;;  %5377 = vperm.xlu0 %8401, %v9770_v53   ;;  %vm1422_vm14 = vcmp.ne.bf16.partialorder %v18863_v32, 0  ;;  %v18864_v53 = vld [vmem:[#allocation30_spill] sm:$0xff]  ;;  %v18868_v37 = vld [vmem:[#allocation31_spill] sm:$0xff]  ;;  %18878 = vst [vmem:[#allocation32_spill] sm:$0xff] %v10047_v63  ;;  %v18879_v0 = vld [vmem:[#allocation33_spill] sm:$0xff]  ;;  %vm10061_vm0 = vcmp.ne.s16.totalorder %v18880_v23, 0 }
 0x181   : > { %vm1421_vm3 = vcmp.ne.bf16.partialorder %v18864_v53, 0  ;;  %vm1424_vm10 = vcmp.ne.bf16.partialorder %v18868_v37, 0  ;;  %v10007_v7 = vsel %vm1422_vm14, 65537, %v18645_v5  ;;  %v5033_v53 = vsel %vm9998_vm7, 1, %v18645_v5  ;;  %v18908_v63 = vld [vmem:[#allocation39_spill] sm:$0xff] }
 0x182   : > { %v9980_v52 = vpop.permute.xlu1 %1210  ;;  %v9982_v1 = vpop.permute.xlu0 %1206  ;;  %18871 = vst [vmem:[#allocation29_spill] sm:$0xff] %v10007_v7  ;;  %v10024_v32 = vsel %vm1421_vm3, 65537, %v18645_v5  ;;  %vm1428_vm15 = vcmp.ne.bf16.partialorder %v18890_v15, 0  ;;  %v18902_v15 = vld [vmem:[#allocation37_spill] sm:$0xff] }
 0x183   : > { %18876 = vst [vmem:[#allocation30_spill] sm:$0xff] %v10024_v32  ;;  %v4429_v32 = vunpack.c.l.b16 %v4125_v16  ;;  %v10117_v9 = vsel %vm1428_vm15, 65537, %v18645_v5  ;;  %vm1429_vm7 = vcmp.ne.bf16.partialorder %v18902_v15, 0 }
 0x184   : > { %5380 = vperm.xlu1 %8402, %v9814_v22   ;;  %5383 = vperm.xlu0 %8401, %v9852_v8   ;;  %v4124_v22 = vsel %vm9877_vm12, 65537, %v18645_v5  ;;  %v10030_v8 = vsel %vm1424_vm10, 65537, %v18645_v5  ;;  %vm1425_vm12 = vcmp.ne.bf16.partialorder %v18879_v0, 0  ;;  %v4126_v0 = vsel %vm9953_vm5, 65537, %v18645_v5 }
 0x185   : > { %18877 = vst [vmem:[#allocation31_spill] sm:$0xff] %v10030_v8  ;;  %v4428_v18 = vunpack.c.l.b16 %v4124_v22  ;;  %v18886_v22 = vrot.slane %v9089_v26, %v8772_v25  ;;  %v10089_v57 = vsel %vm1425_vm12, 65537, %v18645_v5  ;;  %v18893_v8 = vld [vmem:[#allocation36_spill] sm:$0xff]  ;;  %v4127_v26 = vsel %vm9990_vm9, 65537, %v18645_v5 }
 0x186   : > { %v10033_v46 = vpop.permute.xlu1 %1218  ;;  %v10035_v12 = vpop.permute.xlu0 %1214  ;;  %18889 = vst [vmem:[#allocation70_spill] sm:$0xff] %v10089_v57  ;;  %vm1430_vm14 = vcmp.ne.bf16.partialorder %v18893_v8, 0  ;;  %vm1431_vm9 = vcmp.ne.bf16.partialorder %v18908_v63, 0  ;;  %v4128_v8 = vsel %vm10015_vm11, 65537, %v18645_v5  ;;  %v4431_v10 = vunpack.c.l.b16 %v4127_v26  ;;  %v18922_v57 = vld [vmem:[#allocation41_spill] sm:$0xff] }
 0x187   : > { %vm10080_vm1 = vcmp.ne.s16.totalorder %v18886_v22, 0  ;;  %v18892_v22 = vld [vmem:[#allocation35_spill] sm:$0xff]  ;;  %vm4732_vm3 = vcmp.ne.s32.totalorder %v4428_v18, 0  ;;  %v18898_v18 = vrot.slane %v9130_v50, %v8772_v25  ;;  %v10205_v15 = vsel %vm1431_vm9, 65537, %v18645_v5 }
 0x188   : > { %5386 = vperm.xlu1 %8402, %v9891_v38   ;;  %5389 = vperm.xlu0 %8401, %v5030_v20   ;;  %v10070_v38 = vsel %vm1426_vm8, 65537, %v18645_v5  ;;  %v5034_v20 = vsel %vm4730_vm13, 1, %v18645_v5  ;;  %vm1427_vm4 = vcmp.ne.bf16.partialorder %v18892_v22, 0  ;;  %18894 = vst [vmem:[#allocation35_spill] sm:$0xff] %v10117_v9  ;;  %vm10151_vm8 = vcmp.ne.s32.totalorder %v4429_v32, 0  ;;  %v18910_v9 = vld [vmem:[#allocation46_spill] sm:$0xff] }
 0x189   : > { %18883 = vst [vmem:[#allocation33_spill] sm:$0xff] %v10070_v38  ;;  %vm10129_vm10 = vcmp.ne.s16.totalorder %v18898_v18, 0  ;;  %v10134_v22 = vsel %vm1427_vm4, 65537, %v18645_v5  ;;  %v18905_v18 = vld [vmem:[#allocation38_spill] sm:$0xff]  ;;  %v5036_v38 = vsel %vm4732_vm3, 1, %v18645_v5  ;;  %v18914_v37 = vrot.slane %v18910_v9, %v8772_v25  ;;  %18920 = vst [vmem:[#allocation73_spill] sm:$0xff] %v10205_v15 }
 0x18a   : > { %v10092_v4 = vpop.permute.xlu1 %1229  ;;  %v10094_v7 = vpop.permute.xlu0 %1225  ;;  %18901 = vst [vmem:[#allocation36_spill] sm:$0xff] %v10134_v22  ;;  %vm1432_vm6 = vcmp.ne.bf16.partialorder %v18905_v18, 0  ;;  %v18921_v18 = vld [vmem:[#allocation40_spill] sm:$0xff]  ;;  %v4432_v22 = vunpack.c.l.b16 %v4128_v8  ;;  %vm1433_vm15 = vcmp.ne.bf16.partialorder %v18922_v57, 0  ;;  %vm10219_vm4 = vcmp.ne.s32.totalorder %v4431_v10, 0  ;;  %v18933_v10 = vld [vmem:[#allocation42_spill] sm:$0xff] }
 0x18b   : > { %18891 = vst [vmem:[#allocation34_spill] sm:$0xff] %v10094_v7  ;;  %v5035_v7 = vsel %vm10073_vm2, 1, %v18645_v5  ;;  %vm10182_vm11 = vcmp.ne.s16.totalorder %v18914_v37, 0  ;;  %v10191_v26 = vsel %vm1432_vm6, 65537, %v18645_v5  ;;  %vm1434_vm2 = vcmp.ne.bf16.partialorder %v18921_v18, 0  ;;  %v18937_v18 = vld [vmem:[#allocation44_spill] sm:$0xff] }
 0x18c   : > { %5392 = vperm.xlu1 %8402, %v5031_v19   ;;  %5395 = vperm.xlu0 %8401, %v5032_v30   ;;  %v18895_v30 = vrot.slane %v9130_v50, %v8769_v27  ;;  %v10147_v50 = vsel %vm1430_vm14, 65537, %v18645_v5  ;;  %18917 = vst [vmem:[#allocation39_spill] sm:$0xff] %v10191_v26  ;;  %vm10261_vm3 = vcmp.ne.s32.totalorder %v4432_v22, 0  ;;  %v18936_v26 = vld [vmem:[#allocation43_spill] sm:$0xff]  ;;  %vm1438_vm6 = vcmp.ne.bf16.partialorder %v18937_v18, 0 }
 0x18d   : > { %18904 = vst [vmem:[#allocation71_spill] sm:$0xff] %v10147_v50  ;;  %v5039_v15 = vsel %vm10219_vm4, 1, %v18645_v5  ;;  %v10318_v3 = vsel %vm1438_vm6, 65537, %v18645_v5  ;;  %v19019_v8 = vld [vmem:[#allocation55_spill] sm:$0xff] }
 0x18e   : > { %vm10122_vm5 = vcmp.ne.s16.totalorder %v18895_v30, 0  ;;  %v10137_v45 = vpop.permute.xlu1 %1237  ;;  %v10139_v16 = vpop.permute.xlu0 %1233  ;;  %v4430_v30 = vunpack.c.l.b16 %v4126_v0  ;;  %v10170_v0 = vsel %vm1429_vm7, 65537, %v18645_v5  ;;  %vm1435_vm7 = vcmp.ne.bf16.partialorder %v18936_v26, 0  ;;  %18948 = vst [vmem:[#allocation75_spill] sm:$0xff] %v10318_v3 }
 0x18f   : > { %18903 = vst [vmem:[#allocation37_spill] sm:$0xff] %v10139_v16  ;;  %18909 = vst [vmem:[#allocation38_spill] sm:$0xff] %v10170_v0 }
 0x190   : > { %5398 = vperm.xlu1 %8402, %v5033_v53   ;;  %5401 = vperm.xlu0 %8401, %v5034_v20   ;;  %v18911_v53 = vrot.slane %v18910_v9, %v8769_v27  ;;  %v5037_v9 = vsel %vm10151_vm8, 1, %v18645_v5  ;;  %vm4734_vm12 = vcmp.ne.s32.totalorder %v4430_v30, 0  ;;  %v4129_v30 = vsel %vm10061_vm0, 65537, %v18645_v5  ;;  %v18964_v20 = vld [vmem:[#allocation48_spill] sm:$0xff] }
 0x191   : > { %v5038_v37 = vsel %vm4734_vm12, 1, %v18645_v5  ;;  %vm10236_vm0 = vcmp.ne.s16.totalorder %v18928_v41, 0  ;;  %v10258_v41 = vsel %vm1433_vm15, 65537, %v18645_v5 }
 0x192   : > { %vm10175_vm13 = vcmp.ne.s16.totalorder %v18911_v53, 0  ;;  %v10193_v16 = vpop.permute.xlu1 %1245  ;;  %v10195_v53 = vpop.permute.xlu0 %1241  ;;  %18932 = vst [vmem:[#allocation41_spill] sm:$0xff] %v10258_v41  ;;  %v18952_v41 = vld [vmem:[#allocation47_spill] sm:$0xff] }
 0x193   : > { %18918 = vst [vmem:[#allocation46_spill] sm:$0xff] %v10193_v16  ;;  %18919 = vst [vmem:[#allocation72_spill] sm:$0xff] %v10195_v53  ;;  %v4130_v53 = vsel %vm10080_vm1, 65537, %v18645_v5  ;;  %vm1436_vm1 = vcmp.ne.bf16.partialorder %v18933_v10, 0  ;;  %v4433_v16 = vunpack.c.l.b16 %v4129_v30  ;;  %v4131_v30 = vsel %vm10122_vm5, 65537, %v18645_v5  ;;  %v18949_v10 = vld [vmem:[#allocation45_spill] sm:$0xff] }
 0x194   : > { %5404 = vperm.xlu1 %8402, %v5035_v7   ;;  %5407 = vperm.xlu0 %8401, %v5036_v38   ;;  %v18925_v7 = vrot.slane %v9171_v2, %v8769_v27  ;;  %v4434_v57 = vunpack.c.l.b16 %v4130_v53  ;;  %v18941_v53 = vrot.slane %v9168_v51, %v8772_v25  ;;  %vm1437_vm5 = vcmp.ne.bf16.partialorder %v18949_v10, 0 }
 0x195   : > { %vm1440_vm12 = vcmp.ne.bf16.partialorder %v18952_v41, 0  ;;  %v4435_v26 = vunpack.c.l.b16 %v4131_v30 }
 0x196   : > { %vm10229_vm14 = vcmp.ne.s16.totalorder %v18925_v7, 0  ;;  %v10249_v7 = vsel %vm1434_vm2, 65537, %v18645_v5  ;;  %v10251_v50 = vpop.permute.xlu1 %1253  ;;  %v10253_v2 = vpop.permute.xlu0 %1249  ;;  %vm10290_vm9 = vcmp.ne.s16.totalorder %v18941_v53, 0  ;;  %v10313_v53 = vsel %vm1435_vm7, 65537, %v18645_v5 }
 0x197   : > { %18931 = vst [vmem:[#allocation40_spill] sm:$0xff] %v10249_v7  ;;  %18947 = vst [vmem:[#allocation74_spill] sm:$0xff] %v10313_v53  ;;  %vm10326_vm2 = vcmp.ne.s32.totalorder %v4434_v57, 0  ;;  %v18955_v57 = vrot.slane %v9216_v39, %v8769_v27  ;;  %v10375_v32 = vsel %vm1440_vm12, 65537, %v18645_v5  ;;  %v4135_v23 = vsel %vm10229_vm14, 65537, %v18645_v5 }
 0x198   : > { %5410 = vperm.xlu1 %8402, %v5037_v9   ;;  %5413 = vperm.xlu0 %8401, %v5038_v37   ;;  %v4132_v9 = vsel %vm10129_vm10, 65537, %v18645_v5  ;;  %v18938_v37 = vrot.slane %v9168_v51, %v8769_v27  ;;  %v5040_v51 = vsel %vm10261_vm3, 1, %v18645_v5  ;;  %vm10321_vm10 = vcmp.ne.s32.totalorder %v4433_v16, 0  ;;  %18963 = vst [vmem:[#allocation76_spill] sm:$0xff] %v10375_v32 }
 0x199   : > { %v4133_v16 = vsel %vm10175_vm13, 65537, %v18645_v5  ;;  %vm10343_vm15 = vcmp.ne.s16.totalorder %v18955_v57, 0  ;;  %v10361_v57 = vsel %vm1437_vm5, 65537, %v18645_v5  ;;  %vm1439_vm13 = vcmp.ne.bf16.partialorder %v18964_v20, 0 }
 0x19a   : > { %vm10283_vm8 = vcmp.ne.s16.totalorder %v18938_v37, 0  ;;  %v10301_v37 = vsel %vm1436_vm1, 65537, %v18645_v5  ;;  %v10303_v0 = vpop.permute.xlu1 %1264  ;;  %v10305_v7 = vpop.permute.xlu0 %1260  ;;  %18961 = vst [vmem:[#allocation45_spill] sm:$0xff] %v10361_v57  ;;  %v5042_v10 = vsel %vm10326_vm2, 1, %v18645_v5  ;;  %v4439_v57 = vunpack.c.l.b16 %v4135_v23 }
 0x19b   : > { %18944 = vst [vmem:[#allocation42_spill] sm:$0xff] %v10301_v37  ;;  %18945 = vst [vmem:[#allocation43_spill] sm:$0xff] %v10303_v0  ;;  %v4137_v19 = vsel %vm10283_vm8, 65537, %v18645_v5  ;;  %v4139_v3 = vsel %vm10343_vm15, 65537, %v18645_v5  ;;  %vm1445_vm15 = vcmp.ne.bf16.partialorder %v9275_v47, 0 }
 0x19c   : > { %18946 = vst [vmem:[#allocation44_spill] sm:$0xff] %v10305_v7  ;;  %5416 = vperm.xlu1 %8402, %v5039_v15   ;;  %5419 = vperm.xlu0 %8401, %v5040_v51   ;;  %v4436_v7 = vunpack.c.l.b16 %v4132_v9  ;;  %v4134_v15 = vsel %vm10182_vm11, 65537, %v18645_v5  ;;  %v18958_v9 = vrot.slane %v9216_v39, %v8772_v25  ;;  %v5041_v39 = vsel %vm10321_vm10, 1, %v18645_v5 }
 0x19d   : > { %vm10381_vm11 = vcmp.ne.s32.totalorder %v4435_v26, 0  ;;  %v4438_v41 = vunpack.c.l.b16 %v4134_v15  ;;  %v4136_v26 = vsel %vm10236_vm0, 65537, %v18645_v5  ;;  %v18972_v15 = vrot.slane %v9191_v56, %v8772_v25 }
 0x19e   : > { %vm10350_vm4 = vcmp.ne.s16.totalorder %v18958_v9, 0  ;;  %v10363_v0 = vpop.permute.xlu1 %1275  ;;  %v10365_v18 = vpop.permute.xlu0 %1268  ;;  %vm10385_vm1 = vcmp.ne.s32.totalorder %v4436_v7, 0  ;;  %v4437_v9 = vunpack.c.l.b16 %v4133_v16  ;;  %v18969_v7 = vrot.slane %v9191_v56, %v8769_v27 }
 0x19f   : > { %18962 = vst [vmem:[#allocation47_spill] sm:$0xff] %v10365_v18  ;;  %vm10409_vm7 = vcmp.ne.s16.totalorder %v18972_v15, 0  ;;  %v18979_v15 = vld [vmem:[#allocation50_spill] sm:$0xff]  ;;  %v18980_v18 = vld [vmem:[#allocation51_spill] sm:$0xff]  ;;  %v5043_v38 = vsel %vm10381_vm11, 1, %v18645_v5  ;;  %v5044_v20 = vsel %vm10385_vm1, 1, %v18645_v5  ;;  %v4443_v51 = vunpack.c.l.b16 %v4139_v3 }
 0x1a0   : > { %5422 = vperm.xlu1 %8402, %v5041_v39   ;;  %5425 = vperm.xlu0 %8401, %v5042_v10   ;;  %vm10402_vm3 = vcmp.ne.s16.totalorder %v18969_v7, 0  ;;  %v10420_v10 = vsel %vm1439_vm13, 65537, %v18645_v5  ;;  %v18976_v7 = vld [vmem:[#allocation49_spill] sm:$0xff]  ;;  %vm1441_vm0 = vcmp.ne.bf16.partialorder %v18979_v15, 0  ;;  %vm1444_vm6 = vcmp.ne.bf16.partialorder %v18980_v18, 0 }
 0x1a1   : > { %18975 = vst [vmem:[#allocation48_spill] sm:$0xff] %v10420_v10  ;;  %vm1442_vm14 = vcmp.ne.bf16.partialorder %v18976_v7, 0  ;;  %vm10435_vm5 = vcmp.ne.s32.totalorder %v4437_v9, 0  ;;  %vm10439_vm10 = vcmp.ne.s32.totalorder %v4438_v41, 0  ;;  %v4138_v9 = vsel %vm10290_vm9, 65537, %v18645_v5 }
 0x1a2   : > { %v10423_v53 = vpop.permute.xlu1 %1283  ;;  %v10425_v56 = vpop.permute.xlu0 %1279  ;;  %v18985_v41 = vrot.slane %v9247_v24, %v8769_v27  ;;  %v10472_v22 = vsel %vm1442_vm14, 65537, %v18645_v5  ;;  %v10487_v37 = vsel %vm1444_vm6, 65537, %v18645_v5  ;;  %vm1446_vm9 = vcmp.ne.bf16.partialorder %v9273_v61, 0 }
 0x1a3   : > { %18977 = vst [vmem:[#allocation49_spill] sm:$0xff] %v10423_v53  ;;  %18978 = vst [vmem:[#allocation77_spill] sm:$0xff] %v10425_v56  ;;  %v4440_v56 = vunpack.c.l.b16 %v4136_v26  ;;  %v18988_v26 = vrot.slane %v9247_v24, %v8772_v25  ;;  %v5045_v7 = vsel %vm10435_vm5, 1, %v18645_v5  ;;  %v5046_v15 = vsel %vm10439_vm10, 1, %v18645_v5 }
 0x1a4   : > { %5428 = vperm.xlu1 %8402, %v5043_v38   ;;  %5431 = vperm.xlu0 %8401, %v5044_v20   ;;  %vm10456_vm12 = vcmp.ne.s16.totalorder %v18985_v41, 0  ;;  %18991 = vst [vmem:[#allocation50_spill] sm:$0xff] %v10472_v22  ;;  %v10477_v20 = vsel %vm1441_vm0, 65537, %v18645_v5  ;;  %v18993_v41 = vld [vmem:[#allocation52_spill] sm:$0xff]  ;;  %vm10496_vm13 = vcmp.ne.s32.totalorder %v4439_v57, 0  ;;  %v4441_v53 = vunpack.c.l.b16 %v4137_v19 }
 0x1a5   : > { %vm10463_vm2 = vcmp.ne.s16.totalorder %v18988_v26, 0  ;;  %18992 = vst [vmem:[#allocation51_spill] sm:$0xff] %v10477_v20  ;;  %vm1443_vm8 = vcmp.ne.bf16.partialorder %v18993_v41, 0  ;;  %18994 = vst [vmem:[#allocation52_spill] sm:$0xff] %v10487_v37  ;;  %vm10500_vm11 = vcmp.ne.s32.totalorder %v4440_v56, 0  ;;  %v4442_v32 = vunpack.c.l.b16 %v4138_v9 }
 0x1a6   : > { %v10480_v24 = vpop.permute.xlu1 %1291  ;;  %v10482_v26 = vpop.permute.xlu0 %1287  ;;  %v4140_v57 = vsel %vm10350_vm4, 65537, %v18645_v5  ;;  %v18999_v56 = vrot.slane %v9237_v54, %v8769_v27  ;;  %v19002_v9 = vrot.slane %v9237_v54, %v8772_v25  ;;  %v10542_v54 = vsel %vm1446_vm9, 65537, %v18645_v5 }
 0x1a7   : > { %19006 = vst [vmem:[#allocation79_spill] sm:$0xff] %v10542_v54  ;;  %v5048_v41 = vsel %vm10500_vm11, 1, %v18645_v5  ;;  %vm10555_vm4 = vcmp.ne.s32.totalorder %v4441_v53, 0  ;;  %vm10559_vm0 = vcmp.ne.s32.totalorder %v4442_v32, 0  ;;  %v4444_v30 = vunpack.c.l.b16 %v4140_v57 }
 0x1a8   : > { %5434 = vperm.xlu1 %8402, %v5045_v7   ;;  %5437 = vperm.xlu0 %8401, %v5046_v15   ;;  %vm10517_vm1 = vcmp.ne.s16.totalorder %v18999_v56, 0  ;;  %vm10524_vm14 = vcmp.ne.s16.totalorder %v19002_v9, 0  ;;  %v10537_v56 = vsel %vm1443_vm8, 65537, %v18645_v5  ;;  %v5047_v15 = vsel %vm10496_vm13, 1, %v18645_v5 }
 0x1a9   : > { %19005 = vst [vmem:[#allocation78_spill] sm:$0xff] %v10537_v56  ;;  %v4141_v18 = vsel %vm10402_vm3, 65537, %v18645_v5  ;;  %v4142_v53 = vsel %vm10409_vm7, 65537, %v18645_v5  ;;  %v19011_v32 = vrot.slane %v9289_v21, %v8769_v27  ;;  %v19014_v57 = vrot.slane %v9289_v21, %v8772_v25 }
 0x1aa   : > { %v10545_v9 = vpop.permute.xlu1 %1299  ;;  %v10547_v10 = vpop.permute.xlu0 %1295  ;;  %vm1447_vm7 = vcmp.ne.bf16.partialorder %v19019_v8, 0  ;;  %vm1450_vm10 = vcmp.ne.bf16.partialorder %v9368_v49, 0  ;;  %v5049_v21 = vsel %vm10555_vm4, 1, %v18645_v5  ;;  %vm10605_vm8 = vcmp.ne.s32.totalorder %v4443_v51, 0 }
 0x1ab   : > { %vm10576_vm6 = vcmp.ne.s16.totalorder %v19011_v32, 0  ;;  %vm10583_vm5 = vcmp.ne.s16.totalorder %v19014_v57, 0  ;;  %v19018_v32 = vld [vmem:[#allocation54_spill] sm:$0xff]  ;;  %v5050_v57 = vsel %vm10559_vm0, 1, %v18645_v5  ;;  %vm10609_vm9 = vcmp.ne.s32.totalorder %v4444_v30, 0 }
 0x1ac   : > { %5440 = vperm.xlu1 %8402, %v5047_v15   ;;  %5443 = vperm.xlu0 %8401, %v5048_v41   ;;  %v10594_v41 = vsel %vm1445_vm15, 65537, %v18645_v5  ;;  %vm1448_vm3 = vcmp.ne.bf16.partialorder %v19018_v32, 0  ;;  %v4445_v16 = vunpack.c.l.b16 %v4141_v18  ;;  %v4446_v22 = vunpack.c.l.b16 %v4142_v53  ;;  %v19024_v18 = vld [vmem:[#allocation53_spill] sm:$0xff] }
 0x1ad   : > { %19017 = vst [vmem:[#allocation80_spill] sm:$0xff] %v10594_v41  ;;  %v4143_v51 = vsel %vm10456_vm12, 65537, %v18645_v5  ;;  %v4144_v30 = vsel %vm10463_vm2, 65537, %v18645_v5  ;;  %v19025_v53 = vrot.slane %v19024_v18, %v8769_v27  ;;  %v19028_v61 = vrot.slane %v19024_v18, %v8772_v25 }
 0x1ae   : > { %v10617_v63 = vpop.permute.xlu1 %1310  ;;  %v10646_v38 = vsel %vm1448_vm3, 65537, %v18645_v5  ;;  %vm1449_vm12 = vcmp.ne.bf16.partialorder %v9370_v58, 0  ;;  %vm1452_vm2 = vcmp.ne.bf16.partialorder %v9422_v35, 0  ;;  %v5051_v32 = vsel %vm10605_vm8, 1, %v18645_v5 }
 0x1af   : > { %vm10630_vm13 = vcmp.ne.s16.totalorder %v19025_v53, 0  ;;  %vm10637_vm11 = vcmp.ne.s16.totalorder %v19028_v61, 0  ;;  %19031 = vst [vmem:[#allocation54_spill] sm:$0xff] %v10646_v38  ;;  %v10651_v53 = vsel %vm1447_vm7, 65537, %v18645_v5  ;;  %v10657_v61 = vsel %vm1450_vm10, 65537, %v18645_v5 }
 0x1b0   : > { %5446 = vperm.xlu1 %8402, %v5049_v21   ;;  %5449 = vperm.xlu0 %8401, %v5050_v57   ;;  %v10619_v21 = vpop.permute.xlu0 %1303  ;;  %19032 = vst [vmem:[#allocation55_spill] sm:$0xff] %v10651_v53  ;;  %19033 = vst [vmem:[#allocation53_spill] sm:$0xff] %v10657_v61  ;;  %v5052_v18 = vsel %vm10609_vm9, 1, %v18645_v5  ;;  %vm10666_vm15 = vcmp.ne.s32.totalorder %v4445_v16, 0  ;;  %vm10670_vm4 = vcmp.ne.s32.totalorder %v4446_v22, 0  ;;  %v4447_v23 = vunpack.c.l.b16 %v4143_v51 }
 0x1b1   : > { %v4448_v54 = vunpack.c.l.b16 %v4144_v30  ;;  %v4145_v39 = vsel %vm10517_vm1, 65537, %v18645_v5  ;;  %v4146_v16 = vsel %vm10524_vm14, 65537, %v18645_v5  ;;  %v19038_v22 = vrot.slane %v9333_v42, %v8769_v27 }
 0x1b2   : > { %v19041_v30 = vrot.slane %v9333_v42, %v8772_v25  ;;  %v10712_v42 = vsel %vm1452_vm2, 65537, %v18645_v5  ;;  %vm1451_vm1 = vcmp.ne.bf16.partialorder %v9424_v13, 0  ;;  %v5054_v58 = vsel %vm10670_vm4, 1, %v18645_v5 }
 0x1b3   : > { %vm10687_vm0 = vcmp.ne.s16.totalorder %v19038_v22, 0  ;;  %v10707_v22 = vsel %vm1449_vm12, 65537, %v18645_v5  ;;  %19045 = vst [vmem:[#allocation82_spill] sm:$0xff] %v10712_v42  ;;  %vm10725_vm14 = vcmp.ne.s32.totalorder %v4447_v23, 0  ;;  %vm10729_vm7 = vcmp.ne.s32.totalorder %v4448_v54, 0 }
 0x1b4   : > { %5452 = vperm.xlu1 %8402, %v5051_v32   ;;  %5455 = vperm.xlu0 %8401, %v5052_v18   ;;  %vm10694_vm3 = vcmp.ne.s16.totalorder %v19041_v30, 0  ;;  %19044 = vst [vmem:[#allocation81_spill] sm:$0xff] %v10707_v22  ;;  %v10715_v30 = vpop.permute.xlu1 %1318  ;;  %v10717_v41 = vpop.permute.xlu0 %1314  ;;  %v5053_v18 = vsel %vm10666_vm15, 1, %v18645_v5  ;;  %v4449_v7 = vunpack.c.l.b16 %v4145_v39  ;;  %v4450_v19 = vunpack.c.l.b16 %v4146_v16 }
 0x1b5   : > { %v4147_v49 = vsel %vm10576_vm6, 65537, %v18645_v5  ;;  %v4148_v23 = vsel %vm10583_vm5, 65537, %v18645_v5  ;;  %v19050_v54 = vrot.slane %v9321_v62, %v8769_v27  ;;  %v19053_v16 = vrot.slane %v9321_v62, %v8772_v25 }
 0x1b6   : > { %vm1454_vm6 = vcmp.ne.bf16.partialorder %v9479_v14, 0  ;;  %vm1453_vm5 = vcmp.ne.bf16.partialorder %v9481_v17, 0  ;;  %vm1456_vm9 = vcmp.ne.bf16.partialorder %v9522_v40, 0  ;;  %v5055_v62 = vsel %vm10725_vm14, 1, %v18645_v5  ;;  %v19095_v17 = vld [vmem:[#allocation65_spill] sm:$0xff] }
 0x1b7   : > { %vm10746_vm10 = vcmp.ne.s16.totalorder %v19050_v54, 0  ;;  %vm10753_vm8 = vcmp.ne.s16.totalorder %v19053_v16, 0  ;;  %v5056_v54 = vsel %vm10729_vm7, 1, %v18645_v5  ;;  %vm10775_vm12 = vcmp.ne.s32.totalorder %v4449_v7, 0 }
 0x1b8   : > { %5458 = vperm.xlu1 %8402, %v5053_v18   ;;  %5461 = vperm.xlu0 %8401, %v5054_v58   ;;  %v10764_v58 = vsel %vm1451_vm1, 65537, %v18645_v5  ;;  %vm10779_vm2 = vcmp.ne.s32.totalorder %v4450_v19, 0  ;;  %v4451_v15 = vunpack.c.l.b16 %v4147_v49  ;;  %v4452_v8 = vunpack.c.l.b16 %v4148_v23  ;;  %v10787_v47 = vpop.permute.xlu1 %1326 }
 0x1b9   : > { %19056 = vst [vmem:[#allocation83_spill] sm:$0xff] %v10764_v58  ;;  %v4149_v7 = vsel %vm10630_vm13, 65537, %v18645_v5  ;;  %v4150_v19 = vsel %vm10637_vm11, 65537, %v18645_v5  ;;  %v19061_v49 = vrot.slane %v9361_v34, %v8769_v27  ;;  %v10816_v37 = vsel %vm1454_vm6, 65537, %v18645_v5 }
 0x1ba   : > { %19067 = vst [vmem:[#allocation84_spill] sm:$0xff] %v10816_v37  ;;  %vm1455_vm13 = vcmp.ne.bf16.partialorder %v9524_v28, 0  ;;  %vm1458_vm11 = vcmp.ne.bf16.partialorder %v9577_v33, 0  ;;  %v5057_v14 = vsel %vm10775_vm12, 1, %v18645_v5  ;;  %vm10836_vm1 = vcmp.ne.s32.totalorder %v4451_v15, 0 }
 0x1bb   : > { %vm10800_vm15 = vcmp.ne.s16.totalorder %v19061_v49, 0  ;;  %v10821_v49 = vsel %vm1453_vm5, 65537, %v18645_v5  ;;  %vm10840_vm14 = vcmp.ne.s32.totalorder %v4452_v8, 0  ;;  %v4453_v57 = vunpack.c.l.b16 %v4149_v7  ;;  %v19074_v8 = vld [vmem:[#allocation56_spill] sm:$0xff] }
 0x1bc   : > { %5464 = vperm.xlu1 %8402, %v5055_v62   ;;  %5467 = vperm.xlu0 %8401, %v5056_v54   ;;  %v10789_v62 = vpop.permute.xlu0 %1322  ;;  %v19064_v54 = vrot.slane %v9361_v34, %v8772_v25  ;;  %19068 = vst [vmem:[#allocation85_spill] sm:$0xff] %v10821_v49  ;;  %v10827_v34 = vsel %vm1456_vm9, 65537, %v18645_v5  ;;  %v4454_v3 = vunpack.c.l.b16 %v4150_v19  ;;  %v4151_v16 = vsel %vm10687_vm0, 65537, %v18645_v5 }
 0x1bd   : > { %19069 = vst [vmem:[#allocation86_spill] sm:$0xff] %v10827_v34  ;;  %v4152_v15 = vsel %vm10694_vm3, 65537, %v18645_v5  ;;  %v19078_v19 = vrot.slane %v19074_v8, %v8772_v25  ;;  %vm1457_vm0 = vcmp.ne.bf16.partialorder %v9579_v55, 0  ;;  %v5059_v38 = vsel %vm10836_vm1, 1, %v18645_v5 }
 0x1be   : > { %vm10807_vm4 = vcmp.ne.s16.totalorder %v19064_v54, 0  ;;  %v5058_v54 = vsel %vm10779_vm2, 1, %v18645_v5  ;;  %v5060_v28 = vsel %vm10840_vm14, 1, %v18645_v5  ;;  %vm10895_vm3 = vcmp.ne.s32.totalorder %v4453_v57, 0 }
 0x1bf   : > { %vm10864_vm6 = vcmp.ne.s16.totalorder %v19078_v19, 0  ;;  %v10885_v19 = vpop.permute.xlu1 %1334  ;;  %vm10899_vm5 = vcmp.ne.s32.totalorder %v4454_v3, 0  ;;  %v4455_v51 = vunpack.c.l.b16 %v4151_v16  ;;  %v4456_v37 = vunpack.c.l.b16 %v4152_v15 }
 0x1c0   : > { %5470 = vperm.xlu1 %8402, %v5057_v14   ;;  %5473 = vperm.xlu0 %8401, %v5058_v54   ;;  %v19075_v14 = vrot.slane %v19074_v8, %v8769_v27  ;;  %v10882_v8 = vsel %vm1458_vm11, 65537, %v18645_v5  ;;  %v10887_v13 = vpop.permute.xlu0 %1330  ;;  %v4154_v57 = vsel %vm10753_vm8, 65537, %v18645_v5  ;;  %v19087_v3 = vrot.slane %v9401_v59, %v8769_v27 }
 0x1c1   : > { %19082 = vst [vmem:[#allocation87_spill] sm:$0xff] %v10882_v8  ;;  %v19090_v16 = vrot.slane %v9401_v59, %v8772_v25  ;;  %vm1459_vm8 = vcmp.ne.bf16.partialorder %v19095_v17, 0  ;;  %vm1462_vm2 = vcmp.ne.bf16.partialorder %v9676_v31, 0  ;;  %v5061_v59 = vsel %vm10895_vm3, 1, %v18645_v5  ;;  %v19139_v17 = vld [vmem:[#allocation18_spill] sm:$0xff] }
 0x1c2   : > { %vm10857_vm7 = vcmp.ne.s16.totalorder %v19075_v14, 0  ;;  %v10877_v14 = vsel %vm1455_vm13, 65537, %v18645_v5  ;;  %vm10916_vm9 = vcmp.ne.s16.totalorder %v19087_v3, 0  ;;  %v19094_v3 = vld [vmem:[#allocation11_spill] sm:$0xff]  ;;  %vm10945_vm13 = vcmp.ne.s32.totalorder %v4455_v51, 0 }
 0x1c3   : > { %19081 = vst [vmem:[#allocation56_spill] sm:$0xff] %v10877_v14  ;;  %vm10923_vm12 = vcmp.ne.s16.totalorder %v19090_v16, 0  ;;  %v5062_v16 = vsel %vm10899_vm5, 1, %v18645_v5  ;;  %vm10949_vm11 = vcmp.ne.s32.totalorder %v4456_v37, 0  ;;  %v4458_v49 = vunpack.c.l.b16 %v4154_v57  ;;  %v10957_v32 = vpop.permute.xlu1 %1345 }
 0x1c4   : > { %5476 = vperm.xlu1 %8402, %v5059_v38   ;;  %5479 = vperm.xlu0 %8401, %v5060_v28   ;;  %v4153_v38 = vsel %vm10746_vm10, 65537, %v18645_v5  ;;  %v10934_v28 = vsel %vm1457_vm0, 65537, %v18645_v5  ;;  %vm1460_vm10 = vcmp.ne.bf16.partialorder %v19094_v3, 0  ;;  %19100 = vst [vmem:[#allocation11_spill] sm:$0xff] %v10957_v32  ;;  %v4155_v51 = vsel %vm10800_vm15, 65537, %v18645_v5 }
 0x1c5   : > { %19093 = vst [vmem:[#allocation88_spill] sm:$0xff] %v10934_v28  ;;  %v4457_v39 = vunpack.c.l.b16 %v4153_v38  ;;  %v4156_v37 = vsel %vm10807_vm4, 65537, %v18645_v5  ;;  %v19102_v38 = vld [vmem:[#allocation57_spill] sm:$0xff]  ;;  %v10986_v35 = vsel %vm1460_vm10, 65537, %v18645_v5  ;;  %vm1461_vm15 = vcmp.ne.bf16.partialorder %v9678_v11, 0 }
 0x1c6   : > { %v19103_v57 = vrot.slane %v19102_v38, %v8769_v27  ;;  %v19106_v33 = vrot.slane %v19102_v38, %v8772_v25  ;;  %19109 = vst [vmem:[#allocation57_spill] sm:$0xff] %v10986_v35  ;;  %vm1464_vm4 = vcmp.ne.bf16.partialorder %v9732_v48, 0  ;;  %v5063_v3 = vsel %vm10945_vm13, 1, %v18645_v5 }
 0x1c7   : > { %v5064_v38 = vsel %vm10949_vm11, 1, %v18645_v5  ;;  %vm11006_vm0 = vcmp.ne.s32.totalorder %v4457_v39, 0  ;;  %vm11010_vm3 = vcmp.ne.s32.totalorder %v4458_v49, 0  ;;  %v4459_v23 = vunpack.c.l.b16 %v4155_v51  ;;  %v19116_v49 = vld [vmem:[#allocation59_spill] sm:$0xff] }
 0x1c8   : > { %5482 = vperm.xlu1 %8402, %v5061_v59   ;;  %5485 = vperm.xlu0 %8401, %v5062_v16   ;;  %v10959_v59 = vpop.permute.xlu0 %1338  ;;  %vm10970_vm1 = vcmp.ne.s16.totalorder %v19103_v57, 0  ;;  %vm10977_vm14 = vcmp.ne.s16.totalorder %v19106_v33, 0  ;;  %v10991_v57 = vsel %vm1459_vm8, 65537, %v18645_v5  ;;  %v10997_v33 = vsel %vm1462_vm2, 65537, %v18645_v5 }
 0x1c9   : > { %19101 = vst [vmem:[#allocation65_spill] sm:$0xff] %v10959_v59  ;;  %19110 = vst [vmem:[#allocation89_spill] sm:$0xff] %v10991_v57  ;;  %v4460_v8 = vunpack.c.l.b16 %v4156_v37  ;;  %v4157_v18 = vsel %vm10857_vm7, 65537, %v18645_v5  ;;  %v4158_v39 = vsel %vm10864_vm6, 65537, %v18645_v5  ;;  %v19120_v37 = vrot.slane %v19116_v49, %v8772_v25 }
 0x1ca   : > { %19111 = vst [vmem:[#allocation90_spill] sm:$0xff] %v10997_v33  ;;  %vm1463_vm7 = vcmp.ne.bf16.partialorder %v9734_v60, 0  ;;  %v5065_v28 = vsel %vm11006_vm0, 1, %v18645_v5  ;;  %v5066_v11 = vsel %vm11010_vm3, 1, %v18645_v5  ;;  %vm11065_vm6 = vcmp.ne.s32.totalorder %v4459_v23, 0 }
 0x1cb   : > { %vm11034_vm10 = vcmp.ne.s16.totalorder %v19120_v37, 0  ;;  %v11055_v37 = vpop.permute.xlu1 %1353  ;;  %vm11069_vm8 = vcmp.ne.s32.totalorder %v4460_v8, 0  ;;  %v4461_v7 = vunpack.c.l.b16 %v4157_v18  ;;  %v4462_v35 = vunpack.c.l.b16 %v4158_v39  ;;  %v19131_v8 = vld [vmem:[#allocation58_spill] sm:$0xff] }
 0x1cc   : > { %5488 = vperm.xlu1 %8402, %v5063_v3   ;;  %5491 = vperm.xlu0 %8401, %v5064_v38   ;;  %v19117_v3 = vrot.slane %v19116_v49, %v8769_v27  ;;  %v11052_v49 = vsel %vm1464_vm4, 65537, %v18645_v5  ;;  %19125 = vst [vmem:[#allocation92_spill] sm:$0xff] %v11055_v37  ;;  %v11057_v55 = vpop.permute.xlu0 %1349  ;;  %v4160_v23 = vsel %vm10923_vm12, 65537, %v18645_v5  ;;  %v19132_v31 = vrot.slane %v19131_v8, %v8769_v27 }
 0x1cd   : > { %19124 = vst [vmem:[#allocation91_spill] sm:$0xff] %v11052_v49  ;;  %19126 = vst [vmem:[#allocation93_spill] sm:$0xff] %v11057_v55  ;;  %v19135_v39 = vrot.slane %v19131_v8, %v8772_v25  ;;  %vm1465_vm12 = vcmp.ne.bf16.partialorder %v19139_v17, 0  ;;  %vm1468_vm11 = vcmp.ne.bf16.partialorder %v9830_v29, 0  ;;  %v5067_v40 = vsel %vm11065_vm6, 1, %v18645_v5  ;;  %v19180_v29 = vld [vmem:[#allocation28_spill] sm:$0xff] }
 0x1ce   : > { %vm11027_vm5 = vcmp.ne.s16.totalorder %v19117_v3, 0  ;;  %v11047_v3 = vsel %vm1461_vm15, 65537, %v18645_v5  ;;  %vm11086_vm2 = vcmp.ne.s16.totalorder %v19132_v31, 0  ;;  %v11104_v31 = vsel %vm1463_vm7, 65537, %v18645_v5 }
 0x1cf   : > { %19123 = vst [vmem:[#allocation59_spill] sm:$0xff] %v11047_v3  ;;  %vm11093_vm13 = vcmp.ne.s16.totalorder %v19135_v39, 0  ;;  %19138 = vst [vmem:[#allocation58_spill] sm:$0xff] %v11104_v31  ;;  %v5068_v60 = vsel %vm11069_vm8, 1, %v18645_v5  ;;  %vm11119_vm15 = vcmp.ne.s32.totalorder %v4461_v7, 0  ;;  %vm11123_vm4 = vcmp.ne.s32.totalorder %v4462_v35, 0 }
 0x1d0   : > { %5494 = vperm.xlu1 %8402, %v5065_v28   ;;  %5497 = vperm.xlu0 %8401, %v5066_v11   ;;  %v4159_v28 = vsel %vm10916_vm9, 65537, %v18645_v5  ;;  %vm1466_vm9 = vcmp.ne.bf16.partialorder %v9784_v44, 0  ;;  %v4464_v3 = vunpack.c.l.b16 %v4160_v23  ;;  %v4161_v54 = vsel %vm10970_vm1, 65537, %v18645_v5  ;;  %v19144_v35 = vld [vmem:[#allocation61_spill] sm:$0xff] }
 0x1d1   : > { %v4463_v33 = vunpack.c.l.b16 %v4159_v28  ;;  %v4162_v7 = vsel %vm10977_vm14, 65537, %v18645_v5  ;;  %v19148_v23 = vrot.slane %v19144_v35, %v8772_v25  ;;  %v11156_v34 = vsel %vm1466_vm9, 65537, %v18645_v5 }
 0x1d2   : > { %19151 = vst [vmem:[#allocation18_spill] sm:$0xff] %v11156_v34  ;;  %vm1467_vm1 = vcmp.ne.bf16.partialorder %v9832_v6, 0  ;;  %vm1470_vm14 = vcmp.ne.bf16.partialorder %v9884_v36, 0  ;;  %v5069_v44 = vsel %vm11119_vm15, 1, %v18645_v5  ;;  %v5070_v17 = vsel %vm11123_vm4, 1, %v18645_v5 }
 0x1d3   : > { %v11109_v8 = vpop.permute.xlu1 %5311  ;;  %v11111_v39 = vpop.permute.xlu0 %5308  ;;  %vm11147_vm3 = vcmp.ne.s16.totalorder %v19148_v23, 0  ;;  %vm11180_vm7 = vcmp.ne.s32.totalorder %v4463_v33, 0  ;;  %vm11184_vm6 = vcmp.ne.s32.totalorder %v4464_v3, 0  ;;  %v4465_v14 = vunpack.c.l.b16 %v4161_v54  ;;  %v19158_v3 = vld [vmem:[#allocation60_spill] sm:$0xff] }
 0x1d4   : > { %5500 = vperm.xlu1 %8402, %v5067_v40   ;;  %5503 = vperm.xlu0 %8401, %v5068_v60   ;;  %v19145_v40 = vrot.slane %v19144_v35, %v8769_v27  ;;  %v11167_v35 = vsel %vm1468_vm11, 65537, %v18645_v5  ;;  %v4466_v49 = vunpack.c.l.b16 %v4162_v7  ;;  %v4163_v57 = vsel %vm11027_vm5, 65537, %v18645_v5 }
 0x1d5   : > { %19153 = vst [vmem:[#allocation94_spill] sm:$0xff] %v11167_v35  ;;  %v4164_v33 = vsel %vm11034_vm10, 65537, %v18645_v5  ;;  %v19162_v7 = vrot.slane %v19158_v3, %v8772_v25  ;;  %v5071_v31 = vsel %vm11180_vm7, 1, %v18645_v5  ;;  %v5072_v6 = vsel %vm11184_vm6, 1, %v18645_v5 }
 0x1d6   : > { %vm11140_vm0 = vcmp.ne.s16.totalorder %v19145_v40, 0  ;;  %v11161_v40 = vsel %vm1465_vm12, 65537, %v18645_v5  ;;  %vm11239_vm10 = vcmp.ne.s32.totalorder %v4465_v14, 0  ;;  %vm11243_vm12 = vcmp.ne.s32.totalorder %v4466_v49, 0  ;;  %v19172_v49 = vld [vmem:[#allocation63_spill] sm:$0xff] }
 0x1d7   : > { %19152 = vst [vmem:[#allocation61_spill] sm:$0xff] %v11161_v40  ;;  %v11170_v23 = vpop.permute.xlu1 %5314  ;;  %v11172_v48 = vpop.permute.xlu0 %5317  ;;  %vm11208_vm9 = vcmp.ne.s16.totalorder %v19162_v7, 0  ;;  %v19167_v7 = vld [vmem:[#allocation23_spill] sm:$0xff]  ;;  %v4467_v34 = vunpack.c.l.b16 %v4163_v57  ;;  %v4468_v40 = vunpack.c.l.b16 %v4164_v33  ;;  %v4166_v14 = vsel %vm11093_vm13, 65537, %v18645_v5 }
 0x1d8   : > { %5506 = vperm.xlu1 %8402, %v5069_v44   ;;  %5509 = vperm.xlu0 %8401, %v5070_v17   ;;  %v19159_v44 = vrot.slane %v19158_v3, %v8769_v27  ;;  %v11226_v3 = vsel %vm1470_vm14, 65537, %v18645_v5  ;;  %vm1469_vm5 = vcmp.ne.bf16.partialorder %v19167_v7, 0  ;;  %v19173_v16 = vrot.slane %v19172_v49, %v8769_v27  ;;  %v19234_v17 = vld [vmem:[#allocation37_spill] sm:$0xff] }
 0x1d9   : > { %19166 = vst [vmem:[#allocation95_spill] sm:$0xff] %v11226_v3  ;;  %v19176_v33 = vrot.slane %v19172_v49, %v8772_v25  ;;  %vm1471_vm13 = vcmp.ne.bf16.partialorder %v19180_v29, 0  ;;  %vm1474_vm4 = vcmp.ne.bf16.partialorder %v9980_v52, 0  ;;  %v5073_v18 = vsel %vm11239_vm10, 1, %v18645_v5  ;;  %v19220_v52 = vld [vmem:[#allocation34_spill] sm:$0xff] }
 0x1da   : > { %vm11201_vm8 = vcmp.ne.s16.totalorder %v19159_v44, 0  ;;  %v11221_v44 = vsel %vm1467_vm1, 65537, %v18645_v5  ;;  %vm11260_vm11 = vcmp.ne.s16.totalorder %v19173_v16, 0  ;;  %v11278_v16 = vsel %vm1469_vm5, 65537, %v18645_v5 }
 0x1db   : > { %19165 = vst [vmem:[#allocation60_spill] sm:$0xff] %v11221_v44  ;;  %v11229_v15 = vpop.permute.xlu1 %5320  ;;  %v11231_v51 = vpop.permute.xlu0 %5323  ;;  %vm11267_vm15 = vcmp.ne.s16.totalorder %v19176_v33, 0  ;;  %19179 = vst [vmem:[#allocation23_spill] sm:$0xff] %v11278_v16  ;;  %v5074_v7 = vsel %vm11243_vm12, 1, %v18645_v5  ;;  %vm11293_vm1 = vcmp.ne.s32.totalorder %v4467_v34, 0  ;;  %vm11297_vm14 = vcmp.ne.s32.totalorder %v4468_v40, 0 }
 0x1dc   : > { %5512 = vperm.xlu1 %8402, %v5071_v31   ;;  %5515 = vperm.xlu0 %8401, %v5072_v6   ;;  %v4165_v31 = vsel %vm11086_vm2, 65537, %v18645_v5  ;;  %vm1472_vm2 = vcmp.ne.bf16.partialorder %v9939_v43, 0  ;;  %v4470_v44 = vunpack.c.l.b16 %v4166_v14  ;;  %v4167_v38 = vsel %vm11140_vm0, 65537, %v18645_v5  ;;  %v19185_v40 = vld [vmem:[#allocation62_spill] sm:$0xff] }
 0x1dd   : > { %v4469_v35 = vunpack.c.l.b16 %v4165_v31  ;;  %v4168_v34 = vsel %vm11147_vm3, 65537, %v18645_v5  ;;  %v19189_v14 = vrot.slane %v19185_v40, %v8772_v25  ;;  %v11330_v60 = vsel %vm1472_vm2, 65537, %v18645_v5 }
 0x1de   : > { %19192 = vst [vmem:[#allocation63_spill] sm:$0xff] %v11330_v60  ;;  %vm1473_vm0 = vcmp.ne.bf16.partialorder %v9982_v1, 0  ;;  %vm1476_vm3 = vcmp.ne.bf16.partialorder %v10033_v46, 0  ;;  %v5075_v43 = vsel %vm11293_vm1, 1, %v18645_v5  ;;  %v5076_v29 = vsel %vm11297_vm14, 1, %v18645_v5 }
 0x1df   : > { %v11283_v49 = vpop.permute.xlu1 %5326  ;;  %v11285_v33 = vpop.permute.xlu0 %5329  ;;  %vm11321_vm6 = vcmp.ne.s16.totalorder %v19189_v14, 0  ;;  %vm11354_vm5 = vcmp.ne.s32.totalorder %v4469_v35, 0  ;;  %vm11358_vm10 = vcmp.ne.s32.totalorder %v4470_v44, 0  ;;  %v4471_v58 = vunpack.c.l.b16 %v4167_v38  ;;  %v19199_v44 = vld [vmem:[#allocation7_spill] sm:$0xff]  ;;  %v19269_v38 = vld [vmem:[#allocation10_spill] sm:$0xff] }
 0x1e0   : > { %5518 = vperm.xlu1 %8402, %v5073_v18   ;;  %5521 = vperm.xlu0 %8401, %v5074_v7   ;;  %v19186_v18 = vrot.slane %v19185_v40, %v8769_v27  ;;  %v11341_v40 = vsel %vm1474_vm4, 65537, %v18645_v5  ;;  %v4472_v3 = vunpack.c.l.b16 %v4168_v34  ;;  %v4169_v11 = vsel %vm11201_vm8, 65537, %v18645_v5 }
 0x1e1   : > { %19194 = vst [vmem:[#allocation62_spill] sm:$0xff] %v11341_v40  ;;  %v4170_v35 = vsel %vm11208_vm9, 65537, %v18645_v5  ;;  %v19203_v34 = vrot.slane %v19199_v44, %v8772_v25  ;;  %vm1475_vm8 = vcmp.ne.bf16.partialorder %v10035_v12, 0  ;;  %v5077_v16 = vsel %vm11354_vm5, 1, %v18645_v5 }
 0x1e2   : > { %vm11314_vm7 = vcmp.ne.s16.totalorder %v19186_v18, 0  ;;  %v11335_v18 = vsel %vm1471_vm13, 65537, %v18645_v5  ;;  %v5078_v1 = vsel %vm11358_vm10, 1, %v18645_v5  ;;  %vm11413_vm9 = vcmp.ne.s32.totalorder %v4471_v58, 0 }
 0x1e3   : > { %19193 = vst [vmem:[#allocation28_spill] sm:$0xff] %v11335_v18  ;;  %v11344_v14 = vpop.permute.xlu1 %5332  ;;  %v11346_v36 = vpop.permute.xlu0 %5335  ;;  %vm11382_vm2 = vcmp.ne.s16.totalorder %v19203_v34, 0  ;;  %vm11417_vm13 = vcmp.ne.s32.totalorder %v4472_v3, 0  ;;  %v4473_v54 = vunpack.c.l.b16 %v4169_v11  ;;  %v4474_v60 = vunpack.c.l.b16 %v4170_v35  ;;  %v19212_v3 = vld [vmem:[#allocation6_spill] sm:$0xff] }
 0x1e4   : > { %5524 = vperm.xlu1 %8402, %v5075_v43   ;;  %5527 = vperm.xlu0 %8401, %v5076_v29   ;;  %v19200_v43 = vrot.slane %v19199_v44, %v8769_v27  ;;  %v11400_v44 = vsel %vm1476_vm3, 65537, %v18645_v5  ;;  %v4172_v58 = vsel %vm11267_vm15, 65537, %v18645_v5  ;;  %v19213_v28 = vrot.slane %v19212_v3, %v8769_v27 }
 0x1e5   : > { %19207 = vst [vmem:[#allocation96_spill] sm:$0xff] %v11400_v44  ;;  %v19216_v35 = vrot.slane %v19212_v3, %v8772_v25  ;;  %vm1477_vm15 = vcmp.ne.bf16.partialorder %v19220_v52, 0  ;;  %vm1480_vm14 = vcmp.ne.bf16.partialorder %v10137_v45, 0  ;;  %v5079_v57 = vsel %vm11413_vm9, 1, %v18645_v5 }
 0x1e6   : > { %vm11375_vm12 = vcmp.ne.s16.totalorder %v19200_v43, 0  ;;  %v11395_v43 = vsel %vm1473_vm0, 65537, %v18645_v5  ;;  %vm11434_vm4 = vcmp.ne.s16.totalorder %v19213_v28, 0  ;;  %v11452_v28 = vsel %vm1475_vm8, 65537, %v18645_v5 }
 0x1e7   : > { %19206 = vst [vmem:[#allocation7_spill] sm:$0xff] %v11395_v43  ;;  %v11403_v34 = vpop.permute.xlu1 %5338  ;;  %v11405_v42 = vpop.permute.xlu0 %5341  ;;  %vm11441_vm1 = vcmp.ne.s16.totalorder %v19216_v35, 0  ;;  %19219 = vst [vmem:[#allocation6_spill] sm:$0xff] %v11452_v28  ;;  %v5080_v12 = vsel %vm11417_vm13, 1, %v18645_v5  ;;  %vm11467_vm0 = vcmp.ne.s32.totalorder %v4473_v54, 0  ;;  %vm11471_vm3 = vcmp.ne.s32.totalorder %v4474_v60, 0 }
 0x1e8   : > { %5530 = vperm.xlu1 %8402, %v5077_v16   ;;  %5533 = vperm.xlu0 %8401, %v5078_v1   ;;  %v4171_v16 = vsel %vm11260_vm11, 65537, %v18645_v5  ;;  %vm1478_vm11 = vcmp.ne.bf16.partialorder %v10092_v4, 0  ;;  %v4476_v43 = vunpack.c.l.b16 %v4172_v58  ;;  %v4174_v54 = vsel %vm11321_vm6, 65537, %v18645_v5  ;;  %v19225_v60 = vld [vmem:[#allocation9_spill] sm:$0xff] }
 0x1e9   : > { %v4475_v40 = vunpack.c.l.b16 %v4171_v16  ;;  %v19229_v58 = vrot.slane %v19225_v60, %v8772_v25  ;;  %v11504_v7 = vsel %vm1478_vm11, 65537, %v18645_v5  ;;  %v5081_v52 = vsel %vm11467_vm0, 1, %v18645_v5 }
 0x1ea   : > { %19232 = vst [vmem:[#allocation34_spill] sm:$0xff] %v11504_v7  ;;  %v5082_v44 = vsel %vm11471_vm3, 1, %v18645_v5  ;;  %vm11533_vm9 = vcmp.ne.s32.totalorder %v4476_v43, 0  ;;  %v4478_v22 = vunpack.c.l.b16 %v4174_v54  ;;  %v4175_v18 = vsel %vm11375_vm12, 65537, %v18645_v5  ;;  %v19242_v43 = vld [vmem:[#allocation8_spill] sm:$0xff] }
 0x1eb   : > { %v11457_v3 = vpop.permute.xlu1 %5344  ;;  %v11459_v35 = vpop.permute.xlu0 %5347  ;;  %vm11495_vm10 = vcmp.ne.s16.totalorder %v19229_v58, 0  ;;  %v19236_v58 = vld [vmem:[#allocation46_spill] sm:$0xff]  ;;  %vm11529_vm8 = vcmp.ne.s32.totalorder %v4475_v40, 0  ;;  %v4176_v40 = vsel %vm11382_vm2, 65537, %v18645_v5  ;;  %v19246_v54 = vrot.slane %v19242_v43, %v8772_v25 }
 0x1ec   : > { %5536 = vperm.xlu1 %8402, %v5079_v57   ;;  %5539 = vperm.xlu0 %8401, %v5080_v12   ;;  %v4173_v57 = vsel %vm11314_vm7, 65537, %v18645_v5  ;;  %v19226_v12 = vrot.slane %v19225_v60, %v8769_v27  ;;  %vm1479_vm7 = vcmp.ne.bf16.partialorder %v19234_v17, 0  ;;  %v11516_v60 = vsel %vm1480_vm14, 65537, %v18645_v5 }
 0x1ed   : > { %19235 = vst [vmem:[#allocation37_spill] sm:$0xff] %v11516_v60  ;;  %vm1482_vm6 = vcmp.ne.bf16.partialorder %v19236_v58, 0  ;;  %v4477_v61 = vunpack.c.l.b16 %v4173_v57  ;;  %vm11563_vm11 = vcmp.ne.s16.totalorder %v19246_v54, 0  ;;  %v19251_v54 = vld [vmem:[#allocation72_spill] sm:$0xff]  ;;  %v5083_v53 = vsel %vm11529_vm8, 1, %v18645_v5 }
 0x1ee   : > { %vm11488_vm5 = vcmp.ne.s16.totalorder %v19226_v12, 0  ;;  %v11509_v12 = vsel %vm1477_vm15, 65537, %v18645_v5  ;;  %vm1481_vm12 = vcmp.ne.bf16.partialorder %v19251_v54, 0  ;;  %v5084_v17 = vsel %vm11533_vm9, 1, %v18645_v5  ;;  %v19278_v58 = vld [vmem:[#allocation44_spill] sm:$0xff] }
 0x1ef   : > { %19233 = vst [vmem:[#allocation9_spill] sm:$0xff] %v11509_v12  ;;  %v11519_v31 = vpop.permute.xlu1 %5350  ;;  %v11521_v4 = vpop.permute.xlu0 %5353  ;;  %vm11594_vm2 = vcmp.ne.s32.totalorder %v4477_v61, 0  ;;  %vm11598_vm15 = vcmp.ne.s32.totalorder %v4478_v22, 0  ;;  %v4479_v7 = vunpack.c.l.b16 %v4175_v18  ;;  %v4480_v12 = vunpack.c.l.b16 %v4176_v40  ;;  %v19256_v22 = vld [vmem:[#allocation64_spill] sm:$0xff] }
 0x1f0   : > { %5542 = vperm.xlu1 %8402, %v5081_v52   ;;  %5545 = vperm.xlu0 %8401, %v5082_v44   ;;  %v19243_v44 = vrot.slane %v19242_v43, %v8769_v27  ;;  %v11581_v43 = vsel %vm1482_vm6, 65537, %v18645_v5  ;;  %v4178_v61 = vsel %vm11441_vm1, 65537, %v18645_v5  ;;  %v19257_v28 = vrot.slane %v19256_v22, %v8769_v27  ;;  %v346_v52 = vld [vmem:[%s11729_s17 + $0x4] sm:$0xf]  ;;  %v347_v18 = vld [vmem:[%s11729_s17 + $0x8] sm:$0xf] }
 0x1f1   : > { %19250 = vst [vmem:[#allocation8_spill] sm:$0xff] %v11581_v43  ;;  %v19260_v40 = vrot.slane %v19256_v22, %v8772_v25  ;;  %vm1483_vm1 = vcmp.ne.bf16.partialorder %v10253_v2, 0  ;;  %v19264_v22 = vld [vmem:[#allocation43_spill] sm:$0xff]  ;;  %v5085_v1 = vsel %vm11594_vm2, 1, %v18645_v5  ;;  %v5086_v54 = vsel %vm11598_vm15, 1, %v18645_v5 }
 0x1f2   : > { %vm11556_vm13 = vcmp.ne.s16.totalorder %v19243_v44, 0  ;;  %v11576_v44 = vsel %vm1479_vm7, 65537, %v18645_v5  ;;  %vm11621_vm14 = vcmp.ne.s16.totalorder %v19257_v28, 0  ;;  %v11639_v28 = vsel %vm1481_vm12, 65537, %v18645_v5 }
 0x1f3   : > { %19249 = vst [vmem:[#allocation46_spill] sm:$0xff] %v11576_v44  ;;  %v11584_v6 = vpop.permute.xlu1 %5356  ;;  %v11586_v29 = vpop.permute.xlu0 %5359  ;;  %vm11628_vm0 = vcmp.ne.s16.totalorder %v19260_v40, 0  ;;  %19263 = vst [vmem:[#allocation72_spill] sm:$0xff] %v11639_v28  ;;  %vm1486_vm3 = vcmp.ne.bf16.partialorder %v19264_v22, 0  ;;  %vm11654_vm7 = vcmp.ne.s32.totalorder %v4479_v7, 0  ;;  %vm11658_vm6 = vcmp.ne.s32.totalorder %v4480_v12, 0 }
 0x1f4   : > { %5548 = vperm.xlu1 %8402, %v5083_v53   ;;  %5551 = vperm.xlu0 %8401, %v5084_v17   ;;  %v4177_v53 = vsel %vm11434_vm4, 65537, %v18645_v5  ;;  %vm1484_vm4 = vcmp.ne.bf16.partialorder %v10251_v50, 0  ;;  %v4482_v44 = vunpack.c.l.b16 %v4178_v61  ;;  %v4179_v7 = vsel %vm11488_vm5, 65537, %v18645_v5 }
 0x1f5   : > { %v4481_v60 = vunpack.c.l.b16 %v4177_v53  ;;  %v4180_v12 = vsel %vm11495_vm10, 65537, %v18645_v5  ;;  %v19273_v61 = vrot.slane %v19269_v38, %v8772_v25  ;;  %v11692_v46 = vsel %vm1484_vm4, 65537, %v18645_v5 }
 0x1f6   : > { %19276 = vst [vmem:[#allocation64_spill] sm:$0xff] %v11692_v46  ;;  %vm1485_vm5 = vcmp.ne.bf16.partialorder %v19278_v58, 0  ;;  %vm6220_vm10 = vcmp.eq.s32.totalorder %v11109_v8, 1  ;;  %v5087_v50 = vsel %vm11654_vm7, 1, %v18645_v5  ;;  %v5088_v2 = vsel %vm11658_vm6, 1, %v18645_v5 }
 0x1f7   : > { %v11644_v40 = vpop.permute.xlu1 %5362  ;;  %v11646_v45 = vpop.permute.xlu0 %5365  ;;  %vm11683_vm9 = vcmp.ne.s16.totalorder %v19273_v61, 0  ;;  %vm11716_vm12 = vcmp.ne.s32.totalorder %v4481_v60, 0  ;;  %vm11720_vm2 = vcmp.ne.s32.totalorder %v4482_v44, 0  ;;  %v4483_v43 = vunpack.c.l.b16 %v4179_v7  ;;  %v19284_v44 = vld [vmem:[#allocation13_spill] sm:$0xff]  ;;  %v345_v46 = vld [vmem:[%s11729_s17] sm:$0xf] }
 0x1f8   : > { %5554 = vperm.xlu1 %8402, %v5085_v1   ;;  %5557 = vperm.xlu0 %8401, %v5086_v54   ;;  %v19270_v1 = vrot.slane %v19269_v38, %v8769_v27  ;;  %v11703_v38 = vsel %vm1486_vm3, 65537, %v18645_v5  ;;  %v4484_v28 = vunpack.c.l.b16 %v4180_v12  ;;  %vm6219_vm15 = vcmp.eq.s32.totalorder %v11111_v39, 1  ;;  %vm11769_vm3 = vmpackc.low %vm6220_vm10, %vm6220_vm10 }
 0x1f9   : > { %19279 = vst [vmem:[#allocation10_spill] sm:$0xff] %v11703_v38  ;;  %v4181_v56 = vsel %vm11556_vm13, 65537, %v18645_v5  ;;  %v4182_v60 = vsel %vm11563_vm11, 65537, %v18645_v5  ;;  %v19285_v7 = vrot.slane %v19284_v44, %v8769_v27  ;;  %vm1488_vm13 = vcmp.ne.bf16.partialorder %v10363_v0, 0  ;;  %vm11788_vm7 = vmpackc.low %vm6219_vm15, %vm6219_vm15  ;;  %v19308_v38 = vld [vmem:[#allocation47_spill] sm:$0xff] }
 0x1fa   : > { %vm11676_vm8 = vcmp.ne.s16.totalorder %v19270_v1, 0  ;;  %v11697_v1 = vsel %vm1483_vm1, 65537, %v18645_v5  ;;  %vm341_vm11 = vcmask 261120   ;;  %v5089_v58 = vsel %vm11716_vm12, 1, %v18645_v5 }
 0x1fb   : > { %19277 = vst [vmem:[#allocation43_spill] sm:$0xff] %v11697_v1  ;;  %v11706_v61 = vpop.permute.xlu1 %5368  ;;  %v11708_v16 = vpop.permute.xlu0 %5371  ;;  %vm11741_vm4 = vcmp.ne.s16.totalorder %v19285_v7, 0  ;;  %v11761_v7 = vsel %vm1485_vm5, 65537, %v18645_v5  ;;  %vm11792_vm6 = vcmp.ne.s32.totalorder %v4483_v43, 0  ;;  %vm11796_vm5 = vcmp.ne.s32.totalorder %v4484_v28, 0  ;;  %v19300_v28 = vld [vmem:[#allocation12_spill] sm:$0xff] }
 0x1fc   : > { %5560 = vperm.xlu1 %8402, %v5087_v50   ;;  %5563 = vperm.xlu0 %8401, %v5088_v2   ;;  %v19288_v50 = vrot.slane %v19284_v44, %v8772_v25  ;;  %19291 = vst [vmem:[#allocation44_spill] sm:$0xff] %v11761_v7  ;;  %v5090_v44 = vsel %vm11720_vm2, 1, %v18645_v5  ;;  %v4485_v20 = vunpack.c.l.b16 %v4181_v56  ;;  %v4486_v55 = vunpack.c.l.b16 %v4182_v60 }
 0x1fd   : > { %vm6221_vm10 = vcmp.eq.s32.totalorder %v11170_v23, 1  ;;  %v4184_v43 = vsel %vm11628_vm0, 65537, %v18645_v5  ;;  %v19304_v60 = vrot.slane %v19300_v28, %v8772_v25  ;;  %v5091_v17 = vsel %vm11792_vm6, 1, %v18645_v5  ;;  %v19324_v23 = vld [vmem:[#allocation49_spill] sm:$0xff] }
 0x1fe   : > { %vm11748_vm1 = vcmp.ne.s16.totalorder %v19288_v50, 0  ;;  %v5092_v0 = vsel %vm11796_vm5, 1, %v18645_v5  ;;  %vm11851_vm0 = vmpackc.low %vm6221_vm10, %vm6221_vm10  ;;  %vm11855_vm15 = vcmp.ne.s32.totalorder %v4485_v20, 0  ;;  %v4488_v8 = vunpack.c.l.b16 %v4184_v43 }
 0x1ff   : > { %v11773_v57 = vpop.permute.xlu1 %5374  ;;  %v11775_v11 = vpop.permute.xlu0 %5377  ;;  %vm11819_vm2 = vcmp.ne.s16.totalorder %v19304_v60, 0  ;;  %v6827_v60 = vsel %vm11788_vm7, %v345_v46, 0  ;;  %v4185_v20 = vsel %vm11676_vm8, 65537, %v18645_v5  ;;  %vm1490_vm8 = vcmp.ne.bf16.partialorder %v19324_v23, 0  ;;  %v19339_v46 = vld [vmem:[#allocation77_spill] sm:$0xff] }
 0x200   : > { %5566 = vperm.xlu1 %8402, %v5089_v58   ;;  %5569 = vperm.xlu0 %8401, %v5090_v44   ;;  %v4183_v44 = vsel %vm11621_vm14, 65537, %v18645_v5  ;;  %v19301_v58 = vrot.slane %v19300_v28, %v8769_v27  ;;  %vm1487_vm14 = vcmp.ne.bf16.partialorder %v19308_v38, 0  ;;  %v6828_v28 = vsel %vm11769_vm3, %v346_v52, 0 }
 0x201   : > { %v4487_v50 = vunpack.c.l.b16 %v4183_v44  ;;  %v11868_v22 = vsel %vm1487_vm14, 65537, %v18645_v5  ;;  %v7133_v54 = vunpack.c.l.bf16 %v6828_v28  ;;  %v7132_v7 = vunpack.c.l.bf16 %v6827_v60  ;;  %v19362_v28 = vld [vmem:[#allocation16_spill] sm:$0xff] }
 0x202   : > { %vm11812_vm12 = vcmp.ne.s16.totalorder %v19301_v58, 0  ;;  %v11830_v58 = vsel %vm1488_vm13, 65537, %v18645_v5  ;;  %vm11859_vm13 = vcmp.ne.s32.totalorder %v4486_v55, 0  ;;  %19316 = vst [vmem:[#allocation47_spill] sm:$0xff] %v11868_v22  ;;  %v4186_v55 = vsel %vm11683_vm9, 65537, %v18645_v5 }
 0x203   : > { %19307 = vst [vmem:[#allocation13_spill] sm:$0xff] %v11830_v58  ;;  %v11837_v37 = vpop.permute.xlu1 %5380  ;;  %v11839_v59 = vpop.permute.xlu0 %5383  ;;  %vm6222_vm9 = vcmp.eq.s32.totalorder %v11172_v48, 1  ;;  %vm11906_vm6 = vcmp.ne.s32.totalorder %v4487_v50, 0  ;;  %vm11910_vm5 = vcmp.ne.s32.totalorder %v4488_v8, 0  ;;  %v4489_v60 = vunpack.c.l.b16 %v4185_v20  ;;  %v19331_v8 = vld [vmem:[#allocation14_spill] sm:$0xff] }
 0x204   : > { %19309 = vst [vmem:[#allocation12_spill] sm:$0xff] %v11839_v59  ;;  %5572 = vperm.xlu1 %8402, %v5091_v17   ;;  %5575 = vperm.xlu0 %8401, %v5092_v0   ;;  %v19317_v17 = vld [vmem:[#allocation15_spill] sm:$0xff]  ;;  %v4490_v52 = vunpack.c.l.b16 %v4186_v55  ;;  %vm6223_vm10 = vcmp.eq.s32.totalorder %v11229_v15, 1  ;;  %v4187_v1 = vsel %vm11741_vm4, 65537, %v18645_v5  ;;  %v4188_v50 = vsel %vm11748_vm1, 65537, %v18645_v5  ;;  %vm11951_vm1 = vmpackc.low %vm6222_vm9, %vm6222_vm9 }
 0x205   : > { %v19318_v44 = vrot.slane %v19317_v17, %v8769_v27  ;;  %v19321_v38 = vrot.slane %v19317_v17, %v8772_v25  ;;  %v5093_v17 = vsel %vm11855_vm15, 1, %v18645_v5  ;;  %v19335_v55 = vrot.slane %v19331_v8, %v8772_v25  ;;  %vm11969_vm15 = vmpackc.low %vm6223_vm10, %vm6223_vm10 }
 0x206   : > { %v11942_v2 = vsel %vm1490_vm8, 65537, %v18645_v5  ;;  %vm1489_vm4 = vcmp.ne.bf16.partialorder %v19339_v46, 0  ;;  %v7437_v53 = vsel %vm341_vm11, %v7132_v7, 0.0  ;;  %v5095_v22 = vsel %vm11906_vm6, 1, %v18645_v5 }
 0x207   : > { %vm11879_vm3 = vcmp.ne.s16.totalorder %v19318_v44, 0  ;;  %vm11886_vm7 = vcmp.ne.s16.totalorder %v19321_v38, 0  ;;  %v6829_v44 = vsel %vm11851_vm0, %v347_v18, 0  ;;  %v11896_v32 = vpop.permute.xlu1 %5386  ;;  %v11898_v59 = vpop.permute.xlu0 %5389  ;;  %v5094_v38 = vsel %vm11859_vm13, 1, %v18645_v5  ;;  %19338 = vst [vmem:[#allocation14_spill] sm:$0xff] %v11942_v2 }
 0x208   : > { %19325 = vst [vmem:[#allocation15_spill] sm:$0xff] %v11896_v32  ;;  %19326 = vst [vmem:[#allocation49_spill] sm:$0xff] %v11898_v59  ;;  %5578 = vperm.xlu1 %8402, %v5093_v17   ;;  %5581 = vperm.xlu0 %8401, %v5094_v38   ;;  %v19332_v17 = vrot.slane %v19331_v8, %v8769_v27  ;;  %vm11933_vm0 = vcmp.ne.s16.totalorder %v19335_v55, 0  ;;  %v7134_v58 = vunpack.c.l.bf16 %v6829_v44  ;;  %v348_v8 = vld [vmem:[%s11729_s17 + $0xc] sm:$0xf]  ;;  %v5096_v7 = vsel %vm11910_vm5, 1, %v18645_v5 }
 0x209   : > { %vm11973_vm13 = vcmp.ne.s32.totalorder %v4489_v60, 0  ;;  %vm11977_vm8 = vcmp.ne.s32.totalorder %v4490_v52, 0  ;;  %v4491_v18 = vunpack.c.l.b16 %v4187_v1  ;;  %v4190_v60 = vsel %vm11819_vm2, 65537, %v18645_v5  ;;  %v19351_v52 = vld [vmem:[#allocation66_spill] sm:$0xff] }
 0x20a   : > { %vm11926_vm14 = vcmp.ne.s16.totalorder %v19332_v17, 0  ;;  %v7438_v17 = vsel %vm341_vm11, %v7133_v54, 0.0  ;;  %v349_v54 = vld [vmem:[%s11729_s17 + $0x10] sm:$0xf]  ;;  %v19352_v1 = vrot.slane %v19351_v52, %v8769_v27  ;;  %v19355_v46 = vrot.slane %v19351_v52, %v8772_v25 }
 0x20b   : > { %v11955_v12 = vpop.permute.xlu1 %5392  ;;  %v11957_v23 = vpop.permute.xlu0 %5395  ;;  %v7439_v15 = vadd.f32 %v7438_v17, %v7437_v53  ;;  %v6830_v39 = vsel %vm11951_vm1, %v348_v8, 0  ;;  %v6831_v59 = vsel %vm11969_vm15, %v349_v54, 0  ;;  %v5098_v53 = vsel %vm11977_vm8, 1, %v18645_v5  ;;  %v19391_v17 = vld [vmem:[#allocation17_spill] sm:$0xff] }
 0x20c   : > { %19342 = vst [vmem:[#allocation77_spill] sm:$0xff] %v11955_v12  ;;  %19343 = vst [vmem:[#allocation97_spill] sm:$0xff] %v11957_v23  ;;  %5584 = vperm.xlu1 %8402, %v5095_v22   ;;  %5587 = vperm.xlu0 %8401, %v5096_v7   ;;  %v4492_v23 = vunpack.c.l.b16 %v4188_v50  ;;  %v11986_v12 = vsel %vm1489_vm4, 65537, %v18645_v5  ;;  %v4189_v22 = vsel %vm11812_vm12, 65537, %v18645_v5  ;;  %vm11997_vm9 = vcmp.ne.s16.totalorder %v19352_v1, 0 }
 0x20d   : > { %19350 = vst [vmem:[#allocation98_spill] sm:$0xff] %v11986_v12  ;;  %vm12004_vm6 = vcmp.ne.s16.totalorder %v19355_v46, 0  ;;  %vm6224_vm12 = vcmp.eq.s32.totalorder %v11231_v51, 1  ;;  %v7440_v1 = vsel %vm341_vm11, %v7134_v58, 0.0  ;;  %v5097_v46 = vsel %vm11973_vm13, 1, %v18645_v5 }
 0x20e   : > { %vm12026_vm2 = vcmp.ne.s32.totalorder %v4491_v18, 0  ;;  %vm12030_vm5 = vcmp.ne.s32.totalorder %v4492_v23, 0  ;;  %v4493_v8 = vunpack.c.l.b16 %v4189_v22  ;;  %v4494_v55 = vunpack.c.l.b16 %v4190_v60  ;;  %vm12065_vm15 = vmpackc.low %vm6224_vm12, %vm6224_vm12 }
 0x20f   : > { %v12016_v32 = vpop.permute.xlu1 %5398  ;;  %v12018_v52 = vpop.permute.xlu0 %5401  ;;  %v7135_v54 = vunpack.c.l.bf16 %v6830_v39  ;;  %vm6225_vm10 = vcmp.eq.s32.totalorder %v11283_v49, 1  ;;  %v4191_v48 = vsel %vm11879_vm3, 65537, %v18645_v5  ;;  %v4192_v44 = vsel %vm11886_vm7, 65537, %v18645_v5 }
 0x210   : > { %5590 = vperm.xlu1 %8402, %v5097_v46   ;;  %5593 = vperm.xlu0 %8401, %v5098_v53   ;;  %v19363_v23 = vrot.slane %v19362_v28, %v8769_v27  ;;  %v19366_v22 = vrot.slane %v19362_v28, %v8772_v25  ;;  %vm1492_vm3 = vcmp.ne.bf16.partialorder %v10480_v24, 0  ;;  %v7441_v39 = vadd.f32 %v7440_v1, %v7439_v15  ;;  %v350_v53 = vld [vmem:[%s11729_s17 + $0x14] sm:$0xf]  ;;  %v351_v15 = vld [vmem:[%s11729_s17 + $0x18] sm:$0xf]  ;;  %vm12083_vm13 = vmpackc.low %vm6225_vm10, %vm6225_vm10 }
 0x211   : > { %vm1491_vm7 = vcmp.ne.bf16.partialorder %v10482_v26, 0  ;;  %v7136_v46 = vunpack.c.l.bf16 %v6831_v59  ;;  %v5099_v56 = vsel %vm12026_vm2, 1, %v18645_v5  ;;  %v5100_v59 = vsel %vm12030_vm5, 1, %v18645_v5 }
 0x212   : > { %vm12044_vm4 = vcmp.ne.s16.totalorder %v19363_v23, 0  ;;  %vm12051_vm1 = vcmp.ne.s16.totalorder %v19366_v22, 0  ;;  %vm12087_vm8 = vcmp.ne.s32.totalorder %v4493_v8, 0  ;;  %vm12091_vm12 = vcmp.ne.s32.totalorder %v4494_v55, 0  ;;  %v19378_v55 = vld [vmem:[#allocation19_spill] sm:$0xff] }
 0x213   : > { %v12069_v23 = vpop.permute.xlu1 %5404  ;;  %v12071_v22 = vpop.permute.xlu0 %5407  ;;  %v4495_v58 = vunpack.c.l.b16 %v4191_v48  ;;  %v4496_v0 = vunpack.c.l.b16 %v4192_v44  ;;  %v12098_v49 = vsel %vm1492_vm3, 65537, %v18645_v5  ;;  %v7442_v43 = vsel %vm341_vm11, %v7135_v54, 0.0 }
 0x214   : > { %5596 = vperm.xlu1 %8402, %v5099_v56   ;;  %5599 = vperm.xlu0 %8401, %v5100_v59   ;;  %19377 = vst [vmem:[#allocation66_spill] sm:$0xff] %v12098_v49  ;;  %v4193_v56 = vsel %vm11926_vm14, 65537, %v18645_v5  ;;  %v4194_v8 = vsel %vm11933_vm0, 65537, %v18645_v5  ;;  %v19379_v59 = vrot.slane %v19378_v55, %v8769_v27  ;;  %v19382_v24 = vrot.slane %v19378_v55, %v8772_v25 }
 0x215   : > { %v12124_v20 = vsel %vm1491_vm7, 65537, %v18645_v5  ;;  %v7443_v38 = vadd.f32 %v7442_v43, %v7441_v39  ;;  %v6832_v44 = vsel %vm12065_vm15, %v350_v53, 0  ;;  %vm6226_vm14 = vcmp.eq.s32.totalorder %v11285_v33, 1 }
 0x216   : > { %vm12110_vm2 = vcmp.ne.s16.totalorder %v19379_v59, 0  ;;  %vm12117_vm5 = vcmp.ne.s16.totalorder %v19382_v24, 0  ;;  %19385 = vst [vmem:[#allocation16_spill] sm:$0xff] %v12124_v20  ;;  %v7444_v59 = vsel %vm341_vm11, %v7136_v46, 0.0  ;;  %v6833_v55 = vsel %vm12083_vm13, %v351_v15, 0 }
 0x217   : > { %v12132_v24 = vpop.permute.xlu1 %5410  ;;  %v12134_v2 = vpop.permute.xlu0 %5413  ;;  %v5101_v26 = vsel %vm12087_vm8, 1, %v18645_v5  ;;  %v5102_v43 = vsel %vm12091_vm12, 1, %v18645_v5  ;;  %vm12142_vm0 = vcmp.ne.s32.totalorder %v4495_v58, 0  ;;  %vm12146_vm10 = vcmp.ne.s32.totalorder %v4496_v0, 0 }
 0x218   : > { %19386 = vst [vmem:[#allocation19_spill] sm:$0xff] %v12134_v2  ;;  %5602 = vperm.xlu1 %8402, %v5101_v26   ;;  %5605 = vperm.xlu0 %8401, %v5102_v43   ;;  %v4497_v53 = vunpack.c.l.b16 %v4193_v56  ;;  %v4498_v28 = vunpack.c.l.b16 %v4194_v8  ;;  %v7137_v15 = vunpack.c.l.bf16 %v6832_v44  ;;  %vm6227_vm3 = vcmp.eq.s32.totalorder %v11344_v14, 1 }
 0x219   : > { %v4195_v51 = vsel %vm11997_vm9, 65537, %v18645_v5  ;;  %v4196_v1 = vsel %vm12004_vm6, 65537, %v18645_v5  ;;  %v19392_v0 = vrot.slane %v19391_v17, %v8769_v27  ;;  %v19395_v56 = vrot.slane %v19391_v17, %v8772_v25  ;;  %vm12182_vm6 = vmpackc.low %vm6226_vm14, %vm6226_vm14 }
 0x21a   : > { %v7445_v26 = vadd.f32 %v7444_v59, %v7443_v38  ;;  %vm1494_vm9 = vcmp.ne.bf16.partialorder %v10545_v9, 0  ;;  %v7138_v43 = vunpack.c.l.bf16 %v6833_v55  ;;  %v5103_v7 = vsel %vm12142_vm0, 1, %v18645_v5  ;;  %v353_v59 = vld [vmem:[%s11729_s17 + $0x20] sm:$0xf]  ;;  %vm12200_vm13 = vmpackc.low %vm6227_vm3, %vm6227_vm3 }
 0x21b   : > { %vm12160_vm7 = vcmp.ne.s16.totalorder %v19392_v0, 0  ;;  %vm12167_vm15 = vcmp.ne.s16.totalorder %v19395_v56, 0  ;;  %v352_v0 = vld [vmem:[%s11729_s17 + $0x1c] sm:$0xf]  ;;  %v12186_v56 = vpop.permute.xlu1 %5416  ;;  %v12188_v50 = vpop.permute.xlu0 %5419  ;;  %v5104_v38 = vsel %vm12146_vm10, 1, %v18645_v5  ;;  %vm12204_vm8 = vcmp.ne.s32.totalorder %v4497_v53, 0 }
 0x21c   : > { %19400 = vst [vmem:[#allocation17_spill] sm:$0xff] %v12186_v56  ;;  %19401 = vst [vmem:[#allocation99_spill] sm:$0xff] %v12188_v50  ;;  %5608 = vperm.xlu1 %8402, %v5103_v7   ;;  %5611 = vperm.xlu0 %8401, %v5104_v38   ;;  %vm12208_vm12 = vcmp.ne.s32.totalorder %v4498_v28, 0  ;;  %v4499_v46 = vunpack.c.l.b16 %v4195_v51  ;;  %v4500_v44 = vunpack.c.l.b16 %v4196_v1  ;;  %vm1493_vm14 = vcmp.ne.bf16.partialorder %v10547_v10, 0  ;;  %v19408_v7 = vld [vmem:[#allocation21_spill] sm:$0xff] }
 0x21d   : > { %v7446_v14 = vsel %vm341_vm11, %v7137_v15, 0.0  ;;  %v4197_v49 = vsel %vm12044_vm4, 65537, %v18645_v5  ;;  %v4198_v53 = vsel %vm12051_vm1, 65537, %v18645_v5  ;;  %v19409_v28 = vrot.slane %v19408_v7, %v8769_v27 }
 0x21e   : > { %v19412_v51 = vrot.slane %v19408_v7, %v8772_v25  ;;  %v12237_v18 = vsel %vm1494_vm9, 65537, %v18645_v5  ;;  %v7447_v60 = vadd.f32 %v7446_v14, %v7445_v26  ;;  %v6834_v1 = vsel %vm12182_vm6, %v352_v0, 0 }
 0x21f   : > { %vm12223_vm0 = vcmp.ne.s16.totalorder %v19409_v28, 0  ;;  %19415 = vst [vmem:[#allocation21_spill] sm:$0xff] %v12237_v18  ;;  %vm6228_vm4 = vcmp.eq.s32.totalorder %v11346_v36, 1  ;;  %v7448_v28 = vsel %vm341_vm11, %v7138_v43, 0.0  ;;  %v6835_v7 = vsel %vm12200_vm13, %v353_v59, 0  ;;  %v12247_v12 = vpop.permute.xlu0 %5425 }
 0x220   : > { %vm12230_vm10 = vcmp.ne.s16.totalorder %v19412_v51, 0  ;;  %v12245_v51 = vpop.permute.xlu1 %5422  ;;  %v5105_v9 = vsel %vm12204_vm8, 1, %v18645_v5  ;;  %v5106_v26 = vsel %vm12208_vm12, 1, %v18645_v5  ;;  %vm12255_vm1 = vcmp.ne.s32.totalorder %v4499_v46, 0  ;;  %v19420_v46 = vld [vmem:[#allocation20_spill] sm:$0xff] }
 0x221   : > { %5614 = vperm.xlu1 %8402, %v5105_v9   ;;  %5617 = vperm.xlu0 %8401, %v5106_v26   ;;  %vm12259_vm3 = vcmp.ne.s32.totalorder %v4500_v44, 0  ;;  %v4501_v17 = vunpack.c.l.b16 %v4197_v49  ;;  %v4502_v59 = vunpack.c.l.b16 %v4198_v53  ;;  %v7139_v33 = vunpack.c.l.bf16 %v6834_v1 }
 0x222   : > { %vm6229_vm9 = vcmp.eq.s32.totalorder %v11403_v34, 1  ;;  %v4199_v55 = vsel %vm12110_vm2, 65537, %v18645_v5  ;;  %v4200_v39 = vsel %vm12117_vm5, 65537, %v18645_v5  ;;  %v19421_v44 = vrot.slane %v19420_v46, %v8769_v27  ;;  %vm12299_vm2 = vmpackc.low %vm6228_vm4, %vm6228_vm4 }
 0x223   : > { %v19424_v49 = vrot.slane %v19420_v46, %v8772_v25  ;;  %v12291_v1 = vsel %vm1493_vm14, 65537, %v18645_v5  ;;  %v7449_v9 = vadd.f32 %v7448_v28, %v7447_v60  ;;  %v7140_v46 = vunpack.c.l.bf16 %v6835_v7  ;;  %v12305_v54 = vpop.permute.xlu0 %5431  ;;  %v355_v28 = vld [vmem:[%s11729_s17 + $0x28] sm:$0xf]  ;;  %vm12317_vm5 = vmpackc.low %vm6229_vm9, %vm6229_vm9 }
 0x224   : > { %vm12273_vm6 = vcmp.ne.s16.totalorder %v19421_v44, 0  ;;  %19427 = vst [vmem:[#allocation20_spill] sm:$0xff] %v12291_v1  ;;  %v354_v44 = vld [vmem:[%s11729_s17 + $0x24] sm:$0xf]  ;;  %v12303_v48 = vpop.permute.xlu1 %5428  ;;  %v5107_v10 = vsel %vm12255_vm1, 1, %v18645_v5  ;;  %v5108_v60 = vsel %vm12259_vm3, 1, %v18645_v5  ;;  %v4503_v43 = vunpack.c.l.b16 %v4199_v55 }
 0x225   : > { %vm12280_vm13 = vcmp.ne.s16.totalorder %v19424_v49, 0  ;;  %5620 = vperm.xlu1 %8402, %v5107_v10   ;;  %5623 = vperm.xlu0 %8401, %v5108_v60   ;;  %vm12321_vm8 = vcmp.ne.s32.totalorder %v4501_v17, 0  ;;  %vm12325_vm12 = vcmp.ne.s32.totalorder %v4502_v59, 0  ;;  %v4504_v26 = vunpack.c.l.b16 %v4200_v39  ;;  %v19436_v10 = vld [vmem:[#allocation67_spill] sm:$0xff] }
 0x226   : > { %vm1496_vm14 = vcmp.ne.bf16.partialorder %v10617_v63, 0  ;;  %v7450_v34 = vsel %vm341_vm11, %v7139_v33, 0.0  ;;  %v4201_v18 = vsel %vm12160_vm7, 65537, %v18645_v5  ;;  %v4202_v17 = vsel %vm12167_vm15, 65537, %v18645_v5 }
 0x227   : > { %v19437_v59 = vrot.slane %v19436_v10, %v8769_v27  ;;  %v19440_v55 = vrot.slane %v19436_v10, %v8772_v25  ;;  %vm1495_vm7 = vcmp.ne.bf16.partialorder %v10619_v21, 0  ;;  %v7451_v58 = vadd.f32 %v7450_v34, %v7449_v9  ;;  %v12360_v10 = vpop.permute.xlu0 %5437 }
 0x228   : > { %v6836_v8 = vsel %vm12299_vm2, %v354_v44, 0  ;;  %vm6230_vm15 = vcmp.eq.s32.totalorder %v11405_v42, 1  ;;  %v7452_v39 = vsel %vm341_vm11, %v7140_v46, 0.0  ;;  %v12358_v20 = vpop.permute.xlu1 %5434  ;;  %v5110_v9 = vsel %vm12325_vm12, 1, %v18645_v5  ;;  %v19475_v44 = vld [vmem:[#allocation24_spill] sm:$0xff] }
 0x229   : > { %vm12340_vm4 = vcmp.ne.s16.totalorder %v19437_v59, 0  ;;  %vm12347_vm1 = vcmp.ne.s16.totalorder %v19440_v55, 0  ;;  %v6837_v59 = vsel %vm12317_vm5, %v355_v28, 0  ;;  %v5109_v55 = vsel %vm12321_vm8, 1, %v18645_v5  ;;  %5629 = vperm.xlu0 %8401, %v5110_v9  }
 0x22a   : > { %5626 = vperm.xlu1 %8402, %v5109_v55   ;;  %vm12368_vm3 = vcmp.ne.s32.totalorder %v4503_v43, 0  ;;  %vm12372_vm9 = vcmp.ne.s32.totalorder %v4504_v26, 0  ;;  %v4505_v49 = vunpack.c.l.b16 %v4201_v18  ;;  %v4506_v28 = vunpack.c.l.b16 %v4202_v17  ;;  %v19447_v43 = vld [vmem:[#allocation22_spill] sm:$0xff] }
 0x22b   : > { %v7141_v36 = vunpack.c.l.bf16 %v6836_v8  ;;  %vm6231_vm2 = vcmp.eq.s32.totalorder %v11457_v3, 1  ;;  %v4203_v7 = vsel %vm12223_vm0, 65537, %v18645_v5  ;;  %v4204_v0 = vsel %vm12230_vm10, 65537, %v18645_v5  ;;  %vm12415_vm0 = vmpackc.low %vm6230_vm15, %vm6230_vm15  ;;  %v12421_v63 = vpop.permute.xlu0 %5443 }
 0x22c   : > { %v19448_v26 = vrot.slane %v19447_v43, %v8769_v27  ;;  %v19451_v18 = vrot.slane %v19447_v43, %v8772_v25  ;;  %v12404_v8 = vsel %vm1496_vm14, 65537, %v18645_v5  ;;  %v7453_v55 = vadd.f32 %v7452_v39, %v7451_v58  ;;  %v12419_v15 = vpop.permute.xlu1 %5440  ;;  %v357_v39 = vld [vmem:[%s11729_s17 + $0x30] sm:$0xf]  ;;  %vm12433_vm10 = vmpackc.low %vm6231_vm2, %vm6231_vm2 }
 0x22d   : > { %19454 = vst [vmem:[#allocation67_spill] sm:$0xff] %v12404_v8  ;;  %v12409_v9 = vsel %vm1495_vm7, 65537, %v18645_v5  ;;  %v7142_v43 = vunpack.c.l.bf16 %v6837_v59  ;;  %v5111_v58 = vsel %vm12368_vm3, 1, %v18645_v5  ;;  %v5112_v21 = vsel %vm12372_vm9, 1, %v18645_v5 }
 0x22e   : > { %vm12386_vm5 = vcmp.ne.s16.totalorder %v19448_v26, 0  ;;  %vm12393_vm8 = vcmp.ne.s16.totalorder %v19451_v18, 0  ;;  %19455 = vst [vmem:[#allocation22_spill] sm:$0xff] %v12409_v9  ;;  %v356_v26 = vld [vmem:[%s11729_s17 + $0x2c] sm:$0xf]  ;;  %5632 = vperm.xlu1 %8402, %v5111_v58   ;;  %5635 = vperm.xlu0 %8401, %v5112_v21   ;;  %vm12437_vm12 = vcmp.ne.s32.totalorder %v4505_v49, 0  ;;  %v4507_v46 = vunpack.c.l.b16 %v4203_v7 }
 0x22f   : > { %vm12441_vm14 = vcmp.ne.s32.totalorder %v4506_v28, 0  ;;  %v4508_v38 = vunpack.c.l.b16 %v4204_v0  ;;  %v7454_v1 = vsel %vm341_vm11, %v7141_v36, 0.0  ;;  %v4205_v58 = vsel %vm12273_vm6, 65537, %v18645_v5  ;;  %v19464_v21 = vld [vmem:[#allocation25_spill] sm:$0xff] }
 0x230   : > { %v4206_v49 = vsel %vm12280_vm13, 65537, %v18645_v5  ;;  %v19465_v28 = vrot.slane %v19464_v21, %v8769_v27  ;;  %v19468_v7 = vrot.slane %v19464_v21, %v8772_v25  ;;  %v7455_v0 = vadd.f32 %v7454_v1, %v7453_v55  ;;  %v12476_v56 = vpop.permute.xlu1 %5446  ;;  %v12478_v21 = vpop.permute.xlu0 %5449  ;;  %v19503_v55 = vld [vmem:[#allocation26_spill] sm:$0xff] }
 0x231   : > { %v6838_v53 = vsel %vm12415_vm0, %v356_v26, 0  ;;  %vm6232_vm6 = vcmp.eq.s32.totalorder %v11459_v35, 1  ;;  %v6839_v3 = vsel %vm12433_vm10, %v357_v39, 0  ;;  %v5114_v1 = vsel %vm12441_vm14, 1, %v18645_v5 }
 0x232   : > { %vm12457_vm7 = vcmp.ne.s16.totalorder %v19465_v28, 0  ;;  %vm12464_vm15 = vcmp.ne.s16.totalorder %v19468_v7, 0  ;;  %v7456_v28 = vsel %vm341_vm11, %v7142_v43, 0.0  ;;  %v5113_v7 = vsel %vm12437_vm12, 1, %v18645_v5  ;;  %5641 = vperm.xlu0 %8401, %v5114_v1   ;;  %v358_v1 = vld [vmem:[%s11729_s17 + $0x34] sm:$0xf]  ;;  %vm12525_vm10 = vmpackc.low %vm6232_vm6, %vm6232_vm6 }
 0x233   : > { %5638 = vperm.xlu1 %8402, %v5113_v7   ;;  %vm12486_vm13 = vcmp.ne.s32.totalorder %v4507_v46, 0  ;;  %vm12490_vm3 = vcmp.ne.s32.totalorder %v4508_v38, 0  ;;  %v4509_v26 = vunpack.c.l.b16 %v4205_v58  ;;  %v4510_v18 = vunpack.c.l.b16 %v4206_v49 }
 0x234   : > { %v7143_v39 = vunpack.c.l.bf16 %v6838_v53  ;;  %vm6233_vm9 = vcmp.eq.s32.totalorder %v11519_v31, 1  ;;  %v4207_v42 = vsel %vm12340_vm4, 65537, %v18645_v5  ;;  %v4208_v59 = vsel %vm12347_vm1, 65537, %v18645_v5 }
 0x235   : > { %v19476_v38 = vrot.slane %v19475_v44, %v8769_v27  ;;  %v19479_v58 = vrot.slane %v19475_v44, %v8772_v25  ;;  %vm1498_vm4 = vcmp.ne.bf16.partialorder %v10715_v30, 0  ;;  %v7457_v53 = vadd.f32 %v7456_v28, %v7455_v0  ;;  %v359_v0 = vld [vmem:[%s11729_s17 + $0x38] sm:$0xf]  ;;  %vm12543_vm12 = vmpackc.low %vm6233_vm9, %vm6233_vm9 }
 0x236   : > { %vm1497_vm1 = vcmp.ne.bf16.partialorder %v10717_v41, 0  ;;  %v7144_v7 = vunpack.c.l.bf16 %v6839_v3  ;;  %v5115_v14 = vsel %vm12486_vm13, 1, %v18645_v5  ;;  %v5116_v3 = vsel %vm12490_vm3, 1, %v18645_v5 }
 0x237   : > { %vm12504_vm2 = vcmp.ne.s16.totalorder %v19476_v38, 0  ;;  %vm12511_vm0 = vcmp.ne.s16.totalorder %v19479_v58, 0  ;;  %v12529_v38 = vpop.permute.xlu1 %5452  ;;  %v12531_v58 = vpop.permute.xlu0 %5455  ;;  %5644 = vperm.xlu1 %8402, %v5115_v14   ;;  %5647 = vperm.xlu0 %8401, %v5116_v3   ;;  %vm12547_vm14 = vcmp.ne.s32.totalorder %v4509_v26, 0  ;;  %vm12551_vm6 = vcmp.ne.s32.totalorder %v4510_v18, 0  ;;  %v19491_v18 = vld [vmem:[#allocation27_spill] sm:$0xff] }
 0x238   : > { %v4511_v43 = vunpack.c.l.b16 %v4207_v42  ;;  %v4512_v33 = vunpack.c.l.b16 %v4208_v59  ;;  %v12558_v31 = vsel %vm1498_vm4, 65537, %v18645_v5  ;;  %v7458_v60 = vsel %vm341_vm11, %v7143_v39, 0.0 }
 0x239   : > { %19490 = vst [vmem:[#allocation25_spill] sm:$0xff] %v12558_v31  ;;  %v4209_v14 = vsel %vm12386_vm5, 65537, %v18645_v5  ;;  %v4210_v26 = vsel %vm12393_vm8, 65537, %v18645_v5  ;;  %v19492_v3 = vrot.slane %v19491_v18, %v8769_v27  ;;  %v19495_v30 = vrot.slane %v19491_v18, %v8772_v25 }
 0x23a   : > { %v12584_v34 = vsel %vm1497_vm1, 65537, %v18645_v5  ;;  %v7459_v17 = vadd.f32 %v7458_v60, %v7457_v53  ;;  %v6840_v59 = vsel %vm12525_vm10, %v358_v1, 0  ;;  %vm6234_vm5 = vcmp.eq.s32.totalorder %v11521_v4, 1 }
 0x23b   : > { %vm12570_vm13 = vcmp.ne.s16.totalorder %v19492_v3, 0  ;;  %vm12577_vm3 = vcmp.ne.s16.totalorder %v19495_v30, 0  ;;  %19498 = vst [vmem:[#allocation24_spill] sm:$0xff] %v12584_v34  ;;  %v7460_v3 = vsel %vm341_vm11, %v7144_v7, 0.0  ;;  %v6841_v18 = vsel %vm12543_vm12, %v359_v0, 0  ;;  %v12592_v30 = vpop.permute.xlu1 %5458  ;;  %v12594_v8 = vpop.permute.xlu0 %5461 }
 0x23c   : > { %v5117_v41 = vsel %vm12547_vm14, 1, %v18645_v5  ;;  %v5118_v60 = vsel %vm12551_vm6, 1, %v18645_v5  ;;  %vm12602_vm8 = vcmp.ne.s32.totalorder %v4511_v43, 0  ;;  %vm12606_vm9 = vcmp.ne.s32.totalorder %v4512_v33, 0 }
 0x23d   : > { %5650 = vperm.xlu1 %8402, %v5117_v41   ;;  %5653 = vperm.xlu0 %8401, %v5118_v60   ;;  %v4513_v1 = vunpack.c.l.b16 %v4209_v14  ;;  %v4514_v44 = vunpack.c.l.b16 %v4210_v26  ;;  %v7145_v0 = vunpack.c.l.bf16 %v6840_v59  ;;  %vm6235_vm4 = vcmp.eq.s32.totalorder %v11584_v6, 1  ;;  %v365_v26 = vld [vmem:[%s11729_s17 + $0x50] sm:$0xf] }
 0x23e   : > { %v4211_v35 = vsel %vm12457_vm7, 65537, %v18645_v5  ;;  %v4212_v28 = vsel %vm12464_vm15, 65537, %v18645_v5  ;;  %v19504_v33 = vrot.slane %v19503_v55, %v8769_v27  ;;  %v19507_v14 = vrot.slane %v19503_v55, %v8772_v25  ;;  %vm12642_vm15 = vmpackc.low %vm6234_vm5, %vm6234_vm5 }
 0x23f   : > { %v7461_v41 = vadd.f32 %v7460_v3, %v7459_v17  ;;  %vm1500_vm7 = vcmp.ne.bf16.partialorder %v10787_v47, 0  ;;  %v7146_v60 = vunpack.c.l.bf16 %v6841_v18  ;;  %v12648_v50 = vpop.permute.xlu0 %5467  ;;  %v5119_v36 = vsel %vm12602_vm8, 1, %v18645_v5  ;;  %v361_v3 = vld [vmem:[%s11729_s17 + $0x40] sm:$0xf]  ;;  %vm12660_vm12 = vmpackc.low %vm6235_vm4, %vm6235_vm4 }
 0x240   : > { %vm12620_vm1 = vcmp.ne.s16.totalorder %v19504_v33, 0  ;;  %vm12627_vm10 = vcmp.ne.s16.totalorder %v19507_v14, 0  ;;  %v360_v33 = vld [vmem:[%s11729_s17 + $0x3c] sm:$0xf]  ;;  %v12646_v14 = vpop.permute.xlu1 %5464  ;;  %v5120_v17 = vsel %vm12606_vm9, 1, %v18645_v5  ;;  %vm12664_vm14 = vcmp.ne.s32.totalorder %v4513_v1, 0 }
 0x241   : > { %5656 = vperm.xlu1 %8402, %v5119_v36   ;;  %5659 = vperm.xlu0 %8401, %v5120_v17   ;;  %vm12668_vm6 = vcmp.ne.s32.totalorder %v4514_v44, 0  ;;  %v4515_v7 = vunpack.c.l.b16 %v4211_v35  ;;  %v4516_v59 = vunpack.c.l.b16 %v4212_v28  ;;  %vm1499_vm5 = vcmp.ne.bf16.partialorder %v10789_v62, 0  ;;  %v19518_v36 = vld [vmem:[#allocation69_spill] sm:$0xff] }
 0x242   : > { %v7462_v6 = vsel %vm341_vm11, %v7145_v0, 0.0  ;;  %v4213_v31 = vsel %vm12504_vm2, 65537, %v18645_v5  ;;  %v4214_v1 = vsel %vm12511_vm0, 65537, %v18645_v5  ;;  %v19519_v44 = vrot.slane %v19518_v36, %v8769_v27 }
 0x243   : > { %v19522_v35 = vrot.slane %v19518_v36, %v8772_v25  ;;  %v12697_v46 = vsel %vm1500_vm7, 65537, %v18645_v5  ;;  %v7463_v49 = vadd.f32 %v7462_v6, %v7461_v41  ;;  %v6842_v28 = vsel %vm12642_vm15, %v360_v33, 0  ;;  %v12707_v9 = vpop.permute.xlu0 %5473 }
 0x244   : > { %vm12683_vm8 = vcmp.ne.s16.totalorder %v19519_v44, 0  ;;  %19525 = vst [vmem:[#allocation27_spill] sm:$0xff] %v12697_v46  ;;  %vm6236_vm2 = vcmp.eq.s32.totalorder %v11586_v29, 1  ;;  %v7464_v44 = vsel %vm341_vm11, %v7146_v60, 0.0  ;;  %v6843_v36 = vsel %vm12660_vm12, %v361_v3, 0 }
 0x245   : > { %vm12690_vm9 = vcmp.ne.s16.totalorder %v19522_v35, 0  ;;  %v12705_v35 = vpop.permute.xlu1 %5470  ;;  %v5121_v47 = vsel %vm12664_vm14, 1, %v18645_v5  ;;  %v5122_v41 = vsel %vm12668_vm6, 1, %v18645_v5  ;;  %vm12715_vm0 = vcmp.ne.s32.totalorder %v4515_v7, 0  ;;  %v19530_v7 = vld [vmem:[#allocation68_spill] sm:$0xff] }
 0x246   : > { %5662 = vperm.xlu1 %8402, %v5121_v47   ;;  %5665 = vperm.xlu0 %8401, %v5122_v41   ;;  %vm12719_vm4 = vcmp.ne.s32.totalorder %v4516_v59, 0  ;;  %v4517_v55 = vunpack.c.l.b16 %v4213_v31  ;;  %v4518_v3 = vunpack.c.l.b16 %v4214_v1  ;;  %v7147_v4 = vunpack.c.l.bf16 %v6842_v28 }
 0x247   : > { %vm6237_vm7 = vcmp.eq.s32.totalorder %v11644_v40, 1  ;;  %v4215_v18 = vsel %vm12570_vm13, 65537, %v18645_v5  ;;  %v4216_v53 = vsel %vm12577_vm3, 65537, %v18645_v5  ;;  %v19531_v59 = vrot.slane %v19530_v7, %v8769_v27  ;;  %vm12759_vm13 = vmpackc.low %vm6236_vm2, %vm6236_vm2  ;;  %v12765_v39 = vpop.permute.xlu0 %5479 }
 0x248   : > { %v19534_v31 = vrot.slane %v19530_v7, %v8772_v25  ;;  %v12751_v28 = vsel %vm1499_vm5, 65537, %v18645_v5  ;;  %v7465_v47 = vadd.f32 %v7464_v44, %v7463_v49  ;;  %v7148_v7 = vunpack.c.l.bf16 %v6843_v36  ;;  %v363_v44 = vld [vmem:[%s11729_s17 + $0x48] sm:$0xf]  ;;  %vm12777_vm3 = vmpackc.low %vm6237_vm7, %vm6237_vm7 }
 0x249   : > { %vm12733_vm15 = vcmp.ne.s16.totalorder %v19531_v59, 0  ;;  %19537 = vst [vmem:[#allocation26_spill] sm:$0xff] %v12751_v28  ;;  %v362_v59 = vld [vmem:[%s11729_s17 + $0x44] sm:$0xf]  ;;  %v12763_v42 = vpop.permute.xlu1 %5476  ;;  %v5123_v62 = vsel %vm12715_vm0, 1, %v18645_v5  ;;  %v5124_v49 = vsel %vm12719_vm4, 1, %v18645_v5  ;;  %v4519_v60 = vunpack.c.l.b16 %v4215_v18 }
 0x24a   : > { %vm12740_vm12 = vcmp.ne.s16.totalorder %v19534_v31, 0  ;;  %5668 = vperm.xlu1 %8402, %v5123_v62   ;;  %5671 = vperm.xlu0 %8401, %v5124_v49   ;;  %vm12781_vm14 = vcmp.ne.s32.totalorder %v4517_v55, 0  ;;  %vm12785_vm6 = vcmp.ne.s32.totalorder %v4518_v3, 0  ;;  %v4520_v41 = vunpack.c.l.b16 %v4216_v53  ;;  %v19546_v62 = vld [vmem:[#allocation30_spill] sm:$0xff] }
 0x24b   : > { %v7466_v46 = vsel %vm341_vm11, %v7147_v4, 0.0  ;;  %vm6238_vm5 = vcmp.eq.s32.totalorder %v11646_v45, 1  ;;  %v4217_v40 = vsel %vm12620_vm1, 65537, %v18645_v5  ;;  %v4218_v55 = vsel %vm12627_vm10, 65537, %v18645_v5 }
 0x24c   : > { %v19547_v3 = vrot.slane %v19546_v62, %v8769_v27  ;;  %v19550_v4 = vrot.slane %v19546_v62, %v8772_v25  ;;  %v7467_v53 = vadd.f32 %v7466_v46, %v7465_v47  ;;  %v7468_v34 = vsel %vm341_vm11, %v7148_v7, 0.0  ;;  %v364_v47 = vld [vmem:[%s11729_s17 + $0x4c] sm:$0xf]  ;;  %vm12834_vm1 = vmpackc.low %vm6238_vm5, %vm6238_vm5 }
 0x24d   : > { %v6845_v2 = vsel %vm12777_vm3, %v363_v44, 0  ;;  %v12820_v62 = vpop.permute.xlu1 %5482  ;;  %v5125_v43 = vsel %vm12781_vm14, 1, %v18645_v5  ;;  %v5126_v46 = vsel %vm12785_vm6, 1, %v18645_v5  ;;  %vm12838_vm10 = vcmp.ne.s32.totalorder %v4519_v60, 0  ;;  %v19559_v60 = vld [vmem:[#allocation29_spill] sm:$0xff] }
 0x24e   : > { %vm12800_vm2 = vcmp.ne.s16.totalorder %v19547_v3, 0  ;;  %vm12807_vm0 = vcmp.ne.s16.totalorder %v19550_v4, 0  ;;  %v6844_v3 = vsel %vm12759_vm13, %v362_v59, 0  ;;  %v12822_v4 = vpop.permute.xlu0 %5485  ;;  %5674 = vperm.xlu1 %8402, %v5125_v43   ;;  %5677 = vperm.xlu0 %8401, %v5126_v46   ;;  %vm12842_vm4 = vcmp.ne.s32.totalorder %v4520_v41, 0 }
 0x24f   : > { %v4521_v44 = vunpack.c.l.b16 %v4217_v40  ;;  %v4522_v29 = vunpack.c.l.b16 %v4218_v55  ;;  %v7149_v36 = vunpack.c.l.bf16 %v6844_v3  ;;  %vm6239_vm7 = vcmp.eq.s32.totalorder %v11706_v61, 1  ;;  %v372_v55 = vld [vmem:[%s11729_s17 + $0x6c] sm:$0xf] }
 0x250   : > { %v4219_v45 = vsel %vm12683_vm8, 65537, %v18645_v5  ;;  %v4220_v33 = vsel %vm12690_vm9, 65537, %v18645_v5  ;;  %v19560_v41 = vrot.slane %v19559_v60, %v8769_v27  ;;  %v19563_v40 = vrot.slane %v19559_v60, %v8772_v25  ;;  %vm12886_vm6 = vmpackc.low %vm6239_vm7, %vm6239_vm7 }
 0x251   : > { %vm1502_vm8 = vcmp.ne.bf16.partialorder %v10885_v19, 0  ;;  %v7469_v17 = vadd.f32 %v7468_v34, %v7467_v53  ;;  %v7150_v0 = vunpack.c.l.bf16 %v6845_v2  ;;  %v6846_v3 = vsel %vm12834_vm1, %v364_v47, 0  ;;  %v12872_v46 = vpop.permute.xlu1 %5488  ;;  %v366_v19 = vld [vmem:[%s11729_s17 + $0x54] sm:$0xf] }
 0x252   : > { %vm12856_vm13 = vcmp.ne.s16.totalorder %v19560_v41, 0  ;;  %vm12863_vm3 = vcmp.ne.s16.totalorder %v19563_v40, 0  ;;  %vm6257_vm9 = vcmp.eq.s32.totalorder %v12245_v51, 1  ;;  %v12874_v41 = vpop.permute.xlu0 %5491  ;;  %v5127_v60 = vsel %vm12838_vm10, 1, %v18645_v5  ;;  %v383_v51 = vld [vmem:[%s11729_s17 + $0x98] sm:$0xf] }
 0x253   : > { %v5128_v40 = vsel %vm12842_vm4, 1, %v18645_v5  ;;  %5680 = vperm.xlu1 %8402, %v5127_v60   ;;  %vm12890_vm5 = vcmp.ne.s32.totalorder %v4521_v44, 0  ;;  %vm12894_vm1 = vcmp.ne.s32.totalorder %v4522_v29, 0  ;;  %v4523_v47 = vunpack.c.l.b16 %v4219_v45  ;;  %v19572_v44 = vld [vmem:[#allocation32_spill] sm:$0xff] }
 0x254   : > { %5683 = vperm.xlu0 %8401, %v5128_v40   ;;  %v4524_v7 = vunpack.c.l.b16 %v4220_v33  ;;  %v7470_v59 = vsel %vm341_vm11, %v7149_v36, 0.0  ;;  %vm6258_vm10 = vcmp.eq.s32.totalorder %v12247_v12, 1  ;;  %v4221_v61 = vsel %vm12733_vm15, 65537, %v18645_v5  ;;  %v388_v45 = vld [vmem:[%s11729_s17 + $0xac] sm:$0xf] }
 0x255   : > { %v4222_v31 = vsel %vm12740_vm12, 65537, %v18645_v5  ;;  %v19573_v29 = vrot.slane %v19572_v44, %v8769_v27  ;;  %v19576_v36 = vrot.slane %v19572_v44, %v8772_v25  ;;  %v7471_v6 = vadd.f32 %v7470_v59, %v7469_v17  ;;  %vm12927_vm12 = vmpackc.low %vm6257_vm9, %vm6257_vm9  ;;  %v12932_v44 = vpop.permute.xlu1 %5494 }
 0x256   : > { %v7472_v60 = vsel %vm341_vm11, %v7150_v0, 0.0  ;;  %v7151_v1 = vunpack.c.l.bf16 %v6846_v3  ;;  %vm6240_vm15 = vcmp.eq.s32.totalorder %v11708_v16, 1  ;;  %v6847_v40 = vsel %vm12886_vm6, %v365_v26, 0  ;;  %v12934_v17 = vpop.permute.xlu0 %5497  ;;  %v384_v3 = vld [vmem:[%s11729_s17 + $0x9c] sm:$0xf]  ;;  %vm12947_vm9 = vmpackc.low %vm6258_vm10, %vm6258_vm10 }
 0x257   : > { %vm12909_vm4 = vcmp.ne.s16.totalorder %v19573_v29, 0  ;;  %vm12916_vm7 = vcmp.ne.s16.totalorder %v19576_v36, 0  ;;  %vm6259_vm14 = vcmp.eq.s32.totalorder %v12303_v48, 1  ;;  %v5129_v0 = vsel %vm12890_vm5, 1, %v18645_v5 }
 0x258   : > { %v5130_v26 = vsel %vm12894_vm1, 1, %v18645_v5  ;;  %5686 = vperm.xlu1 %8402, %v5129_v0   ;;  %vm12951_vm6 = vcmp.ne.s32.totalorder %v4523_v47, 0  ;;  %vm12955_vm5 = vcmp.ne.s32.totalorder %v4524_v7, 0  ;;  %v4525_v53 = vunpack.c.l.b16 %v4221_v61 }
 0x259   : > { %5689 = vperm.xlu0 %8401, %v5130_v26   ;;  %v4526_v36 = vunpack.c.l.b16 %v4222_v31  ;;  %v12962_v12 = vsel %vm1502_vm8, 65537, %v18645_v5  ;;  %vm19588_vm1 = vcmp.ne.bf16.partialorder %v10887_v13, 0  ;;  %v4223_v47 = vsel %vm12800_vm2, 65537, %v18645_v5  ;;  %vm12980_vm8 = vmpackc.low %vm6240_vm15, %vm6240_vm15  ;;  %v12997_v16 = vpop.permute.xlu1 %5500 }
 0x25a   : > { %19587 = vst [vmem:[#allocation69_spill] sm:$0xff] %v12962_v12  ;;  %v12967_v0 = vsel %vm19588_vm1, 65537, %v18645_v5  ;;  %v4224_v7 = vsel %vm12807_vm0, 65537, %v18645_v5  ;;  %v7473_v61 = vadd.f32 %v7472_v60, %v7471_v6  ;;  %v7474_v31 = vsel %vm341_vm11, %v7151_v1, 0.0  ;;  %v385_v6 = vld [vmem:[%s11729_s17 + $0xa0] sm:$0xf]  ;;  %vm12993_vm2 = vmpackc.low %vm6259_vm14, %vm6259_vm14  ;;  %v12999_v1 = vpop.permute.xlu0 %5503 }
 0x25b   : > { %19589 = vst [vmem:[#allocation68_spill] sm:$0xff] %v12967_v0  ;;  %v7152_v26 = vunpack.c.l.bf16 %v6847_v40  ;;  %vm6241_vm10 = vcmp.eq.s32.totalorder %v11773_v57, 1  ;;  %v6865_v49 = vsel %vm12927_vm12, %v383_v51, 0  ;;  %v6866_v18 = vsel %vm12947_vm9, %v384_v3, 0  ;;  %19594 = vst [vmem:[#allocation30_spill] sm:$0xff] %v12997_v16  ;;  %v19596_v51 = vld [vmem:[#allocation31_spill] sm:$0xff] }
 0x25c   : > { %19595 = vst [vmem:[#allocation29_spill] sm:$0xff] %v12999_v1  ;;  %v5131_v40 = vsel %vm12951_vm6, 1, %v18645_v5  ;;  %v5132_v29 = vsel %vm12955_vm5, 1, %v18645_v5  ;;  %v19597_v48 = vrot.slane %v19596_v51, %v8769_v27  ;;  %v19600_v2 = vrot.slane %v19596_v51, %v8772_v25  ;;  %v393_v0 = vld [vmem:[%s11729_s17 + $0xc0] sm:$0xf] }
 0x25d   : > { %5692 = vperm.xlu1 %8402, %v5131_v40   ;;  %5695 = vperm.xlu0 %8401, %v5132_v29   ;;  %vm13021_vm15 = vcmp.ne.s32.totalorder %v4525_v53, 0  ;;  %vm13025_vm12 = vcmp.ne.s32.totalorder %v4526_v36, 0  ;;  %v4528_v1 = vunpack.c.l.b16 %v4224_v7  ;;  %v6848_v51 = vsel %vm12980_vm8, %v366_v19, 0  ;;  %v19607_v36 = vld [vmem:[#allocation70_spill] sm:$0xff] }
 0x25e   : > { %vm13010_vm0 = vcmp.ne.s16.totalorder %v19597_v48, 0  ;;  %vm13017_vm14 = vcmp.ne.s16.totalorder %v19600_v2, 0  ;;  %v4527_v48 = vunpack.c.l.b16 %v4223_v47  ;;  %vm6260_vm9 = vcmp.eq.s32.totalorder %v12305_v54, 1  ;;  %v367_v2 = vld [vmem:[%s11729_s17 + $0x58] sm:$0xf] }
 0x25f   : > { %v4225_v40 = vsel %vm12856_vm13, 65537, %v18645_v5  ;;  %v4226_v53 = vsel %vm12863_vm3, 65537, %v18645_v5  ;;  %v19608_v29 = vrot.slane %v19607_v36, %v8769_v27  ;;  %v7475_v7 = vadd.f32 %v7474_v31, %v7473_v61  ;;  %vm13052_vm13 = vmpackc.low %vm6241_vm10, %vm6241_vm10  ;;  %v13059_v61 = vpop.permute.xlu0 %5509 }
 0x260   : > { %v7476_v19 = vsel %vm341_vm11, %v7152_v26, 0.0  ;;  %v7170_v13 = vunpack.c.l.bf16 %v6865_v49  ;;  %v6867_v43 = vsel %vm12993_vm2, %v385_v6, 0  ;;  %v7171_v16 = vunpack.c.l.bf16 %v6866_v18  ;;  %19613 = vst [vmem:[#allocation32_spill] sm:$0xff] %v13059_v61  ;;  %v386_v26 = vld [vmem:[%s11729_s17 + $0xa4] sm:$0xf]  ;;  %vm13071_vm5 = vmpackc.low %vm6260_vm9, %vm6260_vm9 }
 0x261   : > { %vm13041_vm6 = vcmp.ne.s16.totalorder %v19608_v29, 0  ;;  %vm6261_vm3 = vcmp.eq.s32.totalorder %v12358_v20, 1  ;;  %v13057_v29 = vpop.permute.xlu1 %5506  ;;  %v5133_v31 = vsel %vm13021_vm15, 1, %v18645_v5  ;;  %v5134_v57 = vsel %vm13025_vm12, 1, %v18645_v5 }
 0x262   : > { %5698 = vperm.xlu1 %8402, %v5133_v31   ;;  %5701 = vperm.xlu0 %8401, %v5134_v57   ;;  %vm13075_vm1 = vcmp.ne.s32.totalorder %v4527_v48, 0  ;;  %vm13079_vm8 = vcmp.ne.s32.totalorder %v4528_v1, 0  ;;  %v4529_v60 = vunpack.c.l.b16 %v4225_v40  ;;  %v4530_v59 = vunpack.c.l.b16 %v4226_v53  ;;  %v387_v53 = vld [vmem:[%s11729_s17 + $0xa8] sm:$0xf] }
 0x263   : > { %v7153_v34 = vunpack.c.l.bf16 %v6848_v51  ;;  %v7172_v54 = vunpack.c.l.bf16 %v6867_v43  ;;  %v4227_v61 = vsel %vm12909_vm4, 65537, %v18645_v5  ;;  %v4228_v31 = vsel %vm12916_vm7, 65537, %v18645_v5  ;;  %vm13100_vm4 = vmpackc.low %vm6261_vm3, %vm6261_vm3  ;;  %v370_v43 = vld [vmem:[%s11729_s17 + $0x64] sm:$0xf] }
 0x264   : > { %v7477_v48 = vadd.f32 %v7476_v19, %v7475_v7  ;;  %v6849_v57 = vsel %vm13052_vm13, %v367_v2, 0  ;;  %vm6242_vm10 = vcmp.eq.s32.totalorder %v11775_v11, 1  ;;  %v7518_v1 = vsel %vm341_vm11, %v7170_v13, 0.0  ;;  %v13106_v7 = vpop.permute.xlu0 %5515  ;;  %v19622_v13 = vld [vmem:[#allocation33_spill] sm:$0xff] }
 0x265   : > { %v7519_v40 = vsel %vm341_vm11, %v7171_v16, 0.0  ;;  %v6868_v51 = vsel %vm13071_vm5, %v386_v26, 0  ;;  %v13104_v33 = vpop.permute.xlu1 %5512  ;;  %v5135_v19 = vsel %vm13075_vm1, 1, %v18645_v5  ;;  %v5136_v16 = vsel %vm13079_vm8, 1, %v18645_v5  ;;  %vm13153_vm5 = vmpackc.low %vm6242_vm10, %vm6242_vm10 }
 0x266   : > { %v19623_v20 = vrot.slane %v19622_v13, %v8769_v27  ;;  %v19626_v2 = vrot.slane %v19607_v36, %v8772_v25  ;;  %5704 = vperm.xlu1 %8402, %v5135_v19   ;;  %5707 = vperm.xlu0 %8401, %v5136_v16   ;;  %vm13128_vm15 = vcmp.ne.s32.totalorder %v4529_v60, 0  ;;  %vm13132_vm12 = vcmp.ne.s32.totalorder %v4530_v59, 0 }
 0x267   : > { %v4531_v18 = vunpack.c.l.b16 %v4227_v61  ;;  %v4532_v6 = vunpack.c.l.b16 %v4228_v31  ;;  %v7154_v36 = vunpack.c.l.bf16 %v6849_v57  ;;  %vm6262_vm9 = vcmp.eq.s32.totalorder %v12360_v10, 1  ;;  %v368_v31 = vld [vmem:[%s11729_s17 + $0x5c] sm:$0xf] }
 0x268   : > { %vm13117_vm7 = vcmp.ne.s16.totalorder %v19623_v20, 0  ;;  %vm13124_vm2 = vcmp.ne.s16.totalorder %v19626_v2, 0  ;;  %v7478_v20 = vsel %vm341_vm11, %v7153_v34, 0.0  ;;  %v7521_v2 = vsel %vm341_vm11, %v7172_v54, 0.0  ;;  %v13159_v16 = vpop.permute.xlu0 %5521  ;;  %vm13177_vm1 = vmpackc.low %vm6262_vm9, %vm6262_vm9  ;;  %v19651_v54 = vld [vmem:[#allocation36_spill] sm:$0xff] }
 0x269   : > { %v19633_v60 = vrot.slane %v19622_v13, %v8772_v25  ;;  %vm6243_vm3 = vcmp.eq.s32.totalorder %v11837_v37, 1  ;;  %v7520_v59 = vadd.f32 %v7519_v40, %v7518_v1  ;;  %v7173_v61 = vunpack.c.l.bf16 %v6868_v51  ;;  %v13157_v57 = vpop.permute.xlu1 %5518  ;;  %19638 = vst [vmem:[#allocation31_spill] sm:$0xff] %v13159_v16  ;;  %v19696_v13 = vld [vmem:[#allocation77_spill] sm:$0xff] }
 0x26a   : > { %v6869_v34 = vsel %vm13100_vm4, %v387_v53, 0  ;;  %v5137_v1 = vsel %vm13128_vm15, 1, %v18645_v5  ;;  %v5138_v40 = vsel %vm13132_vm12, 1, %v18645_v5  ;;  %v4229_v11 = vsel %vm13010_vm0, 65537, %v18645_v5  ;;  %vm13203_vm10 = vmpackc.low %vm6243_vm3, %vm6243_vm3 }
 0x26b   : > { %vm13142_vm13 = vcmp.ne.s16.totalorder %v19633_v60, 0  ;;  %v4230_v51 = vsel %vm13017_vm14, 65537, %v18645_v5  ;;  %v7522_v53 = vadd.f32 %v7521_v2, %v7520_v59  ;;  %vm6263_vm8 = vcmp.eq.s32.totalorder %v12419_v15, 1  ;;  %5710 = vperm.xlu1 %8402, %v5137_v1   ;;  %5713 = vperm.xlu0 %8401, %v5138_v40   ;;  %v369_v1 = vld [vmem:[%s11729_s17 + $0x60] sm:$0xf]  ;;  %v19658_v60 = vld [vmem:[#allocation12_spill] sm:$0xff] }
 0x26c   : > { %vm13182_vm0 = vcmp.ne.s32.totalorder %v4531_v18, 0  ;;  %vm13186_vm14 = vcmp.ne.s32.totalorder %v4532_v6, 0  ;;  %v7174_v26 = vunpack.c.l.bf16 %v6869_v34  ;;  %v4533_v10 = vunpack.c.l.b16 %v4229_v11  ;;  %v389_v11 = vld [vmem:[%s11729_s17 + $0xb0] sm:$0xf]  ;;  %v13220_v37 = vpop.permute.xlu0 %5527 }
 0x26d   : > { %v4534_v49 = vunpack.c.l.b16 %v4230_v51  ;;  %v4231_v2 = vsel %vm13041_vm6, 65537, %v18645_v5  ;;  %v7479_v59 = vadd.f32 %v7478_v20, %v7477_v48  ;;  %v6850_v6 = vsel %vm13153_vm5, %v368_v31, 0  ;;  %vm13214_vm6 = vmpackc.low %vm6263_vm8, %vm6263_vm8  ;;  %v13218_v20 = vpop.permute.xlu1 %5524  ;;  %19650 = vst [vmem:[#allocation33_spill] sm:$0xff] %v13220_v37 }
 0x26e   : > { %v7523_v47 = vsel %vm341_vm11, %v7173_v61, 0.0  ;;  %v6870_v40 = vsel %vm13177_vm1, %v388_v45, 0  ;;  %19649 = vst [vmem:[#allocation70_spill] sm:$0xff] %v13218_v20  ;;  %v5139_v31 = vsel %vm13182_vm0, 1, %v18645_v5  ;;  %v5140_v61 = vsel %vm13186_vm14, 1, %v18645_v5  ;;  %v19722_v20 = vld [vmem:[#allocation39_spill] sm:$0xff] }
 0x26f   : > { %v19652_v15 = vrot.slane %v19651_v54, %v8769_v27  ;;  %v19655_v45 = vrot.slane %v19651_v54, %v8772_v25  ;;  %v7524_v3 = vadd.f32 %v7523_v47, %v7522_v53  ;;  %5716 = vperm.xlu1 %8402, %v5139_v31   ;;  %5719 = vperm.xlu0 %8401, %v5140_v61   ;;  %vm4837_vm12 = vcmp.ne.s32.totalorder %v4533_v10, 0  ;;  %v19659_v54 = vld [vmem:[#allocation35_spill] sm:$0xff]  ;;  %v390_v31 = vld [vmem:[%s11729_s17 + $0xb4] sm:$0xf]  ;;  %v371_v61 = vld [vmem:[%s11729_s17 + $0x68] sm:$0xf] }
 0x270   : > { %vm4838_vm9 = vcmp.ne.s32.totalorder %v4534_v49, 0  ;;  %v4535_v28 = vunpack.c.l.b16 %v4231_v2  ;;  %v7480_v18 = vsel %vm341_vm11, %v7154_v36, 0.0  ;;  %vm6244_vm3 = vcmp.eq.s32.totalorder %v19658_v60, 1  ;;  %v13260_v49 = vpop.permute.xlu0 %5533  ;;  %v19686_v60 = vld [vmem:[#allocation49_spill] sm:$0xff] }
 0x271   : > { %vm13231_vm4 = vcmp.ne.s16.totalorder %v19652_v15, 0  ;;  %vm13238_vm15 = vcmp.ne.s16.totalorder %v19655_v45, 0  ;;  %v7525_v15 = vsel %vm341_vm11, %v7174_v26, 0.0  ;;  %vm6264_vm5 = vcmp.eq.s32.totalorder %v12421_v63, 1  ;;  %v13258_v26 = vpop.permute.xlu1 %5530  ;;  %19664 = vst [vmem:[#allocation12_spill] sm:$0xff] %v13260_v49 }
 0x272   : > { %v19660_v45 = vrot.slane %v19659_v54, %v8769_v27  ;;  %v6851_v53 = vsel %vm13203_vm10, %v369_v1, 0  ;;  %v7175_v10 = vunpack.c.l.bf16 %v6870_v40  ;;  %v6871_v36 = vsel %vm13214_vm6, %v389_v11, 0  ;;  %19663 = vst [vmem:[#allocation36_spill] sm:$0xff] %v13258_v26  ;;  %vm13274_vm0 = vmpackc.low %vm6264_vm5, %vm6264_vm5 }
 0x273   : > { %vm6265_vm8 = vcmp.eq.s32.totalorder %v12476_v56, 1  ;;  %v5141_v2 = vsel %vm4837_vm12, 1, %v18645_v5  ;;  %v5142_v47 = vsel %vm4838_vm9, 1, %v18645_v5  ;;  %v4232_v34 = vsel %vm13124_vm2, 65537, %v18645_v5 }
 0x274   : > { %vm13249_vm1 = vcmp.ne.s16.totalorder %v19660_v45, 0  ;;  %v4233_v1 = vsel %vm13117_vm7, 65537, %v18645_v5  ;;  %v7481_v40 = vadd.f32 %v7480_v18, %v7479_v59  ;;  %v7155_v11 = vunpack.c.l.bf16 %v6850_v6  ;;  %5722 = vperm.xlu1 %8402, %v5141_v2   ;;  %5725 = vperm.xlu0 %8401, %v5142_v47   ;;  %vm13286_vm7 = vmpackc.low %vm6244_vm3, %vm6244_vm3  ;;  %v19672_v45 = vld [vmem:[#allocation15_spill] sm:$0xff]  ;;  %v391_v2 = vld [vmem:[%s11729_s17 + $0xb8] sm:$0xf] }
 0x275   : > { %v7526_v48 = vadd.f32 %v7525_v15, %v7524_v3  ;;  %vm13278_vm14 = vcmp.ne.s32.totalorder %v4535_v28, 0  ;;  %v7176_v63 = vunpack.c.l.bf16 %v6871_v36  ;;  %v4536_v59 = vunpack.c.l.b16 %v4232_v34  ;;  %v19671_v15 = vld [vmem:[#allocation11_spill] sm:$0xff]  ;;  %vm13299_vm6 = vmpackc.low %vm6265_vm8, %vm6265_vm8  ;;  %v13306_v34 = vpop.permute.xlu1 %5536 }
 0x276   : > { %v4537_v6 = vunpack.c.l.b16 %v4233_v1  ;;  %v4234_v3 = vsel %vm13142_vm13, 65537, %v18645_v5  ;;  %vm1504_vm2 = vcmp.ne.bf16.partialorder %v19671_v15, 0  ;;  %v7156_v28 = vunpack.c.l.bf16 %v6851_v53  ;;  %v13308_v53 = vpop.permute.xlu0 %5539 }
 0x277   : > { %vm6245_vm10 = vcmp.eq.s32.totalorder %v19672_v45, 1  ;;  %v4538_v36 = vunpack.c.l.b16 %v4234_v3  ;;  %v7527_v47 = vsel %vm341_vm11, %v7175_v10, 0.0  ;;  %v6872_v19 = vsel %vm13274_vm0, %v390_v31, 0  ;;  %v19716_v45 = vld [vmem:[#allocation97_spill] sm:$0xff] }
 0x278   : > { %v5143_v1 = vsel %vm13278_vm14, 1, %v18645_v5  ;;  %vm4840_vm13 = vcmp.ne.s32.totalorder %v4536_v59, 0  ;;  %v7482_v56 = vsel %vm341_vm11, %v7155_v11, 0.0  ;;  %v6852_v49 = vsel %vm13286_vm7, %v370_v43, 0  ;;  %vm13324_vm9 = vmpackc.low %vm6245_vm10, %vm6245_vm10  ;;  %v19682_v59 = vld [vmem:[#allocation38_spill] sm:$0xff] }
 0x279   : > { %v7528_v3 = vadd.f32 %v7527_v47, %v7526_v48  ;;  %5728 = vperm.xlu1 %8402, %v5143_v1   ;;  %vm13316_vm12 = vcmp.ne.s32.totalorder %v4537_v6, 0  ;;  %v7483_v31 = vadd.f32 %v7482_v56, %v7481_v40  ;;  %v7529_v11 = vsel %vm341_vm11, %v7176_v63, 0.0 }
 0x27a   : > { %v6873_v43 = vsel %vm13299_vm6, %v391_v2, 0  ;;  %v5144_v48 = vsel %vm4840_vm13, 1, %v18645_v5  ;;  %v19679_v18 = vrot.slane %v19659_v54, %v8772_v25  ;;  %v19683_v6 = vrot.slane %v19682_v59, %v8769_v27  ;;  %v13349_v54 = vpop.permute.xlu1 %5542  ;;  %v13351_v47 = vpop.permute.xlu0 %5545 }
 0x27b   : > { %v7484_v63 = vsel %vm341_vm11, %v7156_v28, 0.0  ;;  %vm6246_vm8 = vcmp.eq.s32.totalorder %v19686_v60, 1  ;;  %v7177_v2 = vunpack.c.l.bf16 %v6872_v19  ;;  %5731 = vperm.xlu0 %8401, %v5144_v48   ;;  %vm4842_vm0 = vcmp.ne.s32.totalorder %v4538_v36, 0 }
 0x27c   : > { %vm13335_vm3 = vcmp.ne.s16.totalorder %v19679_v18, 0  ;;  %vm13342_vm5 = vcmp.ne.s16.totalorder %v19683_v6, 0  ;;  %vm6266_vm14 = vcmp.eq.s32.totalorder %v12478_v21, 1  ;;  %v5145_v1 = vsel %vm13316_vm12, 1, %v18645_v5 }
 0x27d   : > { %v4235_v28 = vsel %vm13231_vm4, 65537, %v18645_v5  ;;  %v4236_v19 = vsel %vm13238_vm15, 65537, %v18645_v5  ;;  %v6853_v36 = vsel %vm13324_vm9, %v371_v61, 0  ;;  %v7530_v56 = vadd.f32 %v7529_v11, %v7528_v3  ;;  %5734 = vperm.xlu1 %8402, %v5145_v1   ;;  %v392_v61 = vld [vmem:[%s11729_s17 + $0xbc] sm:$0xf]  ;;  %vm13377_vm4 = vmpackc.low %vm6266_vm14, %vm6266_vm14  ;;  %v19690_v1 = vld [vmem:[#allocation65_spill] sm:$0xff] }
 0x27e   : > { %v7178_v48 = vunpack.c.l.bf16 %v6873_v43  ;;  %vm6267_vm7 = vcmp.eq.s32.totalorder %v12529_v38, 1  ;;  %v5146_v10 = vsel %vm4842_vm0, 1, %v18645_v5  ;;  %v4539_v18 = vunpack.c.l.b16 %v4235_v28  ;;  %v13395_v28 = vpop.permute.xlu1 %5548 }
 0x27f   : > { %v4540_v6 = vunpack.c.l.b16 %v4236_v19  ;;  %v4237_v51 = vsel %vm13249_vm1, 65537, %v18645_v5  ;;  %v7157_v3 = vunpack.c.l.bf16 %v6852_v49  ;;  %5737 = vperm.xlu0 %8401, %v5146_v10   ;;  %v13384_v43 = vsel %vm1504_vm2, 65537, %v18645_v5  ;;  %vm13390_vm1 = vmpackc.low %vm6246_vm8, %vm6246_vm8  ;;  %v13397_v19 = vpop.permute.xlu0 %5551 }
 0x280   : > { %v4541_v12 = vunpack.c.l.b16 %v4237_v51  ;;  %19689 = vst [vmem:[#allocation35_spill] sm:$0xff] %v13384_v43  ;;  %vm1503_vm15 = vcmp.ne.bf16.partialorder %v19690_v1, 0  ;;  %v7531_v49 = vsel %vm341_vm11, %v7177_v2, 0.0  ;;  %vm4843_vm10 = vcmp.ne.s32.totalorder %v4539_v18, 0  ;;  %vm13412_vm13 = vmpackc.low %vm6267_vm7, %vm6267_vm7 }
 0x281   : > { %v19693_v15 = vrot.slane %v19682_v59, %v8772_v25  ;;  %v7485_v60 = vadd.f32 %v7484_v63, %v7483_v31  ;;  %v7158_v51 = vunpack.c.l.bf16 %v6853_v36  ;;  %vm6247_vm6 = vcmp.eq.s32.totalorder %v19696_v13, 1  ;;  %v19699_v63 = vld [vmem:[#allocation71_spill] sm:$0xff] }
 0x282   : > { %v7532_v26 = vadd.f32 %v7531_v49, %v7530_v56  ;;  %v7533_v59 = vsel %vm341_vm11, %v7178_v48, 0.0  ;;  %v6874_v18 = vsel %vm13377_vm4, %v392_v61, 0  ;;  %v5147_v31 = vsel %vm4843_vm10, 1, %v18645_v5  ;;  %vm13457_vm7 = vmpackc.low %vm6247_vm6, %vm6247_vm6  ;;  %v19711_v48 = vld [vmem:[#allocation73_spill] sm:$0xff] }
 0x283   : > { %vm13402_vm2 = vcmp.ne.s16.totalorder %v19693_v15, 0  ;;  %vm4844_vm12 = vcmp.ne.s32.totalorder %v4540_v6, 0  ;;  %v19700_v36 = vrot.slane %v19699_v63, %v8769_v27  ;;  %v19703_v38 = vrot.slane %v19699_v63, %v8772_v25  ;;  %5740 = vperm.xlu1 %8402, %v5147_v31   ;;  %v373_v31 = vld [vmem:[%s11729_s17 + $0x70] sm:$0xf] }
 0x284   : > { %v13439_v6 = vsel %vm1503_vm15, 65537, %v18645_v5  ;;  %v7486_v61 = vsel %vm341_vm11, %v7157_v3, 0.0  ;;  %vm4845_vm0 = vcmp.ne.s32.totalorder %v4541_v12, 0  ;;  %v6854_v11 = vsel %vm13390_vm1, %v372_v55, 0  ;;  %v395_v55 = vld [vmem:[%s11729_s17 + $0xc8] sm:$0xf] }
 0x285   : > { %vm13423_vm9 = vcmp.ne.s16.totalorder %v19700_v36, 0  ;;  %vm13430_vm8 = vcmp.ne.s16.totalorder %v19703_v38, 0  ;;  %19706 = vst [vmem:[#allocation11_spill] sm:$0xff] %v13439_v6  ;;  %v6875_v15 = vsel %vm13412_vm13, %v393_v0, 0  ;;  %vm6268_vm14 = vcmp.eq.s32.totalorder %v12531_v58, 1  ;;  %v13448_v36 = vpop.permute.xlu1 %5554  ;;  %v13450_v38 = vpop.permute.xlu0 %5557 }
 0x286   : > { %v5148_v63 = vsel %vm4844_vm12, 1, %v18645_v5  ;;  %v7487_v1 = vadd.f32 %v7486_v61, %v7485_v60  ;;  %v7488_v3 = vsel %vm341_vm11, %v7158_v51, 0.0  ;;  %v7534_v0 = vadd.f32 %v7533_v59, %v7532_v26  ;;  %vm13477_vm15 = vmpackc.low %vm6268_vm14, %vm6268_vm14 }
 0x287   : > { %v7179_v12 = vunpack.c.l.bf16 %v6874_v18  ;;  %5743 = vperm.xlu0 %8401, %v5148_v63   ;;  %vm6269_vm4 = vcmp.eq.s32.totalorder %v12592_v30, 1  ;;  %v5149_v21 = vsel %vm4845_vm0, 1, %v18645_v5  ;;  %v4238_v60 = vsel %vm13335_vm3, 65537, %v18645_v5  ;;  %v394_v18 = vld [vmem:[%s11729_s17 + $0xc4] sm:$0xf] }
 0x288   : > { %v4239_v13 = vsel %vm13342_vm5, 65537, %v18645_v5  ;;  %v7159_v2 = vunpack.c.l.bf16 %v6854_v11  ;;  %v7180_v59 = vunpack.c.l.bf16 %v6875_v15  ;;  %5746 = vperm.xlu1 %8402, %v5149_v21   ;;  %v6855_v61 = vsel %vm13457_vm7, %v373_v31, 0  ;;  %v19715_v21 = vld [vmem:[#allocation92_spill] sm:$0xff]  ;;  %vm13503_vm10 = vmpackc.low %vm6269_vm4, %vm6269_vm4 }
 0x289   : > { %v4542_v63 = vunpack.c.l.b16 %v4238_v60  ;;  %v13485_v51 = vpop.permute.xlu1 %5560  ;;  %v13487_v11 = vpop.permute.xlu0 %5563  ;;  %v4543_v15 = vunpack.c.l.b16 %v4239_v13  ;;  %v19712_v58 = vrot.slane %v19711_v48, %v8769_v27  ;;  %vm1506_vm5 = vcmp.ne.bf16.partialorder %v19715_v21, 0  ;;  %v400_v21 = vld [vmem:[%s11729_s17 + $0xdc] sm:$0xf] }
 0x28a   : > { %v7489_v43 = vadd.f32 %v7488_v3, %v7487_v1  ;;  %vm6248_vm1 = vcmp.eq.s32.totalorder %v19716_v45, 1  ;;  %v7535_v31 = vsel %vm341_vm11, %v7179_v12, 0.0  ;;  %v19719_v13 = vrot.slane %v19711_v48, %v8772_v25 }
 0x28b   : > { %vm13492_vm3 = vcmp.ne.s16.totalorder %v19712_v58, 0  ;;  %v7536_v1 = vadd.f32 %v7535_v31, %v7534_v0  ;;  %v6876_v3 = vsel %vm13477_vm15, %v394_v18, 0  ;;  %vm4846_vm13 = vcmp.ne.s32.totalorder %v4542_v63, 0  ;;  %vm13542_vm4 = vmpackc.low %vm6248_vm1, %vm6248_vm1 }
 0x28c   : > { %vm13510_vm6 = vcmp.ne.s16.totalorder %v19719_v13, 0  ;;  %vm4847_vm12 = vcmp.ne.s32.totalorder %v4543_v15, 0  ;;  %v7490_v30 = vsel %vm341_vm11, %v7159_v2, 0.0  ;;  %v7160_v12 = vunpack.c.l.bf16 %v6855_v61  ;;  %v19726_v61 = vld [vmem:[#allocation93_spill] sm:$0xff] }
 0x28d   : > { %v7537_v6 = vsel %vm341_vm11, %v7180_v59, 0.0  ;;  %v5150_v37 = vsel %vm4846_vm13, 1, %v18645_v5  ;;  %v19723_v48 = vrot.slane %v19722_v20, %v8769_v27  ;;  %v6877_v0 = vsel %vm13503_vm10, %v395_v55, 0  ;;  %v13533_v18 = vpop.permute.xlu1 %5566  ;;  %v13535_v40 = vpop.permute.xlu0 %5569  ;;  %v374_v15 = vld [vmem:[%s11729_s17 + $0x74] sm:$0xf] }
 0x28e   : > { %vm6270_vm14 = vcmp.eq.s32.totalorder %v12594_v8, 1  ;;  %5749 = vperm.xlu0 %8401, %v5150_v37   ;;  %v5151_v2 = vsel %vm4847_vm12, 1, %v18645_v5  ;;  %v4240_v59 = vsel %vm13402_vm2, 65537, %v18645_v5  ;;  %vm1505_vm7 = vcmp.ne.bf16.partialorder %v19726_v61, 0  ;;  %v19737_v37 = vld [vmem:[#allocation41_spill] sm:$0xff] }
 0x28f   : > { %vm13522_vm0 = vcmp.ne.s16.totalorder %v19723_v48, 0  ;;  %v7491_v63 = vadd.f32 %v7490_v30, %v7489_v43  ;;  %v7181_v31 = vunpack.c.l.bf16 %v6876_v3  ;;  %5752 = vperm.xlu1 %8402, %v5151_v2   ;;  %v4544_v10 = vunpack.c.l.b16 %v4240_v59 }
 0x290   : > { %v7538_v55 = vadd.f32 %v7537_v6, %v7536_v1  ;;  %vm6271_vm2 = vcmp.eq.s32.totalorder %v12646_v14, 1  ;;  %v4241_v60 = vsel %vm13423_vm9, 65537, %v18645_v5  ;;  %v4242_v43 = vsel %vm13430_vm8, 65537, %v18645_v5  ;;  %v396_v1 = vld [vmem:[%s11729_s17 + $0xcc] sm:$0xf]  ;;  %vm13565_vm9 = vmpackc.low %vm6270_vm14, %vm6270_vm14 }
 0x291   : > { %v19729_v45 = vrot.slane %v19722_v20, %v8772_v25  ;;  %vm6249_vm1 = vcmp.eq.s32.totalorder %v12016_v32, 1  ;;  %v7182_v6 = vunpack.c.l.bf16 %v6877_v0  ;;  %vm4848_vm8 = vcmp.ne.s32.totalorder %v4544_v10, 0  ;;  %v13573_v0 = vpop.permute.xlu1 %5572  ;;  %v13575_v59 = vpop.permute.xlu0 %5575  ;;  %vm13588_vm13 = vmpackc.low %vm6271_vm2, %vm6271_vm2 }
 0x292   : > { %v4545_v49 = vunpack.c.l.b16 %v4241_v60  ;;  %v7492_v20 = vsel %vm341_vm11, %v7160_v12, 0.0  ;;  %v6856_v3 = vsel %vm13542_vm4, %v374_v15, 0  ;;  %v5152_v48 = vsel %vm4848_vm8, 1, %v18645_v5  ;;  %v397_v12 = vld [vmem:[%s11729_s17 + $0xd0] sm:$0xf] }
 0x293   : > { %vm13556_vm15 = vcmp.ne.s16.totalorder %v19729_v45, 0  ;;  %v4546_v2 = vunpack.c.l.b16 %v4242_v43  ;;  %v13580_v8 = vsel %vm1506_vm5, 65537, %v18645_v5  ;;  %vm6250_vm10 = vcmp.eq.s32.totalorder %v12018_v52, 1  ;;  %5755 = vperm.xlu0 %8401, %v5152_v48   ;;  %v375_v43 = vld [vmem:[%s11729_s17 + $0x78] sm:$0xf]  ;;  %vm13603_vm5 = vmpackc.low %vm6249_vm1, %vm6249_vm1 }
 0x294   : > { %19734 = vst [vmem:[#allocation15_spill] sm:$0xff] %v13580_v8  ;;  %v7539_v10 = vsel %vm341_vm11, %v7181_v31, 0.0  ;;  %vm4849_vm12 = vcmp.ne.s32.totalorder %v4545_v49, 0  ;;  %v19738_v60 = vrot.slane %v19737_v37, %v8769_v27  ;;  %v6878_v45 = vsel %vm13565_vm9, %v396_v1, 0 }
 0x295   : > { %v7540_v31 = vadd.f32 %v7539_v10, %v7538_v55  ;;  %v5153_v49 = vsel %vm4849_vm12, 1, %v18645_v5  ;;  %vm4850_vm4 = vcmp.ne.s32.totalorder %v4546_v2, 0  ;;  %v13613_v48 = vsel %vm1505_vm7, 65537, %v18645_v5  ;;  %v376_v2 = vld [vmem:[%s11729_s17 + $0x7c] sm:$0xf]  ;;  %vm13640_vm7 = vmpackc.low %vm6250_vm10, %vm6250_vm10 }
 0x296   : > { %vm13595_vm14 = vcmp.ne.s16.totalorder %v19738_v60, 0  ;;  %19743 = vst [vmem:[#allocation38_spill] sm:$0xff] %v13613_v48  ;;  %v7493_v60 = vadd.f32 %v7492_v20, %v7491_v63  ;;  %v7161_v32 = vunpack.c.l.bf16 %v6856_v3  ;;  %v7541_v16 = vsel %vm341_vm11, %v7182_v6, 0.0  ;;  %5758 = vperm.xlu1 %8402, %v5153_v49   ;;  %v13630_v6 = vpop.permute.xlu1 %5578  ;;  %v13632_v20 = vpop.permute.xlu0 %5581 }
 0x297   : > { %v19744_v55 = vrot.slane %v19737_v37, %v8772_v25  ;;  %v6879_v1 = vsel %vm13588_vm13, %v397_v12, 0  ;;  %vm6272_vm1 = vcmp.eq.s32.totalorder %v12648_v50, 1  ;;  %v5154_v61 = vsel %vm4850_vm4, 1, %v18645_v5  ;;  %19747 = vst [vmem:[#allocation49_spill] sm:$0xff] %v13632_v20  ;;  %v19750_v37 = vld [vmem:[#allocation40_spill] sm:$0xff] }
 0x298   : > { %v4243_v63 = vsel %vm13492_vm3, 65537, %v18645_v5  ;;  %v6857_v3 = vsel %vm13603_vm5, %v375_v43, 0  ;;  %v7183_v12 = vunpack.c.l.bf16 %v6878_v45  ;;  %5761 = vperm.xlu0 %8401, %v5154_v61   ;;  %v4244_v15 = vsel %vm13510_vm6, 65537, %v18645_v5  ;;  %vm13669_vm8 = vmpackc.low %vm6272_vm1, %vm6272_vm1  ;;  %v399_v20 = vld [vmem:[%s11729_s17 + $0xd8] sm:$0xf] }
 0x299   : > { %vm13619_vm2 = vcmp.ne.s16.totalorder %v19744_v55, 0  ;;  %v4547_v26 = vunpack.c.l.b16 %v4243_v63  ;;  %v19751_v14 = vrot.slane %v19750_v37, %v8769_v27  ;;  %v19754_v52 = vrot.slane %v19750_v37, %v8772_v25 }
 0x29a   : > { %v7542_v55 = vadd.f32 %v7541_v16, %v7540_v31  ;;  %vm6273_vm6 = vcmp.eq.s32.totalorder %v12705_v35, 1  ;;  %v4548_v58 = vunpack.c.l.b16 %v4244_v15  ;;  %v7494_v61 = vsel %vm341_vm11, %v7161_v32, 0.0  ;;  %v13681_v50 = vpop.permute.xlu0 %5587 }
 0x29b   : > { %vm13650_vm3 = vcmp.ne.s16.totalorder %v19751_v14, 0  ;;  %vm13657_vm9 = vcmp.ne.s16.totalorder %v19754_v52, 0  ;;  %v7184_v63 = vunpack.c.l.bf16 %v6879_v1  ;;  %v398_v14 = vld [vmem:[%s11729_s17 + $0xd4] sm:$0xf]  ;;  %vm4851_vm10 = vcmp.ne.s32.totalorder %v4547_v26, 0  ;;  %v13679_v1 = vpop.permute.xlu1 %5584  ;;  %19759 = vst [vmem:[#allocation65_spill] sm:$0xff] %v13681_v50 }
 0x29c   : > { %v4245_v16 = vsel %vm13522_vm0, 65537, %v18645_v5  ;;  %v7162_v31 = vunpack.c.l.bf16 %v6857_v3  ;;  %v6858_v15 = vsel %vm13640_vm7, %v376_v2, 0  ;;  %v5155_v32 = vsel %vm4851_vm10, 1, %v18645_v5  ;;  %v19760_v52 = vld [vmem:[#allocation74_spill] sm:$0xff]  ;;  %vm13695_vm0 = vmpackc.low %vm6273_vm6, %vm6273_vm6  ;;  %v379_v26 = vld [vmem:[%s11729_s17 + $0x88] sm:$0xf] }
 0x29d   : > { %vm4852_vm13 = vcmp.ne.s32.totalorder %v4548_v58, 0  ;;  %v19761_v45 = vrot.slane %v19760_v52, %v8769_v27  ;;  %v7495_v13 = vadd.f32 %v7494_v61, %v7493_v60  ;;  %v7543_v3 = vsel %vm341_vm11, %v7183_v12, 0.0  ;;  %5764 = vperm.xlu1 %8402, %v5155_v32   ;;  %v19771_v2 = vld [vmem:[#allocation42_spill] sm:$0xff] }
 0x29e   : > { %v5156_v10 = vsel %vm4852_vm13, 1, %v18645_v5  ;;  %v4549_v58 = vunpack.c.l.b16 %v4245_v16  ;;  %vm6251_vm5 = vcmp.eq.s32.totalorder %v12069_v23, 1  ;;  %v6880_v60 = vsel %vm13669_vm8, %v398_v14, 0 }
 0x29f   : > { %vm13686_vm12 = vcmp.ne.s16.totalorder %v19761_v45, 0  ;;  %v7544_v45 = vadd.f32 %v7543_v3, %v7542_v55  ;;  %5767 = vperm.xlu0 %8401, %v5156_v10   ;;  %v4246_v35 = vsel %vm13556_vm15, 65537, %v18645_v5  ;;  %v7163_v12 = vunpack.c.l.bf16 %v6858_v15  ;;  %v13719_v37 = vpop.permute.xlu1 %5590  ;;  %vm13729_vm15 = vmpackc.low %vm6251_vm5, %vm6251_vm5  ;;  %v19785_v15 = vld [vmem:[#allocation45_spill] sm:$0xff] }
 0x2a0   : > { %v7545_v61 = vsel %vm341_vm11, %v7184_v63, 0.0  ;;  %vm4853_vm4 = vcmp.ne.s32.totalorder %v4549_v58, 0  ;;  %v4550_v32 = vunpack.c.l.b16 %v4246_v35  ;;  %v19766_v16 = vrot.slane %v19760_v52, %v8772_v25  ;;  %v13721_v63 = vpop.permute.xlu0 %5593  ;;  %v377_v52 = vld [vmem:[%s11729_s17 + $0x80] sm:$0xf] }
 0x2a1   : > { %v7496_v55 = vsel %vm341_vm11, %v7162_v31, 0.0  ;;  %v6881_v14 = vsel %vm13695_vm0, %v399_v20, 0  ;;  %vm6274_vm7 = vcmp.eq.s32.totalorder %v12707_v9, 1  ;;  %v5157_v30 = vsel %vm4853_vm4, 1, %v18645_v5 }
 0x2a2   : > { %vm13710_vm1 = vcmp.ne.s16.totalorder %v19766_v16, 0  ;;  %v7185_v20 = vunpack.c.l.bf16 %v6880_v60  ;;  %5770 = vperm.xlu1 %8402, %v5157_v30   ;;  %vm4854_vm6 = vcmp.ne.s32.totalorder %v4550_v32, 0  ;;  %v4247_v3 = vsel %vm13595_vm14, 65537, %v18645_v5  ;;  %vm13750_vm14 = vmpackc.low %vm6274_vm7, %vm6274_vm7 }
 0x2a3   : > { %v19772_v10 = vrot.slane %v19771_v2, %v8769_v27  ;;  %v7546_v23 = vadd.f32 %v7545_v61, %v7544_v45  ;;  %vm6275_vm10 = vcmp.eq.s32.totalorder %v12763_v42, 1  ;;  %v5158_v35 = vsel %vm4854_vm6, 1, %v18645_v5  ;;  %v402_v42 = vld [vmem:[%s11729_s17 + $0xe4] sm:$0xf] }
 0x2a4   : > { %v4551_v16 = vunpack.c.l.b16 %v4247_v3  ;;  %v7497_v60 = vadd.f32 %v7496_v55, %v7495_v13  ;;  %vm6252_vm13 = vcmp.eq.s32.totalorder %v12071_v22, 1  ;;  %v7186_v32 = vunpack.c.l.bf16 %v6881_v14  ;;  %5773 = vperm.xlu0 %8401, %v5158_v35   ;;  %v13760_v14 = vpop.permute.xlu1 %5596  ;;  %v13762_v9 = vpop.permute.xlu0 %5599  ;;  %v401_v35 = vld [vmem:[%s11729_s17 + $0xe0] sm:$0xf] }
 0x2a5   : > { %vm13739_vm8 = vcmp.ne.s16.totalorder %v19772_v10, 0  ;;  %v4248_v45 = vsel %vm13619_vm2, 65537, %v18645_v5  ;;  %v7498_v61 = vsel %vm341_vm11, %v7163_v12, 0.0  ;;  %v6859_v13 = vsel %vm13729_vm15, %v377_v52, 0  ;;  %19777 = vst [vmem:[#allocation77_spill] sm:$0xff] %v13762_v9  ;;  %vm13776_vm2 = vmpackc.low %vm6275_vm10, %vm6275_vm10 }
 0x2a6   : > { %vm4855_vm0 = vcmp.ne.s32.totalorder %v4551_v16, 0  ;;  %v4552_v55 = vunpack.c.l.b16 %v4248_v45  ;;  %v19778_v3 = vrot.slane %v19771_v2, %v8772_v25  ;;  %v7547_v56 = vsel %vm341_vm11, %v7185_v20, 0.0  ;;  %v378_v16 = vld [vmem:[%s11729_s17 + $0x84] sm:$0xf]  ;;  %vm13791_vm4 = vmpackc.low %vm6252_vm13, %vm6252_vm13 }
 0x2a7   : > { %v5159_v52 = vsel %vm4855_vm0, 1, %v18645_v5  ;;  %v4249_v31 = vsel %vm13650_vm3, 65537, %v18645_v5  ;;  %v4250_v2 = vsel %vm13657_vm9, 65537, %v18645_v5  ;;  %vm6253_vm7 = vcmp.eq.s32.totalorder %v12132_v24, 1 }
 0x2a8   : > { %vm13767_vm5 = vcmp.ne.s16.totalorder %v19778_v3, 0  ;;  %v7548_v20 = vadd.f32 %v7547_v56, %v7546_v23  ;;  %v6882_v45 = vsel %vm13750_vm14, %v400_v21, 0  ;;  %5776 = vperm.xlu1 %8402, %v5159_v52   ;;  %vm4856_vm3 = vcmp.ne.s32.totalorder %v4552_v55, 0  ;;  %v13813_v30 = vpop.permute.xlu1 %5602  ;;  %v13815_v55 = vpop.permute.xlu0 %5605 }
 0x2a9   : > { %v7549_v43 = vsel %vm341_vm11, %v7186_v32, 0.0  ;;  %v5160_v49 = vsel %vm4856_vm3, 1, %v18645_v5  ;;  %v4553_v3 = vunpack.c.l.b16 %v4249_v31  ;;  %v4554_v22 = vunpack.c.l.b16 %v4250_v2 }
 0x2aa   : > { %v19786_v8 = vrot.slane %v19785_v15, %v8769_v27  ;;  %v7164_v23 = vunpack.c.l.bf16 %v6859_v13  ;;  %v6883_v21 = vsel %vm13776_vm2, %v401_v35, 0  ;;  %vm6276_vm15 = vcmp.eq.s32.totalorder %v12765_v39, 1  ;;  %5779 = vperm.xlu0 %8401, %v5160_v49  }
 0x2ab   : > { %v4251_v32 = vsel %vm13686_vm12, 65537, %v18645_v5  ;;  %v7187_v56 = vunpack.c.l.bf16 %v6882_v45  ;;  %vm4857_vm6 = vcmp.ne.s32.totalorder %v4553_v3, 0  ;;  %vm4858_vm10 = vcmp.ne.s32.totalorder %v4554_v22, 0  ;;  %vm13830_vm12 = vmpackc.low %vm6253_vm7, %vm6253_vm7  ;;  %v19803_v22 = vld [vmem:[#allocation19_spill] sm:$0xff] }
 0x2ac   : > { %vm13803_vm9 = vcmp.ne.s16.totalorder %v19786_v8, 0  ;;  %v6860_v8 = vsel %vm13791_vm4, %v378_v16, 0  ;;  %v19789_v13 = vrot.slane %v19785_v15, %v8772_v25  ;;  %v7550_v52 = vadd.f32 %v7549_v43, %v7548_v20  ;;  %vm13840_vm0 = vmpackc.low %vm6276_vm15, %vm6276_vm15  ;;  %v19796_v43 = vld [vmem:[#allocation75_spill] sm:$0xff] }
 0x2ad   : > { %vm6277_vm14 = vcmp.eq.s32.totalorder %v12820_v62, 1  ;;  %v5161_v31 = vsel %vm4857_vm6, 1, %v18645_v5  ;;  %v4555_v2 = vunpack.c.l.b16 %v4251_v32  ;;  %v7499_v16 = vadd.f32 %v7498_v61, %v7497_v60  ;;  %v13865_v32 = vpop.permute.xlu0 %5611 }
 0x2ae   : > { %vm13822_vm13 = vcmp.ne.s16.totalorder %v19789_v13, 0  ;;  %v7188_v15 = vunpack.c.l.bf16 %v6883_v21  ;;  %5782 = vperm.xlu1 %8402, %v5161_v31   ;;  %v5162_v24 = vsel %vm4858_vm10, 1, %v18645_v5  ;;  %v4252_v20 = vsel %vm13710_vm1, 65537, %v18645_v5  ;;  %v13863_v21 = vpop.permute.xlu1 %5608  ;;  %vm13875_vm1 = vmpackc.low %vm6277_vm14, %vm6277_vm14 }
 0x2af   : > { %v19797_v60 = vrot.slane %v19796_v43, %v8769_v27  ;;  %v19800_v39 = vrot.slane %v19796_v43, %v8772_v25  ;;  %v7165_v3 = vunpack.c.l.bf16 %v6860_v8  ;;  %vm6254_vm7 = vcmp.eq.s32.totalorder %v19803_v22, 1  ;;  %5785 = vperm.xlu0 %8401, %v5162_v24   ;;  %v405_v22 = vld [vmem:[%s11729_s17 + $0xf0] sm:$0xf] }
 0x2b0   : > { %vm4859_vm3 = vcmp.ne.s32.totalorder %v4555_v2, 0  ;;  %v4556_v50 = vunpack.c.l.b16 %v4252_v20  ;;  %v7500_v13 = vsel %vm341_vm11, %v7164_v23, 0.0  ;;  %v6861_v31 = vsel %vm13830_vm12, %v379_v26, 0 }
 0x2b1   : > { %vm13851_vm2 = vcmp.ne.s16.totalorder %v19797_v60, 0  ;;  %vm13858_vm4 = vcmp.ne.s16.totalorder %v19800_v39, 0  ;;  %v7551_v43 = vsel %vm341_vm11, %v7187_v56, 0.0  ;;  %v403_v60 = vld [vmem:[%s11729_s17 + $0xe8] sm:$0xf]  ;;  %v4253_v2 = vsel %vm13739_vm8, 65537, %v18645_v5  ;;  %vm13901_vm8 = vmpackc.low %vm6254_vm7, %vm6254_vm7 }
 0x2b2   : > { %v7552_v24 = vadd.f32 %v7551_v43, %v7550_v52  ;;  %v6884_v23 = vsel %vm13840_vm0, %v402_v42, 0  ;;  %v5163_v26 = vsel %vm4859_vm3, 1, %v18645_v5  ;;  %vm4860_vm15 = vcmp.ne.s32.totalorder %v4556_v50, 0  ;;  %v19806_v56 = vld [vmem:[#allocation48_spill] sm:$0xff] }
 0x2b3   : > { %v19807_v12 = vrot.slane %v19806_v56, %v8769_v27  ;;  %v7553_v20 = vsel %vm341_vm11, %v7188_v15, 0.0  ;;  %vm6278_vm10 = vcmp.eq.s32.totalorder %v12822_v4, 1  ;;  %5788 = vperm.xlu1 %8402, %v5163_v26   ;;  %v5164_v58 = vsel %vm4860_vm15, 1, %v18645_v5  ;;  %v380_v39 = vld [vmem:[%s11729_s17 + $0x8c] sm:$0xf] }
 0x2b4   : > { %v4557_v52 = vunpack.c.l.b16 %v4253_v2  ;;  %v7501_v45 = vadd.f32 %v7500_v13, %v7499_v16  ;;  %v6885_v15 = vsel %vm13875_vm1, %v403_v60, 0  ;;  %5791 = vperm.xlu0 %8401, %v5164_v58   ;;  %v4254_v43 = vsel %vm13767_vm5, 65537, %v18645_v5  ;;  %v13910_v2 = vpop.permute.xlu1 %5614  ;;  %v13912_v16 = vpop.permute.xlu0 %5617  ;;  %v404_v42 = vld [vmem:[%s11729_s17 + $0xec] sm:$0xf]  ;;  %vm13928_vm5 = vmpackc.low %vm6278_vm10, %vm6278_vm10 }
 0x2b5   : > { %vm13888_vm6 = vcmp.ne.s16.totalorder %v19807_v12, 0  ;;  %v7189_v13 = vunpack.c.l.bf16 %v6884_v23  ;;  %v4558_v26 = vunpack.c.l.b16 %v4254_v43  ;;  %v19812_v12 = vrot.slane %v19806_v56, %v8772_v25 }
 0x2b6   : > { %vm4861_vm12 = vcmp.ne.s32.totalorder %v4557_v52, 0  ;;  %v7502_v10 = vsel %vm341_vm11, %v7165_v3, 0.0  ;;  %v7166_v8 = vunpack.c.l.bf16 %v6861_v31  ;;  %v7554_v58 = vadd.f32 %v7553_v20, %v7552_v24  ;;  %v19817_v31 = vld [vmem:[#allocation76_spill] sm:$0xff] }
 0x2b7   : > { %vm13919_vm14 = vcmp.ne.s16.totalorder %v19812_v12, 0  ;;  %v5165_v23 = vsel %vm4861_vm12, 1, %v18645_v5  ;;  %v6862_v56 = vsel %vm13901_vm8, %v380_v39, 0  ;;  %v7190_v52 = vunpack.c.l.bf16 %v6885_v15 }
 0x2b8   : > { %5794 = vperm.xlu1 %8402, %v5165_v23   ;;  %vm4862_vm0 = vcmp.ne.s32.totalorder %v4558_v26, 0  ;;  %v4255_v3 = vsel %vm13803_vm9, 65537, %v18645_v5  ;;  %v19818_v4 = vrot.slane %v19817_v31, %v8769_v27  ;;  %v13945_v20 = vadd.f32 %v7502_v10, %v7501_v45  ;;  %v13949_v15 = vpop.permute.xlu1 %5620  ;;  %v13951_v43 = vpop.permute.xlu0 %5623 }
 0x2b9   : > { %vm6279_vm3 = vcmp.eq.s32.totalorder %v12872_v46, 1  ;;  %v5166_v39 = vsel %vm4862_vm0, 1, %v18645_v5  ;;  %v4559_v50 = vunpack.c.l.b16 %v4255_v3  ;;  %19821 = vst [vmem:[#allocation71_spill] sm:$0xff] %v13951_v43  ;;  %v7555_v9 = vsel %vm341_vm11, %v7189_v13, 0.0 }
 0x2ba   : > { %vm13941_vm7 = vcmp.ne.s16.totalorder %v19818_v4, 0  ;;  %v6886_v26 = vsel %vm13928_vm5, %v404_v42, 0  ;;  %vm6295_vm9 = vcmp.eq.s32.totalorder %v13306_v34, 1  ;;  %5797 = vperm.xlu0 %8401, %v5166_v39   ;;  %v4256_v45 = vsel %vm13822_vm13, 65537, %v18645_v5  ;;  %vm13973_vm13 = vmpackc.low %vm6279_vm3, %vm6279_vm3  ;;  %v19827_v4 = vld [vmem:[#allocation17_spill] sm:$0xff] }
 0x2bb   : > { %v7556_v12 = vadd.f32 %v7555_v9, %v7554_v58  ;;  %vm6296_vm1 = vcmp.eq.s32.totalorder %v13308_v53, 1  ;;  %vm4863_vm15 = vcmp.ne.s32.totalorder %v4559_v50, 0  ;;  %v4560_v10 = vunpack.c.l.b16 %v4256_v45  ;;  %vm13991_vm5 = vmpackc.low %vm6295_vm9, %vm6295_vm9  ;;  %v421_v39 = vld [vmem:[%s11729_s17 + $0x130] sm:$0xf]  ;;  %v422_v50 = vld [vmem:[%s11729_s17 + $0x134] sm:$0xf] }
 0x2bc   : > { %v19822_v23 = vrot.slane %v19817_v31, %v8772_v25  ;;  %v7557_v42 = vsel %vm341_vm11, %v7190_v52, 0.0  ;;  %v5167_v58 = vsel %vm4863_vm15, 1, %v18645_v5  ;;  %v4257_v3 = vsel %vm13851_vm2, 65537, %v18645_v5  ;;  %v13995_v61 = vpop.permute.xlu1 %5626  ;;  %v13997_v49 = vpop.permute.xlu0 %5629  ;;  %vm14004_vm2 = vmpackc.low %vm6296_vm1, %vm6296_vm1 }
 0x2bd   : > { %v4258_v31 = vsel %vm13858_vm4, 65537, %v18645_v5  ;;  %v13984_v52 = vunpack.c.l.bf16 %v6862_v56  ;;  %vm6255_vm8 = vcmp.eq.s32.totalorder %v19827_v4, 1  ;;  %vm6280_vm12 = vcmp.eq.s32.totalorder %v12874_v41, 1  ;;  %5800 = vperm.xlu1 %8402, %v5167_v58   ;;  %19830 = vst [vmem:[#allocation73_spill] sm:$0xff] %v13995_v61  ;;  %19831 = vst [vmem:[#allocation92_spill] sm:$0xff] %v13997_v49 }
 0x2be   : > { %vm13964_vm10 = vcmp.ne.s16.totalorder %v19822_v23, 0  ;;  %vm4864_vm0 = vcmp.ne.s32.totalorder %v4560_v10, 0  ;;  %v7191_v56 = vunpack.c.l.bf16 %v6886_v26  ;;  %v4561_v45 = vunpack.c.l.b16 %v4257_v3  ;;  %v19834_v10 = vld [vmem:[#allocation51_spill] sm:$0xff]  ;;  %vm14027_vm9 = vmpackc.low %vm6280_vm12, %vm6280_vm12 }
 0x2bf   : > { %v5168_v9 = vsel %vm4864_vm0, 1, %v18645_v5  ;;  %v4562_v23 = vunpack.c.l.b16 %v4258_v31  ;;  %v19835_v58 = vrot.slane %v19834_v10, %v8769_v27  ;;  %v7558_v26 = vadd.f32 %v7557_v42, %v7556_v12  ;;  %v406_v31 = vld [vmem:[%s11729_s17 + $0xf4] sm:$0xf] }
 0x2c0   : > { %v6887_v53 = vsel %vm13973_vm13, %v405_v22, 0  ;;  %vm6297_vm3 = vcmp.eq.s32.totalorder %v13349_v54, 1  ;;  %5803 = vperm.xlu0 %8401, %v5168_v9   ;;  %v4259_v49 = vsel %vm13888_vm6, 65537, %v18645_v5  ;;  %v7504_v3 = vsel %vm341_vm11, %v7166_v8, 0.0  ;;  %v14044_v35 = vpop.permute.xlu1 %5632  ;;  %v14046_v9 = vpop.permute.xlu0 %5635 }
 0x2c1   : > { %vm14012_vm4 = vcmp.ne.s16.totalorder %v19835_v58, 0  ;;  %vm6281_vm1 = vcmp.eq.s32.totalorder %v12932_v44, 1  ;;  %vm4865_vm15 = vcmp.ne.s32.totalorder %v4561_v45, 0  ;;  %vm4866_vm13 = vcmp.ne.s32.totalorder %v4562_v23, 0  ;;  %19843 = vst [vmem:[#allocation97_spill] sm:$0xff] %v14044_v35  ;;  %19844 = vst [vmem:[#allocation39_spill] sm:$0xff] %v14046_v9 }
 0x2c2   : > { %v19840_v12 = vrot.slane %v19834_v10, %v8772_v25  ;;  %v6903_v8 = vsel %vm13991_vm5, %v421_v39, 0  ;;  %v6904_v41 = vsel %vm14004_vm2, %v422_v50, 0  ;;  %v5169_v42 = vsel %vm4865_vm15, 1, %v18645_v5  ;;  %v423_v10 = vld [vmem:[%s11729_s17 + $0x138] sm:$0xf]  ;;  %vm14053_vm6 = vmpackc.low %vm6297_vm3, %vm6297_vm3 }
 0x2c3   : > { %v4563_v22 = vunpack.c.l.b16 %v4259_v49  ;;  %v7559_v45 = vsel %vm341_vm11, %v7191_v56, 0.0  ;;  %v7192_v23 = vunpack.c.l.bf16 %v6887_v53  ;;  %5806 = vperm.xlu1 %8402, %v5169_v42   ;;  %v5170_v49 = vsel %vm4866_vm13, 1, %v18645_v5  ;;  %v19847_v50 = vld [vmem:[#allocation50_spill] sm:$0xff]  ;;  %vm14081_vm2 = vmpackc.low %vm6281_vm1, %vm6281_vm1  ;;  %v14269_v35 = vld [vmem:[%s11729_s17 + $0x94] sm:$0xf] }
 0x2c4   : > { %vm14035_vm0 = vcmp.ne.s16.totalorder %v19840_v12, 0  ;;  %v4260_v39 = vsel %vm13919_vm14, 65537, %v18645_v5  ;;  %v19848_v56 = vrot.slane %v19847_v50, %v8769_v27  ;;  %v19851_v54 = vrot.slane %v19847_v50, %v8772_v25  ;;  %5809 = vperm.xlu0 %8401, %v5170_v49   ;;  %v407_v9 = vld [vmem:[%s11729_s17 + $0xf8] sm:$0xf]  ;;  %v14103_v24 = vpop.permute.xlu1 %5638 }
 0x2c5   : > { %v7560_v12 = vadd.f32 %v7559_v45, %v7558_v26  ;;  %v6888_v42 = vsel %vm14027_vm9, %v406_v31, 0  ;;  %vm4867_vm14 = vcmp.ne.s32.totalorder %v4563_v22, 0  ;;  %v4564_v60 = vunpack.c.l.b16 %v4260_v39  ;;  %v14090_v31 = vld [vmem:[%s11729_s17 + $0x90] sm:$0xf]  ;;  %vm14095_vm9 = vmpackc.low %vm6255_vm8, %vm6255_vm8  ;;  %19858 = vst [vmem:[#allocation93_spill] sm:$0xff] %v14103_v24 }
 0x2c6   : > { %vm14064_vm12 = vcmp.ne.s16.totalorder %v19848_v56, 0  ;;  %vm14071_vm5 = vcmp.ne.s16.totalorder %v19851_v54, 0  ;;  %vm6282_vm3 = vcmp.eq.s32.totalorder %v12934_v17, 1  ;;  %v7208_v50 = vunpack.c.l.bf16 %v6903_v8  ;;  %v424_v56 = vld [vmem:[%s11729_s17 + $0x13c] sm:$0xf] }
 0x2c7   : > { %v7209_v54 = vunpack.c.l.bf16 %v6904_v41  ;;  %v4261_v26 = vsel %vm13941_vm7, 65537, %v18645_v5  ;;  %v6905_v58 = vsel %vm14053_vm6, %v423_v10, 0  ;;  %vm6298_vm1 = vcmp.eq.s32.totalorder %v13351_v47, 1  ;;  %v14105_v41 = vpop.permute.xlu0 %5641  ;;  %vm14117_vm7 = vmpackc.low %vm6282_vm3, %vm6282_vm3 }
 0x2c8   : > { %v5171_v8 = vsel %vm4867_vm14, 1, %v18645_v5  ;;  %vm4868_vm15 = vcmp.ne.s32.totalorder %v4564_v60, 0  ;;  %19859 = vst [vmem:[#allocation41_spill] sm:$0xff] %v14105_v41  ;;  %v7561_v4 = vsel %vm341_vm11, %v7192_v23, 0.0  ;;  %v7193_v22 = vunpack.c.l.bf16 %v6888_v42  ;;  %v19862_v42 = vld [vmem:[#allocation78_spill] sm:$0xff]  ;;  %vm14140_vm6 = vmpackc.low %vm6298_vm1, %vm6298_vm1 }
 0x2c9   : > { %5812 = vperm.xlu1 %8402, %v5171_v8   ;;  %v5172_v45 = vsel %vm4868_vm15, 1, %v18645_v5  ;;  %v4565_v49 = vunpack.c.l.b16 %v4261_v26  ;;  %v14110_v10 = vadd.f32 %v7504_v3, %v13945_v20  ;;  %v6889_v46 = vsel %vm14081_vm2, %v407_v9, 0  ;;  %v408_v9 = vld [vmem:[%s11729_s17 + $0xfc] sm:$0xf]  ;;  %v19868_v8 = vld [vmem:[#allocation99_spill] sm:$0xff] }
 0x2ca   : > { %vm6299_vm8 = vcmp.eq.s32.totalorder %v13395_v28, 1  ;;  %5815 = vperm.xlu0 %8401, %v5172_v45   ;;  %v4262_v23 = vsel %vm13964_vm10, 65537, %v18645_v5  ;;  %v19863_v20 = vrot.slane %v19862_v42, %v8769_v27  ;;  %v6863_v17 = vsel %vm14095_vm9, %v14090_v31, 0 }
 0x2cb   : > { %v7210_v60 = vunpack.c.l.bf16 %v6905_v58  ;;  %vm4869_vm10 = vcmp.ne.s32.totalorder %v4565_v49, 0  ;;  %v4566_v26 = vunpack.c.l.b16 %v4262_v23  ;;  %vm6256_vm14 = vcmp.eq.s32.totalorder %v19868_v8, 1  ;;  %v14148_v58 = vpop.permute.xlu1 %5644  ;;  %v14150_v41 = vpop.permute.xlu0 %5647  ;;  %vm14164_vm3 = vmpackc.low %vm6299_vm8, %vm6299_vm8  ;;  %v19876_v23 = vld [vmem:[#allocation52_spill] sm:$0xff] }
 0x2cc   : > { %vm14128_vm13 = vcmp.ne.s16.totalorder %v19863_v20, 0  ;;  %v7562_v45 = vadd.f32 %v7561_v4, %v7560_v12  ;;  %v7599_v20 = vsel %vm341_vm11, %v7208_v50, 0.0  ;;  %v7600_v31 = vsel %vm341_vm11, %v7209_v54, 0.0  ;;  %19869 = vst [vmem:[#allocation40_spill] sm:$0xff] %v14148_v58  ;;  %19870 = vst [vmem:[#allocation74_spill] sm:$0xff] %v14150_v41 }
 0x2cd   : > { %v5173_v44 = vsel %vm4869_vm10, 1, %v18645_v5  ;;  %v19871_v47 = vrot.slane %v19862_v42, %v8772_v25  ;;  %v7563_v49 = vsel %vm341_vm11, %v7193_v22, 0.0  ;;  %v7194_v12 = vunpack.c.l.bf16 %v6889_v46  ;;  %v425_v4 = vld [vmem:[%s11729_s17 + $0x140] sm:$0xf] }
 0x2ce   : > { %5818 = vperm.xlu1 %8402, %v5173_v44   ;;  %vm4870_vm9 = vcmp.ne.s32.totalorder %v4566_v26, 0  ;;  %v4263_v54 = vsel %vm14012_vm4, 65537, %v18645_v5  ;;  %v19877_v42 = vrot.slane %v19876_v23, %v8769_v27  ;;  %v6890_v28 = vsel %vm14117_vm7, %v408_v9, 0 }
 0x2cf   : > { %vm14155_vm2 = vcmp.ne.s16.totalorder %v19871_v47, 0  ;;  %v6906_v46 = vsel %vm14140_vm6, %v424_v56, 0  ;;  %v5174_v44 = vsel %vm4870_vm9, 1, %v18645_v5  ;;  %v4567_v26 = vunpack.c.l.b16 %v4263_v54  ;;  %v19880_v47 = vld [vmem:[#allocation30_spill] sm:$0xff]  ;;  %v14191_v56 = vpop.permute.xlu1 %5650  ;;  %v14193_v13 = vpop.permute.xlu0 %5653 }
 0x2d0   : > { %vm14174_vm1 = vcmp.ne.s16.totalorder %v19877_v42, 0  ;;  %vm6283_vm15 = vcmp.eq.s32.totalorder %v19880_v47, 1  ;;  %v7601_v48 = vadd.f32 %v7600_v31, %v7599_v20  ;;  %v7602_v41 = vsel %vm341_vm11, %v7210_v60, 0.0  ;;  %5821 = vperm.xlu0 %8401, %v5174_v44   ;;  %v19913_v20 = vld [vmem:[#allocation55_spill] sm:$0xff] }
 0x2d1   : > { %v4264_v42 = vsel %vm14035_vm0, 65537, %v18645_v5  ;;  %v6907_v39 = vsel %vm14164_vm3, %v425_v4, 0  ;;  %vm6300_vm4 = vcmp.eq.s32.totalorder %v13397_v19, 1  ;;  %vm4871_vm7 = vcmp.ne.s32.totalorder %v4567_v26, 0  ;;  %v426_v26 = vld [vmem:[%s11729_s17 + $0x144] sm:$0xf] }
 0x2d2   : > { %v4568_v9 = vunpack.c.l.b16 %v4264_v42  ;;  %v19881_v60 = vrot.slane %v19876_v23, %v8772_v25  ;;  %v7211_v62 = vunpack.c.l.bf16 %v6906_v46  ;;  %v5175_v31 = vsel %vm4871_vm7, 1, %v18645_v5  ;;  %vm14214_vm10 = vmpackc.low %vm6300_vm4, %vm6300_vm4 }
 0x2d3   : > { %v4265_v4 = vsel %vm14064_vm12, 65537, %v18645_v5  ;;  %v4266_v50 = vsel %vm14071_vm5, 65537, %v18645_v5  ;;  %v7564_v54 = vadd.f32 %v7563_v49, %v7562_v45  ;;  %v7603_v44 = vadd.f32 %v7602_v41, %v7601_v48  ;;  %5824 = vperm.xlu1 %8402, %v5175_v31   ;;  %v19886_v49 = vld [vmem:[#allocation80_spill] sm:$0xff]  ;;  %vm14237_vm5 = vmpackc.low %vm6283_vm15, %vm6283_vm15 }
 0x2d4   : > { %vm14198_vm8 = vcmp.ne.s16.totalorder %v19881_v60, 0  ;;  %vm6301_vm0 = vcmp.eq.s32.totalorder %v13448_v36, 1  ;;  %vm4872_vm6 = vcmp.ne.s32.totalorder %v4568_v9, 0  ;;  %v7212_v23 = vunpack.c.l.bf16 %v6907_v39  ;;  %v409_v60 = vld [vmem:[%s11729_s17 + $0x100] sm:$0xf] }
 0x2d5   : > { %v5176_v34 = vsel %vm4872_vm6, 1, %v18645_v5  ;;  %v4569_v53 = vunpack.c.l.b16 %v4265_v4  ;;  %v4570_v45 = vunpack.c.l.b16 %v4266_v50  ;;  %v19887_v41 = vrot.slane %v19886_v49, %v8769_v27  ;;  %v14241_v4 = vpop.permute.xlu1 %5656  ;;  %v14243_v50 = vpop.permute.xlu0 %5659  ;;  %vm14251_vm9 = vmpackc.low %vm6301_vm0, %vm6301_vm0 }
 0x2d6   : > { %v14228_v19 = vsel %vm341_vm11, %v13984_v52, 0.0  ;;  %v14230_v42 = vunpack.c.l.bf16 %v6863_v17  ;;  %v7565_v39 = vsel %vm341_vm11, %v7194_v12, 0.0  ;;  %v7195_v9 = vunpack.c.l.bf16 %v6890_v28  ;;  %5827 = vperm.xlu0 %8401, %v5176_v34   ;;  %v19892_v52 = vld [vmem:[#allocation29_spill] sm:$0xff]  ;;  %v427_v12 = vld [vmem:[%s11729_s17 + $0x148] sm:$0xf]  ;;  %vm14274_vm0 = vmpackc.low %vm6256_vm14, %vm6256_vm14 }
 0x2d7   : > { %vm14222_vm12 = vcmp.ne.s16.totalorder %v19887_v41, 0  ;;  %vm6284_vm3 = vcmp.eq.s32.totalorder %v19892_v52, 1  ;;  %v7604_v17 = vsel %vm341_vm11, %v7211_v62, 0.0  ;;  %vm4873_vm15 = vcmp.ne.s32.totalorder %v4569_v53, 0 }
 0x2d8   : > { %vm4874_vm4 = vcmp.ne.s32.totalorder %v4570_v45, 0  ;;  %v19895_v47 = vrot.slane %v19886_v49, %v8772_v25  ;;  %v7605_v41 = vadd.f32 %v7604_v17, %v7603_v44  ;;  %v6908_v62 = vsel %vm14214_vm10, %v426_v26, 0  ;;  %v410_v49 = vld [vmem:[%s11729_s17 + $0x104] sm:$0xf] }
 0x2d9   : > { %v5177_v36 = vsel %vm4873_vm15, 1, %v18645_v5  ;;  %v4267_v58 = vsel %vm14128_vm13, 65537, %v18645_v5  ;;  %v7566_v45 = vadd.f32 %v7565_v39, %v7564_v54  ;;  %v7606_v44 = vsel %vm341_vm11, %v7212_v23, 0.0  ;;  %vm14286_vm13 = vmpackc.low %vm6284_vm3, %vm6284_vm3  ;;  %v14296_v23 = vpop.permute.xlu1 %5662  ;;  %v14298_v39 = vpop.permute.xlu0 %5665  ;;  %v19902_v17 = vld [vmem:[#allocation79_spill] sm:$0xff] }
 0x2da   : > { %vm14258_vm7 = vcmp.ne.s16.totalorder %v19895_v47, 0  ;;  %5830 = vperm.xlu1 %8402, %v5177_v36   ;;  %v5178_v26 = vsel %vm4874_vm4, 1, %v18645_v5  ;;  %v4571_v46 = vunpack.c.l.b16 %v4267_v58  ;;  %v6891_v3 = vsel %vm14237_vm5, %v409_v60, 0 }
 0x2db   : > { %v6909_v54 = vsel %vm14251_vm9, %v427_v12, 0  ;;  %vm6302_vm14 = vcmp.eq.s32.totalorder %v13450_v38, 1  ;;  %5833 = vperm.xlu0 %8401, %v5178_v26   ;;  %v4268_v58 = vsel %vm14155_vm2, 65537, %v18645_v5  ;;  %v7213_v60 = vunpack.c.l.bf16 %v6908_v62  ;;  %v428_v26 = vld [vmem:[%s11729_s17 + $0x14c] sm:$0xf] }
 0x2dc   : > { %vm4875_vm6 = vcmp.ne.s32.totalorder %v4571_v46, 0  ;;  %v4572_v31 = vunpack.c.l.b16 %v4268_v58  ;;  %v4269_v52 = vsel %vm14174_vm1, 65537, %v18645_v5  ;;  %v19903_v12 = vrot.slane %v19902_v17, %v8769_v27  ;;  %vm14321_vm1 = vmpackc.low %vm6302_vm14, %vm6302_vm14 }
 0x2dd   : > { %v6864_v24 = vsel %vm14274_vm0, %v14269_v35, 0  ;;  %v7607_v47 = vadd.f32 %v7606_v44, %v7605_v41  ;;  %vm6303_vm2 = vcmp.eq.s32.totalorder %v13485_v51, 1  ;;  %v5179_v62 = vsel %vm4875_vm6, 1, %v18645_v5  ;;  %v14339_v58 = vpop.permute.xlu0 %5671 }
 0x2de   : > { %vm14306_vm10 = vcmp.ne.s16.totalorder %v19903_v12, 0  ;;  %v6892_v22 = vsel %vm14286_vm13, %v410_v49, 0  ;;  %v7214_v36 = vunpack.c.l.bf16 %v6909_v54  ;;  %5836 = vperm.xlu1 %8402, %v5179_v62   ;;  %vm4876_vm5 = vcmp.ne.s32.totalorder %v4572_v31, 0  ;;  %v14337_v54 = vpop.permute.xlu1 %5668  ;;  %vm14346_vm9 = vmpackc.low %vm6303_vm2, %vm6303_vm2 }
 0x2df   : > { %v4573_v35 = vunpack.c.l.b16 %v4269_v52  ;;  %v19908_v41 = vrot.slane %v19902_v17, %v8772_v25  ;;  %v7567_v44 = vsel %vm341_vm11, %v7195_v9, 0.0  ;;  %v7196_v49 = vunpack.c.l.bf16 %v6891_v3  ;;  %v429_v17 = vld [vmem:[%s11729_s17 + $0x150] sm:$0xf]  ;;  %v19921_v9 = vld [vmem:[#allocation54_spill] sm:$0xff] }
 0x2e0   : > { %v5180_v38 = vsel %vm4876_vm5, 1, %v18645_v5  ;;  %v4270_v8 = vsel %vm14198_vm8, 65537, %v18645_v5  ;;  %v7568_v31 = vadd.f32 %v7567_v44, %v7566_v45  ;;  %v7608_v52 = vsel %vm341_vm11, %v7213_v60, 0.0 }
 0x2e1   : > { %vm14328_vm3 = vcmp.ne.s16.totalorder %v19908_v41, 0  ;;  %5839 = vperm.xlu0 %8401, %v5180_v38   ;;  %vm4877_vm15 = vcmp.ne.s32.totalorder %v4573_v35, 0  ;;  %v4574_v3 = vunpack.c.l.b16 %v4270_v8  ;;  %v19914_v12 = vrot.slane %v19913_v20, %v8769_v27  ;;  %v14379_v48 = vpop.permute.xlu0 %5677 }
 0x2e2   : > { %v7197_v45 = vunpack.c.l.bf16 %v6892_v22  ;;  %v7609_v60 = vadd.f32 %v7608_v52, %v7607_v47  ;;  %v6910_v51 = vsel %vm14321_vm1, %v428_v26, 0  ;;  %v5181_v41 = vsel %vm4877_vm15, 1, %v18645_v5  ;;  %v19920_v26 = vld [vmem:[#allocation32_spill] sm:$0xff]  ;;  %v14377_v38 = vpop.permute.xlu1 %5674 }
 0x2e3   : > { %vm14353_vm8 = vcmp.ne.s16.totalorder %v19914_v12, 0  ;;  %vm6285_vm4 = vcmp.eq.s32.totalorder %v13057_v29, 1  ;;  %v7610_v44 = vsel %vm341_vm11, %v7214_v36, 0.0  ;;  %5842 = vperm.xlu1 %8402, %v5181_v41   ;;  %vm4878_vm0 = vcmp.ne.s32.totalorder %v4574_v3, 0 }
 0x2e4   : > { %v4271_v35 = vsel %vm14222_vm12, 65537, %v18645_v5  ;;  %v19917_v22 = vrot.slane %v19913_v20, %v8772_v25  ;;  %vm6286_vm14 = vcmp.eq.s32.totalorder %v19920_v26, 1  ;;  %v6911_v46 = vsel %vm14346_vm9, %v429_v17, 0  ;;  %vm14400_vm2 = vmpackc.low %vm6285_vm4, %vm6285_vm4 }
 0x2e5   : > { %vm6304_vm6 = vcmp.eq.s32.totalorder %v13487_v11, 1  ;;  %v5182_v36 = vsel %vm4878_vm0, 1, %v18645_v5  ;;  %v7569_v8 = vsel %vm341_vm11, %v7196_v49, 0.0  ;;  %v7215_v52 = vunpack.c.l.bf16 %v6910_v51  ;;  %v411_v49 = vld [vmem:[%s11729_s17 + $0x108] sm:$0xf]  ;;  %vm14424_vm9 = vmpackc.low %vm6286_vm14, %vm6286_vm14  ;;  %v19937_v51 = vld [vmem:[#allocation81_spill] sm:$0xff] }
 0x2e6   : > { %vm14368_vm13 = vcmp.ne.s16.totalorder %v19917_v22, 0  ;;  %5845 = vperm.xlu0 %8401, %v5182_v36   ;;  %v4575_v3 = vunpack.c.l.b16 %v4271_v35  ;;  %v4272_v20 = vsel %vm14258_vm7, 65537, %v18645_v5  ;;  %v19922_v17 = vrot.slane %v19921_v9, %v8769_v27  ;;  %vm14415_vm1 = vmpackc.low %vm6304_vm6, %vm6304_vm6  ;;  %v14429_v11 = vpop.permute.xlu1 %5680 }
 0x2e7   : > { %v14394_v41 = vadd.f32 %v14228_v19, %v14110_v10  ;;  %v7611_v34 = vadd.f32 %v7610_v44, %v7609_v60  ;;  %vm6305_vm7 = vcmp.eq.s32.totalorder %v13533_v18, 1  ;;  %v4576_v35 = vunpack.c.l.b16 %v4272_v20  ;;  %v430_v19 = vld [vmem:[%s11729_s17 + $0x154] sm:$0xf]  ;;  %v412_v20 = vld [vmem:[%s11729_s17 + $0x10c] sm:$0xf] }
 0x2e8   : > { %vm14388_vm12 = vcmp.ne.s16.totalorder %v19922_v17, 0  ;;  %v14407_v22 = vsel %vm341_vm11, %v14230_v42, 0.0  ;;  %v14409_v36 = vunpack.c.l.bf16 %v6864_v24  ;;  %v7216_v10 = vunpack.c.l.bf16 %v6911_v46  ;;  %v14431_v46 = vpop.permute.xlu0 %5683  ;;  %vm14447_vm0 = vmpackc.low %vm6305_vm7, %vm6305_vm7  ;;  %v413_v42 = vld [vmem:[%s11729_s17 + $0x110] sm:$0xf] }
 0x2e9   : > { %vm4879_vm5 = vcmp.ne.s32.totalorder %v4575_v3, 0  ;;  %v7570_v60 = vadd.f32 %v7569_v8, %v7568_v31  ;;  %v7571_v44 = vsel %vm341_vm11, %v7197_v45, 0.0  ;;  %vm4880_vm15 = vcmp.ne.s32.totalorder %v4576_v35, 0  ;;  %v431_v3 = vld [vmem:[%s11729_s17 + $0x158] sm:$0xf] }
 0x2ea   : > { %19927 = vst [vmem:[#allocation42_spill] sm:$0xff] %v14409_v36  ;;  %v5183_v24 = vsel %vm4879_vm5, 1, %v18645_v5  ;;  %v19932_v31 = vrot.slane %v19921_v9, %v8772_v25  ;;  %v6893_v26 = vsel %vm14400_vm2, %v411_v49, 0  ;;  %v7612_v8 = vsel %vm341_vm11, %v7215_v52, 0.0 }
 0x2eb   : > { %5848 = vperm.xlu1 %8402, %v5183_v24   ;;  %v5184_v9 = vsel %vm4880_vm15, 1, %v18645_v5  ;;  %v4273_v35 = vsel %vm14306_vm10, 65537, %v18645_v5  ;;  %vm6287_vm14 = vcmp.eq.s32.totalorder %v13104_v33, 1  ;;  %v7613_v49 = vadd.f32 %v7612_v8, %v7611_v34  ;;  %v19957_v33 = vld [vmem:[#allocation83_spill] sm:$0xff] }
 0x2ec   : > { %vm14436_vm4 = vcmp.ne.s16.totalorder %v19932_v31, 0  ;;  %v6912_v52 = vsel %vm14415_vm1, %v430_v19, 0  ;;  %5851 = vperm.xlu0 %8401, %v5184_v9   ;;  %v4577_v18 = vunpack.c.l.b16 %v4273_v35  ;;  %v19938_v31 = vrot.slane %v19937_v51, %v8769_v27  ;;  %v14474_v9 = vpop.permute.xlu1 %5686  ;;  %v14476_v35 = vpop.permute.xlu0 %5689 }
 0x2ed   : > { %v6894_v28 = vsel %vm14424_vm9, %v412_v20, 0  ;;  %v7614_v36 = vsel %vm341_vm11, %v7216_v10, 0.0  ;;  %vm6306_vm10 = vcmp.eq.s32.totalorder %v13535_v40, 1  ;;  %v4274_v34 = vsel %vm14328_vm3, 65537, %v18645_v5  ;;  %vm14489_vm3 = vmpackc.low %vm6287_vm14, %vm6287_vm14 }
 0x2ee   : > { %vm14461_vm6 = vcmp.ne.s16.totalorder %v19938_v31, 0  ;;  %v7198_v19 = vunpack.c.l.bf16 %v6893_v26  ;;  %v6913_v29 = vsel %vm14447_vm0, %v431_v3, 0  ;;  %vm4881_vm2 = vcmp.ne.s32.totalorder %v4577_v18, 0  ;;  %vm14501_vm1 = vmpackc.low %vm6306_vm10, %vm6306_vm10 }
 0x2ef   : > { %v4578_v8 = vunpack.c.l.b16 %v4274_v34  ;;  %v19941_v10 = vrot.slane %v19937_v51, %v8772_v25  ;;  %v7572_v53 = vadd.f32 %v7571_v44, %v7570_v60  ;;  %v7217_v3 = vunpack.c.l.bf16 %v6912_v52  ;;  %v432_v34 = vld [vmem:[%s11729_s17 + $0x15c] sm:$0xf]  ;;  %v19983_v52 = vld [vmem:[#allocation85_spill] sm:$0xff] }
 0x2f0   : > { %v5185_v17 = vsel %vm4881_vm2, 1, %v18645_v5  ;;  %v4275_v18 = vsel %vm14353_vm8, 65537, %v18645_v5  ;;  %v7199_v51 = vunpack.c.l.bf16 %v6894_v28  ;;  %v7615_v31 = vadd.f32 %v7614_v36, %v7613_v49  ;;  %v19948_v49 = vld [vmem:[#allocation53_spill] sm:$0xff] }
 0x2f1   : > { %vm14481_vm7 = vcmp.ne.s16.totalorder %v19941_v10, 0  ;;  %vm6307_vm5 = vcmp.eq.s32.totalorder %v13573_v0, 1  ;;  %5854 = vperm.xlu1 %8402, %v5185_v17   ;;  %vm4882_vm9 = vcmp.ne.s32.totalorder %v4578_v8, 0  ;;  %v7218_v60 = vunpack.c.l.bf16 %v6913_v29  ;;  %v14528_v17 = vpop.permute.xlu1 %5692 }
 0x2f2   : > { %v5186_v44 = vsel %vm4882_vm9, 1, %v18645_v5  ;;  %v4579_v62 = vunpack.c.l.b16 %v4275_v18  ;;  %v4276_v36 = vsel %vm14368_vm13, 65537, %v18645_v5  ;;  %v19949_v40 = vrot.slane %v19948_v49, %v8769_v27  ;;  %v14530_v18 = vpop.permute.xlu0 %5695  ;;  %vm14539_vm0 = vmpackc.low %vm6307_vm5, %vm6307_vm5 }
 0x2f3   : > { %v19952_v28 = vrot.slane %v19948_v49, %v8772_v25  ;;  %v7573_v29 = vsel %vm341_vm11, %v7198_v19, 0.0  ;;  %v6895_v47 = vsel %vm14489_vm3, %v413_v42, 0  ;;  %vm6288_vm13 = vcmp.eq.s32.totalorder %v13106_v7, 1  ;;  %5857 = vperm.xlu0 %8401, %v5186_v44   ;;  %v439_v7 = vld [vmem:[%s11729_s17 + $0x178] sm:$0xf] }
 0x2f4   : > { %vm14513_vm8 = vcmp.ne.s16.totalorder %v19949_v40, 0  ;;  %v4580_v10 = vunpack.c.l.b16 %v4276_v36  ;;  %v7616_v40 = vsel %vm341_vm11, %v7217_v3, 0.0  ;;  %v6914_v49 = vsel %vm14501_vm1, %v432_v34, 0  ;;  %vm14582_vm5 = vmpackc.low %vm6288_vm13, %vm6288_vm13 }
 0x2f5   : > { %vm14520_vm15 = vcmp.ne.s16.totalorder %v19952_v28, 0  ;;  %v433_v28 = vld [vmem:[%s11729_s17 + $0x160] sm:$0xf]  ;;  %vm4883_vm14 = vcmp.ne.s32.totalorder %v4579_v62, 0  ;;  %v4277_v42 = vsel %vm14388_vm12, 65537, %v18645_v5  ;;  %v7617_v26 = vadd.f32 %v7616_v40, %v7615_v31 }
 0x2f6   : > { %v5187_v44 = vsel %vm4883_vm14, 1, %v18645_v5  ;;  %vm4884_vm10 = vcmp.ne.s32.totalorder %v4580_v10, 0  ;;  %v4581_v3 = vunpack.c.l.b16 %v4277_v42  ;;  %v19958_v34 = vrot.slane %v19957_v33, %v8769_v27 }
 0x2f7   : > { %v14556_v62 = vadd.f32 %v14407_v22, %v14394_v41  ;;  %v7574_v36 = vadd.f32 %v7573_v29, %v7572_v53  ;;  %v7618_v12 = vsel %vm341_vm11, %v7218_v60, 0.0  ;;  %5860 = vperm.xlu1 %8402, %v5187_v44   ;;  %v5188_v31 = vsel %vm4884_vm10, 1, %v18645_v5  ;;  %v14573_v22 = vpop.permute.xlu1 %5698  ;;  %v14575_v53 = vpop.permute.xlu0 %5701  ;;  %v414_v44 = vld [vmem:[%s11729_s17 + $0x114] sm:$0xf] }
 0x2f8   : > { %vm14550_vm2 = vcmp.ne.s16.totalorder %v19958_v34, 0  ;;  %v19962_v10 = vrot.slane %v19957_v33, %v8772_v25  ;;  %v6915_v42 = vsel %vm14539_vm0, %v433_v28, 0  ;;  %vm6308_vm3 = vcmp.eq.s32.totalorder %v13575_v59, 1  ;;  %5863 = vperm.xlu0 %8401, %v5188_v31  }
 0x2f9   : > { %19961 = vst [vmem:[#allocation45_spill] sm:$0xff] %v14556_v62  ;;  %vm4885_vm1 = vcmp.ne.s32.totalorder %v4581_v3, 0  ;;  %v4278_v41 = vsel %vm14436_vm4, 65537, %v18645_v5  ;;  %v7575_v60 = vsel %vm341_vm11, %v7199_v51, 0.0  ;;  %v7200_v29 = vunpack.c.l.bf16 %v6895_v47  ;;  %v19967_v47 = vld [vmem:[#allocation82_spill] sm:$0xff]  ;;  %vm14603_vm0 = vmpackc.low %vm6308_vm3, %vm6308_vm3  ;;  %v19973_v62 = vld [vmem:[#allocation31_spill] sm:$0xff] }
 0x2fa   : > { %vm14563_vm12 = vcmp.ne.s16.totalorder %v19962_v10, 0  ;;  %v7219_v19 = vunpack.c.l.bf16 %v6914_v49  ;;  %v4582_v3 = vunpack.c.l.b16 %v4278_v41  ;;  %v7619_v45 = vadd.f32 %v7618_v12, %v7617_v26  ;;  %v434_v26 = vld [vmem:[%s11729_s17 + $0x164] sm:$0xf]  ;;  %v19981_v12 = vld [vmem:[#allocation49_spill] sm:$0xff] }
 0x2fb   : > { %vm6309_vm4 = vcmp.eq.s32.totalorder %v13630_v6, 1  ;;  %v5189_v33 = vsel %vm4885_vm1, 1, %v18645_v5  ;;  %v4279_v51 = vsel %vm14461_vm6, 65537, %v18645_v5  ;;  %v19968_v34 = vrot.slane %v19967_v47, %v8769_v27  ;;  %v14613_v59 = vpop.permute.xlu1 %5704 }
 0x2fc   : > { %vm6289_vm13 = vcmp.eq.s32.totalorder %v13157_v57, 1  ;;  %v7220_v49 = vunpack.c.l.bf16 %v6915_v42  ;;  %5866 = vperm.xlu1 %8402, %v5189_v33   ;;  %vm4886_vm6 = vcmp.ne.s32.totalorder %v4582_v3, 0  ;;  %v4583_v24 = vunpack.c.l.b16 %v4279_v51  ;;  %v435_v33 = vld [vmem:[%s11729_s17 + $0x168] sm:$0xf]  ;;  %vm14623_vm10 = vmpackc.low %vm6309_vm4, %vm6309_vm4 }
 0x2fd   : > { %vm14594_vm9 = vcmp.ne.s16.totalorder %v19968_v34, 0  ;;  %v7576_v31 = vadd.f32 %v7575_v60, %v7574_v36  ;;  %v6896_v10 = vsel %vm14582_vm5, %v414_v44, 0  ;;  %v5190_v41 = vsel %vm4886_vm6, 1, %v18645_v5  ;;  %v14615_v34 = vpop.permute.xlu0 %5707  ;;  %v415_v44 = vld [vmem:[%s11729_s17 + $0x118] sm:$0xf] }
 0x2fe   : > { %v4280_v42 = vsel %vm14481_vm7, 65537, %v18645_v5  ;;  %vm6290_vm14 = vcmp.eq.s32.totalorder %v19973_v62, 1  ;;  %v7620_v3 = vsel %vm341_vm11, %v7219_v19, 0.0  ;;  %5869 = vperm.xlu0 %8401, %v5190_v41   ;;  %vm4887_vm3 = vcmp.ne.s32.totalorder %v4583_v24, 0  ;;  %vm14632_vm7 = vmpackc.low %vm6289_vm13, %vm6289_vm13  ;;  %v438_v62 = vld [vmem:[%s11729_s17 + $0x174] sm:$0xf] }
 0x2ff   : > { %v4584_v20 = vunpack.c.l.b16 %v4280_v42  ;;  %v7577_v60 = vsel %vm341_vm11, %v7200_v29, 0.0  ;;  %v7621_v19 = vadd.f32 %v7620_v3, %v7619_v45  ;;  %v6916_v6 = vsel %vm14603_vm0, %v434_v26, 0  ;;  %vm14681_vm13 = vmpackc.low %vm6290_vm14, %vm6290_vm14 }
 0x300   : > { %v5191_v51 = vsel %vm4887_vm3, 1, %v18645_v5  ;;  %v19978_v24 = vrot.slane %v19967_v47, %v8772_v25  ;;  %v7622_v57 = vsel %vm341_vm11, %v7220_v49, 0.0  ;;  %v4281_v29 = vsel %vm14513_vm8, 65537, %v18645_v5  ;;  %v14657_v49 = vpop.permute.xlu1 %5710 }
 0x301   : > { %5872 = vperm.xlu1 %8402, %v5191_v51   ;;  %vm4888_vm5 = vcmp.ne.s32.totalorder %v4584_v20, 0  ;;  %v4282_v45 = vsel %vm14520_vm15, 65537, %v18645_v5  ;;  %v7201_v26 = vunpack.c.l.bf16 %v6896_v10  ;;  %v6917_v47 = vsel %vm14623_vm10, %v435_v33, 0  ;;  %v14659_v3 = vpop.permute.xlu0 %5713 }
 0x302   : > { %vm14642_vm1 = vcmp.ne.s16.totalorder %v19978_v24, 0  ;;  %vm6310_vm4 = vcmp.eq.s32.totalorder %v19981_v12, 1  ;;  %v5192_v42 = vsel %vm4888_vm5, 1, %v18645_v5  ;;  %19982 = vst [vmem:[#allocation75_spill] sm:$0xff] %v14659_v3  ;;  %v19984_v20 = vrot.slane %v19983_v52, %v8769_v27  ;;  %v416_v3 = vld [vmem:[%s11729_s17 + $0x11c] sm:$0xf] }
 0x303   : > { %v19987_v10 = vrot.slane %v19983_v52, %v8772_v25  ;;  %v6897_v36 = vsel %vm14632_vm7, %v415_v44, 0  ;;  %v7221_v51 = vunpack.c.l.bf16 %v6916_v6  ;;  %5875 = vperm.xlu0 %8401, %v5192_v42   ;;  %v4585_v24 = vunpack.c.l.b16 %v4281_v29  ;;  %v436_v6 = vld [vmem:[%s11729_s17 + $0x16c] sm:$0xf]  ;;  %vm14693_vm6 = vmpackc.low %vm6310_vm4, %vm6310_vm4  ;;  %v437_v12 = vld [vmem:[%s11729_s17 + $0x170] sm:$0xf] }
 0x304   : > { %vm14664_vm8 = vcmp.ne.s16.totalorder %v19984_v20, 0  ;;  %v4586_v61 = vunpack.c.l.b16 %v4282_v45  ;;  %v7578_v43 = vadd.f32 %v7577_v60, %v7576_v31  ;;  %v7623_v52 = vadd.f32 %v7622_v57, %v7621_v19  ;;  %v14703_v29 = vpop.permute.xlu1 %5716 }
 0x305   : > { %vm14671_vm15 = vcmp.ne.s16.totalorder %v19987_v10, 0  ;;  %vm6311_vm0 = vcmp.eq.s32.totalorder %v13679_v1, 1  ;;  %v4283_v44 = vsel %vm14550_vm2, 65537, %v18645_v5  ;;  %v7222_v28 = vunpack.c.l.bf16 %v6917_v47  ;;  %v14705_v45 = vpop.permute.xlu0 %5719  ;;  %v19997_v10 = vld [vmem:[#allocation84_spill] sm:$0xff] }
 0x306   : > { %vm4889_vm14 = vcmp.ne.s32.totalorder %v4585_v24, 0  ;;  %vm4890_vm10 = vcmp.ne.s32.totalorder %v4586_v61, 0  ;;  %v4284_v31 = vsel %vm14563_vm12, 65537, %v18645_v5  ;;  %v7579_v60 = vsel %vm341_vm11, %v7201_v26, 0.0  ;;  %vm14714_vm2 = vmpackc.low %vm6311_vm0, %vm6311_vm0  ;;  %v19996_v26 = vld [vmem:[#allocation65_spill] sm:$0xff] }
 0x307   : > { %v7202_v0 = vunpack.c.l.bf16 %v6897_v36  ;;  %v5193_v19 = vsel %vm4889_vm14, 1, %v18645_v5  ;;  %v5194_v57 = vsel %vm4890_vm10, 1, %v18645_v5  ;;  %v6898_v47 = vsel %vm14681_vm13, %v416_v3, 0 }
 0x308   : > { %v7624_v61 = vsel %vm341_vm11, %v7221_v51, 0.0  ;;  %vm6312_vm12 = vcmp.eq.s32.totalorder %v19996_v26, 1  ;;  %5878 = vperm.xlu1 %8402, %v5193_v19   ;;  %5881 = vperm.xlu0 %8401, %v5194_v57   ;;  %v4587_v42 = vunpack.c.l.b16 %v4283_v44  ;;  %v19998_v36 = vrot.slane %v19997_v10, %v8769_v27 }
 0x309   : > { %v7625_v51 = vadd.f32 %v7624_v61, %v7623_v52  ;;  %v6918_v1 = vsel %vm14693_vm6, %v436_v6, 0  ;;  %v4588_v24 = vunpack.c.l.b16 %v4284_v31  ;;  %v4285_v20 = vsel %vm14594_vm9, 65537, %v18645_v5  ;;  %vm14746_vm9 = vmpackc.low %vm6312_vm12, %vm6312_vm12  ;;  %v14754_v61 = vpop.permute.xlu0 %5725 }
 0x30a   : > { %vm14722_vm3 = vcmp.ne.s16.totalorder %v19998_v36, 0  ;;  %v20001_v19 = vrot.slane %v19997_v10, %v8772_v25  ;;  %v7626_v57 = vsel %vm341_vm11, %v7222_v28, 0.0  ;;  %vm6333_vm5 = vcmp.eq.s32.totalorder %v14191_v56, 1  ;;  %v14752_v28 = vpop.permute.xlu1 %5722 }
 0x30b   : > { %vm4891_vm4 = vcmp.ne.s32.totalorder %v4587_v42, 0  ;;  %v4589_v52 = vunpack.c.l.b16 %v4285_v20  ;;  %v6919_v6 = vsel %vm14714_vm2, %v437_v12, 0  ;;  %vm6334_vm13 = vcmp.eq.s32.totalorder %v14193_v13, 1  ;;  %v20006_v42 = vld [vmem:[#allocation56_spill] sm:$0xff]  ;;  %vm14775_vm2 = vmpackc.low %vm6333_vm5, %vm6333_vm5 }
 0x30c   : > { %vm14734_vm7 = vcmp.ne.s16.totalorder %v20001_v19, 0  ;;  %v5195_v31 = vsel %vm4891_vm4, 1, %v18645_v5  ;;  %vm4892_vm0 = vcmp.ne.s32.totalorder %v4588_v24, 0  ;;  %v20007_v12 = vrot.slane %v20006_v42, %v8769_v27  ;;  %vm14789_vm12 = vmpackc.low %vm6334_vm13, %vm6334_vm13 }
 0x30d   : > { %v7580_v26 = vadd.f32 %v7579_v60, %v7578_v43  ;;  %v7223_v10 = vunpack.c.l.bf16 %v6918_v1  ;;  %5884 = vperm.xlu1 %8402, %v5195_v31   ;;  %v5196_v36 = vsel %vm4892_vm0, 1, %v18645_v5  ;;  %vm14764_vm14 = vcmp.ne.s32.totalorder %v4589_v52, 0  ;;  %v460_v52 = vld [vmem:[%s11729_s17 + $0x1cc] sm:$0xf] }
 0x30e   : > { %vm14759_vm6 = vcmp.ne.s16.totalorder %v20007_v12, 0  ;;  %v7581_v20 = vsel %vm341_vm11, %v7202_v0, 0.0  ;;  %v14769_v19 = vunpack.c.l.bf16 %v6898_v47  ;;  %vm6313_vm10 = vcmp.eq.s32.totalorder %v13719_v37, 1  ;;  %5887 = vperm.xlu0 %8401, %v5196_v36   ;;  %v459_v47 = vld [vmem:[%s11729_s17 + $0x1c8] sm:$0xf] }
 0x30f   : > { %v4286_v43 = vsel %vm14642_vm1, 65537, %v18645_v5  ;;  %v7627_v60 = vadd.f32 %v7626_v57, %v7625_v51  ;;  %v7224_v1 = vunpack.c.l.bf16 %v6919_v6  ;;  %v6920_v0 = vsel %vm14746_vm9, %v438_v62, 0  ;;  %v14810_v6 = vpop.permute.xlu1 %5728  ;;  %vm14817_vm4 = vmpackc.low %vm6313_vm10, %vm6313_vm10 }
 0x310   : > { %v4590_v31 = vunpack.c.l.b16 %v4286_v43  ;;  %v20016_v41 = vrot.slane %v20006_v42, %v8772_v25  ;;  %vm6335_vm1 = vcmp.eq.s32.totalorder %v14241_v4, 1  ;;  %v5197_v51 = vsel %vm14764_vm14, 1, %v18645_v5  ;;  %20019 = vst [vmem:[#allocation19_spill] sm:$0xff] %v14810_v6  ;;  %v20022_v43 = vld [vmem:[#allocation86_spill] sm:$0xff]  ;;  %v461_v6 = vld [vmem:[%s11729_s17 + $0x1d0] sm:$0xf] }
 0x311   : > { %v4287_v13 = vsel %vm14664_vm8, 65537, %v18645_v5  ;;  %v4288_v57 = vsel %vm14671_vm15, 65537, %v18645_v5  ;;  %v7628_v62 = vsel %vm341_vm11, %v7223_v10, 0.0  ;;  %5890 = vperm.xlu1 %8402, %v5197_v51   ;;  %v20023_v33 = vrot.slane %v20022_v43, %v8769_v27  ;;  %v14834_v51 = vpop.permute.xlu0 %5731  ;;  %vm14840_vm13 = vmpackc.low %vm6335_vm1, %vm6335_vm1 }
 0x312   : > { %vm14796_vm5 = vcmp.ne.s16.totalorder %v20016_v41, 0  ;;  %vm4894_vm9 = vcmp.ne.s32.totalorder %v4590_v31, 0  ;;  %v4591_v8 = vunpack.c.l.b16 %v4287_v13  ;;  %v4592_v24 = vunpack.c.l.b16 %v4288_v57 }
 0x313   : > { %vm14824_vm8 = vcmp.ne.s16.totalorder %v20023_v33, 0  ;;  %vm6314_vm15 = vcmp.eq.s32.totalorder %v13721_v63, 1  ;;  %v6941_v37 = vsel %vm14775_vm2, %v459_v47, 0  ;;  %v6942_v10 = vsel %vm14789_vm12, %v460_v52, 0  ;;  %v14857_v56 = vpop.permute.xlu1 %5734 }
 0x314   : > { %v5198_v31 = vsel %vm4894_vm9, 1, %v18645_v5  ;;  %v7629_v13 = vadd.f32 %v7628_v62, %v7627_v60  ;;  %v7225_v57 = vunpack.c.l.bf16 %v6920_v0  ;;  %vm4895_vm0 = vcmp.ne.s32.totalorder %v4591_v8, 0  ;;  %v440_v62 = vld [vmem:[%s11729_s17 + $0x17c] sm:$0xf]  ;;  %vm14863_vm2 = vmpackc.low %vm6314_vm15, %vm6314_vm15 }
 0x315   : > { %5893 = vperm.xlu0 %8401, %v5198_v31   ;;  %vm4896_vm14 = vcmp.ne.s32.totalorder %v4592_v24, 0  ;;  %v20028_v12 = vrot.slane %v20022_v43, %v8772_v25  ;;  %v14851_v60 = vadd.f32 %v7581_v20, %v7580_v26  ;;  %v7630_v0 = vsel %vm341_vm11, %v7224_v1, 0.0  ;;  %v20033_v43 = vld [vmem:[#allocation88_spill] sm:$0xff] }
 0x316   : > { %v6921_v4 = vsel %vm14817_vm4, %v439_v7, 0  ;;  %v5199_v52 = vsel %vm4895_vm0, 1, %v18645_v5  ;;  %v7246_v24 = vunpack.c.l.bf16 %v6941_v37  ;;  %v7247_v26 = vunpack.c.l.bf16 %v6942_v10  ;;  %v20069_v10 = vld [vmem:[#allocation13_spill] sm:$0xff] }
 0x317   : > { %vm14847_vm10 = vcmp.ne.s16.totalorder %v20028_v12, 0  ;;  %vm6336_vm12 = vcmp.eq.s32.totalorder %v14243_v50, 1  ;;  %5896 = vperm.xlu1 %8402, %v5199_v52   ;;  %v4289_v20 = vsel %vm14722_vm3, 65537, %v18645_v5  ;;  %v6943_v1 = vsel %vm14840_vm13, %v461_v6, 0  ;;  %v14885_v12 = vpop.permute.xlu0 %5737  ;;  %v20042_v50 = vld [vmem:[#allocation87_spill] sm:$0xff] }
 0x318   : > { %v5200_v7 = vsel %vm4896_vm14, 1, %v18645_v5  ;;  %v4593_v63 = vunpack.c.l.b16 %v4289_v20  ;;  %v4290_v42 = vsel %vm14734_vm7, 65537, %v18645_v5  ;;  %v20034_v37 = vrot.slane %v20033_v43, %v8769_v27  ;;  %vm14905_vm15 = vmpackc.low %vm6336_vm12, %vm6336_vm12 }
 0x319   : > { %v7631_v3 = vadd.f32 %v7630_v0, %v7629_v13  ;;  %v7632_v31 = vsel %vm341_vm11, %v7225_v57, 0.0  ;;  %v7226_v33 = vunpack.c.l.bf16 %v6921_v4  ;;  %5899 = vperm.xlu0 %8401, %v5200_v7   ;;  %v4594_v6 = vunpack.c.l.b16 %v4290_v42  ;;  %v462_v0 = vld [vmem:[%s11729_s17 + $0x1d4] sm:$0xf] }
 0x31a   : > { %vm14880_vm1 = vcmp.ne.s16.totalorder %v20034_v37, 0  ;;  %v20037_v44 = vrot.slane %v20033_v43, %v8772_v25  ;;  %v6922_v20 = vsel %vm14863_vm2, %v440_v62, 0  ;;  %vm6337_vm7 = vcmp.eq.s32.totalorder %v14296_v23, 1 }
 0x31b   : > { %vm4897_vm4 = vcmp.ne.s32.totalorder %v4593_v63, 0  ;;  %v4291_v13 = vsel %vm14759_vm6, 65537, %v18645_v5  ;;  %vm6315_vm9 = vcmp.eq.s32.totalorder %v13760_v14, 1  ;;  %v7248_v57 = vunpack.c.l.bf16 %v6943_v1  ;;  %v14913_v63 = vpop.permute.xlu1 %5740  ;;  %vm14927_vm0 = vmpackc.low %vm6337_vm7, %vm6337_vm7 }
 0x31c   : > { %vm14890_vm3 = vcmp.ne.s16.totalorder %v20037_v44, 0  ;;  %v5201_v62 = vsel %vm4897_vm4, 1, %v18645_v5  ;;  %vm4898_vm13 = vcmp.ne.s32.totalorder %v4594_v6, 0  ;;  %v7680_v8 = vsel %vm341_vm11, %v7246_v24, 0.0  ;;  %v463_v24 = vld [vmem:[%s11729_s17 + $0x1d8] sm:$0xf]  ;;  %vm14938_vm14 = vmpackc.low %vm6315_vm9, %vm6315_vm9 }
 0x31d   : > { %v7681_v40 = vsel %vm341_vm11, %v7247_v26, 0.0  ;;  %5902 = vperm.xlu1 %8402, %v5201_v62   ;;  %v5202_v7 = vsel %vm4898_vm13, 1, %v18645_v5  ;;  %v4595_v1 = vunpack.c.l.b16 %v4291_v13  ;;  %v20043_v42 = vrot.slane %v20042_v50, %v8769_v27  ;;  %v441_v62 = vld [vmem:[%s11729_s17 + $0x180] sm:$0xf]  ;;  %v442_v26 = vld [vmem:[%s11729_s17 + $0x184] sm:$0xf] }
 0x31e   : > { %v7633_v37 = vadd.f32 %v7632_v31, %v7631_v3  ;;  %v7634_v6 = vsel %vm341_vm11, %v7226_v33, 0.0  ;;  %v7227_v44 = vunpack.c.l.bf16 %v6922_v20  ;;  %5905 = vperm.xlu0 %8401, %v5202_v7   ;;  %v4292_v13 = vsel %vm14796_vm5, 65537, %v18645_v5  ;;  %v20050_v31 = vld [vmem:[#allocation77_spill] sm:$0xff]  ;;  %v466_v20 = vld [vmem:[%s11729_s17 + $0x1e4] sm:$0xf] }
 0x31f   : > { %vm14918_vm6 = vcmp.ne.s16.totalorder %v20043_v42, 0  ;;  %vm6316_vm2 = vcmp.eq.s32.totalorder %v20050_v31, 1  ;;  %v6944_v23 = vsel %vm14905_vm15, %v462_v0, 0  ;;  %vm4899_vm12 = vcmp.ne.s32.totalorder %v4595_v1, 0  ;;  %v14957_v0 = vpop.permute.xlu0 %5743 }
 0x320   : > { %v4596_v33 = vunpack.c.l.b16 %v4292_v13  ;;  %v20051_v36 = vrot.slane %v20042_v50, %v8772_v25  ;;  %v7682_v14 = vadd.f32 %v7681_v40, %v7680_v8  ;;  %v7683_v7 = vsel %vm341_vm11, %v7248_v57, 0.0  ;;  %v14962_v13 = vpop.permute.xlu1 %5746  ;;  %v20055_v8 = vld [vmem:[#allocation23_spill] sm:$0xff]  ;;  %v20105_v40 = vld [vmem:[#allocation28_spill] sm:$0xff] }
 0x321   : > { %v5203_v42 = vsel %vm4899_vm12, 1, %v18645_v5  ;;  %v4293_v4 = vsel %vm14824_vm8, 65537, %v18645_v5  ;;  %v6945_v1 = vsel %vm14927_vm0, %v463_v24, 0  ;;  %vm6338_vm7 = vcmp.eq.s32.totalorder %v14298_v39, 1  ;;  %20054 = vst [vmem:[#allocation48_spill] sm:$0xff] %v14962_v13  ;;  %vm14977_vm8 = vmpackc.low %vm6316_vm2, %vm6316_vm2 }
 0x322   : > { %vm14948_vm5 = vcmp.ne.s16.totalorder %v20051_v36, 0  ;;  %5908 = vperm.xlu1 %8402, %v5203_v42   ;;  %vm4900_vm4 = vcmp.ne.s32.totalorder %v4596_v33, 0  ;;  %v4597_v50 = vunpack.c.l.b16 %v4293_v4  ;;  %v20056_v57 = vrot.slane %v20055_v8, %v8769_v27  ;;  %v464_v13 = vld [vmem:[%s11729_s17 + $0x1dc] sm:$0xf]  ;;  %vm14991_vm0 = vmpackc.low %vm6338_vm7, %vm6338_vm7 }
 0x323   : > { %v6923_v41 = vsel %vm14938_vm14, %v441_v62, 0  ;;  %v7249_v33 = vunpack.c.l.bf16 %v6944_v23  ;;  %v5204_v36 = vsel %vm4900_vm4, 1, %v18645_v5  ;;  %v4294_v42 = vsel %vm14847_vm10, 65537, %v18645_v5  ;;  %v15021_v24 = vpop.permute.xlu0 %5749 }
 0x324   : > { %vm14967_vm9 = vcmp.ne.s16.totalorder %v20056_v57, 0  ;;  %v7684_v4 = vadd.f32 %v7683_v7, %v7682_v14  ;;  %vm6339_vm15 = vcmp.eq.s32.totalorder %v14337_v54, 1  ;;  %5911 = vperm.xlu0 %8401, %v5204_v36   ;;  %vm4901_vm13 = vcmp.ne.s32.totalorder %v4597_v50, 0  ;;  %20068 = vst [vmem:[#allocation76_spill] sm:$0xff] %v15021_v24  ;;  %v15033_v52 = vpop.permute.xlu1 %5752 }
 0x325   : > { %v4598_v62 = vunpack.c.l.b16 %v4294_v42  ;;  %v7635_v3 = vadd.f32 %v7634_v6, %v7633_v37  ;;  %v7636_v31 = vsel %vm341_vm11, %v7227_v44, 0.0  ;;  %v7250_v57 = vunpack.c.l.bf16 %v6945_v1  ;;  %v465_v1 = vld [vmem:[%s11729_s17 + $0x1e0] sm:$0xf]  ;;  %vm15013_vm2 = vmpackc.low %vm6339_vm15, %vm6339_vm15  ;;  %20073 = vst [vmem:[#allocation17_spill] sm:$0xff] %v15033_v52 }
 0x326   : > { %v5205_v47 = vsel %vm4901_vm13, 1, %v18645_v5  ;;  %v20063_v14 = vrot.slane %v20055_v8, %v8772_v25  ;;  %v7228_v37 = vunpack.c.l.bf16 %v6923_v41  ;;  %v6924_v6 = vsel %vm14977_vm8, %v442_v26, 0 }
 0x327   : > { %5914 = vperm.xlu1 %8402, %v5205_v47   ;;  %vm4902_vm14 = vcmp.ne.s32.totalorder %v4598_v62, 0  ;;  %v4295_v39 = vsel %vm14880_vm1, 65537, %v18645_v5  ;;  %v7685_v44 = vsel %vm341_vm11, %v7249_v33, 0.0  ;;  %v4296_v26 = vsel %vm14890_vm3, 65537, %v18645_v5 }
 0x328   : > { %vm14999_vm10 = vcmp.ne.s16.totalorder %v20063_v14, 0  ;;  %v5206_v8 = vsel %vm4902_vm14, 1, %v18645_v5  ;;  %v4599_v41 = vunpack.c.l.b16 %v4295_v39  ;;  %v20070_v33 = vrot.slane %v20069_v10, %v8769_v27 }
 0x329   : > { %vm6317_vm12 = vcmp.eq.s32.totalorder %v13813_v30, 1  ;;  %v7686_v54 = vadd.f32 %v7685_v44, %v7684_v4  ;;  %v6946_v42 = vsel %vm14991_vm0, %v464_v13, 0  ;;  %5917 = vperm.xlu0 %8401, %v5206_v8   ;;  %v4600_v62 = vunpack.c.l.b16 %v4296_v26  ;;  %v443_v44 = vld [vmem:[%s11729_s17 + $0x188] sm:$0xf]  ;;  %v20081_v30 = vld [vmem:[#allocation95_spill] sm:$0xff] }
 0x32a   : > { %vm15026_vm1 = vcmp.ne.s16.totalorder %v20070_v33, 0  ;;  %v7637_v47 = vadd.f32 %v7636_v31, %v7635_v3  ;;  %v7687_v14 = vsel %vm341_vm11, %v7250_v57, 0.0  ;;  %vm6340_vm3 = vcmp.eq.s32.totalorder %v14339_v58, 1  ;;  %v20077_v31 = vld [vmem:[#allocation70_spill] sm:$0xff]  ;;  %vm15056_vm13 = vmpackc.low %vm6317_vm12, %vm6317_vm12 }
 0x32b   : > { %vm4903_vm7 = vcmp.ne.s32.totalorder %v4599_v41, 0  ;;  %v20074_v39 = vrot.slane %v20069_v10, %v8772_v25  ;;  %v6947_v13 = vsel %vm15013_vm2, %v465_v1, 0  ;;  %vm4904_vm8 = vcmp.ne.s32.totalorder %v4600_v62, 0 }
 0x32c   : > { %v5207_v4 = vsel %vm4903_vm7, 1, %v18645_v5  ;;  %v4297_v3 = vsel %vm14918_vm6, 65537, %v18645_v5  ;;  %vm6291_vm15 = vcmp.eq.s32.totalorder %v20077_v31, 1  ;;  %v7638_v57 = vsel %vm341_vm11, %v7228_v37, 0.0 }
 0x32d   : > { %vm15040_vm4 = vcmp.ne.s16.totalorder %v20074_v39, 0  ;;  %v7229_v23 = vunpack.c.l.bf16 %v6924_v6  ;;  %v7251_v1 = vunpack.c.l.bf16 %v6946_v42  ;;  %5920 = vperm.xlu1 %8402, %v5207_v4   ;;  %v5208_v8 = vsel %vm4904_vm8, 1, %v18645_v5  ;;  %v15065_v6 = vpop.permute.xlu0 %5755  ;;  %v20087_v39 = vld [vmem:[#allocation98_spill] sm:$0xff] }
 0x32e   : > { %v7688_v43 = vadd.f32 %v7687_v14, %v7686_v54  ;;  %vm6341_vm6 = vcmp.eq.s32.totalorder %v14377_v38, 1  ;;  %5923 = vperm.xlu0 %8401, %v5208_v8   ;;  %v4601_v41 = vunpack.c.l.b16 %v4297_v3  ;;  %v4298_v37 = vsel %vm14948_vm5, 65537, %v18645_v5  ;;  %20080 = vst [vmem:[#allocation51_spill] sm:$0xff] %v15065_v6  ;;  %vm15083_vm5 = vmpackc.low %vm6340_vm3, %vm6340_vm3  ;;  %v15099_v8 = vpop.permute.xlu1 %5758  ;;  %v467_v6 = vld [vmem:[%s11729_s17 + $0x1e8] sm:$0xf] }
 0x32f   : > { %v20082_v26 = vrot.slane %v20081_v30, %v8769_v27  ;;  %v15076_v54 = vsel %vm341_vm11, %v14769_v19, 0.0  ;;  %vm6318_vm14 = vcmp.eq.s32.totalorder %v13815_v55, 1  ;;  %v7252_v42 = vunpack.c.l.bf16 %v6947_v13  ;;  %20091 = vst [vmem:[#allocation50_spill] sm:$0xff] %v15099_v8  ;;  %vm15107_vm3 = vmpackc.low %vm6341_vm6, %vm6341_vm6 }
 0x330   : > { %v4602_v14 = vunpack.c.l.b16 %v4298_v37  ;;  %v20088_v4 = vrot.slane %v20087_v39, %v8769_v27  ;;  %v7639_v19 = vadd.f32 %v7638_v57, %v7637_v47  ;;  %v6925_v13 = vsel %vm15056_vm13, %v443_v44, 0  ;;  %v444_v44 = vld [vmem:[%s11729_s17 + $0x18c] sm:$0xf] }
 0x331   : > { %vm15070_vm0 = vcmp.ne.s16.totalorder %v20082_v26, 0  ;;  %vm4905_vm12 = vcmp.ne.s32.totalorder %v4601_v41, 0  ;;  %v4319_v58 = vsel %vm14967_vm9, 65537, %v18645_v5  ;;  %v7640_v37 = vsel %vm341_vm11, %v7229_v23, 0.0  ;;  %vm15116_vm9 = vmpackc.low %vm6318_vm14, %vm6318_vm14  ;;  %v15123_v41 = vpop.permute.xlu0 %5761 }
 0x332   : > { %vm15090_vm2 = vcmp.ne.s16.totalorder %v20088_v4, 0  ;;  %v7689_v26 = vsel %vm341_vm11, %v7251_v1, 0.0  ;;  %v5209_v57 = vsel %vm4905_vm12, 1, %v18645_v5  ;;  %vm4906_vm7 = vcmp.ne.s32.totalorder %v4602_v14, 0  ;;  %20096 = vst [vmem:[#allocation78_spill] sm:$0xff] %v15123_v41 }
 0x333   : > { %v7690_v23 = vadd.f32 %v7689_v26, %v7688_v43  ;;  %v6948_v38 = vsel %vm15083_vm5, %v466_v20, 0  ;;  %5926 = vperm.xlu1 %8402, %v5209_v57   ;;  %v5210_v50 = vsel %vm4906_vm7, 1, %v18645_v5  ;;  %v4623_v1 = vunpack.c.l.b16 %v4319_v58  ;;  %v445_v26 = vld [vmem:[%s11729_s17 + $0x190] sm:$0xf] }
 0x334   : > { %v7230_v14 = vunpack.c.l.bf16 %v6925_v13  ;;  %vm6319_vm8 = vcmp.eq.s32.totalorder %v13863_v21, 1  ;;  %v7691_v55 = vsel %vm341_vm11, %v7252_v42, 0.0  ;;  %5929 = vperm.xlu0 %8401, %v5210_v50   ;;  %v4320_v43 = vsel %vm14999_vm10, 65537, %v18645_v5  ;;  %v20109_v50 = vld [vmem:[#allocation33_spill] sm:$0xff] }
 0x335   : > { %v6949_v20 = vsel %vm15107_vm3, %v467_v6, 0  ;;  %vm6342_vm13 = vcmp.eq.s32.totalorder %v14379_v48, 1  ;;  %vm4927_vm6 = vcmp.ne.s32.totalorder %v4623_v1, 0  ;;  %v4624_v62 = vunpack.c.l.b16 %v4320_v43  ;;  %vm15154_vm10 = vmpackc.low %vm6319_vm8, %vm6319_vm8 }
 0x336   : > { %v20097_v4 = vrot.slane %v20081_v30, %v8772_v25  ;;  %v20100_v21 = vrot.slane %v20087_v39, %v8772_v25  ;;  %v6926_v6 = vsel %vm15116_vm9, %v444_v44, 0  ;;  %v7253_v42 = vunpack.c.l.bf16 %v6948_v38  ;;  %v15159_v44 = vpop.permute.xlu1 %5764  ;;  %vm15173_vm9 = vmpackc.low %vm6342_vm13, %vm6342_vm13 }
 0x337   : > { %v5231_v58 = vsel %vm4927_vm6, 1, %v18645_v5  ;;  %v4357_v30 = vsel %vm15026_vm1, 65537, %v18645_v5  ;;  %v7692_v39 = vadd.f32 %v7691_v55, %v7690_v23  ;;  %vm6343_vm12 = vcmp.eq.s32.totalorder %v14429_v11, 1  ;;  %v468_v23 = vld [vmem:[%s11729_s17 + $0x1ec] sm:$0xf]  ;;  %vm15187_vm8 = vmpackc.low %vm6291_vm15, %vm6291_vm15 }
 0x338   : > { %vm15136_vm14 = vcmp.ne.s16.totalorder %v20097_v4, 0  ;;  %vm15143_vm5 = vcmp.ne.s16.totalorder %v20100_v21, 0  ;;  %5992 = vperm.xlu1 %8402, %v5231_v58   ;;  %vm4928_vm3 = vcmp.ne.s32.totalorder %v4624_v62, 0  ;;  %v4661_v57 = vunpack.c.l.b16 %v4357_v30  ;;  %v15181_v21 = vpop.permute.xlu0 %5767  ;;  %v417_v58 = vld [vmem:[%s11729_s17 + $0x120] sm:$0xf]  ;;  %vm15200_vm15 = vmpackc.low %vm6343_vm12, %vm6343_vm12 }
 0x339   : > { %v20106_v38 = vrot.slane %v20105_v40, %v8769_v27  ;;  %vm6292_vm1 = vcmp.eq.s32.totalorder %v20109_v50, 1  ;;  %v7641_v1 = vadd.f32 %v7640_v37, %v7639_v19  ;;  %v7254_v43 = vunpack.c.l.bf16 %v6949_v20 }
 0x33a   : > { %v5232_v62 = vsel %vm4928_vm3, 1, %v18645_v5  ;;  %v4358_v4 = vsel %vm15040_vm4, 65537, %v18645_v5  ;;  %v7642_v48 = vsel %vm341_vm11, %v7230_v14, 0.0  ;;  %v7231_v37 = vunpack.c.l.bf16 %v6926_v6  ;;  %v20116_v6 = vld [vmem:[#allocation14_spill] sm:$0xff] }
 0x33b   : > { %vm15164_vm7 = vcmp.ne.s16.totalorder %v20106_v38, 0  ;;  %5995 = vperm.xlu0 %8401, %v5232_v62   ;;  %vm4965_vm13 = vcmp.ne.s32.totalorder %v4661_v57, 0  ;;  %v4662_v20 = vunpack.c.l.b16 %v4358_v4  ;;  %v6927_v33 = vsel %vm15154_vm10, %v445_v26, 0  ;;  %v469_v38 = vld [vmem:[%s11729_s17 + $0x1f0] sm:$0xf]  ;;  %v15217_v62 = vpop.permute.xlu1 %5770 }
 0x33c   : > { %vm6320_vm4 = vcmp.eq.s32.totalorder %v13865_v32, 1  ;;  %v7693_v30 = vsel %vm341_vm11, %v7253_v42, 0.0  ;;  %v5269_v14 = vsel %vm4965_vm13, 1, %v18645_v5  ;;  %v20117_v57 = vrot.slane %v20116_v6, %v8769_v27 }
 0x33d   : > { %v7694_v26 = vadd.f32 %v7693_v30, %v7692_v39  ;;  %v6950_v42 = vsel %vm15173_vm9, %v468_v23, 0  ;;  %6106 = vperm.xlu1 %8402, %v5269_v14   ;;  %vm4966_vm10 = vcmp.ne.s32.totalorder %v4662_v20, 0  ;;  %v4321_v11 = vsel %vm15070_vm0, 65537, %v18645_v5  ;;  %v15229_v20 = vpop.permute.xlu0 %5773 }
 0x33e   : > { %vm15208_vm6 = vcmp.ne.s16.totalorder %v20117_v57, 0  ;;  %v7695_v4 = vsel %vm341_vm11, %v7254_v43, 0.0  ;;  %v5270_v57 = vsel %vm4966_vm10, 1, %v18645_v5  ;;  %v4625_v41 = vunpack.c.l.b16 %v4321_v11 }
 0x33f   : > { %v4359_v39 = vsel %vm15090_vm2, 65537, %v18645_v5  ;;  %v6899_v23 = vsel %vm15187_vm8, %v417_v58, 0  ;;  %v6951_v55 = vsel %vm15200_vm15, %v469_v38, 0  ;;  %vm6344_vm12 = vcmp.eq.s32.totalorder %v14431_v46, 1  ;;  %6109 = vperm.xlu0 %8401, %v5270_v57   ;;  %v446_v58 = vld [vmem:[%s11729_s17 + $0x194] sm:$0xf]  ;;  %vm15242_vm2 = vmpackc.low %vm6320_vm4, %vm6320_vm4  ;;  %v15267_v11 = vpop.permute.xlu1 %5776 }
 0x340   : > { %v4663_v10 = vunpack.c.l.b16 %v4359_v39  ;;  %v20120_v43 = vrot.slane %v20105_v40, %v8772_v25  ;;  %v7643_v3 = vadd.f32 %v7642_v48, %v7641_v1  ;;  %v7232_v19 = vunpack.c.l.bf16 %v6927_v33  ;;  %vm15262_vm4 = vmpackc.low %vm6344_vm12, %vm6344_vm12 }
 0x341   : > { %v7255_v31 = vunpack.c.l.bf16 %v6950_v42  ;;  %vm4929_vm3 = vcmp.ne.s32.totalorder %v4625_v41, 0  ;;  %v7696_v14 = vadd.f32 %v7695_v4, %v7694_v26  ;;  %vm6345_vm9 = vcmp.eq.s32.totalorder %v14474_v9, 1  ;;  %v470_v41 = vld [vmem:[%s11729_s17 + $0x1f4] sm:$0xf]  ;;  %v15287_v13 = vpop.permute.xlu0 %5779 }
 0x342   : > { %vm15234_vm0 = vcmp.ne.s16.totalorder %v20120_v43, 0  ;;  %v5233_v40 = vsel %vm4929_vm3, 1, %v18645_v5  ;;  %vm4967_vm8 = vcmp.ne.s32.totalorder %v4663_v10, 0  ;;  %v20125_v1 = vrot.slane %v20116_v6, %v8772_v25  ;;  %vm15283_vm10 = vmpackc.low %vm6345_vm9, %vm6345_vm9 }
 0x343   : > { %v15255_v32 = vunpack.c.l.bf16 %v6899_v23  ;;  %v7644_v33 = vsel %vm341_vm11, %v7231_v37, 0.0  ;;  %v7256_v42 = vunpack.c.l.bf16 %v6951_v55  ;;  %5998 = vperm.xlu1 %8402, %v5233_v40   ;;  %v5271_v6 = vsel %vm4967_vm8, 1, %v18645_v5  ;;  %v471_v23 = vld [vmem:[%s11729_s17 + $0x1f8] sm:$0xf] }
 0x344   : > { %vm15251_vm13 = vcmp.ne.s16.totalorder %v20125_v1, 0  ;;  %v6928_v4 = vsel %vm15242_vm2, %v446_v58, 0  ;;  %vm6321_vm15 = vcmp.eq.s32.totalorder %v13910_v2, 1  ;;  %6112 = vperm.xlu0 %8401, %v5271_v6   ;;  %v4322_v46 = vsel %vm15136_vm14, 65537, %v18645_v5  ;;  %v15290_v58 = vld [vmem:[%s11729_s17 + $0x124] sm:$0xf]  ;;  %vm15295_vm14 = vmpackc.low %vm6292_vm1, %vm6292_vm1 }
 0x345   : > { %v4360_v37 = vsel %vm15143_vm5, 65537, %v18645_v5  ;;  %v7645_v57 = vadd.f32 %v7644_v33, %v7643_v3  ;;  %v7697_v39 = vsel %vm341_vm11, %v7255_v31, 0.0  ;;  %v4626_v10 = vunpack.c.l.b16 %v4322_v46  ;;  %v447_v40 = vld [vmem:[%s11729_s17 + $0x198] sm:$0xf]  ;;  %vm15309_vm5 = vmpackc.low %vm6321_vm15, %vm6321_vm15  ;;  %v20140_v33 = vld [vmem:[#allocation16_spill] sm:$0xff]  ;;  %v15342_v55 = vpop.permute.xlu0 %5785 }
 0x346   : > { %v4664_v43 = vunpack.c.l.b16 %v4360_v37  ;;  %v20132_v7 = vmov 0  ;;  %v7646_v9 = vsel %vm341_vm11, %v7232_v19, 0.0  ;;  %v7698_v3 = vadd.f32 %v7697_v39, %v7696_v14  ;;  %v20136_v19 = vld [vmem:[#allocation63_spill] sm:$0xff]  ;;  %v15333_v37 = vpop.permute.xlu1 %5782 }
 0x347   : > { %v20133_v7 = vsel %vm15295_vm14, 4294967295, %v20132_v7  ;;  %v6952_v38 = vsel %vm15262_vm4, %v470_v41, 0  ;;  %v4323_v31 = vsel %vm15164_vm7, 65537, %v18645_v5  ;;  %v7699_v1 = vsel %vm341_vm11, %v7256_v42, 0.0 }
 0x348   : > { %vm6346_vm1 = vcmp.eq.s32.totalorder %v14476_v35, 1  ;;  %vm4930_vm12 = vcmp.ne.s32.totalorder %v4626_v10, 0  ;;  %vm4968_vm2 = vcmp.ne.s32.totalorder %v4664_v43, 0  ;;  %v20137_v14 = vrot.slane %v20136_v19, %v8769_v27  ;;  %v448_v35 = vld [vmem:[%s11729_s17 + $0x19c] sm:$0xf] }
 0x349   : > { %v20141_v2 = vrot.slane %v20140_v33, %v8769_v27  ;;  %v6953_v42 = vsel %vm15283_vm10, %v471_v23, 0  ;;  %v5234_v26 = vsel %vm4930_vm12, 1, %v18645_v5  ;;  %v5272_v6 = vsel %vm4968_vm2, 1, %v18645_v5  ;;  %vm15350_vm8 = vmpackc.low %vm6346_vm1, %vm6346_vm1 }
 0x34a   : > { %vm15318_vm3 = vcmp.ne.s16.totalorder %v20137_v14, 0  ;;  %v4627_v46 = vunpack.c.l.b16 %v4323_v31  ;;  %v7233_v10 = vunpack.c.l.bf16 %v6928_v4  ;;  %vm6322_vm9 = vcmp.eq.s32.totalorder %v13912_v16, 1  ;;  %6001 = vperm.xlu1 %8402, %v5234_v26   ;;  %6115 = vperm.xlu0 %8401, %v5272_v6   ;;  %v472_v14 = vld [vmem:[%s11729_s17 + $0x1fc] sm:$0xf]  ;;  %v20156_v4 = vld [vmem:[#allocation7_spill] sm:$0xff] }
 0x34b   : > { %vm15325_vm7 = vcmp.ne.s16.totalorder %v20141_v2, 0  ;;  %v4361_v23 = vsel %vm15208_vm6, 65537, %v18645_v5  ;;  %v6929_v43 = vsel %vm15309_vm5, %v447_v40, 0  ;;  %v7257_v31 = vunpack.c.l.bf16 %v6952_v38  ;;  %vm15366_vm10 = vmpackc.low %vm6322_vm9, %vm6322_vm9 }
 0x34c   : > { %vm4931_vm4 = vcmp.ne.s32.totalorder %v4627_v46, 0  ;;  %v4665_v2 = vunpack.c.l.b16 %v4361_v23  ;;  %v20146_v47 = vrot.slane %v20136_v19, %v8772_v25  ;;  %v7647_v50 = vadd.f32 %v7646_v9, %v7645_v57  ;;  %v15375_v9 = vpop.permute.xlu1 %5788  ;;  %v15388_v46 = vpop.permute.xlu0 %5791 }
 0x34d   : > { %v7700_v40 = vadd.f32 %v7699_v1, %v7698_v3  ;;  %v7258_v38 = vunpack.c.l.bf16 %v6953_v42  ;;  %vm6347_vm15 = vcmp.eq.s32.totalorder %v14528_v17, 1  ;;  %vm6371_vm5 = vcmp.eq.s32.totalorder %v15159_v44, 1  ;;  %v20160_v17 = vld [vmem:[#allocation66_spill] sm:$0xff] }
 0x34e   : > { %vm15357_vm6 = vcmp.ne.s16.totalorder %v20146_v47, 0  ;;  %v5235_v19 = vsel %vm4931_vm4, 1, %v18645_v5  ;;  %vm4969_vm1 = vcmp.ne.s32.totalorder %v4665_v2, 0  ;;  %v4324_v57 = vsel %vm15234_vm0, 65537, %v18645_v5  ;;  %vm15394_vm0 = vmpackc.low %vm6347_vm15, %vm6347_vm15 }
 0x34f   : > { %v20151_v3 = vrot.slane %v20140_v33, %v8772_v25  ;;  %v7234_v1 = vunpack.c.l.bf16 %v6929_v43  ;;  %v6954_v42 = vsel %vm15350_vm8, %v472_v14, 0  ;;  %vm6372_vm2 = vcmp.eq.s32.totalorder %v15181_v21, 1  ;;  %6004 = vperm.xlu1 %8402, %v5235_v19  }
 0x350   : > { %v5273_v30 = vsel %vm4969_vm1, 1, %v18645_v5  ;;  %v7701_v23 = vsel %vm341_vm11, %v7257_v31, 0.0  ;;  %vm6348_vm9 = vcmp.eq.s32.totalorder %v14530_v18, 1  ;;  %v4628_v43 = vunpack.c.l.b16 %v4324_v57 }
 0x351   : > { %vm15380_vm12 = vcmp.ne.s16.totalorder %v20151_v3, 0  ;;  %6118 = vperm.xlu0 %8401, %v5273_v30   ;;  %v4362_v14 = vsel %vm15251_vm13, 65537, %v18645_v5  ;;  %v20157_v2 = vrot.slane %v20156_v4, %v8769_v27  ;;  %v20161_v47 = vrot.slane %v20160_v17, %v8769_v27  ;;  %v497_v3 = vld [vmem:[%s11729_s17 + $0x260] sm:$0xf]  ;;  %vm15422_vm13 = vmpackc.low %vm6371_vm5, %vm6371_vm5 }
 0x352   : > { %v6930_v57 = vsel %vm15366_vm10, %v448_v35, 0  ;;  %v7702_v48 = vadd.f32 %v7701_v23, %v7700_v40  ;;  %vm6373_vm15 = vcmp.eq.s32.totalorder %v15217_v62, 1  ;;  %v7703_v39 = vsel %vm341_vm11, %v7258_v38, 0.0  ;;  %v498_v35 = vld [vmem:[%s11729_s17 + $0x264] sm:$0xf]  ;;  %vm15433_vm10 = vmpackc.low %vm6372_vm2, %vm6372_vm2  ;;  %v15437_v40 = vpop.permute.xlu1 %5794 }
 0x353   : > { %vm15405_vm8 = vcmp.ne.s16.totalorder %v20157_v2, 0  ;;  %vm15412_vm4 = vcmp.ne.s16.totalorder %v20161_v47, 0  ;;  %v4666_v2 = vunpack.c.l.b16 %v4362_v14  ;;  %v7648_v47 = vsel %vm341_vm11, %v7233_v10, 0.0  ;;  %v473_v38 = vld [vmem:[%s11729_s17 + $0x200] sm:$0xf]  ;;  %vm15450_vm1 = vmpackc.low %vm6348_vm9, %vm6348_vm9 }
 0x354   : > { %v7259_v6 = vunpack.c.l.bf16 %v6954_v42  ;;  %vm4932_vm5 = vcmp.ne.s32.totalorder %v4628_v43, 0  ;;  %v15441_v23 = vadd.f32 %v15076_v54, %v14851_v60  ;;  %v15443_v10 = vadd.f32 %v7648_v47, %v7647_v50  ;;  %v474_v14 = vld [vmem:[%s11729_s17 + $0x204] sm:$0xf]  ;;  %v499_v54 = vld [vmem:[%s11729_s17 + $0x268] sm:$0xf]  ;;  %vm15466_vm14 = vmpackc.low %vm6373_vm15, %vm6373_vm15 }
 0x355   : > { %v5236_v42 = vsel %vm4932_vm5, 1, %v18645_v5  ;;  %vm4970_vm2 = vcmp.ne.s32.totalorder %v4666_v2, 0  ;;  %v15456_v43 = vsel %vm341_vm11, %v7234_v1, 0.0  ;;  %v15458_v8 = vunpack.c.l.bf16 %v6930_v57  ;;  %v15471_v2 = vpop.permute.xlu0 %5797 }
 0x356   : > { %20168 = vst [vmem:[#allocation99_spill] sm:$0xff] %v15441_v23  ;;  %v6979_v60 = vsel %vm15422_vm13, %v497_v3, 0  ;;  %6007 = vperm.xlu1 %8402, %v5236_v42   ;;  %v5274_v50 = vsel %vm4970_vm2, 1, %v18645_v5  ;;  %v20173_v1 = vrot.slane %v20156_v4, %v8772_v25  ;;  %v7704_v3 = vadd.f32 %v7703_v39, %v7702_v48 }
 0x357   : > { %v6980_v62 = vsel %vm15433_vm10, %v498_v35, 0  ;;  %6121 = vperm.xlu0 %8401, %v5274_v50   ;;  %v4325_v30 = vsel %vm15318_vm3, 65537, %v18645_v5  ;;  %v4363_v47 = vsel %vm15325_vm7, 65537, %v18645_v5  ;;  %v7705_v42 = vsel %vm341_vm11, %v7259_v6, 0.0  ;;  %v15496_v35 = vpop.permute.xlu1 %5800 }
 0x358   : > { %vm15476_vm9 = vcmp.ne.s16.totalorder %v20173_v1, 0  ;;  %v6955_v4 = vsel %vm15394_vm0, %v473_v38, 0  ;;  %v4629_v1 = vunpack.c.l.b16 %v4325_v30  ;;  %v4667_v23 = vunpack.c.l.b16 %v4363_v47  ;;  %v20181_v47 = vld [vmem:[#allocation62_spill] sm:$0xff] }
 0x359   : > { %v6956_v39 = vsel %vm15450_vm1, %v474_v14, 0  ;;  %v7284_v48 = vunpack.c.l.bf16 %v6979_v60  ;;  %v6981_v36 = vsel %vm15466_vm14, %v499_v54, 0  ;;  %vm6374_vm3 = vcmp.eq.s32.totalorder %v15229_v20, 1  ;;  %v15511_v21 = vpop.permute.xlu0 %5803  ;;  %v500_v60 = vld [vmem:[%s11729_s17 + $0x26c] sm:$0xf] }
 0x35a   : > { %v20176_v41 = vrot.slane %v20160_v17, %v8772_v25  ;;  %v7285_v6 = vunpack.c.l.bf16 %v6980_v62  ;;  %vm4933_vm0 = vcmp.ne.s32.totalorder %v4629_v1, 0  ;;  %vm4971_vm13 = vcmp.ne.s32.totalorder %v4667_v23, 0  ;;  %vm15515_vm10 = vmpackc.low %vm6374_vm3, %vm6374_vm3 }
 0x35b   : > { %v4326_v44 = vsel %vm15357_vm6, 65537, %v18645_v5  ;;  %v7260_v38 = vunpack.c.l.bf16 %v6955_v4  ;;  %vm6375_vm14 = vcmp.eq.s32.totalorder %v15267_v11, 1  ;;  %v5237_v20 = vsel %vm4933_vm0, 1, %v18645_v5 }
 0x35c   : > { %vm15501_vm7 = vcmp.ne.s16.totalorder %v20176_v41, 0  ;;  %v5275_v14 = vsel %vm4971_vm13, 1, %v18645_v5  ;;  %vm6349_vm15 = vcmp.eq.s32.totalorder %v14573_v22, 1  ;;  %v7286_v17 = vunpack.c.l.bf16 %v6981_v36  ;;  %6010 = vperm.xlu1 %8402, %v5237_v20   ;;  %v20185_v36 = vld [vmem:[#allocation20_spill] sm:$0xff]  ;;  %v15552_v20 = vpop.permute.xlu1 %5806 }
 0x35d   : > { %6124 = vperm.xlu0 %8401, %v5275_v14   ;;  %v4630_v26 = vunpack.c.l.b16 %v4326_v44  ;;  %v4364_v54 = vsel %vm15380_vm12, 65537, %v18645_v5  ;;  %v7706_v18 = vadd.f32 %v7705_v42, %v7704_v3  ;;  %v7261_v50 = vunpack.c.l.bf16 %v6956_v39  ;;  %v501_v3 = vld [vmem:[%s11729_s17 + $0x270] sm:$0xf]  ;;  %vm15542_vm12 = vmpackc.low %vm6375_vm14, %vm6375_vm14  ;;  %v15566_v19 = vpop.permute.xlu0 %5809 }
 0x35e   : > { %v7761_v62 = vsel %vm341_vm11, %v7284_v48, 0.0  ;;  %v4668_v30 = vunpack.c.l.b16 %v4364_v54  ;;  %v20182_v4 = vrot.slane %v20181_v47, %v8769_v27  ;;  %v20186_v41 = vrot.slane %v20185_v36, %v8769_v27  ;;  %vm15558_vm2 = vmpackc.low %vm6349_vm15, %vm6349_vm15 }
 0x35f   : > { %v7762_v16 = vsel %vm341_vm11, %v7285_v6, 0.0  ;;  %vm4934_vm1 = vcmp.ne.s32.totalorder %v4630_v26, 0  ;;  %v4327_v39 = vsel %vm15405_vm8, 65537, %v18645_v5  ;;  %v4365_v48 = vsel %vm15412_vm4, 65537, %v18645_v5  ;;  %v475_v6 = vld [vmem:[%s11729_s17 + $0x208] sm:$0xf] }
 0x360   : > { %vm15526_vm6 = vcmp.ne.s16.totalorder %v20182_v4, 0  ;;  %vm15533_vm5 = vcmp.ne.s16.totalorder %v20186_v41, 0  ;;  %vm6350_vm3 = vcmp.eq.s32.totalorder %v14575_v53, 1  ;;  %v6982_v31 = vsel %vm15515_vm10, %v500_v60, 0 }
 0x361   : > { %v5238_v14 = vsel %vm4934_vm1, 1, %v18645_v5  ;;  %vm4972_vm8 = vcmp.ne.s32.totalorder %v4668_v30, 0  ;;  %v20193_v26 = vrot.slane %v20181_v47, %v8772_v25  ;;  %v7707_v54 = vsel %vm341_vm11, %v7260_v38, 0.0  ;;  %vm15601_vm15 = vmpackc.low %vm6350_vm3, %vm6350_vm3 }
 0x362   : > { %v7764_v4 = vsel %vm341_vm11, %v7286_v17, 0.0  ;;  %6013 = vperm.xlu1 %8402, %v5238_v14   ;;  %v5276_v60 = vsel %vm4972_vm8, 1, %v18645_v5  ;;  %v4631_v23 = vunpack.c.l.b16 %v4327_v39  ;;  %v7763_v41 = vadd.f32 %v7762_v16, %v7761_v62  ;;  %v15593_v16 = vpop.permute.xlu1 %5812 }
 0x363   : > { %vm15571_vm4 = vcmp.ne.s16.totalorder %v20193_v26, 0  ;;  %v6983_v30 = vsel %vm15542_vm12, %v501_v3, 0  ;;  %vm6376_vm0 = vcmp.eq.s32.totalorder %v15287_v13, 1  ;;  %6127 = vperm.xlu0 %8401, %v5276_v60   ;;  %v4669_v47 = vunpack.c.l.b16 %v4365_v48  ;;  %v15596_v3 = vld [vmem:[%s11729_s17 + $0x20c] sm:$0xf]  ;;  %v20203_v60 = vld [vmem:[#allocation6_spill] sm:$0xff] }
 0x364   : > { %v20196_v26 = vrot.slane %v20185_v36, %v8772_v25  ;;  %v6957_v17 = vsel %vm15558_vm2, %v475_v6, 0  ;;  %v7287_v39 = vunpack.c.l.bf16 %v6982_v31  ;;  %vm4935_vm14 = vcmp.ne.s32.totalorder %v4631_v23, 0  ;;  %v15607_v6 = vpop.permute.xlu0 %5815  ;;  %v502_v31 = vld [vmem:[%s11729_s17 + $0x274] sm:$0xf] }
 0x365   : > { %v4328_v62 = vsel %vm15476_vm9, 65537, %v18645_v5  ;;  %v7765_v42 = vadd.f32 %v7764_v4, %v7763_v41  ;;  %vm6377_vm10 = vcmp.eq.s32.totalorder %v15333_v37, 1  ;;  %v5239_v48 = vsel %vm4935_vm14, 1, %v18645_v5  ;;  %vm15613_vm9 = vmpackc.low %vm6376_vm0, %vm6376_vm0  ;;  %v15778_v41 = vld [vmem:[%s11729_s17 + $0x1a0] sm:$0xf] }
 0x366   : > { %vm15584_vm13 = vcmp.ne.s16.totalorder %v20196_v26, 0  ;;  %vm4973_vm12 = vcmp.ne.s32.totalorder %v4669_v47, 0  ;;  %v7708_v57 = vadd.f32 %v7707_v54, %v7706_v18  ;;  %v7288_v11 = vunpack.c.l.bf16 %v6983_v30  ;;  %6016 = vperm.xlu1 %8402, %v5239_v48   ;;  %vm15641_vm2 = vmpackc.low %vm6377_vm10, %vm6377_vm10 }
 0x367   : > { %v5277_v14 = vsel %vm4973_vm12, 1, %v18645_v5  ;;  %v4632_v4 = vunpack.c.l.b16 %v4328_v62  ;;  %v20204_v23 = vrot.slane %v20203_v60, %v8769_v27  ;;  %v15627_v18 = vadd.f32 %v15456_v43, %v15443_v10  ;;  %v503_v62 = vld [vmem:[%s11729_s17 + $0x278] sm:$0xf] }
 0x368   : > { %v7709_v13 = vsel %vm341_vm11, %v7261_v50, 0.0  ;;  %v7262_v54 = vunpack.c.l.bf16 %v6957_v17  ;;  %6130 = vperm.xlu0 %8401, %v5277_v14   ;;  %v4366_v30 = vsel %vm15501_vm7, 65537, %v18645_v5  ;;  %v6958_v47 = vsel %vm15601_vm15, %v15596_v3, 0  ;;  %v15645_v50 = vpop.permute.xlu1 %5818 }
 0x369   : > { %vm15621_vm1 = vcmp.ne.s16.totalorder %v20204_v23, 0  ;;  %v7766_v26 = vsel %vm341_vm11, %v7287_v39, 0.0  ;;  %vm4936_vm3 = vcmp.ne.s32.totalorder %v4632_v4, 0  ;;  %v4670_v43 = vunpack.c.l.b16 %v4366_v30  ;;  %v20209_v39 = vld [vmem:[#allocation21_spill] sm:$0xff] }
 0x36a   : > { %vm6323_vm7 = vcmp.eq.s32.totalorder %v13949_v15, 1  ;;  %vm6351_vm8 = vcmp.eq.s32.totalorder %v14613_v59, 1  ;;  %v7767_v33 = vadd.f32 %v7766_v26, %v7765_v42  ;;  %v6984_v17 = vsel %vm15613_vm9, %v502_v31, 0  ;;  %v15661_v42 = vpop.permute.xlu0 %5821  ;;  %v477_v23 = vld [vmem:[%s11729_s17 + $0x210] sm:$0xf] }
 0x36b   : > { %v5240_v37 = vsel %vm4936_vm3, 1, %v18645_v5  ;;  %v20210_v3 = vrot.slane %v20209_v39, %v8769_v27  ;;  %v7710_v48 = vadd.f32 %v7709_v13, %v7708_v57  ;;  %v7768_v14 = vsel %vm341_vm11, %v7288_v11, 0.0  ;;  %vm15677_vm10 = vmpackc.low %vm6351_vm8, %vm6351_vm8  ;;  %v505_v13 = vld [vmem:[%s11729_s17 + $0x280] sm:$0xf] }
 0x36c   : > { %vm6378_vm14 = vcmp.eq.s32.totalorder %v15342_v55, 1  ;;  %6019 = vperm.xlu1 %8402, %v5240_v37   ;;  %vm4974_vm15 = vcmp.ne.s32.totalorder %v4670_v43, 0  ;;  %v6985_v31 = vsel %vm15641_vm2, %v503_v62, 0  ;;  %v4329_v4 = vsel %vm15526_vm6, 65537, %v18645_v5  ;;  %v15693_v10 = vpop.permute.xlu1 %5824 }
 0x36d   : > { %vm15655_vm0 = vcmp.ne.s16.totalorder %v20210_v3, 0  ;;  %v5278_v53 = vsel %vm4974_vm15, 1, %v18645_v5  ;;  %v4367_v57 = vsel %vm15533_vm5, 65537, %v18645_v5  ;;  %v7711_v11 = vsel %vm341_vm11, %v7262_v54, 0.0  ;;  %vm15703_vm9 = vmpackc.low %vm6378_vm14, %vm6378_vm14  ;;  %v20267_v3 = vld [vmem:[#allocation89_spill] sm:$0xff] }
 0x36e   : > { %vm6352_vm12 = vcmp.eq.s32.totalorder %v14615_v34, 1  ;;  %v7289_v30 = vunpack.c.l.bf16 %v6984_v17  ;;  %6133 = vperm.xlu0 %8401, %v5278_v53   ;;  %v4633_v1 = vunpack.c.l.b16 %v4329_v4  ;;  %v20215_v44 = vrot.slane %v20203_v60, %v8772_v25  ;;  %v504_v60 = vld [vmem:[%s11729_s17 + $0x27c] sm:$0xf]  ;;  %v15728_v53 = vpop.permute.xlu0 %5827 }
 0x36f   : > { %v7769_v54 = vadd.f32 %v7768_v14, %v7767_v33  ;;  %vm6379_vm5 = vcmp.eq.s32.totalorder %v15375_v9, 1  ;;  %v4671_v59 = vunpack.c.l.b16 %v4367_v57  ;;  %v4330_v62 = vsel %vm15571_vm4, 65537, %v18645_v5  ;;  %v478_v14 = vld [vmem:[%s11729_s17 + $0x214] sm:$0xf]  ;;  %vm15720_vm3 = vmpackc.low %vm6352_vm12, %vm6352_vm12 }
 0x370   : > { %vm15685_vm6 = vcmp.ne.s16.totalorder %v20215_v44, 0  ;;  %v15697_v43 = vsel %vm341_vm11, %v15458_v8, 0.0  ;;  %v7290_v17 = vunpack.c.l.bf16 %v6985_v31  ;;  %vm4937_vm2 = vcmp.ne.s32.totalorder %v4633_v1, 0  ;;  %vm15735_vm14 = vmpackc.low %vm6379_vm5, %vm6379_vm5  ;;  %v20227_v44 = vld [vmem:[#allocation96_spill] sm:$0xff]  ;;  %v15762_v52 = vpop.permute.xlu1 %5830 }
 0x371   : > { %v4634_v37 = vunpack.c.l.b16 %v4330_v62  ;;  %v20220_v22 = vrot.slane %v20209_v39, %v8772_v25  ;;  %v6959_v8 = vsel %vm15677_vm10, %v477_v23, 0  ;;  %v5241_v31 = vsel %vm4937_vm2, 1, %v18645_v5 }
 0x372   : > { %vm4975_vm8 = vcmp.ne.s32.totalorder %v4671_v59, 0  ;;  %v4368_v39 = vsel %vm15584_vm13, 65537, %v18645_v5  ;;  %v7712_v4 = vadd.f32 %v7711_v11, %v7710_v48  ;;  %v7263_v57 = vunpack.c.l.bf16 %v6958_v47  ;;  %6022 = vperm.xlu1 %8402, %v5241_v31   ;;  %v20231_v47 = vld [vmem:[#allocation22_spill] sm:$0xff]  ;;  %v15768_v33 = vpop.permute.xlu0 %5833 }
 0x373   : > { %vm15710_vm4 = vcmp.ne.s16.totalorder %v20220_v22, 0  ;;  %v7770_v23 = vsel %vm341_vm11, %v7289_v30, 0.0  ;;  %v5279_v1 = vsel %vm4975_vm8, 1, %v18645_v5  ;;  %v20228_v38 = vrot.slane %v20227_v44, %v8769_v27  ;;  %v20274_v59 = vld [vmem:[#allocation34_spill] sm:$0xff] }
 0x374   : > { %v20232_v48 = vrot.slane %v20231_v47, %v8769_v27  ;;  %v7771_v11 = vadd.f32 %v7770_v23, %v7769_v54  ;;  %v6986_v30 = vsel %vm15703_vm9, %v504_v60, 0  ;;  %6136 = vperm.xlu0 %8401, %v5279_v1   ;;  %vm4938_vm10 = vcmp.ne.s32.totalorder %v4634_v37, 0 }
 0x375   : > { %vm15743_vm13 = vcmp.ne.s16.totalorder %v20228_v38, 0  ;;  %v4672_v62 = vunpack.c.l.b16 %v4368_v39  ;;  %v7264_v22 = vunpack.c.l.bf16 %v6959_v8  ;;  %v6960_v31 = vsel %vm15720_vm3, %v478_v14, 0 }
 0x376   : > { %vm15750_vm15 = vcmp.ne.s16.totalorder %v20232_v48, 0  ;;  %v7772_v38 = vsel %vm341_vm11, %v7290_v17, 0.0  ;;  %v4331_v48 = vsel %vm15621_vm1, 65537, %v18645_v5  ;;  %v6987_v54 = vsel %vm15735_vm14, %v505_v13, 0  ;;  %vm15783_vm1 = vmpackc.low %vm6323_vm7, %vm6323_vm7 }
 0x377   : > { %vm6380_vm12 = vcmp.eq.s32.totalorder %v15388_v46, 1  ;;  %v5242_v60 = vsel %vm4938_vm10, 1, %v18645_v5  ;;  %vm4976_vm5 = vcmp.ne.s32.totalorder %v4672_v62, 0  ;;  %v20235_v37 = vrot.slane %v20227_v44, %v8772_v25  ;;  %v506_v44 = vld [vmem:[%s11729_s17 + $0x284] sm:$0xf] }
 0x378   : > { %vm6353_vm2 = vcmp.eq.s32.totalorder %v14657_v49, 1  ;;  %v7291_v14 = vunpack.c.l.bf16 %v6986_v30  ;;  %6025 = vperm.xlu1 %8402, %v5242_v60   ;;  %v5280_v55 = vsel %vm4976_vm5, 1, %v18645_v5  ;;  %v4635_v39 = vunpack.c.l.b16 %v4331_v48  ;;  %vm15798_vm7 = vmpackc.low %vm6380_vm12, %vm6380_vm12  ;;  %v479_v48 = vld [vmem:[%s11729_s17 + $0x218] sm:$0xf]  ;;  %v20247_v60 = vld [vmem:[#allocation75_spill] sm:$0xff] }
 0x379   : > { %vm15773_vm9 = vcmp.ne.s16.totalorder %v20235_v37, 0  ;;  %v7713_v23 = vsel %vm341_vm11, %v7263_v57, 0.0  ;;  %v7773_v13 = vadd.f32 %v7772_v38, %v7771_v11  ;;  %vm6381_vm3 = vcmp.eq.s32.totalorder %v15437_v40, 1  ;;  %6139 = vperm.xlu0 %8401, %v5280_v55   ;;  %v15802_v11 = vpop.permute.xlu1 %5836  ;;  %v507_v55 = vld [vmem:[%s11729_s17 + $0x288] sm:$0xf] }
 0x37a   : > { %v4369_v15 = vsel %vm15655_vm0, 65537, %v18645_v5  ;;  %v7714_v34 = vadd.f32 %v7713_v23, %v7712_v4  ;;  %v7292_v1 = vunpack.c.l.bf16 %v6987_v54  ;;  %vm4939_vm8 = vcmp.ne.s32.totalorder %v4635_v39, 0  ;;  %vm15819_vm0 = vmpackc.low %vm6353_vm2, %vm6353_vm2  ;;  %v20250_v39 = vld [vmem:[#allocation9_spill] sm:$0xff] }
 0x37b   : > { %v4673_v57 = vunpack.c.l.b16 %v4369_v15  ;;  %v20242_v62 = vrot.slane %v20231_v47, %v8772_v25  ;;  %v7715_v4 = vsel %vm341_vm11, %v7264_v22, 0.0  ;;  %v7265_v38 = vunpack.c.l.bf16 %v6960_v31  ;;  %vm15830_vm12 = vmpackc.low %vm6381_vm3, %vm6381_vm3  ;;  %v15837_v31 = vpop.permute.xlu0 %5839 }
 0x37c   : > { %v5243_v47 = vsel %vm4939_vm8, 1, %v18645_v5  ;;  %vm6354_vm10 = vcmp.eq.s32.totalorder %v20247_v60, 1  ;;  %v7774_v37 = vsel %vm341_vm11, %v7291_v14, 0.0  ;;  %v4332_v49 = vsel %vm15685_vm6, 65537, %v18645_v5 }
 0x37d   : > { %vm15807_vm14 = vcmp.ne.s16.totalorder %v20242_v62, 0  ;;  %6028 = vperm.xlu1 %8402, %v5243_v47   ;;  %vm4977_vm5 = vcmp.ne.s32.totalorder %v4673_v57, 0  ;;  %v20251_v23 = vrot.slane %v20250_v39, %v8769_v27  ;;  %v7775_v40 = vadd.f32 %v7774_v37, %v7773_v13  ;;  %v15855_v24 = vpop.permute.xlu1 %5842 }
 0x37e   : > { %v6988_v15 = vsel %vm15798_vm7, %v506_v44, 0  ;;  %v5281_v57 = vsel %vm4977_vm5, 1, %v18645_v5  ;;  %v4636_v62 = vunpack.c.l.b16 %v4332_v49  ;;  %v7716_v47 = vadd.f32 %v7715_v4, %v7714_v34  ;;  %v20254_v44 = vld [vmem:[#allocation67_spill] sm:$0xff]  ;;  %v480_v4 = vld [vmem:[%s11729_s17 + $0x21c] sm:$0xf] }
 0x37f   : > { %vm15842_vm2 = vcmp.ne.s16.totalorder %v20251_v23, 0  ;;  %v6961_v26 = vsel %vm15819_vm0, %v479_v48, 0  ;;  %v7776_v46 = vsel %vm341_vm11, %v7292_v1, 0.0  ;;  %6142 = vperm.xlu0 %8401, %v5281_v57   ;;  %v4370_v23 = vsel %vm15710_vm4, 65537, %v18645_v5  ;;  %vm15871_vm4 = vmpackc.low %vm6354_vm10, %vm6354_vm10  ;;  %v15882_v22 = vpop.permute.xlu0 %5845  ;;  %v508_v57 = vld [vmem:[%s11729_s17 + $0x28c] sm:$0xf] }
 0x380   : > { %v6989_v13 = vsel %vm15830_vm12, %v507_v55, 0  ;;  %vm6382_vm6 = vcmp.eq.s32.totalorder %v15471_v2, 1  ;;  %vm4940_vm3 = vcmp.ne.s32.totalorder %v4636_v62, 0  ;;  %v4674_v34 = vunpack.c.l.b16 %v4370_v23 }
 0x381   : > { %v20255_v30 = vrot.slane %v20254_v44, %v8769_v27  ;;  %v7293_v48 = vunpack.c.l.bf16 %v6988_v15  ;;  %v5244_v54 = vsel %vm4940_vm3, 1, %v18645_v5  ;;  %v4333_v37 = vsel %vm15743_vm13, 65537, %v18645_v5  ;;  %vm15890_vm13 = vmpackc.low %vm6382_vm6, %vm6382_vm6 }
 0x382   : > { %v4371_v55 = vsel %vm15750_vm15, 65537, %v18645_v5  ;;  %v7717_v60 = vsel %vm341_vm11, %v7265_v38, 0.0  ;;  %v7777_v49 = vadd.f32 %v7776_v46, %v7775_v40  ;;  %vm6383_vm8 = vcmp.eq.s32.totalorder %v15496_v35, 1  ;;  %6031 = vperm.xlu1 %8402, %v5244_v54   ;;  %v16052_v38 = vld [vmem:[%s11729_s17 + $0x1a4] sm:$0xf] }
 0x383   : > { %vm15863_vm7 = vcmp.ne.s16.totalorder %v20255_v30, 0  ;;  %vm4978_vm0 = vcmp.ne.s32.totalorder %v4674_v34, 0  ;;  %v7294_v15 = vunpack.c.l.bf16 %v6989_v13  ;;  %v4637_v62 = vunpack.c.l.b16 %v4333_v37  ;;  %vm15913_vm12 = vmpackc.low %vm6383_vm8, %vm6383_vm8 }
 0x384   : > { %v5282_v9 = vsel %vm4978_vm0, 1, %v18645_v5  ;;  %v4675_v23 = vunpack.c.l.b16 %v4371_v55  ;;  %v20262_v46 = vrot.slane %v20250_v39, %v8772_v25  ;;  %v7266_v40 = vunpack.c.l.bf16 %v6961_v26  ;;  %v509_v39 = vld [vmem:[%s11729_s17 + $0x290] sm:$0xf] }
 0x385   : > { %v6962_v2 = vsel %vm15871_vm4, %v480_v4, 0  ;;  %vm6355_vm10 = vcmp.eq.s32.totalorder %v14703_v29, 1  ;;  %6145 = vperm.xlu0 %8401, %v5282_v9   ;;  %v4334_v13 = vsel %vm15773_vm9, 65537, %v18645_v5  ;;  %v7718_v34 = vadd.f32 %v7717_v60, %v7716_v47  ;;  %v15917_v4 = vpop.permute.xlu1 %5848  ;;  %v20271_v47 = vld [vmem:[#allocation71_spill] sm:$0xff]  ;;  %v15930_v60 = vpop.permute.xlu0 %5851 }
 0x386   : > { %vm15898_vm15 = vcmp.ne.s16.totalorder %v20262_v46, 0  ;;  %v7778_v30 = vsel %vm341_vm11, %v7293_v48, 0.0  ;;  %vm4941_vm5 = vcmp.ne.s32.totalorder %v4637_v62, 0  ;;  %vm4979_vm6 = vcmp.ne.s32.totalorder %v4675_v23, 0  ;;  %v481_v62 = vld [vmem:[%s11729_s17 + $0x220] sm:$0xf]  ;;  %vm15936_vm4 = vmpackc.low %vm6355_vm10, %vm6355_vm10 }
 0x387   : > { %v20268_v17 = vrot.slane %v20267_v3, %v8769_v27  ;;  %vm6324_vm3 = vcmp.eq.s32.totalorder %v20271_v47, 1  ;;  %v7779_v48 = vadd.f32 %v7778_v30, %v7777_v49  ;;  %v6990_v35 = vsel %vm15890_vm13, %v508_v57, 0 }
 0x388   : > { %v5245_v37 = vsel %vm4941_vm5, 1, %v18645_v5  ;;  %v4638_v55 = vunpack.c.l.b16 %v4334_v13  ;;  %v7267_v9 = vunpack.c.l.bf16 %v6962_v2  ;;  %v7780_v46 = vsel %vm341_vm11, %v7294_v15, 0.0  ;;  %v20309_v13 = vld [vmem:[#allocation73_spill] sm:$0xff] }
 0x389   : > { %vm15922_vm9 = vcmp.ne.s16.totalorder %v20268_v17, 0  ;;  %6034 = vperm.xlu1 %8402, %v5245_v37   ;;  %v5283_v49 = vsel %vm4979_vm6, 1, %v18645_v5  ;;  %v4372_v57 = vsel %vm15807_vm14, 65537, %v18645_v5  ;;  %v20275_v2 = vrot.slane %v20274_v59, %v8769_v27 }
 0x38a   : > { %v20278_v29 = vrot.slane %v20254_v44, %v8772_v25  ;;  %vm6356_vm13 = vcmp.eq.s32.totalorder %v14705_v45, 1  ;;  %v6991_v36 = vsel %vm15913_vm12, %v509_v39, 0  ;;  %6148 = vperm.xlu0 %8401, %v5283_v49   ;;  %vm4942_vm14 = vcmp.ne.s32.totalorder %v4638_v55, 0  ;;  %v15970_v39 = vpop.permute.xlu1 %5854  ;;  %v482_v55 = vld [vmem:[%s11729_s17 + $0x224] sm:$0xf] }
 0x38b   : > { %vm15948_vm8 = vcmp.ne.s16.totalorder %v20275_v2, 0  ;;  %v4676_v15 = vunpack.c.l.b16 %v4372_v57  ;;  %v7719_v17 = vsel %vm341_vm11, %v7266_v40, 0.0  ;;  %v7295_v37 = vunpack.c.l.bf16 %v6990_v35  ;;  %v510_v57 = vld [vmem:[%s11729_s17 + $0x294] sm:$0xf] }
 0x38c   : > { %vm15955_vm0 = vcmp.ne.s16.totalorder %v20278_v29, 0  ;;  %vm6384_vm10 = vcmp.eq.s32.totalorder %v15511_v21, 1  ;;  %v4335_v44 = vsel %vm15842_vm2, 65537, %v18645_v5  ;;  %v6963_v2 = vsel %vm15936_vm4, %v481_v62, 0  ;;  %vm15983_vm2 = vmpackc.low %vm6356_vm13, %vm6356_vm13 }
 0x38d   : > { %v7781_v29 = vadd.f32 %v7780_v46, %v7779_v48  ;;  %v5246_v26 = vsel %vm4942_vm14, 1, %v18645_v5  ;;  %vm4980_vm12 = vcmp.ne.s32.totalorder %v4676_v15, 0  ;;  %v20281_v40 = vrot.slane %v20267_v3, %v8772_v25  ;;  %vm16003_vm4 = vmpackc.low %vm6384_vm10, %vm6384_vm10  ;;  %v20289_v15 = vld [vmem:[#allocation24_spill] sm:$0xff] }
 0x38e   : > { %v7296_v48 = vunpack.c.l.bf16 %v6991_v36  ;;  %vm6385_vm6 = vcmp.eq.s32.totalorder %v15552_v20, 1  ;;  %6037 = vperm.xlu1 %8402, %v5246_v26   ;;  %v5284_v62 = vsel %vm4980_vm12, 1, %v18645_v5  ;;  %v4639_v23 = vunpack.c.l.b16 %v4335_v44 }
 0x38f   : > { %vm15975_vm5 = vcmp.ne.s16.totalorder %v20281_v40, 0  ;;  %v15991_v3 = vadd.f32 %v15697_v43, %v15627_v18  ;;  %v20286_v45 = vsel %vm15783_vm1, %v15778_v41, 0  ;;  %v7720_v49 = vadd.f32 %v7719_v17, %v7718_v34  ;;  %6151 = vperm.xlu0 %8401, %v5284_v62   ;;  %v16010_v43 = vpop.permute.xlu0 %5857  ;;  %v511_v40 = vld [vmem:[%s11729_s17 + $0x298] sm:$0xf] }
 0x390   : > { %v15997_v46 = vunpack.c.l.bf16 %v20286_v45  ;;  %v4373_v18 = vsel %vm15863_vm7, 65537, %v18645_v5  ;;  %v7268_v41 = vunpack.c.l.bf16 %v6963_v2  ;;  %v7782_v8 = vsel %vm341_vm11, %v7295_v37, 0.0  ;;  %vm16027_vm7 = vmpackc.low %vm6385_vm6, %vm6385_vm6  ;;  %v484_v37 = vld [vmem:[%s11729_s17 + $0x22c] sm:$0xf] }
 0x391   : > { %vm4943_vm1 = vcmp.ne.s32.totalorder %v4639_v23, 0  ;;  %v4677_v34 = vunpack.c.l.b16 %v4373_v18  ;;  %v20290_v21 = vrot.slane %v20289_v15, %v8769_v27  ;;  %v7721_v44 = vsel %vm341_vm11, %v7267_v9, 0.0 }
 0x392   : > { %v6964_v1 = vsel %vm15983_vm2, %v482_v55, 0  ;;  %v7783_v26 = vadd.f32 %v7782_v8, %v7781_v29  ;;  %v5247_v2 = vsel %vm4943_vm1, 1, %v18645_v5  ;;  %v7784_v62 = vsel %vm341_vm11, %v7296_v48, 0.0  ;;  %v16038_v55 = vpop.permute.xlu1 %5860 }
 0x393   : > { %vm16016_vm13 = vcmp.ne.s16.totalorder %v20290_v21, 0  ;;  %v6992_v9 = vsel %vm16003_vm4, %v510_v57, 0  ;;  %6040 = vperm.xlu1 %8402, %v5247_v2   ;;  %vm4981_vm14 = vcmp.ne.s32.totalorder %v4677_v34, 0  ;;  %v4336_v29 = vsel %vm15898_vm15, 65537, %v18645_v5  ;;  %v16049_v57 = vpop.permute.xlu0 %5863  ;;  %vm16057_vm15 = vmpackc.low %vm6324_vm3, %vm6324_vm3  ;;  %v20300_v21 = vld [vmem:[#allocation57_spill] sm:$0xff] }
 0x394   : > { %v20295_v20 = vrot.slane %v20274_v59, %v8772_v25  ;;  %v7722_v23 = vadd.f32 %v7721_v44, %v7720_v49  ;;  %vm6357_vm12 = vcmp.eq.s32.totalorder %v14752_v28, 1  ;;  %v5285_v48 = vsel %vm4981_vm14, 1, %v18645_v5  ;;  %v513_v28 = vld [vmem:[%s11729_s17 + $0x2a0] sm:$0xf] }
 0x395   : > { %v4640_v45 = vunpack.c.l.b16 %v4336_v29  ;;  %v7723_v36 = vsel %vm341_vm11, %v7268_v41, 0.0  ;;  %v6993_v49 = vsel %vm16027_vm7, %v511_v40, 0  ;;  %vm6386_vm2 = vcmp.eq.s32.totalorder %v15566_v19, 1  ;;  %6154 = vperm.xlu0 %8401, %v5285_v48   ;;  %v483_v40 = vld [vmem:[%s11729_s17 + $0x228] sm:$0xf]  ;;  %vm16079_vm4 = vmpackc.low %vm6357_vm12, %vm6357_vm12 }
 0x396   : > { %vm16043_vm10 = vcmp.ne.s16.totalorder %v20295_v20, 0  ;;  %v4299_v18 = vsel %vm15922_vm9, 65537, %v18645_v5  ;;  %v7785_v8 = vadd.f32 %v7784_v62, %v7783_v26  ;;  %v7297_v47 = vunpack.c.l.bf16 %v6992_v9  ;;  %v16091_v62 = vpop.permute.xlu1 %5866  ;;  %v512_v20 = vld [vmem:[%s11729_s17 + $0x29c] sm:$0xf]  ;;  %vm16100_vm1 = vmpackc.low %vm6386_vm2, %vm6386_vm2 }
 0x397   : > { %vm4944_vm6 = vcmp.ne.s32.totalorder %v4640_v45, 0  ;;  %v4603_v34 = vunpack.c.l.b16 %v4299_v18  ;;  %v20301_v44 = vrot.slane %v20300_v21, %v8769_v27  ;;  %vm6387_vm9 = vcmp.eq.s32.totalorder %v15593_v16, 1  ;;  %20306 = vst [vmem:[#allocation52_spill] sm:$0xff] %v16091_v62 }
 0x398   : > { %v5248_v54 = vsel %vm4944_vm6, 1, %v18645_v5  ;;  %v4374_v26 = vsel %vm15955_vm0, 65537, %v18645_v5  ;;  %v4337_v2 = vsel %vm15948_vm8, 65537, %v18645_v5  ;;  %v7269_v9 = vunpack.c.l.bf16 %v6964_v1  ;;  %vm16123_vm12 = vmpackc.low %vm6387_vm9, %vm6387_vm9 }
 0x399   : > { %vm16071_vm3 = vcmp.ne.s16.totalorder %v20301_v44, 0  ;;  %v7298_v29 = vunpack.c.l.bf16 %v6993_v49  ;;  %6043 = vperm.xlu1 %8402, %v5248_v54   ;;  %vm4907_vm0 = vcmp.ne.s32.totalorder %v4603_v34, 0  ;;  %vm6325_vm8 = vcmp.eq.s32.totalorder %v20309_v13, 1  ;;  %v16107_v49 = vpop.permute.xlu0 %5869  ;;  %v485_v13 = vld [vmem:[%s11729_s17 + $0x230] sm:$0xf] }
 0x39a   : > { %vm6358_vm7 = vcmp.eq.s32.totalorder %v14754_v61, 1  ;;  %v5211_v48 = vsel %vm4907_vm0, 1, %v18645_v5  ;;  %v4678_v45 = vunpack.c.l.b16 %v4374_v26  ;;  %v4641_v1 = vunpack.c.l.b16 %v4337_v2  ;;  %20310 = vst [vmem:[#allocation30_spill] sm:$0xff] %v16107_v49 }
 0x39b   : > { %v20311_v19 = vrot.slane %v20289_v15, %v8772_v25  ;;  %v7724_v44 = vadd.f32 %v7723_v36, %v7722_v23  ;;  %v6965_v34 = vsel %vm16079_vm4, %v483_v40, 0  ;;  %v7786_v54 = vsel %vm341_vm11, %v7297_v47, 0.0  ;;  %5932 = vperm.xlu0 %8401, %v5211_v48   ;;  %v16132_v36 = vpop.permute.xlu1 %5872  ;;  %v20317_v47 = vld [vmem:[#allocation46_spill] sm:$0xff] }
 0x39c   : > { %v4300_v15 = vsel %vm15975_vm5, 65537, %v18645_v5  ;;  %v7787_v2 = vadd.f32 %v7786_v54, %v7785_v8  ;;  %v6994_v23 = vsel %vm16100_vm1, %v512_v20, 0  ;;  %vm4982_vm2 = vcmp.ne.s32.totalorder %v4678_v45, 0  ;;  %20316 = vst [vmem:[#allocation80_spill] sm:$0xff] %v16132_v36  ;;  %vm16145_vm5 = vmpackc.low %vm6358_vm7, %vm6358_vm7  ;;  %v20377_v36 = vld [vmem:[#allocation72_spill] sm:$0xff] }
 0x39d   : > { %vm16112_vm14 = vcmp.ne.s16.totalorder %v20311_v19, 0  ;;  %vm4945_vm6 = vcmp.ne.s32.totalorder %v4641_v1, 0  ;;  %v20318_v16 = vrot.slane %v20317_v47, %v8769_v27  ;;  %v7788_v8 = vsel %vm341_vm11, %v7298_v29, 0.0  ;;  %v16158_v19 = vpop.permute.xlu0 %5875 }
 0x39e   : > { %vm6388_vm9 = vcmp.eq.s32.totalorder %v15607_v6, 1  ;;  %v5286_v20 = vsel %vm4982_vm2, 1, %v18645_v5  ;;  %v4604_v30 = vunpack.c.l.b16 %v4300_v15  ;;  %v7270_v48 = vunpack.c.l.bf16 %v6965_v34  ;;  %20323 = vst [vmem:[#allocation29_spill] sm:$0xff] %v16158_v19  ;;  %v539_v19 = vld [vmem:[%s11729_s17 + $0x308] sm:$0xf] }
 0x39f   : > { %vm16137_vm4 = vcmp.ne.s16.totalorder %v20318_v16, 0  ;;  %v6995_v45 = vsel %vm16123_vm12, %v513_v28, 0  ;;  %6157 = vperm.xlu1 %8402, %v5286_v20   ;;  %v5249_v61 = vsel %vm4945_vm6, 1, %v18645_v5  ;;  %v4375_v1 = vsel %vm16016_vm13, 65537, %v18645_v5  ;;  %v514_v16 = vld [vmem:[%s11729_s17 + $0x2a4] sm:$0xf]  ;;  %vm16174_vm13 = vmpackc.low %vm6388_vm9, %vm6388_vm9 }
 0x3a0   : > { %v20324_v29 = vrot.slane %v20300_v21, %v8772_v25  ;;  %v7725_v34 = vsel %vm341_vm11, %v7269_v9, 0.0  ;;  %v7299_v26 = vunpack.c.l.bf16 %v6994_v23  ;;  %6046 = vperm.xlu0 %8401, %v5249_v61   ;;  %vm4908_vm0 = vcmp.ne.s32.totalorder %v4604_v30, 0  ;;  %v20329_v23 = vld [vmem:[#allocation25_spill] sm:$0xff] }
 0x3a1   : > { %v4679_v28 = vunpack.c.l.b16 %v4375_v1  ;;  %v6966_v15 = vsel %vm16145_vm5, %v484_v37, 0  ;;  %v7789_v17 = vadd.f32 %v7788_v8, %v7787_v2  ;;  %vm6389_vm7 = vcmp.eq.s32.totalorder %v15645_v50, 1  ;;  %v16194_v1 = vpop.permute.xlu1 %5878 }
 0x3a2   : > { %vm16163_vm1 = vcmp.ne.s16.totalorder %v20324_v29, 0  ;;  %v4338_v9 = vsel %vm16043_vm10, 65537, %v18645_v5  ;;  %v20330_v20 = vrot.slane %v20329_v23, %v8769_v27  ;;  %v7726_v6 = vadd.f32 %v7725_v34, %v7724_v44  ;;  %v16196_v29 = vpop.permute.xlu0 %5881  ;;  %v515_v34 = vld [vmem:[%s11729_s17 + $0x2a8] sm:$0xf]  ;;  %vm16206_vm6 = vmpackc.low %vm6389_vm7, %vm6389_vm7 }
 0x3a3   : > { %v7300_v37 = vunpack.c.l.bf16 %v6995_v45  ;;  %v5212_v35 = vsel %vm4908_vm0, 1, %v18645_v5  ;;  %vm4983_vm2 = vcmp.ne.s32.totalorder %v4679_v28, 0  ;;  %v7654_v8 = vsel %vm341_vm11, %v15997_v46, 0.0  ;;  %vm16226_vm0 = vmpackc.low %vm6325_vm8, %vm6325_vm8 }
 0x3a4   : > { %vm16185_vm12 = vcmp.ne.s16.totalorder %v20330_v20, 0  ;;  %v7727_v30 = vsel %vm341_vm11, %v7270_v48, 0.0  ;;  %5935 = vperm.xlu1 %8402, %v5212_v35   ;;  %v5287_v14 = vsel %vm4983_vm2, 1, %v18645_v5  ;;  %v4642_v61 = vunpack.c.l.b16 %v4338_v9  ;;  %v20333_v20 = vld [vmem:[#allocation19_spill] sm:$0xff]  ;;  %v16221_v9 = vld [vmem:[%s11729_s17 + $0x1a8] sm:$0xf] }
 0x3a5   : > { %vm6359_vm10 = vcmp.eq.s32.totalorder %v20333_v20, 1  ;;  %v7790_v44 = vsel %vm341_vm11, %v7299_v26, 0.0  ;;  %v6996_v45 = vsel %vm16174_vm13, %v514_v16, 0  ;;  %6160 = vperm.xlu0 %8401, %v5287_v14   ;;  %v4301_v48 = vsel %vm16071_vm3, 65537, %v18645_v5 }
 0x3a6   : > { %v20336_v26 = vrot.slane %v20317_v47, %v8772_v25  ;;  %v7271_v16 = vunpack.c.l.bf16 %v6966_v15  ;;  %v7791_v50 = vadd.f32 %v7790_v44, %v7789_v17  ;;  %vm4946_vm9 = vcmp.ne.s32.totalorder %v4642_v61, 0  ;;  %v20341_v15 = vld [vmem:[#allocation59_spill] sm:$0xff]  ;;  %vm16244_vm8 = vmpackc.low %vm6359_vm10, %vm6359_vm10  ;;  %v16265_v46 = vpop.permute.xlu0 %5887  ;;  %v540_v61 = vld [vmem:[%s11729_s17 + $0x30c] sm:$0xf] }
 0x3a7   : > { %v4605_v21 = vunpack.c.l.b16 %v4301_v48  ;;  %v7728_v41 = vadd.f32 %v7727_v30, %v7726_v6  ;;  %v7792_v47 = vsel %vm341_vm11, %v7300_v37, 0.0  ;;  %vm6390_vm3 = vcmp.eq.s32.totalorder %v15661_v42, 1  ;;  %v16253_v48 = vpop.permute.xlu1 %5884 }
 0x3a8   : > { %vm16216_vm5 = vcmp.ne.s16.totalorder %v20336_v26, 0  ;;  %v5250_v14 = vsel %vm4946_vm9, 1, %v18645_v5  ;;  %v20342_v17 = vrot.slane %v20341_v15, %v8769_v27  ;;  %v7301_v6 = vunpack.c.l.bf16 %v6996_v45 }
 0x3a9   : > { %v6997_v37 = vsel %vm16206_vm6, %v515_v34, 0  ;;  %6049 = vperm.xlu1 %8402, %v5250_v14   ;;  %vm4909_vm7 = vcmp.ne.s32.totalorder %v4605_v21, 0  ;;  %v4376_v30 = vsel %vm16112_vm14, 65537, %v18645_v5  ;;  %v16256_v20 = vadd.f32 %v7654_v8, %v15991_v3  ;;  %v516_v8 = vld [vmem:[%s11729_s17 + $0x2ac] sm:$0xf]  ;;  %v20371_v21 = vld [vmem:[#allocation90_spill] sm:$0xff] }
 0x3aa   : > { %vm16236_vm13 = vcmp.ne.s16.totalorder %v20342_v17, 0  ;;  %v20347_v26 = vsel %vm16057_vm15, %v16052_v38, 0  ;;  %v5213_v45 = vsel %vm4909_vm7, 1, %v18645_v5  ;;  %v4680_v34 = vunpack.c.l.b16 %v4376_v30  ;;  %vm16282_vm15 = vmpackc.low %vm6390_vm3, %vm6390_vm3 }
 0x3ab   : > { %v16262_v17 = vunpack.c.l.bf16 %v20347_v26  ;;  %v20348_v18 = vrot.slane %v20329_v23, %v8772_v25  ;;  %v7729_v38 = vsel %vm341_vm11, %v7271_v16, 0.0  ;;  %v7793_v59 = vadd.f32 %v7792_v47, %v7791_v50  ;;  %5938 = vperm.xlu0 %8401, %v5213_v45   ;;  %v20353_v50 = vld [vmem:[#allocation37_spill] sm:$0xff]  ;;  %v16305_v44 = vpop.permute.xlu1 %5890  ;;  %v545_v47 = vld [vmem:[%s11729_s17 + $0x320] sm:$0xf] }
 0x3ac   : > { %v4339_v23 = vsel %vm16137_vm4, 65537, %v18645_v5  ;;  %v6967_v30 = vsel %vm16244_vm8, %v485_v13, 0  ;;  %v7302_v26 = vunpack.c.l.bf16 %v6997_v37  ;;  %vm4984_vm2 = vcmp.ne.s32.totalorder %v4680_v34, 0  ;;  %v535_v34 = vld [vmem:[%s11729_s17 + $0x2f8] sm:$0xf] }
 0x3ad   : > { %vm16270_vm14 = vcmp.ne.s16.totalorder %v20348_v18, 0  ;;  %v4643_v16 = vunpack.c.l.b16 %v4339_v23  ;;  %v20354_v42 = vrot.slane %v20353_v50, %v8769_v27  ;;  %v16298_v18 = vadd.f32 %v7729_v38, %v7728_v41  ;;  %v16316_v23 = vpop.permute.xlu0 %5893 }
 0x3ae   : > { %v7794_v45 = vsel %vm341_vm11, %v7301_v6, 0.0  ;;  %v5288_v40 = vsel %vm4984_vm2, 1, %v18645_v5  ;;  %v4302_v13 = vsel %vm16163_vm1, 65537, %v18645_v5  ;;  %v6998_v37 = vsel %vm16282_vm15, %v516_v8, 0 }
 0x3af   : > { %vm16294_vm10 = vcmp.ne.s16.totalorder %v20354_v42, 0  ;;  %vm6391_vm4 = vcmp.eq.s32.totalorder %v15693_v10, 1  ;;  %6163 = vperm.xlu1 %8402, %v5288_v40   ;;  %vm4947_vm6 = vcmp.ne.s32.totalorder %v4643_v16, 0  ;;  %v4606_v41 = vunpack.c.l.b16 %v4302_v13  ;;  %v16338_v40 = vpop.permute.xlu1 %5896 }
 0x3b0   : > { %v7795_v38 = vadd.f32 %v7794_v45, %v7793_v59  ;;  %v5251_v6 = vsel %vm4947_vm6, 1, %v18645_v5  ;;  %v4377_v54 = vsel %vm16185_vm12, 65537, %v18645_v5  ;;  %vm6409_vm1 = vcmp.eq.s32.totalorder %v16194_v1, 1  ;;  %v536_v59 = vld [vmem:[%s11729_s17 + $0x2fc] sm:$0xf]  ;;  %vm16332_vm12 = vmpackc.low %vm6391_vm4, %vm6391_vm4 }
 0x3b1   : > { %v16318_v8 = vunpack.c.l.bf16 %v6967_v30  ;;  %v7796_v14 = vsel %vm341_vm11, %v7302_v26, 0.0  ;;  %6052 = vperm.xlu0 %8401, %v5251_v6   ;;  %vm4910_vm9 = vcmp.ne.s32.totalorder %v4606_v41, 0  ;;  %v4681_v16 = vunpack.c.l.b16 %v4377_v54  ;;  %vm6713_vm3 = vmpackc.low %vm6409_vm1, %vm6409_vm1 }
 0x3b2   : > { %v20357_v42 = vrot.slane %v20341_v15, %v8772_v25  ;;  %v7303_v1 = vunpack.c.l.bf16 %v6998_v37  ;;  %v5214_v26 = vsel %vm4910_vm9, 1, %v18645_v5  ;;  %v7017_v45 = vsel %vm6713_vm3, %v535_v34, 0  ;;  %v517_v15 = vld [vmem:[%s11729_s17 + $0x2b0] sm:$0xf]  ;;  %v20362_v37 = vld [vmem:[#allocation26_spill] sm:$0xff] }
 0x3b3   : > { %vm6410_vm7 = vcmp.eq.s32.totalorder %v16196_v29, 1  ;;  %vm6392_vm15 = vcmp.eq.s32.totalorder %v15728_v53, 1  ;;  %5941 = vperm.xlu1 %8402, %v5214_v26   ;;  %vm4985_vm2 = vcmp.ne.s32.totalorder %v4681_v16, 0  ;;  %v7322_v13 = vunpack.c.l.bf16 %v7017_v45  ;;  %v16356_v26 = vpop.permute.xlu0 %5899  ;;  %v16376_v30 = vpop.permute.xlu1 %5902 }
 0x3b4   : > { %vm16325_vm8 = vcmp.ne.s16.totalorder %v20357_v42, 0  ;;  %vm6714_vm6 = vmpackc.low %vm6410_vm7, %vm6410_vm7  ;;  %v4340_v10 = vsel %vm16216_vm5, 65537, %v18645_v5  ;;  %v20363_v41 = vrot.slane %v20362_v37, %v8769_v27  ;;  %v16352_v29 = vadd.f32 %v7796_v14, %v7795_v38  ;;  %v537_v42 = vld [vmem:[%s11729_s17 + $0x300] sm:$0xf] }
 0x3b5   : > { %v5289_v6 = vsel %vm4985_vm2, 1, %v18645_v5  ;;  %v7018_v54 = vsel %vm6714_vm6, %v536_v59, 0  ;;  %v4644_v16 = vunpack.c.l.b16 %v4340_v10  ;;  %v7842_v28 = vsel %vm341_vm11, %v7322_v13, 0.0  ;;  %v538_v59 = vld [vmem:[%s11729_s17 + $0x304] sm:$0xf]  ;;  %vm16399_vm2 = vmpackc.low %vm6392_vm15, %vm6392_vm15 }
 0x3b6   : > { %vm16348_vm4 = vcmp.ne.s16.totalorder %v20363_v41, 0  ;;  %6166 = vperm.xlu0 %8401, %v5289_v6   ;;  %v7323_v45 = vunpack.c.l.bf16 %v7018_v54  ;;  %v4303_v41 = vsel %vm16236_vm13, 65537, %v18645_v5  ;;  %vm6411_vm5 = vcmp.eq.s32.totalorder %v16253_v48, 1 }
 0x3b7   : > { %v6999_v38 = vsel %vm16332_vm12, %v517_v15, 0  ;;  %vm4948_vm1 = vcmp.ne.s32.totalorder %v4644_v16, 0  ;;  %v4607_v14 = vunpack.c.l.b16 %v4303_v41  ;;  %vm6715_vm9 = vmpackc.low %vm6411_vm5, %vm6411_vm5  ;;  %vm6412_vm3 = vcmp.eq.s32.totalorder %v16265_v46, 1  ;;  %v544_v46 = vld [vmem:[%s11729_s17 + $0x31c] sm:$0xf] }
 0x3b8   : > { %v7843_v10 = vsel %vm341_vm11, %v7323_v45, 0.0  ;;  %v5252_v13 = vsel %vm4948_vm1, 1, %v18645_v5  ;;  %v7019_v6 = vsel %vm6715_vm9, %v537_v42, 0  ;;  %vm16369_vm7 = vmpackc.low %vm6412_vm3, %vm6412_vm3  ;;  %v4378_v48 = vsel %vm16270_vm14, 65537, %v18645_v5  ;;  %v16386_v45 = vpop.permute.xlu0 %5905 }
 0x3b9   : > { %v20368_v15 = vrot.slane %v20353_v50, %v8772_v25  ;;  %v7798_v54 = vsel %vm341_vm11, %v7303_v1, 0.0  ;;  %v7844_v16 = vadd.f32 %v7843_v10, %v7842_v28  ;;  %6055 = vperm.xlu1 %8402, %v5252_v13   ;;  %vm4911_vm12 = vcmp.ne.s32.totalorder %v4607_v14, 0  ;;  %v518_v50 = vld [vmem:[%s11729_s17 + $0x2b4] sm:$0xf] }
 0x3ba   : > { %v7324_v42 = vunpack.c.l.bf16 %v7019_v6  ;;  %v20372_v41 = vrot.slane %v20371_v21, %v8769_v27  ;;  %v5215_v28 = vsel %vm4911_vm12, 1, %v18645_v5  ;;  %v7020_v14 = vsel %vm16369_vm7, %v538_v59, 0 }
 0x3bb   : > { %vm16381_vm13 = vcmp.ne.s16.totalorder %v20368_v15, 0  ;;  %v4682_v10 = vunpack.c.l.b16 %v4378_v48  ;;  %v4341_v13 = vsel %vm16294_vm10, 65537, %v18645_v5  ;;  %v7304_v6 = vunpack.c.l.bf16 %v6999_v38  ;;  %5944 = vperm.xlu0 %8401, %v5215_v28   ;;  %v16428_v48 = vpop.permute.xlu1 %5908 }
 0x3bc   : > { %vm16391_vm14 = vcmp.ne.s16.totalorder %v20372_v41, 0  ;;  %v7845_v53 = vsel %vm341_vm11, %v7324_v42, 0.0  ;;  %v7325_v15 = vunpack.c.l.bf16 %v7020_v14  ;;  %v4645_v41 = vunpack.c.l.b16 %v4341_v13  ;;  %v16438_v1 = vpop.permute.xlu0 %5911 }
 0x3bd   : > { %v20378_v49 = vrot.slane %v20377_v36, %v8769_v27  ;;  %v20381_v59 = vrot.slane %v20362_v37, %v8772_v25  ;;  %v7846_v38 = vadd.f32 %v7845_v53, %v7844_v16  ;;  %vm4986_vm10 = vcmp.ne.s32.totalorder %v4682_v10, 0  ;;  %v541_v53 = vld [vmem:[%s11729_s17 + $0x310] sm:$0xf] }
 0x3be   : > { %vm6413_vm5 = vcmp.eq.s32.totalorder %v16305_v44, 1  ;;  %vm6414_vm1 = vcmp.eq.s32.totalorder %v16316_v23, 1  ;;  %v7847_v42 = vsel %vm341_vm11, %v7325_v15, 0.0  ;;  %v5290_v37 = vsel %vm4986_vm10, 1, %v18645_v5 }
 0x3bf   : > { %vm16414_vm15 = vcmp.ne.s16.totalorder %v20378_v49, 0  ;;  %vm16421_vm6 = vcmp.ne.s16.totalorder %v20381_v59, 0  ;;  %v7000_v49 = vsel %vm16399_vm2, %v518_v50, 0  ;;  %vm4949_vm9 = vcmp.ne.s32.totalorder %v4645_v41, 0  ;;  %vm6717_vm3 = vmpackc.low %vm6413_vm5, %vm6413_vm5  ;;  %6169 = vperm.xlu1 %8402, %v5290_v37  }
 0x3c0   : > { %v7848_v28 = vadd.f32 %v7847_v42, %v7846_v38  ;;  %v5253_v44 = vsel %vm4949_vm9, 1, %v18645_v5  ;;  %v7021_v16 = vsel %vm6717_vm3, %v539_v19, 0  ;;  %vm6718_vm7 = vmpackc.low %vm6414_vm1, %vm6414_vm1  ;;  %v4304_v23 = vsel %vm16325_vm8, 65537, %v18645_v5  ;;  %v16466_v37 = vpop.permute.xlu0 %5917  ;;  %v20410_v19 = vld [vmem:[#allocation68_spill] sm:$0xff] }
 0x3c1   : > { %v16441_v50 = vadd.f32 %v7798_v54, %v16352_v29  ;;  %6058 = vperm.xlu0 %8401, %v5253_v44   ;;  %v7326_v14 = vunpack.c.l.bf16 %v7021_v16  ;;  %v7022_v10 = vsel %vm6718_vm7, %v540_v61, 0  ;;  %v4608_v13 = vunpack.c.l.b16 %v4304_v23  ;;  %v542_v29 = vld [vmem:[%s11729_s17 + $0x314] sm:$0xf]  ;;  %v16457_v54 = vpop.permute.xlu1 %5914 }
 0x3c2   : > { %v20384_v15 = vrot.slane %v20371_v21, %v8772_v25  ;;  %v7327_v41 = vunpack.c.l.bf16 %v7022_v10  ;;  %v4379_v2 = vsel %vm16348_vm4, 65537, %v18645_v5  ;;  %vm6415_vm8 = vcmp.eq.s32.totalorder %v16338_v40, 1 }
 0x3c3   : > { %vm6416_vm2 = vcmp.eq.s32.totalorder %v16356_v26, 1  ;;  %v16459_v59 = vunpack.c.l.bf16 %v7000_v49  ;;  %v7849_v21 = vsel %vm341_vm11, %v7326_v14, 0.0  ;;  %vm4912_vm10 = vcmp.ne.s32.totalorder %v4608_v13, 0  ;;  %vm6719_vm5 = vmpackc.low %vm6415_vm8, %vm6415_vm8  ;;  %v20387_v26 = vld [vmem:[#allocation27_spill] sm:$0xff] }
 0x3c4   : > { %vm16447_vm12 = vcmp.ne.s16.totalorder %v20384_v15, 0  ;;  %v4683_v38 = vunpack.c.l.b16 %v4379_v2  ;;  %v16463_v61 = vsel %vm341_vm11, %v7304_v6, 0.0  ;;  %v7850_v42 = vadd.f32 %v7849_v21, %v7848_v28  ;;  %vm6720_vm4 = vmpackc.low %vm6416_vm2, %vm6416_vm2 }
 0x3c5   : > { %v5216_v34 = vsel %vm4912_vm10, 1, %v18645_v5  ;;  %v7023_v40 = vsel %vm6719_vm5, %v541_v53, 0  ;;  %v20388_v49 = vrot.slane %v20387_v26, %v8769_v27  ;;  %v7851_v16 = vsel %vm341_vm11, %v7327_v41, 0.0  ;;  %v543_v41 = vld [vmem:[%s11729_s17 + $0x318] sm:$0xf]  ;;  %v16493_v21 = vpop.permute.xlu1 %5920 }
 0x3c6   : > { %5947 = vperm.xlu1 %8402, %v5216_v34   ;;  %vm4987_vm9 = vcmp.ne.s32.totalorder %v4683_v38, 0  ;;  %v7328_v6 = vunpack.c.l.bf16 %v7023_v40  ;;  %v7024_v28 = vsel %vm6720_vm4, %v542_v29, 0  ;;  %v20391_v23 = vrot.slane %v20377_v36, %v8772_v25  ;;  %v16498_v40 = vpop.permute.xlu0 %5923 }
 0x3c7   : > { %vm16471_vm1 = vcmp.ne.s16.totalorder %v20388_v49, 0  ;;  %v7852_v10 = vadd.f32 %v7851_v16, %v7850_v42  ;;  %v5291_v13 = vsel %vm4987_vm9, 1, %v18645_v5  ;;  %v7329_v53 = vunpack.c.l.bf16 %v7024_v28  ;;  %v20394_v49 = vld [vmem:[#allocation58_spill] sm:$0xff] }
 0x3c8   : > { %vm16479_vm3 = vcmp.ne.s16.totalorder %v20391_v23, 0  ;;  %v4342_v15 = vsel %vm16381_vm13, 65537, %v18645_v5  ;;  %6172 = vperm.xlu0 %8401, %v5291_v13   ;;  %v7853_v2 = vsel %vm341_vm11, %v7328_v6, 0.0  ;;  %v4305_v36 = vsel %vm16391_vm14, 65537, %v18645_v5 }
 0x3c9   : > { %v4646_v29 = vunpack.c.l.b16 %v4342_v15  ;;  %vm6417_vm7 = vcmp.eq.s32.totalorder %v16376_v30, 1  ;;  %v7854_v38 = vadd.f32 %v7853_v2, %v7852_v10  ;;  %v7855_v42 = vsel %vm341_vm11, %v7329_v53, 0.0 }
 0x3ca   : > { %v4609_v34 = vunpack.c.l.b16 %v4305_v36  ;;  %vm6721_vm8 = vmpackc.low %vm6417_vm7, %vm6417_vm7  ;;  %vm6418_vm13 = vcmp.eq.s32.totalorder %v16386_v45, 1  ;;  %v20395_v16 = vrot.slane %v20394_v49, %v8769_v27  ;;  %v4380_v45 = vsel %vm16421_vm6, 65537, %v18645_v5 }
 0x3cb   : > { %vm4950_vm14 = vcmp.ne.s32.totalorder %v4646_v29, 0  ;;  %v7025_v30 = vsel %vm6721_vm8, %v543_v41, 0  ;;  %vm16507_vm10 = vmpackc.low %vm6418_vm13, %vm6418_vm13  ;;  %v4343_v28 = vsel %vm16414_vm15, 65537, %v18645_v5  ;;  %v7856_v23 = vadd.f32 %v7855_v42, %v7854_v38  ;;  %v20400_v29 = vld [vmem:[#allocation8_spill] sm:$0xff] }
 0x3cc   : > { %vm16503_vm2 = vcmp.ne.s16.totalorder %v20395_v16, 0  ;;  %v5254_v10 = vsel %vm4950_vm14, 1, %v18645_v5  ;;  %vm4913_vm5 = vcmp.ne.s32.totalorder %v4609_v34, 0  ;;  %v7330_v13 = vunpack.c.l.bf16 %v7025_v30  ;;  %v546_v16 = vld [vmem:[%s11729_s17 + $0x324] sm:$0xf]  ;;  %v16540_v30 = vpop.permute.xlu1 %5926 }
 0x3cd   : > { %6061 = vperm.xlu1 %8402, %v5254_v10   ;;  %v5217_v53 = vsel %vm4913_vm5, 1, %v18645_v5  ;;  %v7026_v15 = vsel %vm16507_vm10, %v544_v46, 0  ;;  %v4684_v41 = vunpack.c.l.b16 %v4380_v45  ;;  %v4647_v2 = vunpack.c.l.b16 %v4343_v28  ;;  %v16545_v45 = vpop.permute.xlu0 %5929 }
 0x3ce   : > { %v20401_v36 = vrot.slane %v20400_v29, %v8769_v27  ;;  %v20404_v38 = vrot.slane %v20387_v26, %v8772_v25  ;;  %5950 = vperm.xlu0 %8401, %v5217_v53   ;;  %v7857_v34 = vsel %vm341_vm11, %v7330_v13, 0.0  ;;  %v7331_v46 = vunpack.c.l.bf16 %v7026_v15 }
 0x3cf   : > { %vm6419_vm4 = vcmp.eq.s32.totalorder %v16428_v48, 1  ;;  %vm6420_vm9 = vcmp.eq.s32.totalorder %v16438_v1, 1  ;;  %v7858_v6 = vadd.f32 %v7857_v34, %v7856_v23  ;;  %vm4988_vm7 = vcmp.ne.s32.totalorder %v4684_v41, 0 }
 0x3d0   : > { %vm16525_vm6 = vcmp.ne.s16.totalorder %v20401_v36, 0  ;;  %vm16532_vm15 = vcmp.ne.s16.totalorder %v20404_v38, 0  ;;  %vm4951_vm8 = vcmp.ne.s32.totalorder %v4647_v2, 0  ;;  %vm6723_vm13 = vmpackc.low %vm6419_vm4, %vm6419_vm4  ;;  %v4306_v26 = vsel %vm16447_vm12, 65537, %v18645_v5  ;;  %v547_v38 = vld [vmem:[%s11729_s17 + $0x328] sm:$0xf] }
 0x3d1   : > { %v7859_v28 = vsel %vm341_vm11, %v7331_v46, 0.0  ;;  %v5292_v48 = vsel %vm4988_vm7, 1, %v18645_v5  ;;  %v5255_v1 = vsel %vm4951_vm8, 1, %v18645_v5  ;;  %v7027_v10 = vsel %vm6723_vm13, %v545_v47, 0  ;;  %vm6724_vm14 = vmpackc.low %vm6420_vm9, %vm6420_vm9  ;;  %v548_v46 = vld [vmem:[%s11729_s17 + $0x32c] sm:$0xf] }
 0x3d2   : > { %v20407_v23 = vrot.slane %v20394_v49, %v8772_v25  ;;  %v20411_v53 = vrot.slane %v20410_v19, %v8769_v27  ;;  %v7860_v41 = vadd.f32 %v7859_v28, %v7858_v6  ;;  %6175 = vperm.xlu1 %8402, %v5292_v48   ;;  %v7332_v2 = vunpack.c.l.bf16 %v7027_v10  ;;  %6064 = vperm.xlu0 %8401, %v5255_v1  }
 0x3d3   : > { %v7028_v36 = vsel %vm6724_vm14, %v546_v16, 0  ;;  %v4610_v47 = vunpack.c.l.b16 %v4306_v26  ;;  %v4381_v49 = vsel %vm16471_vm1, 65537, %v18645_v5  ;;  %vm6421_vm5 = vcmp.eq.s32.totalorder %v16457_v54, 1 }
 0x3d4   : > { %vm16553_vm10 = vcmp.ne.s16.totalorder %v20407_v23, 0  ;;  %vm16560_vm12 = vcmp.ne.s16.totalorder %v20411_v53, 0  ;;  %v7333_v34 = vunpack.c.l.bf16 %v7028_v36  ;;  %vm6422_vm4 = vcmp.eq.s32.totalorder %v16466_v37, 1  ;;  %v16571_v23 = vpop.permute.xlu1 %5992  ;;  %vm6725_vm7 = vmpackc.low %vm6421_vm5, %vm6421_vm5  ;;  %v16579_v37 = vpop.permute.xlu0 %5995 }
 0x3d5   : > { %v7861_v6 = vsel %vm341_vm11, %v7332_v2, 0.0  ;;  %vm4914_vm9 = vcmp.ne.s32.totalorder %v4610_v47, 0  ;;  %v4685_v28 = vunpack.c.l.b16 %v4381_v49  ;;  %v4344_v16 = vsel %vm16479_vm3, 65537, %v18645_v5  ;;  %vm6726_vm1 = vmpackc.low %vm6422_vm4, %vm6422_vm4 }
 0x3d6   : > { %v7862_v26 = vadd.f32 %v7861_v6, %v7860_v41  ;;  %v7863_v44 = vsel %vm341_vm11, %v7333_v34, 0.0  ;;  %v5218_v54 = vsel %vm4914_vm9, 1, %v18645_v5  ;;  %v7029_v48 = vsel %vm6725_vm7, %v547_v38, 0  ;;  %v549_v34 = vld [vmem:[%s11729_s17 + $0x330] sm:$0xf] }
 0x3d7   : > { %v20414_v1 = vrot.slane %v20400_v29, %v8772_v25  ;;  %5953 = vperm.xlu1 %8402, %v5218_v54   ;;  %vm4989_vm3 = vcmp.ne.s32.totalorder %v4685_v28, 0  ;;  %v7334_v14 = vunpack.c.l.bf16 %v7029_v48  ;;  %v7030_v53 = vsel %vm6726_vm1, %v548_v46, 0  ;;  %v550_v46 = vld [vmem:[%s11729_s17 + $0x334] sm:$0xf] }
 0x3d8   : > { %v4648_v41 = vunpack.c.l.b16 %v4344_v16  ;;  %v7864_v2 = vadd.f32 %v7863_v44, %v7862_v26  ;;  %v5293_v36 = vsel %vm4989_vm3, 1, %v18645_v5  ;;  %v7335_v47 = vunpack.c.l.bf16 %v7030_v53  ;;  %v16593_v29 = vpop.permute.xlu1 %6106  ;;  %v16601_v3 = vpop.permute.xlu0 %6109  ;;  %v20417_v44 = vld [vmem:[#allocation91_spill] sm:$0xff] }
 0x3d9   : > { %vm16584_vm8 = vcmp.ne.s16.totalorder %v20414_v1, 0  ;;  %v4307_v38 = vsel %vm16503_vm2, 65537, %v18645_v5  ;;  %6178 = vperm.xlu0 %8401, %v5293_v36   ;;  %v7865_v49 = vsel %vm341_vm11, %v7334_v14, 0.0  ;;  %vm6423_vm14 = vcmp.eq.s32.totalorder %v16493_v21, 1  ;;  %v20421_v36 = vld [vmem:[#allocation43_spill] sm:$0xff] }
 0x3da   : > { %vm4952_vm13 = vcmp.ne.s32.totalorder %v4648_v41, 0  ;;  %v4611_v6 = vunpack.c.l.b16 %v4307_v38  ;;  %v7866_v28 = vadd.f32 %v7865_v49, %v7864_v2  ;;  %v7867_v16 = vsel %vm341_vm11, %v7335_v47, 0.0  ;;  %vm6727_vm5 = vmpackc.low %vm6423_vm14, %vm6423_vm14 }
 0x3db   : > { %v5256_v26 = vsel %vm4952_vm13, 1, %v18645_v5  ;;  %vm6424_vm4 = vcmp.eq.s32.totalorder %v16498_v40, 1  ;;  %v20418_v54 = vrot.slane %v20417_v44, %v8769_v27  ;;  %v7031_v21 = vsel %vm6727_vm5, %v549_v34, 0 }
 0x3dc   : > { %6067 = vperm.xlu1 %8402, %v5256_v26   ;;  %vm4915_vm9 = vcmp.ne.s32.totalorder %v4611_v6, 0  ;;  %vm6728_vm7 = vmpackc.low %vm6424_vm4, %vm6424_vm4  ;;  %v4382_v1 = vsel %vm16532_vm15, 65537, %v18645_v5  ;;  %v4345_v40 = vsel %vm16525_vm6, 65537, %v18645_v5  ;;  %v7868_v14 = vadd.f32 %v7867_v16, %v7866_v28  ;;  %v551_v28 = vld [vmem:[%s11729_s17 + $0x338] sm:$0xf]  ;;  %v16634_v16 = vpop.permute.xlu1 %5998 }
 0x3dd   : > { %vm16606_vm2 = vcmp.ne.s16.totalorder %v20418_v54, 0  ;;  %v5219_v53 = vsel %vm4915_vm9, 1, %v18645_v5  ;;  %v7336_v41 = vunpack.c.l.bf16 %v7031_v21  ;;  %v7032_v2 = vsel %vm6728_vm7, %v550_v46, 0  ;;  %v552_v46 = vld [vmem:[%s11729_s17 + $0x33c] sm:$0xf] }
 0x3de   : > { %v20422_v47 = vrot.slane %v20421_v36, %v8769_v27  ;;  %v20425_v42 = vrot.slane %v20410_v19, %v8772_v25  ;;  %5956 = vperm.xlu0 %8401, %v5219_v53   ;;  %v7337_v62 = vunpack.c.l.bf16 %v7032_v2  ;;  %v4686_v49 = vunpack.c.l.b16 %v4382_v1 }
 0x3df   : > { %v4649_v6 = vunpack.c.l.b16 %v4345_v40  ;;  %vm6425_vm6 = vcmp.eq.s32.totalorder %v16540_v30, 1  ;;  %v7869_v26 = vsel %vm341_vm11, %v7336_v41, 0.0  ;;  %vm6426_vm13 = vcmp.eq.s32.totalorder %v16545_v45, 1  ;;  %v16648_v30 = vpop.permute.xlu0 %6112 }
 0x3e0   : > { %vm16620_vm1 = vcmp.ne.s16.totalorder %v20422_v47, 0  ;;  %vm16627_vm15 = vcmp.ne.s16.totalorder %v20425_v42, 0  ;;  %vm16637_vm3 = vmpackc.low %vm6425_vm6, %vm6425_vm6  ;;  %v4308_v19 = vsel %vm16553_vm10, 65537, %v18645_v5  ;;  %v4383_v21 = vsel %vm16560_vm12, 65537, %v18645_v5  ;;  %v573_v42 = vld [vmem:[%s11729_s17 + $0x390] sm:$0xf] }
 0x3e1   : > { %v7870_v1 = vadd.f32 %v7869_v26, %v7868_v14  ;;  %v7871_v40 = vsel %vm341_vm11, %v7337_v62, 0.0  ;;  %vm4990_vm14 = vcmp.ne.s32.totalorder %v4686_v49, 0  ;;  %vm4953_vm5 = vcmp.ne.s32.totalorder %v4649_v6, 0  ;;  %vm6730_vm4 = vmpackc.low %vm6426_vm13, %vm6426_vm13  ;;  %v574_v26 = vld [vmem:[%s11729_s17 + $0x394] sm:$0xf] }
 0x3e2   : > { %v5294_v45 = vsel %vm4990_vm14, 1, %v18645_v5  ;;  %v5257_v53 = vsel %vm4953_vm5, 1, %v18645_v5  ;;  %v7033_v13 = vsel %vm16637_vm3, %v551_v28, 0  ;;  %v7034_v41 = vsel %vm6730_vm4, %v552_v46, 0 }
 0x3e3   : > { %v7872_v15 = vadd.f32 %v7871_v40, %v7870_v1  ;;  %6181 = vperm.xlu1 %8402, %v5294_v45   ;;  %6070 = vperm.xlu0 %8401, %v5257_v53   ;;  %v7338_v2 = vunpack.c.l.bf16 %v7033_v13  ;;  %v7339_v47 = vunpack.c.l.bf16 %v7034_v41  ;;  %v4612_v14 = vunpack.c.l.b16 %v4308_v19  ;;  %v16671_v19 = vpop.permute.xlu1 %6001  ;;  %v16673_v1 = vpop.permute.xlu0 %6115 }
 0x3e4   : > { %v20430_v62 = vrot.slane %v20417_v44, %v8772_v25  ;;  %v4687_v6 = vunpack.c.l.b16 %v4383_v21  ;;  %vm6447_vm12 = vcmp.eq.s32.totalorder %v16571_v23, 1  ;;  %vm6448_vm9 = vcmp.eq.s32.totalorder %v16579_v37, 1  ;;  %v20433_v21 = vld [vmem:[#allocation69_spill] sm:$0xff] }
 0x3e5   : > { %v4346_v28 = vsel %vm16584_vm8, 65537, %v18645_v5  ;;  %v7873_v46 = vsel %vm341_vm11, %v7338_v2, 0.0  ;;  %v7875_v54 = vsel %vm341_vm11, %v7339_v47, 0.0  ;;  %vm4916_vm7 = vcmp.ne.s32.totalorder %v4612_v14, 0  ;;  %vm6751_vm6 = vmpackc.low %vm6447_vm12, %vm6447_vm12 }
 0x3e6   : > { %vm16659_vm10 = vcmp.ne.s16.totalorder %v20430_v62, 0  ;;  %v4650_v44 = vunpack.c.l.b16 %v4346_v28  ;;  %v20434_v23 = vrot.slane %v20433_v21, %v8769_v27  ;;  %v7874_v10 = vadd.f32 %v7873_v46, %v7872_v15  ;;  %vm6752_vm13 = vmpackc.low %vm6448_vm9, %vm6448_vm9  ;;  %v611_v62 = vld [vmem:[%s11729_s17 + $0x428] sm:$0xf] }
 0x3e7   : > { %v5220_v40 = vsel %vm4916_vm7, 1, %v18645_v5  ;;  %vm4991_vm8 = vcmp.ne.s32.totalorder %v4687_v6, 0  ;;  %v7055_v45 = vsel %vm6751_vm6, %v573_v42, 0  ;;  %v20437_v53 = vrot.slane %v20421_v36, %v8772_v25  ;;  %v20440_v6 = vld [vmem:[#allocation61_spill] sm:$0xff] }
 0x3e8   : > { %vm16678_vm3 = vcmp.ne.s16.totalorder %v20434_v23, 0  ;;  %5959 = vperm.xlu1 %8402, %v5220_v40   ;;  %v5295_v41 = vsel %vm4991_vm8, 1, %v18645_v5  ;;  %v7360_v2 = vunpack.c.l.bf16 %v7055_v45  ;;  %v7056_v47 = vsel %vm6752_vm13, %v574_v26, 0  ;;  %v16709_v23 = vpop.permute.xlu1 %6004  ;;  %v575_v45 = vld [vmem:[%s11729_s17 + $0x398] sm:$0xf] }
 0x3e9   : > { %vm16686_vm14 = vcmp.ne.s16.totalorder %v20437_v53, 0  ;;  %vm4954_vm5 = vcmp.ne.s32.totalorder %v4650_v44, 0  ;;  %v16691_v15 = vadd.f32 %v7875_v54, %v7874_v10  ;;  %6184 = vperm.xlu0 %8401, %v5295_v41   ;;  %v7361_v14 = vunpack.c.l.bf16 %v7056_v47  ;;  %v612_v44 = vld [vmem:[%s11729_s17 + $0x42c] sm:$0xf] }
 0x3ea   : > { %v5258_v42 = vsel %vm4954_vm5, 1, %v18645_v5  ;;  %v4309_v36 = vsel %vm16606_vm2, 65537, %v18645_v5  ;;  %v20441_v28 = vrot.slane %v20440_v6, %v8769_v27  ;;  %v7923_v26 = vsel %vm341_vm11, %v7360_v2, 0.0 }
 0x3eb   : > { %v4613_v54 = vunpack.c.l.b16 %v4309_v36  ;;  %vm6485_vm12 = vcmp.eq.s32.totalorder %v16593_v29, 1  ;;  %vm6486_vm9 = vcmp.eq.s32.totalorder %v16601_v3, 1  ;;  %v7924_v48 = vsel %vm341_vm11, %v7361_v14, 0.0  ;;  %v16720_v29 = vpop.permute.xlu0 %6118  ;;  %v613_v36 = vld [vmem:[%s11729_s17 + $0x430] sm:$0xf] }
 0x3ec   : > { %vm16701_vm4 = vcmp.ne.s16.totalorder %v20441_v28, 0  ;;  %vm6789_vm2 = vmpackc.low %vm6485_vm12, %vm6485_vm12  ;;  %v4384_v10 = vsel %vm16627_vm15, 65537, %v18645_v5  ;;  %v4347_v40 = vsel %vm16620_vm1, 65537, %v18645_v5  ;;  %vm6449_vm7 = vcmp.eq.s32.totalorder %v16634_v16, 1  ;;  %6073 = vperm.xlu1 %8402, %v5258_v42   ;;  %v20447_v28 = vld [vmem:[#allocation64_spill] sm:$0xff] }
 0x3ed   : > { %v7925_v3 = vadd.f32 %v7924_v48, %v7923_v26  ;;  %vm4917_vm6 = vcmp.ne.s32.totalorder %v4613_v54, 0  ;;  %v7093_v53 = vsel %vm6789_vm2, %v611_v62, 0  ;;  %vm6790_vm8 = vmpackc.low %vm6486_vm9, %vm6486_vm9  ;;  %v4688_v41 = vunpack.c.l.b16 %v4384_v10  ;;  %v16741_v10 = vpop.permute.xlu1 %6007 }
 0x3ee   : > { %v20444_v34 = vrot.slane %v20433_v21, %v8772_v25  ;;  %v5221_v38 = vsel %vm4917_vm6, 1, %v18645_v5  ;;  %v7398_v47 = vunpack.c.l.bf16 %v7093_v53  ;;  %v7094_v14 = vsel %vm6790_vm8, %v612_v44, 0  ;;  %vm6753_vm1 = vmpackc.low %vm6449_vm7, %vm6449_vm7 }
 0x3ef   : > { %v4651_v16 = vunpack.c.l.b16 %v4347_v40  ;;  %5962 = vperm.xlu0 %8401, %v5221_v38   ;;  %v7399_v42 = vunpack.c.l.bf16 %v7094_v14  ;;  %vm4992_vm13 = vcmp.ne.s32.totalorder %v4688_v41, 0  ;;  %v7057_v62 = vsel %vm6753_vm1, %v575_v45, 0  ;;  %v16748_v41 = vpop.permute.xlu0 %6121 }
 0x3f0   : > { %vm16725_vm15 = vcmp.ne.s16.totalorder %v20444_v34, 0  ;;  %vm6487_vm5 = vcmp.eq.s32.totalorder %v16648_v30, 1  ;;  %v20448_v21 = vrot.slane %v20447_v28, %v8769_v27  ;;  %v8004_v54 = vsel %vm341_vm11, %v7398_v47, 0.0 }
 0x3f1   : > { %v5296_v44 = vsel %vm4992_vm13, 1, %v18645_v5  ;;  %vm4955_vm9 = vcmp.ne.s32.totalorder %v4651_v16, 0  ;;  %v7362_v48 = vunpack.c.l.bf16 %v7057_v62  ;;  %vm6791_vm2 = vmpackc.low %vm6487_vm5, %vm6487_vm5  ;;  %v8005_v40 = vsel %vm341_vm11, %v7399_v42, 0.0  ;;  %v576_v62 = vld [vmem:[%s11729_s17 + $0x39c] sm:$0xf] }
 0x3f2   : > { %vm16735_vm12 = vcmp.ne.s16.totalorder %v20448_v21, 0  ;;  %6187 = vperm.xlu1 %8402, %v5296_v44   ;;  %v5259_v30 = vsel %vm4955_vm9, 1, %v18645_v5  ;;  %v7095_v45 = vsel %vm6791_vm2, %v613_v36, 0  ;;  %v4310_v53 = vsel %vm16659_vm10, 65537, %v18645_v5  ;;  %v614_v21 = vld [vmem:[%s11729_s17 + $0x434] sm:$0xf] }
 0x3f3   : > { %v20451_v34 = vrot.slane %v20440_v6, %v8772_v25  ;;  %v8006_v47 = vadd.f32 %v8005_v40, %v8004_v54  ;;  %v7926_v14 = vsel %vm341_vm11, %v7362_v48, 0.0  ;;  %v7400_v16 = vunpack.c.l.bf16 %v7095_v45  ;;  %6076 = vperm.xlu0 %8401, %v5259_v30   ;;  %v20454_v48 = vld [vmem:[#allocation11_spill] sm:$0xff] }
 0x3f4   : > { %v4614_v42 = vunpack.c.l.b16 %v4310_v53  ;;  %v7927_v36 = vadd.f32 %v7926_v14, %v7925_v3  ;;  %v4385_v49 = vsel %vm16678_vm3, 65537, %v18645_v5  ;;  %vm6450_vm10 = vcmp.eq.s32.totalorder %v16671_v19, 1  ;;  %v16782_v14 = vpop.permute.xlu0 %6124 }
 0x3f5   : > { %vm16753_vm7 = vcmp.ne.s16.totalorder %v20451_v34, 0  ;;  %vm6488_vm6 = vcmp.eq.s32.totalorder %v16673_v1, 1  ;;  %v8007_v6 = vsel %vm341_vm11, %v7400_v16, 0.0  ;;  %v4689_v54 = vunpack.c.l.b16 %v4385_v49  ;;  %vm6754_vm1 = vmpackc.low %vm6450_vm10, %vm6450_vm10  ;;  %v16780_v34 = vpop.permute.xlu1 %6010 }
 0x3f6   : > { %vm4918_vm8 = vcmp.ne.s32.totalorder %v4614_v42, 0  ;;  %v4348_v44 = vsel %vm16686_vm14, 65537, %v18645_v5  ;;  %v20455_v3 = vrot.slane %v20454_v48, %v8769_v27  ;;  %v8008_v19 = vadd.f32 %v8007_v6, %v8006_v47  ;;  %vm6792_vm3 = vmpackc.low %vm6488_vm6, %vm6488_vm6 }
 0x3f7   : > { %v5222_v40 = vsel %vm4918_vm8, 1, %v18645_v5  ;;  %v7058_v1 = vsel %vm6754_vm1, %v576_v62, 0  ;;  %v4652_v30 = vunpack.c.l.b16 %v4348_v44  ;;  %vm4993_vm5 = vcmp.ne.s32.totalorder %v4689_v54, 0  ;;  %v615_v54 = vld [vmem:[%s11729_s17 + $0x438] sm:$0xf] }
 0x3f8   : > { %vm16772_vm13 = vcmp.ne.s16.totalorder %v20455_v3, 0  ;;  %5965 = vperm.xlu1 %8402, %v5222_v40   ;;  %v7363_v45 = vunpack.c.l.bf16 %v7058_v1  ;;  %v7096_v13 = vsel %vm6792_vm3, %v614_v21, 0  ;;  %v4311_v53 = vsel %vm16701_vm4, 65537, %v18645_v5  ;;  %v577_v21 = vld [vmem:[%s11729_s17 + $0x3a0] sm:$0xf] }
 0x3f9   : > { %v20458_v47 = vrot.slane %v20447_v28, %v8772_v25  ;;  %v5297_v42 = vsel %vm4993_vm5, 1, %v18645_v5  ;;  %v7401_v62 = vunpack.c.l.bf16 %v7096_v13  ;;  %vm4956_vm9 = vcmp.ne.s32.totalorder %v4652_v30, 0  ;;  %v20461_v28 = vld [vmem:[#allocation18_spill] sm:$0xff] }
 0x3fa   : > { %v4615_v49 = vunpack.c.l.b16 %v4311_v53  ;;  %6190 = vperm.xlu0 %8401, %v5297_v42   ;;  %v7928_v46 = vsel %vm341_vm11, %v7363_v45, 0.0  ;;  %v5260_v6 = vsel %vm4956_vm9, 1, %v18645_v5  ;;  %vm6451_vm4 = vcmp.eq.s32.totalorder %v16709_v23, 1  ;;  %v578_v53 = vld [vmem:[%s11729_s17 + $0x3a4] sm:$0xf] }
 0x3fb   : > { %vm16787_vm14 = vcmp.ne.s16.totalorder %v20458_v47, 0  ;;  %vm6489_vm2 = vcmp.eq.s32.totalorder %v16720_v29, 1  ;;  %v20462_v44 = vrot.slane %v20461_v28, %v8769_v27  ;;  %v7929_v40 = vadd.f32 %v7928_v46, %v7927_v36  ;;  %vm6755_vm8 = vmpackc.low %vm6451_vm4, %vm6451_vm4  ;;  %v16811_v47 = vpop.permute.xlu1 %6013 }
 0x3fc   : > { %v8009_v1 = vsel %vm341_vm11, %v7401_v62, 0.0  ;;  %vm4919_vm6 = vcmp.ne.s32.totalorder %v4615_v49, 0  ;;  %v4386_v30 = vsel %vm16725_vm15, 65537, %v18645_v5  ;;  %6079 = vperm.xlu1 %8402, %v5260_v6   ;;  %v7059_v45 = vsel %vm6755_vm8, %v577_v21, 0  ;;  %vm6793_vm1 = vmpackc.low %vm6489_vm2, %vm6489_vm2  ;;  %v16824_v49 = vpop.permute.xlu0 %6127 }
 0x3fd   : > { %vm16801_vm10 = vcmp.ne.s16.totalorder %v20462_v44, 0  ;;  %v8010_v23 = vadd.f32 %v8009_v1, %v8008_v19  ;;  %v5223_v29 = vsel %vm4919_vm6, 1, %v18645_v5  ;;  %v4690_v13 = vunpack.c.l.b16 %v4386_v30  ;;  %v20470_v1 = vld [vmem:[#allocation44_spill] sm:$0xff] }
 0x3fe   : > { %v20465_v36 = vrot.slane %v20454_v48, %v8772_v25  ;;  %v7364_v2 = vunpack.c.l.bf16 %v7059_v45  ;;  %v7097_v62 = vsel %vm6793_vm1, %v615_v54, 0  ;;  %v4349_v19 = vsel %vm16735_vm12, 65537, %v18645_v5  ;;  %5968 = vperm.xlu0 %8401, %v5223_v29   ;;  %v616_v48 = vld [vmem:[%s11729_s17 + $0x43c] sm:$0xf] }
 0x3ff   : > { %vm6452_vm15 = vcmp.eq.s32.totalorder %v16741_v10, 1  ;;  %v7402_v21 = vunpack.c.l.bf16 %v7097_v62  ;;  %vm4994_vm5 = vcmp.ne.s32.totalorder %v4690_v13, 0  ;;  %v4653_v46 = vunpack.c.l.b16 %v4349_v19 }
 0x400   : > { %vm16816_vm3 = vcmp.ne.s16.totalorder %v20465_v36, 0  ;;  %vm6756_vm9 = vmpackc.low %vm6452_vm15, %vm6452_vm15  ;;  %vm6490_vm4 = vcmp.eq.s32.totalorder %v16748_v41, 1  ;;  %v7930_v6 = vsel %vm341_vm11, %v7364_v2, 0.0  ;;  %v5298_v54 = vsel %vm4994_vm5, 1, %v18645_v5 }
 0x401   : > { %v7060_v44 = vsel %vm6756_vm9, %v578_v53, 0  ;;  %vm16830_vm2 = vmpackc.low %vm6490_vm4, %vm6490_vm4  ;;  %v4312_v10 = vsel %vm16753_vm7, 65537, %v18645_v5  ;;  %v20471_v30 = vrot.slane %v20470_v1, %v8769_v27  ;;  %v7931_v41 = vadd.f32 %v7930_v6, %v7929_v40  ;;  %6193 = vperm.xlu1 %8402, %v5298_v54   ;;  %v16845_v53 = vpop.permute.xlu1 %6016  ;;  %v16858_v6 = vpop.permute.xlu0 %6130 }
 0x402   : > { %v8011_v45 = vsel %vm341_vm11, %v7402_v21, 0.0  ;;  %vm4957_vm6 = vcmp.ne.s32.totalorder %v4653_v46, 0  ;;  %v7365_v13 = vunpack.c.l.bf16 %v7060_v44  ;;  %v20474_v38 = vrot.slane %v20461_v28, %v8772_v25  ;;  %v579_v21 = vld [vmem:[%s11729_s17 + $0x3a8] sm:$0xf] }
 0x403   : > { %vm16840_vm12 = vcmp.ne.s16.totalorder %v20471_v30, 0  ;;  %v8012_v2 = vadd.f32 %v8011_v45, %v8010_v23  ;;  %v5261_v62 = vsel %vm4957_vm6, 1, %v18645_v5  ;;  %v7098_v40 = vsel %vm16830_vm2, %v616_v48, 0  ;;  %v617_v23 = vld [vmem:[%s11729_s17 + $0x440] sm:$0xf] }
 0x404   : > { %vm16850_vm7 = vcmp.ne.s16.totalorder %v20474_v38, 0  ;;  %v4616_v19 = vunpack.c.l.b16 %v4312_v10  ;;  %6082 = vperm.xlu0 %8401, %v5261_v62   ;;  %v7932_v46 = vsel %vm341_vm11, %v7365_v13, 0.0  ;;  %v7403_v54 = vunpack.c.l.bf16 %v7098_v40  ;;  %v20477_v48 = vld [vmem:[#allocation35_spill] sm:$0xff] }
 0x405   : > { %v4387_v28 = vsel %vm16772_vm13, 65537, %v18645_v5  ;;  %vm6453_vm8 = vcmp.eq.s32.totalorder %v16780_v34, 1  ;;  %v7933_v44 = vadd.f32 %v7932_v46, %v7931_v41  ;;  %vm6491_vm5 = vcmp.eq.s32.totalorder %v16782_v14, 1  ;;  %v16879_v13 = vpop.permute.xlu1 %6019 }
 0x406   : > { %vm4920_vm1 = vcmp.ne.s32.totalorder %v4616_v19, 0  ;;  %v4691_v30 = vunpack.c.l.b16 %v4387_v28  ;;  %vm6757_vm15 = vmpackc.low %vm6453_vm8, %vm6453_vm8  ;;  %v20478_v26 = vrot.slane %v20477_v48, %v8769_v27  ;;  %v8013_v45 = vsel %vm341_vm11, %v7403_v54, 0.0  ;;  %v580_v54 = vld [vmem:[%s11729_s17 + $0x3ac] sm:$0xf]  ;;  %v16893_v28 = vpop.permute.xlu0 %6133 }
 0x407   : > { %v5224_v37 = vsel %vm4920_vm1, 1, %v18645_v5  ;;  %v7061_v34 = vsel %vm6757_vm15, %v579_v21, 0  ;;  %vm6795_vm13 = vmpackc.low %vm6491_vm5, %vm6491_vm5  ;;  %v4350_v41 = vsel %vm16787_vm14, 65537, %v18645_v5  ;;  %v8014_v14 = vadd.f32 %v8013_v45, %v8012_v2 }
 0x408   : > { %vm16870_vm9 = vcmp.ne.s16.totalorder %v20478_v26, 0  ;;  %5971 = vperm.xlu1 %8402, %v5224_v37   ;;  %vm4995_vm4 = vcmp.ne.s32.totalorder %v4691_v30, 0  ;;  %v7366_v38 = vunpack.c.l.bf16 %v7061_v34  ;;  %v7099_v62 = vsel %vm6795_vm13, %v617_v23, 0  ;;  %v20484_v37 = vld [vmem:[#allocation60_spill] sm:$0xff] }
 0x409   : > { %v20481_v40 = vrot.slane %v20470_v1, %v8772_v25  ;;  %v5299_v21 = vsel %vm4995_vm4, 1, %v18645_v5  ;;  %v7404_v46 = vunpack.c.l.bf16 %v7099_v62  ;;  %v4654_v16 = vunpack.c.l.b16 %v4350_v41  ;;  %v618_v1 = vld [vmem:[%s11729_s17 + $0x444] sm:$0xf] }
 0x40a   : > { %v4313_v2 = vsel %vm16801_vm10, 65537, %v18645_v5  ;;  %6196 = vperm.xlu0 %8401, %v5299_v21   ;;  %v7934_v23 = vsel %vm341_vm11, %v7366_v38, 0.0  ;;  %vm6454_vm14 = vcmp.eq.s32.totalorder %v16811_v47, 1  ;;  %vm6492_vm6 = vcmp.eq.s32.totalorder %v16824_v49, 1 }
 0x40b   : > { %vm16884_vm2 = vcmp.ne.s16.totalorder %v20481_v40, 0  ;;  %v4617_v30 = vunpack.c.l.b16 %v4313_v2  ;;  %v7935_v26 = vadd.f32 %v7934_v23, %v7933_v44  ;;  %v8015_v45 = vsel %vm341_vm11, %v7404_v46, 0.0  ;;  %vm6758_vm1 = vmpackc.low %vm6454_vm14, %vm6454_vm14  ;;  %v16928_v23 = vpop.permute.xlu0 %6136 }
 0x40c   : > { %vm4958_vm8 = vcmp.ne.s32.totalorder %v4654_v16, 0  ;;  %v4388_v3 = vsel %vm16816_vm3, 65537, %v18645_v5  ;;  %v20485_v34 = vrot.slane %v20484_v37, %v8769_v27  ;;  %v8016_v47 = vadd.f32 %v8015_v45, %v8014_v14  ;;  %vm6796_vm5 = vmpackc.low %vm6492_vm6, %vm6492_vm6  ;;  %v581_v14 = vld [vmem:[%s11729_s17 + $0x3b0] sm:$0xf]  ;;  %v16920_v16 = vpop.permute.xlu1 %6022 }
 0x40d   : > { %v5262_v49 = vsel %vm4958_vm8, 1, %v18645_v5  ;;  %vm4921_vm15 = vcmp.ne.s32.totalorder %v4617_v30, 0  ;;  %v7062_v44 = vsel %vm6758_vm1, %v580_v54, 0  ;;  %v20488_v38 = vrot.slane %v20477_v48, %v8772_v25  ;;  %v619_v48 = vld [vmem:[%s11729_s17 + $0x448] sm:$0xf] }
 0x40e   : > { %vm16906_vm10 = vcmp.ne.s16.totalorder %v20485_v34, 0  ;;  %6085 = vperm.xlu1 %8402, %v5262_v49   ;;  %v5225_v62 = vsel %vm4921_vm15, 1, %v18645_v5  ;;  %v7367_v40 = vunpack.c.l.bf16 %v7062_v44  ;;  %v7100_v21 = vsel %vm6796_vm5, %v618_v1, 0 }
 0x40f   : > { %vm16914_vm13 = vcmp.ne.s16.totalorder %v20488_v38, 0  ;;  %v4692_v46 = vunpack.c.l.b16 %v4388_v3  ;;  %5974 = vperm.xlu0 %8401, %v5225_v62   ;;  %v7405_v2 = vunpack.c.l.bf16 %v7100_v21  ;;  %v4351_v54 = vsel %vm16840_vm12, 65537, %v18645_v5  ;;  %v20491_v3 = vld [vmem:[#allocation10_spill] sm:$0xff] }
 0x410   : > { %vm6455_vm3 = vcmp.eq.s32.totalorder %v16845_v53, 1  ;;  %vm6493_vm4 = vcmp.eq.s32.totalorder %v16858_v6, 1  ;;  %v7936_v30 = vsel %vm341_vm11, %v7367_v40, 0.0  ;;  %v4655_v1 = vunpack.c.l.b16 %v4351_v54  ;;  %v16943_v40 = vpop.permute.xlu1 %6025  ;;  %v582_v54 = vld [vmem:[%s11729_s17 + $0x3b4] sm:$0xf] }
 0x411   : > { %vm4996_vm14 = vcmp.ne.s32.totalorder %v4692_v46, 0  ;;  %vm6759_vm6 = vmpackc.low %vm6455_vm3, %vm6455_vm3  ;;  %v4314_v45 = vsel %vm16850_vm7, 65537, %v18645_v5  ;;  %v20492_v29 = vrot.slane %v20491_v3, %v8769_v27  ;;  %v7937_v53 = vadd.f32 %v7936_v30, %v7935_v26  ;;  %v16957_v30 = vpop.permute.xlu0 %6139 }
 0x412   : > { %v8017_v6 = vsel %vm341_vm11, %v7405_v2, 0.0  ;;  %v5300_v49 = vsel %vm4996_vm14, 1, %v18645_v5  ;;  %v7063_v44 = vsel %vm6759_vm6, %v581_v14, 0  ;;  %vm6797_vm8 = vmpackc.low %vm6493_vm4, %vm6493_vm4  ;;  %vm4959_vm1 = vcmp.ne.s32.totalorder %v4655_v1, 0 }
 0x413   : > { %vm16937_vm12 = vcmp.ne.s16.totalorder %v20492_v29, 0  ;;  %v8018_v38 = vadd.f32 %v8017_v6, %v8016_v47  ;;  %6199 = vperm.xlu1 %8402, %v5300_v49   ;;  %v7368_v36 = vunpack.c.l.bf16 %v7063_v44  ;;  %v7101_v62 = vsel %vm6797_vm8, %v619_v48, 0 }
 0x414   : > { %v20495_v21 = vrot.slane %v20484_v37, %v8772_v25  ;;  %v5263_v46 = vsel %vm4959_vm1, 1, %v18645_v5  ;;  %v7406_v2 = vunpack.c.l.bf16 %v7101_v62  ;;  %v4618_v14 = vunpack.c.l.b16 %v4314_v45  ;;  %v620_v37 = vld [vmem:[%s11729_s17 + $0x44c] sm:$0xf]  ;;  %v20498_v45 = vld [vmem:[#allocation38_spill] sm:$0xff] }
 0x415   : > { %v4389_v47 = vsel %vm16870_vm9, 65537, %v18645_v5  ;;  %6088 = vperm.xlu0 %8401, %v5263_v46   ;;  %v7938_v48 = vsel %vm341_vm11, %v7368_v36, 0.0  ;;  %vm6456_vm15 = vcmp.eq.s32.totalorder %v16879_v13, 1  ;;  %vm6494_vm5 = vcmp.eq.s32.totalorder %v16893_v28, 1  ;;  %v16975_v36 = vpop.permute.xlu1 %6028 }
 0x416   : > { %vm16948_vm7 = vcmp.ne.s16.totalorder %v20495_v21, 0  ;;  %v4693_v1 = vunpack.c.l.b16 %v4389_v47  ;;  %v7939_v29 = vadd.f32 %v7938_v48, %v7937_v53  ;;  %v8019_v6 = vsel %vm341_vm11, %v7406_v2, 0.0  ;;  %vm6760_vm4 = vmpackc.low %vm6456_vm15, %vm6456_vm15  ;;  %v16992_v48 = vpop.permute.xlu0 %6142 }
 0x417   : > { %vm4922_vm3 = vcmp.ne.s32.totalorder %v4618_v14, 0  ;;  %v4352_v10 = vsel %vm16884_vm2, 65537, %v18645_v5  ;;  %v20499_v49 = vrot.slane %v20498_v45, %v8769_v27  ;;  %v8020_v13 = vadd.f32 %v8019_v6, %v8018_v38  ;;  %vm6798_vm6 = vmpackc.low %vm6494_vm5, %vm6494_vm5  ;;  %v583_v14 = vld [vmem:[%s11729_s17 + $0x3b8] sm:$0xf] }
 0x418   : > { %v5226_v28 = vsel %vm4922_vm3, 1, %v18645_v5  ;;  %vm4997_vm14 = vcmp.ne.s32.totalorder %v4693_v1, 0  ;;  %v7064_v53 = vsel %vm6760_vm4, %v582_v54, 0  ;;  %v20502_v19 = vrot.slane %v20491_v3, %v8772_v25  ;;  %v621_v3 = vld [vmem:[%s11729_s17 + $0x450] sm:$0xf] }
 0x419   : > { %vm16970_vm9 = vcmp.ne.s16.totalorder %v20499_v49, 0  ;;  %5977 = vperm.xlu1 %8402, %v5226_v28   ;;  %v5301_v21 = vsel %vm4997_vm14, 1, %v18645_v5  ;;  %v7369_v46 = vunpack.c.l.bf16 %v7064_v53  ;;  %v7102_v38 = vsel %vm6798_vm6, %v620_v37, 0 }
 0x41a   : > { %vm16980_vm2 = vcmp.ne.s16.totalorder %v20502_v19, 0  ;;  %v4656_v2 = vunpack.c.l.b16 %v4352_v10  ;;  %6202 = vperm.xlu0 %8401, %v5301_v21   ;;  %v7407_v47 = vunpack.c.l.bf16 %v7102_v38  ;;  %v4315_v54 = vsel %vm16906_vm10, 65537, %v18645_v5  ;;  %v20505_v10 = vld [vmem:[#allocation94_spill] sm:$0xff] }
 0x41b   : > { %vm6457_vm8 = vcmp.eq.s32.totalorder %v16920_v16, 1  ;;  %vm6495_vm1 = vcmp.eq.s32.totalorder %v16928_v23, 1  ;;  %v7940_v1 = vsel %vm341_vm11, %v7369_v46, 0.0  ;;  %v4619_v6 = vunpack.c.l.b16 %v4315_v54  ;;  %v17007_v46 = vpop.permute.xlu1 %6031  ;;  %v584_v54 = vld [vmem:[%s11729_s17 + $0x3bc] sm:$0xf] }
 0x41c   : > { %vm4960_vm15 = vcmp.ne.s32.totalorder %v4656_v2, 0  ;;  %vm6761_vm5 = vmpackc.low %vm6457_vm8, %vm6457_vm8  ;;  %v4390_v37 = vsel %vm16914_vm13, 65537, %v18645_v5  ;;  %v20506_v41 = vrot.slane %v20505_v10, %v8769_v27  ;;  %v7941_v16 = vadd.f32 %v7940_v1, %v7939_v29 }
 0x41d   : > { %v8021_v23 = vsel %vm341_vm11, %v7407_v47, 0.0  ;;  %v5264_v28 = vsel %vm4960_vm15, 1, %v18645_v5  ;;  %v7065_v53 = vsel %vm6761_vm5, %v583_v14, 0  ;;  %vm6799_vm3 = vmpackc.low %vm6495_vm1, %vm6495_vm1  ;;  %vm4923_vm4 = vcmp.ne.s32.totalorder %v4619_v6, 0  ;;  %v17025_v6 = vpop.permute.xlu0 %6145 }
 0x41e   : > { %vm17001_vm10 = vcmp.ne.s16.totalorder %v20506_v41, 0  ;;  %v8022_v19 = vadd.f32 %v8021_v23, %v8020_v13  ;;  %6091 = vperm.xlu1 %8402, %v5264_v28   ;;  %v7370_v42 = vunpack.c.l.bf16 %v7065_v53  ;;  %v7103_v21 = vsel %vm6799_vm3, %v621_v3, 0 }
 0x41f   : > { %v20509_v38 = vrot.slane %v20498_v45, %v8772_v25  ;;  %v5227_v2 = vsel %vm4923_vm4, 1, %v18645_v5  ;;  %v7408_v47 = vunpack.c.l.bf16 %v7103_v21  ;;  %v4694_v14 = vunpack.c.l.b16 %v4390_v37  ;;  %v622_v45 = vld [vmem:[%s11729_s17 + $0x454] sm:$0xf]  ;;  %v20512_v37 = vld [vmem:[#allocation47_spill] sm:$0xff] }
 0x420   : > { %v4353_v13 = vsel %vm16937_vm12, 65537, %v18645_v5  ;;  %5980 = vperm.xlu0 %8401, %v5227_v2   ;;  %v7942_v3 = vsel %vm341_vm11, %v7370_v42, 0.0  ;;  %vm6458_vm14 = vcmp.eq.s32.totalorder %v16943_v40, 1  ;;  %vm6496_vm6 = vcmp.eq.s32.totalorder %v16957_v30, 1 }
 0x421   : > { %vm17012_vm13 = vcmp.ne.s16.totalorder %v20509_v38, 0  ;;  %v4657_v1 = vunpack.c.l.b16 %v4353_v13  ;;  %v7943_v41 = vadd.f32 %v7942_v3, %v7941_v16  ;;  %v8023_v23 = vsel %vm341_vm11, %v7408_v47, 0.0  ;;  %vm6762_vm1 = vmpackc.low %vm6458_vm14, %vm6458_vm14  ;;  %v17056_v3 = vpop.permute.xlu0 %6148 }
 0x422   : > { %vm4998_vm8 = vcmp.ne.s32.totalorder %v4694_v14, 0  ;;  %v4316_v34 = vsel %vm16948_vm7, 65537, %v18645_v5  ;;  %v20513_v28 = vrot.slane %v20512_v37, %v8769_v27  ;;  %v8024_v30 = vadd.f32 %v8023_v23, %v8022_v19  ;;  %vm6800_vm5 = vmpackc.low %vm6496_vm6, %vm6496_vm6  ;;  %v585_v19 = vld [vmem:[%s11729_s17 + $0x3c0] sm:$0xf]  ;;  %v17048_v14 = vpop.permute.xlu1 %6034 }
 0x423   : > { %v5302_v53 = vsel %vm4998_vm8, 1, %v18645_v5  ;;  %vm4961_vm15 = vcmp.ne.s32.totalorder %v4657_v1, 0  ;;  %v7066_v16 = vsel %vm6762_vm1, %v584_v54, 0  ;;  %v20516_v42 = vrot.slane %v20505_v10, %v8772_v25  ;;  %v623_v10 = vld [vmem:[%s11729_s17 + $0x458] sm:$0xf] }
 0x424   : > { %vm17034_vm12 = vcmp.ne.s16.totalorder %v20513_v28, 0  ;;  %6205 = vperm.xlu1 %8402, %v5302_v53   ;;  %v5265_v21 = vsel %vm4961_vm15, 1, %v18645_v5  ;;  %v7371_v38 = vunpack.c.l.bf16 %v7066_v16  ;;  %v7104_v2 = vsel %vm6800_vm5, %v622_v45, 0 }
 0x425   : > { %vm17042_vm3 = vcmp.ne.s16.totalorder %v20516_v42, 0  ;;  %v4620_v47 = vunpack.c.l.b16 %v4316_v34  ;;  %6094 = vperm.xlu0 %8401, %v5265_v21   ;;  %v7409_v13 = vunpack.c.l.bf16 %v7104_v2  ;;  %v4391_v54 = vsel %vm16970_vm9, 65537, %v18645_v5  ;;  %v20519_v34 = vld [vmem:[#allocation15_spill] sm:$0xff] }
 0x426   : > { %vm6459_vm7 = vcmp.eq.s32.totalorder %v16975_v36, 1  ;;  %vm6497_vm4 = vcmp.eq.s32.totalorder %v16992_v48, 1  ;;  %v7944_v1 = vsel %vm341_vm11, %v7371_v38, 0.0  ;;  %v4695_v45 = vunpack.c.l.b16 %v4391_v54  ;;  %v17071_v38 = vpop.permute.xlu1 %6037  ;;  %v17085_v54 = vpop.permute.xlu0 %6151 }
 0x427   : > { %vm4924_vm14 = vcmp.ne.s32.totalorder %v4620_v47, 0  ;;  %vm6763_vm6 = vmpackc.low %vm6459_vm7, %vm6459_vm7  ;;  %v4354_v23 = vsel %vm16980_vm2, 65537, %v18645_v5  ;;  %v20520_v44 = vrot.slane %v20519_v34, %v8769_v27  ;;  %v7945_v36 = vadd.f32 %v7944_v1, %v7943_v41 }
 0x428   : > { %v8025_v48 = vsel %vm341_vm11, %v7409_v13, 0.0  ;;  %v5228_v53 = vsel %vm4924_vm14, 1, %v18645_v5  ;;  %v7067_v16 = vsel %vm6763_vm6, %v585_v19, 0  ;;  %vm6801_vm8 = vmpackc.low %vm6497_vm4, %vm6497_vm4  ;;  %vm4999_vm1 = vcmp.ne.s32.totalorder %v4695_v45, 0  ;;  %v586_v13 = vld [vmem:[%s11729_s17 + $0x3c4] sm:$0xf] }
 0x429   : > { %vm17065_vm9 = vcmp.ne.s16.totalorder %v20520_v44, 0  ;;  %v8026_v42 = vadd.f32 %v8025_v48, %v8024_v30  ;;  %5983 = vperm.xlu1 %8402, %v5228_v53   ;;  %v7372_v62 = vunpack.c.l.bf16 %v7067_v16  ;;  %v7105_v21 = vsel %vm6801_vm8, %v623_v10, 0  ;;  %v590_v48 = vld [vmem:[%s11729_s17 + $0x3d4] sm:$0xf] }
 0x42a   : > { %v20523_v27 = vrot.slane %v20512_v37, %v8772_v25  ;;  %v5303_v2 = vsel %vm4999_vm1, 1, %v18645_v5  ;;  %v7410_v47 = vunpack.c.l.bf16 %v7105_v21  ;;  %v4658_v19 = vunpack.c.l.b16 %v4354_v23  ;;  %v624_v37 = vld [vmem:[%s11729_s17 + $0x45c] sm:$0xf]  ;;  %v17103_v53 = vpop.permute.xlu1 %6040 }
 0x42b   : > { %v4317_v30 = vsel %vm17001_vm10, 65537, %v18645_v5  ;;  %6208 = vperm.xlu0 %8401, %v5303_v2   ;;  %v7946_v10 = vsel %vm341_vm11, %v7372_v62, 0.0  ;;  %vm6460_vm15 = vcmp.eq.s32.totalorder %v17007_v46, 1  ;;  %vm6498_vm5 = vcmp.eq.s32.totalorder %v17025_v6, 1  ;;  %v17113_v2 = vpop.permute.xlu0 %6154 }
 0x42c   : > { %vm17076_vm2 = vcmp.ne.s16.totalorder %v20523_v27, 0  ;;  %v4621_v1 = vunpack.c.l.b16 %v4317_v30  ;;  %v7947_v45 = vadd.f32 %v7946_v10, %v7945_v36  ;;  %v8027_v44 = vsel %vm341_vm11, %v7410_v47, 0.0  ;;  %vm6764_vm4 = vmpackc.low %vm6460_vm15, %vm6460_vm15  ;;  %v625_v27 = vld [vmem:[%s11729_s17 + $0x460] sm:$0xf] }
 0x42d   : > { %vm4962_vm7 = vcmp.ne.s32.totalorder %v4658_v19, 0  ;;  %v4392_v49 = vsel %vm17012_vm13, 65537, %v18645_v5  ;;  %v20526_v23 = vrot.slane %v20519_v34, %v8772_v25  ;;  %v8028_v46 = vadd.f32 %v8027_v44, %v8026_v42  ;;  %vm6802_vm6 = vmpackc.low %vm6498_vm5, %vm6498_vm5  ;;  %v587_v25 = vld [vmem:[%s11729_s17 + $0x3c8] sm:$0xf] }
 0x42e   : > { %v5266_v6 = vsel %vm4962_vm7, 1, %v18645_v5  ;;  %vm4925_vm14 = vcmp.ne.s32.totalorder %v4621_v1, 0  ;;  %v7068_v36 = vsel %vm6764_vm4, %v586_v13, 0  ;;  %v7106_v62 = vsel %vm6802_vm6, %v624_v37, 0  ;;  %v6044_v44 = vpop.permute.xlu1 %6043 }
 0x42f   : > { %vm17098_vm10 = vcmp.ne.s16.totalorder %v20526_v23, 0  ;;  %6097 = vperm.xlu1 %8402, %v5266_v6   ;;  %v5229_v29 = vsel %vm4925_vm14, 1, %v18645_v5  ;;  %v7373_v16 = vunpack.c.l.bf16 %v7068_v36  ;;  %v4696_v21 = vunpack.c.l.b16 %v4392_v49  ;;  %v588_v6 = vld [vmem:[%s11729_s17 + $0x3cc] sm:$0xf] }
 0x430   : > { %5986 = vperm.xlu0 %8401, %v5229_v29   ;;  %v7411_v34 = vunpack.c.l.bf16 %v7106_v62  ;;  %v4355_v42 = vsel %vm17034_vm12, 65537, %v18645_v5  ;;  %vm6461_vm13 = vcmp.eq.s32.totalorder %v17048_v14, 1  ;;  %vm6499_vm8 = vcmp.eq.s32.totalorder %v17056_v3, 1 }
 0x431   : > { %v7948_v47 = vsel %vm341_vm11, %v7373_v16, 0.0  ;;  %vm5000_vm1 = vcmp.ne.s32.totalorder %v4696_v21, 0  ;;  %v4659_v19 = vunpack.c.l.b16 %v4355_v42  ;;  %vm6765_vm15 = vmpackc.low %vm6461_vm13, %vm6461_vm13  ;;  %v4318_v30 = vsel %vm17042_vm3, 65537, %v18645_v5  ;;  %v5933_v16 = vpop.permute.xlu0 %5932 }
 0x432   : > { %vm6393_vm5 = vcmp.eq.s32.totalorder %v15762_v52, 1  ;;  %v7949_v40 = vadd.f32 %v7948_v47, %v7947_v45  ;;  %v8029_v14 = vsel %vm341_vm11, %v7411_v34, 0.0  ;;  %v5304_v13 = vsel %vm5000_vm1, 1, %v18645_v5  ;;  %vm6803_vm12 = vmpackc.low %vm6499_vm8, %vm6499_vm8  ;;  %v591_v52 = vld [vmem:[%s11729_s17 + $0x3d8] sm:$0xf] }
 0x433   : > { %v7069_v3 = vsel %vm6765_vm15, %v587_v25, 0  ;;  %v8030_v10 = vadd.f32 %v8029_v14, %v8028_v46  ;;  %6211 = vperm.xlu1 %8402, %v5304_v13   ;;  %vm4963_vm7 = vcmp.ne.s32.totalorder %v4659_v19, 0  ;;  %v7107_v37 = vsel %vm6803_vm12, %v625_v27, 0  ;;  %v626_v46 = vld [vmem:[%s11729_s17 + $0x464] sm:$0xf] }
 0x434   : > { %v7374_v1 = vunpack.c.l.bf16 %v7069_v3  ;;  %v5267_v26 = vsel %vm4963_vm7, 1, %v18645_v5  ;;  %v7412_v49 = vunpack.c.l.bf16 %v7107_v37  ;;  %v4622_v23 = vunpack.c.l.b16 %v4318_v30  ;;  %v589_v19 = vld [vmem:[%s11729_s17 + $0x3d0] sm:$0xf]  ;;  %v6158_v30 = vpop.permute.xlu1 %6157  ;;  %v627_v14 = vld [vmem:[%s11729_s17 + $0x468] sm:$0xf] }
 0x435   : > { %v4393_v45 = vsel %vm17065_vm9, 65537, %v18645_v5  ;;  %6100 = vperm.xlu0 %8401, %v5267_v26   ;;  %vm6462_vm3 = vcmp.eq.s32.totalorder %v17071_v38, 1  ;;  %vm6500_vm4 = vcmp.eq.s32.totalorder %v17085_v54, 1  ;;  %v4356_v28 = vsel %vm17076_vm2, 65537, %v18645_v5  ;;  %v6047_v13 = vpop.permute.xlu0 %6046 }
 0x436   : > { %v7950_v36 = vsel %vm341_vm11, %v7374_v1, 0.0  ;;  %v4697_v29 = vunpack.c.l.b16 %v4393_v45  ;;  %v8031_v21 = vsel %vm341_vm11, %v7412_v49, 0.0  ;;  %vm4926_vm14 = vcmp.ne.s32.totalorder %v4622_v23, 0  ;;  %vm6766_vm6 = vmpackc.low %vm6462_vm3, %vm6462_vm3  ;;  %v553_v45 = vld [vmem:[%s11729_s17 + $0x340] sm:$0xf] }
 0x437   : > { %v7951_v62 = vadd.f32 %v7950_v36, %v7949_v40  ;;  %v8032_v25 = vadd.f32 %v8031_v21, %v8030_v10  ;;  %v5230_v34 = vsel %vm4926_vm14, 1, %v18645_v5  ;;  %v7070_v38 = vsel %vm6766_vm6, %v588_v6, 0  ;;  %vm6804_vm13 = vmpackc.low %vm6500_vm4, %vm6500_vm4  ;;  %v628_v21 = vld [vmem:[%s11729_s17 + $0x46c] sm:$0xf] }
 0x438   : > { %vm5001_vm9 = vcmp.ne.s32.totalorder %v4697_v29, 0  ;;  %5989 = vperm.xlu1 %8402, %v5230_v34   ;;  %v7375_v42 = vunpack.c.l.bf16 %v7070_v38  ;;  %v7108_v27 = vsel %vm6804_vm13, %v626_v46, 0  ;;  %v4660_v47 = vunpack.c.l.b16 %v4356_v28  ;;  %v5936_v6 = vpop.permute.xlu1 %5935  ;;  %vm17157_vm14 = vmpackc.low %vm6393_vm5, %vm6393_vm5  ;;  %v8174_v46 = vld [vmem:[%s333_s29] sm:$0xff]  ;;  %s8191_s29 = scalar_lea.sflag [#allocation4], %s295_s11 }
 0x439   : > { %v5305_v54 = vsel %vm5001_vm9, 1, %v18645_v5  ;;  %v7413_v41 = vunpack.c.l.bf16 %v7108_v27  ;;  %v4394_v40 = vsel %vm17098_vm10, 65537, %v18645_v5  ;;  %vm6463_vm2 = vcmp.eq.s32.totalorder %v17103_v53, 1  ;;  %v6161_v28 = vpop.permute.xlu0 %6160 }
 0x43a   : > { %6214 = vperm.xlu0 %8401, %v5305_v54   ;;  %vm6501_vm8 = vcmp.eq.s32.totalorder %v17113_v2, 1  ;;  %vm6360_vm1 = vcmp.eq.s32.totalorder %v14834_v51, 1  ;;  %v7952_v3 = vsel %vm341_vm11, %v7375_v42, 0.0  ;;  %vm4964_vm15 = vcmp.ne.s32.totalorder %v4660_v47, 0  ;;  %vm6767_vm12 = vmpackc.low %vm6463_vm2, %vm6463_vm2 }
 0x43b   : > { %v4698_v10 = vunpack.c.l.b16 %v4394_v40  ;;  %vm6464_vm10 = vcmp.eq.s32.totalorder %v6044_v44, 1  ;;  %v7953_v1 = vadd.f32 %v7952_v3, %v7951_v62  ;;  %v8033_v53 = vsel %vm341_vm11, %v7413_v41, 0.0  ;;  %vm6805_vm7 = vmpackc.low %vm6501_vm8, %vm6501_vm8  ;;  %v592_v3 = vld [vmem:[%s11729_s17 + $0x3dc] sm:$0xf] }
 0x43c   : > { %v5268_v2 = vsel %vm4964_vm15, 1, %v18645_v5  ;;  %v7071_v37 = vsel %vm6767_vm12, %v589_v19, 0  ;;  %v8034_v26 = vadd.f32 %v8033_v53, %v8032_v25  ;;  %v7109_v23 = vsel %vm6805_vm7, %v627_v14, 0  ;;  %vm6768_vm4 = vmpackc.low %vm6464_vm10, %vm6464_vm10  ;;  %v6050_v41 = vpop.permute.xlu1 %6049 }
 0x43d   : > { %6103 = vperm.xlu1 %8402, %v5268_v2   ;;  %vm5002_vm3 = vcmp.ne.s32.totalorder %v4698_v10, 0  ;;  %v7376_v49 = vunpack.c.l.bf16 %v7071_v37  ;;  %v7414_v29 = vunpack.c.l.bf16 %v7109_v23  ;;  %v7072_v62 = vsel %vm6768_vm4, %v590_v48, 0  ;;  %v5939_v53 = vpop.permute.xlu0 %5938  ;;  %v519_v2 = vld [vmem:[%s11729_s17 + $0x2b8] sm:$0xf] }
 0x43e   : > { %v5306_v36 = vsel %vm5002_vm3, 1, %v18645_v5  ;;  %vm6427_vm6 = vcmp.eq.s32.totalorder %v5933_v16, 1  ;;  %v7377_v34 = vunpack.c.l.bf16 %v7072_v62  ;;  %vm6502_vm13 = vcmp.eq.s32.totalorder %v6158_v30, 1  ;;  %v554_v16 = vld [vmem:[%s11729_s17 + $0x344] sm:$0xf] }
 0x43f   : > { %6217 = vperm.xlu0 %8401, %v5306_v36   ;;  %v7954_v25 = vsel %vm341_vm11, %v7376_v49, 0.0  ;;  %vm6731_vm9 = vmpackc.low %vm6427_vm6, %vm6427_vm6  ;;  %vm6465_vm5 = vcmp.eq.s32.totalorder %v6047_v13, 1  ;;  %vm6394_vm2 = vcmp.eq.s32.totalorder %v15768_v33, 1  ;;  %v8035_v5 = vsel %vm341_vm11, %v7414_v29, 0.0  ;;  %v629_v30 = vld [vmem:[%s11729_s17 + $0x470] sm:$0xf] }
 0x440   : > { %v7955_v38 = vadd.f32 %v7954_v25, %v7953_v1  ;;  %v7035_v54 = vsel %vm6731_vm9, %v553_v45, 0  ;;  %vm6806_vm8 = vmpackc.low %vm6502_vm13, %vm6502_vm13  ;;  %vm6428_vm15 = vcmp.eq.s32.totalorder %v5936_v6, 1  ;;  %v8036_v42 = vadd.f32 %v8035_v5, %v8034_v26  ;;  %v6164_v25 = vpop.permute.xlu1 %6163 }
 0x441   : > { %8177 = vperm.xlu1 %8402, %v8174_v46   ;;  %v7956_v27 = vsel %vm341_vm11, %v7377_v34, 0.0  ;;  %v7340_v47 = vunpack.c.l.bf16 %v7035_v54  ;;  %v7110_v19 = vsel %vm6806_vm8, %v628_v21, 0  ;;  %vm6769_vm12 = vmpackc.low %vm6465_vm5, %vm6465_vm5  ;;  %vm6503_vm7 = vcmp.eq.s32.totalorder %v6161_v28, 1  ;;  %v555_v46 = vld [vmem:[%s11729_s17 + $0x348] sm:$0xf] }
 0x442   : > { %v7957_v40 = vadd.f32 %v7956_v27, %v7955_v38  ;;  %v7415_v14 = vunpack.c.l.bf16 %v7110_v19  ;;  %v7073_v13 = vsel %vm6769_vm12, %v591_v52, 0  ;;  %vm6732_vm10 = vmpackc.low %vm6428_vm15, %vm6428_vm15  ;;  %vm6466_vm4 = vcmp.eq.s32.totalorder %v6050_v41, 1  ;;  %v630_v34 = vld [vmem:[%s11729_s17 + $0x474] sm:$0xf]  ;;  %v593_v19 = vld [vmem:[%s11729_s17 + $0x3e0] sm:$0xf] }
 0x443   : > { %v7877_v10 = vsel %vm341_vm11, %v7340_v47, 0.0  ;;  %v7378_v48 = vunpack.c.l.bf16 %v7073_v13  ;;  %v7036_v1 = vsel %vm6732_vm10, %v554_v16, 0  ;;  %vm6807_vm3 = vmpackc.low %vm6503_vm7, %vm6503_vm7  ;;  %vm6429_vm13 = vcmp.eq.s32.totalorder %v5939_v53, 1  ;;  %v486_v52 = vld [vmem:[%s11729_s17 + $0x234] sm:$0xf]  ;;  %v6053_v47 = vpop.permute.xlu0 %6052 }
 0x444   : > { %v7878_v37 = vadd.f32 %v7877_v10, %v16691_v15  ;;  %v8037_v26 = vsel %vm341_vm11, %v7415_v14, 0.0  ;;  %v7341_v49 = vunpack.c.l.bf16 %v7036_v1  ;;  %v7111_v23 = vsel %vm6807_vm3, %v629_v30, 0  ;;  %vm6770_vm6 = vmpackc.low %vm6466_vm4, %vm6466_vm4  ;;  %v556_v13 = vld [vmem:[%s11729_s17 + $0x34c] sm:$0xf]  ;;  %v520_v10 = vld [vmem:[%s11729_s17 + $0x2bc] sm:$0xf] }
 0x445   : > { %v8038_v45 = vadd.f32 %v8037_v26, %v8036_v42  ;;  %v7958_v6 = vsel %vm341_vm11, %v7378_v48, 0.0  ;;  %v7416_v36 = vunpack.c.l.bf16 %v7111_v23  ;;  %v7074_v29 = vsel %vm6770_vm6, %v592_v3, 0  ;;  %vm17180_vm9 = vmpackc.low %vm6360_vm1, %vm6360_vm1  ;;  %v20533_v3 = vld [vmem:[#allocation92_spill] sm:$0xff] }
 0x446   : > { %v7959_v15 = vadd.f32 %v7958_v6, %v7957_v40  ;;  %v7879_v21 = vsel %vm341_vm11, %v7341_v49, 0.0  ;;  %v7379_v28 = vunpack.c.l.bf16 %v7074_v29  ;;  %v7001_v38 = vsel %vm17157_vm14, %v519_v2, 0  ;;  %vm6733_vm5 = vmpackc.low %vm6429_vm13, %vm6429_vm13  ;;  %v521_v6 = vld [vmem:[%s11729_s17 + $0x2c0] sm:$0xf] }
 0x447   : > { %v7880_v5 = vadd.f32 %v7879_v21, %v7878_v37  ;;  %v8039_v51 = vsel %vm341_vm11, %v7416_v36, 0.0  ;;  %vm6504_vm1 = vcmp.eq.s32.totalorder %v6164_v25, 1  ;;  %v7801_v54 = vadd.f32 %v16463_v61, %v16441_v50  ;;  %v5942_v61 = vpop.permute.xlu1 %5941  ;;  %vm17204_vm3 = vmpackc.low %vm6394_vm2, %vm6394_vm2  ;;  %v6167_v23 = vpop.permute.xlu0 %6166  ;;  %v8406_v36 = vld [vmem:[%s18288_s3] sm:$0xff]  }
 0x448   : > { %v8040_v16 = vadd.f32 %v8039_v51, %v8038_v45  ;;  %v7960_v42 = vsel %vm341_vm11, %v7379_v28, 0.0  ;;  %v7037_v27 = vsel %vm6733_vm5, %v555_v46, 0  ;;  %vm6808_vm8 = vmpackc.low %vm6504_vm1, %vm6504_vm1  ;;  %vm6467_vm14 = vcmp.eq.s32.totalorder %v6053_v47, 1  ;;  %v631_v45 = vld [vmem:[%s11729_s17 + $0x478] sm:$0xf] }
 0x449   : > { %v7961_v30 = vadd.f32 %v7960_v42, %v7959_v15  ;;  %v7342_v44 = vunpack.c.l.bf16 %v7037_v27  ;;  %v7112_v41 = vsel %vm6808_vm8, %v630_v34, 0  ;;  %v6968_v40 = vsel %vm17180_vm9, %v486_v52, 0  ;;  %vm6771_vm12 = vmpackc.low %vm6467_vm14, %vm6467_vm14  ;;  %v594_v52 = vld [vmem:[%s11729_s17 + $0x3e4] sm:$0xf]  ;;  %v487_v42 = vld [vmem:[%s11729_s17 + $0x238] sm:$0xf] }
 0x44a   : > { %v7306_v14 = vunpack.c.l.bf16 %v7001_v38  ;;  %vm6395_vm15 = vcmp.eq.s32.totalorder %v15802_v11, 1  ;;  %v7417_v50 = vunpack.c.l.bf16 %v7112_v41  ;;  %vm6326_vm10 = vcmp.eq.s32.totalorder %v20533_v3, 1  ;;  %v488_v3 = vld [vmem:[%s11729_s17 + $0x23c] sm:$0xf]  ;;  %v489_v38 = vld [vmem:[%s11729_s17 + $0x240] sm:$0xf] }
 0x44b   : > { %vm6361_vm7 = vcmp.eq.s32.totalorder %v14857_v56, 1  ;;  %v7881_v1 = vsel %vm341_vm11, %v7342_v44, 0.0  ;;  %v7075_v53 = vsel %vm6771_vm12, %v593_v19, 0  ;;  %vm6430_vm4 = vcmp.eq.s32.totalorder %v5942_v61, 1  ;;  %vm17217_vm2 = vmpackc.low %vm6395_vm15, %vm6395_vm15  ;;  %v6056_v34 = vpop.permute.xlu1 %6055  ;;  %v5945_v19 = vpop.permute.xlu0 %5944  ;;  %v20576_v44 = vld [vmem:[#allocation41_spill] sm:$0xff] }
 0x44c   : > { %v7802_v2 = vsel %vm341_vm11, %v16459_v59, 0.0  ;;  %v7882_v37 = vadd.f32 %v7881_v1, %v7880_v5  ;;  %v8041_v26 = vsel %vm341_vm11, %v7417_v50, 0.0  ;;  %v7380_v49 = vunpack.c.l.bf16 %v7075_v53  ;;  %vm6734_vm6 = vmpackc.low %vm6430_vm4, %vm6430_vm4 }
 0x44d   : > { %v7803_v33 = vadd.f32 %v7802_v2, %v7801_v54  ;;  %v8042_v29 = vadd.f32 %v8041_v26, %v8040_v16  ;;  %v7038_v46 = vsel %vm6734_vm6, %v556_v13, 0  ;;  %vm6505_vm9 = vcmp.eq.s32.totalorder %v6167_v23, 1  ;;  %vm17232_vm1 = vmpackc.low %vm6361_vm7, %vm6361_vm7  ;;  %v523_v2 = vld [vmem:[%s11729_s17 + $0x2c8] sm:$0xf]  ;;  %v452_v23 = vld [vmem:[%s11729_s17 + $0x1ac] sm:$0xf] }
 0x44e   : > { %v7804_v59 = vsel %vm341_vm11, %v7306_v14, 0.0  ;;  %v7002_v62 = vsel %vm17204_vm3, %v520_v10, 0  ;;  %v7962_v15 = vsel %vm341_vm11, %v7380_v49, 0.0  ;;  %v7343_v21 = vunpack.c.l.bf16 %v7038_v46  ;;  %vm6809_vm13 = vmpackc.low %vm6505_vm9, %vm6505_vm9  ;;  %v522_v14 = vld [vmem:[%s11729_s17 + $0x2c4] sm:$0xf] }
 0x44f   : > { %v17225_v28 = vunpack.c.l.bf16 %v6968_v40  ;;  %vm6396_vm5 = vcmp.eq.s32.totalorder %v15837_v31, 1  ;;  %v7963_v11 = vadd.f32 %v7962_v15, %v7961_v30  ;;  %v7113_v25 = vsel %vm6809_vm13, %v631_v45, 0  ;;  %v557_v30 = vld [vmem:[%s11729_s17 + $0x350] sm:$0xf]  ;;  %v17259_v48 = vpop.permute.xlu1 %6169  ;;  %v17273_v49 = vpop.permute.xlu0 %6058  ;;  %vm17279_vm9 = vmpackc.low %vm6326_vm10, %vm6326_vm10  ;;  %v490_v45 = vld [vmem:[%s11729_s17 + $0x244] sm:$0xf] }
 0x450   : > { %v7003_v5 = vsel %vm17217_vm2, %v521_v6, 0  ;;  %v7883_v51 = vsel %vm341_vm11, %v7343_v21, 0.0  ;;  %v7418_v54 = vunpack.c.l.bf16 %v7113_v25  ;;  %vm6468_vm8 = vcmp.eq.s32.totalorder %v6056_v34, 1  ;;  %vm17246_vm15 = vmpackc.low %vm6396_vm5, %vm6396_vm5  ;;  %v8407_v34 = vld [vmem:[%s18288_s3 + $0x8] sm:$0xff]  }
 0x451   : > { %v7731_v16 = vsel %vm341_vm11, %v16318_v8, 0.0  ;;  %v7805_v27 = vadd.f32 %v7804_v59, %v7803_v33  ;;  %v7307_v47 = vunpack.c.l.bf16 %v7002_v62  ;;  %v7884_v56 = vadd.f32 %v7883_v51, %v7882_v37  ;;  %vm6772_vm14 = vmpackc.low %vm6468_vm8, %vm6468_vm8 }
 0x452   : > { %vm6397_vm12 = vcmp.eq.s32.totalorder %v15855_v24, 1  ;;  %v8043_v41 = vsel %vm341_vm11, %v7418_v54, 0.0  ;;  %v7076_v40 = vsel %vm6772_vm14, %v594_v52, 0  ;;  %vm6431_vm7 = vcmp.eq.s32.totalorder %v5945_v19, 1 }
 0x453   : > { %v7308_v8 = vunpack.c.l.bf16 %v7003_v5  ;;  %v17253_v50 = vadd.f32 %v8043_v41, %v8042_v29  ;;  %v7381_v61 = vunpack.c.l.bf16 %v7076_v40  ;;  %vm6735_vm3 = vmpackc.low %vm6431_vm7, %vm6431_vm7  ;;  %v7732_v31 = vadd.f32 %v7731_v16, %v16298_v18  ;;  %v20546_v29 = vld [vmem:[#allocation97_spill] sm:$0xff]  ;;  %v17327_v54 = vpop.permute.xlu1 %5947  ;;  %v17351_v41 = vpop.permute.xlu0 %6172 }
 0x454   : > { %v6969_v13 = vsel %vm17232_vm1, %v487_v42, 0  ;;  %vm6362_vm4 = vcmp.eq.s32.totalorder %v14885_v12, 1  ;;  %v7039_v10 = vsel %vm6735_vm3, %v557_v30, 0  ;;  %v8491_v1 = vmov 0.0   ;;  %vm17268_vm2 = vmpackc.low %vm6397_vm12, %vm6397_vm12  ;;  %v524_v30 = vld [vmem:[%s11729_s17 + $0x2cc] sm:$0xf] }
 0x455   : > { %342 = vst.msk [vmem:[#allocation2] sm:$0xff] %vm341_vm11, %v8491_v1  ;;  %8331 = vmatprep.subr.bf16.mxu0 %v8491_v1  ;;  %vm6363_vm6 = vcmp.eq.s32.totalorder %v14913_v63, 1  ;;  %v7806_v53 = vsel %vm341_vm11, %v7307_v47, 0.0  ;;  %v7964_v37 = vsel %vm341_vm11, %v7381_v61, 0.0  ;;  %v7344_v26 = vunpack.c.l.bf16 %v7039_v10  ;;  %vm17295_vm10 = vmpackc.low %vm6362_vm4, %vm6362_vm4  ;;  %v20554_v47 = vld [vmem:[#allocation39_spill] sm:$0xff] }
 0x456   : > { %v7807_v33 = vadd.f32 %v7806_v53, %v7805_v27  ;;  %v7004_v24 = vsel %vm17246_vm15, %v522_v14, 0  ;;  %v17285_v6 = vadd.f32 %v7964_v37, %v7963_v11  ;;  %vm6327_vm13 = vcmp.eq.s32.totalorder %v20546_v29, 1  ;;  %8332 = vmatpush3.bf16.msra.mxu0 %v8406_v36  ;;  %v454_v10 = vld [vmem:[%s11729_s17 + $0x1b4] sm:$0xf]  ;;  %v20567_v29 = vld [vmem:[#allocation36_spill] sm:$0xff] }
 0x457   : > { %v7274_v46 = vunpack.c.l.bf16 %v6969_v13  ;;  %v7808_v62 = vsel %vm341_vm11, %v7308_v8, 0.0  ;;  %v7885_v15 = vsel %vm341_vm11, %v7344_v26, 0.0  ;;  %vm8492_vm5 = vmmov 0   ;;  %8333 = vmatprep.subr.bf16.mxu0 %v8491_v1  ;;  %vm17333_vm8 = vmpackc.low %vm6327_vm13, %vm6327_vm13  ;;  %v525_v13 = vld [vmem:[%s11729_s17 + $0x2d0] sm:$0xf]  ;;  %v17395_v36 = vpop.permute.xlu1 %6061  ;;  %v17401_v59 = vpop.permute.xlu0 %5950 }
 0x458   : > { %8335 = vmatprep.mubr.msk.bf16.mxu0 %vm8492_vm5, %v8491_v1  ;;  %v20549_v21 = vsel %vm16226_vm0, %v16221_v9, 0  ;;  %v7005_v12 = vsel %vm17268_vm2, %v523_v2, 0  ;;  %vm6398_vm1 = vcmp.eq.s32.totalorder %v15882_v22, 1  ;;  %v17308_v25 = vadd.f32 %v7885_v15, %v7884_v56  ;;  %vm17323_vm0 = vmpackc.low %vm6363_vm6, %vm6363_vm6  ;;  %v20563_v2 = vld [vmem:[#allocation48_spill] sm:$0xff]  ;;  %v20564_v26 = vld [vmem:[#allocation93_spill] sm:$0xff] }
 0x459   : > { %v7238_v11 = vunpack.c.l.bf16 %v20549_v21  ;;  %v7656_v52 = vsel %vm341_vm11, %v16262_v17, 0.0  ;;  %v6934_v35 = vsel %vm17279_vm9, %v452_v23, 0  ;;  %v7733_v9 = vsel %vm341_vm11, %v17225_v28, 0.0  ;;  %v453_v17 = vld [vmem:[%s11729_s17 + $0x1b0] sm:$0xf]  ;;  %vm17347_vm12 = vmpackc.low %vm6398_vm1, %vm6398_vm1 }
 0x45a   : > { %v7309_v51 = vunpack.c.l.bf16 %v7004_v24  ;;  %v7734_v28 = vadd.f32 %v7733_v9, %v7732_v31  ;;  %v6970_v63 = vsel %vm17295_vm10, %v488_v3, 0  ;;  %v7809_v42 = vadd.f32 %v7808_v62, %v7807_v33  ;;  %8334 = vmatpush3.bf16.msra.mxu0 %v8407_v34  ;;  %v456_v33 = vld [vmem:[%s11729_s17 + $0x1bc] sm:$0xf] }
 0x45b   : > { %vm6399_vm14 = vcmp.eq.s32.totalorder %v15917_v4, 1  ;;  %v7657_v27 = vadd.f32 %v7656_v52, %v16256_v20  ;;  %vm6328_vm15 = vcmp.eq.s32.totalorder %v20554_v47, 1  ;;  %v7735_v56 = vsel %vm341_vm11, %v7274_v46, 0.0  ;;  %v455_v52 = vld [vmem:[%s11729_s17 + $0x1b8] sm:$0xf] }
 0x45c   : > { %v7310_v19 = vunpack.c.l.bf16 %v7005_v12  ;;  %vm20557_vm7 = vnez %v20133_v7  ;;  %v7658_v8 = vsel %vm341_vm11, %v7238_v11, 0.0  ;;  %v6971_v14 = vsel %vm17323_vm0, %v489_v38, 0  ;;  %vm17370_vm4 = vmpackc.low %vm6399_vm14, %vm6399_vm14  ;;  %v491_v11 = vld [vmem:[%s11729_s17 + $0x248] sm:$0xf] }
 0x45d   : > { %v20558_v20 = vsel %vm20557_vm7, %v15290_v58, 0  ;;  %vm6364_vm3 = vcmp.eq.s32.totalorder %v14957_v0, 1  ;;  %v7239_v22 = vunpack.c.l.bf16 %v6934_v35  ;;  %v6935_v61 = vsel %vm17333_vm8, %v453_v17, 0  ;;  %vm17378_vm6 = vmpackc.low %vm6328_vm15, %vm6328_vm15  ;;  %v20568_v0 = vld [vmem:[#allocation12_spill] sm:$0xff] }
 0x45e   : > { %v17357_v40 = vunpack.c.l.bf16 %v20558_v20  ;;  %v7275_v31 = vunpack.c.l.bf16 %v6970_v63  ;;  %v7810_v7 = vsel %vm341_vm11, %v7309_v51, 0.0  ;;  %v7736_v53 = vadd.f32 %v7735_v56, %v7734_v28  ;;  %vm17390_vm13 = vmpackc.low %vm6364_vm3, %vm6364_vm3  ;;  %v526_v63 = vld [vmem:[%s11729_s17 + $0x2d4] sm:$0xf] }
 0x45f   : > { %vm6365_vm2 = vcmp.eq.s32.totalorder %v20563_v2, 1  ;;  %v7811_v18 = vadd.f32 %v7810_v7, %v7809_v42  ;;  %v7006_v4 = vsel %vm17347_vm12, %v524_v30, 0  ;;  %v7659_v37 = vadd.f32 %v7658_v8, %v7657_v27  ;;  %v17438_v27 = vpop.permute.xlu1 %6175  ;;  %v17444_v30 = vpop.permute.xlu0 %6064  ;;  %v20581_v7 = vld [vmem:[#allocation17_spill] sm:$0xff]  ;;  %v420_v42 = vld [vmem:[%s11729_s17 + $0x12c] sm:$0xf] }
 0x460   : > { %vm6329_vm9 = vcmp.eq.s32.totalorder %v20564_v26, 1  ;;  %v7276_v23 = vunpack.c.l.bf16 %v6971_v14  ;;  %v7812_v24 = vsel %vm341_vm11, %v7310_v19, 0.0  ;;  %vm6293_vm10 = vcmp.eq.s32.totalorder %v20567_v29, 1  ;;  %vm17412_vm0 = vmpackc.low %vm6365_vm2, %vm6365_vm2  ;;  %v20575_v19 = vld [vmem:[#allocation76_spill] sm:$0xff]  ;;  %v527_v14 = vld [vmem:[%s11729_s17 + $0x2d8] sm:$0xf] }
 0x461   : > { %v7240_v46 = vunpack.c.l.bf16 %v6935_v61  ;;  %v7007_v3 = vsel %vm17370_vm4, %v525_v13, 0  ;;  %vm6400_vm5 = vcmp.eq.s32.totalorder %v15930_v60, 1  ;;  %vm6294_vm1 = vcmp.eq.s32.totalorder %v20568_v0, 1  ;;  %vm17420_vm8 = vmpackc.low %vm6329_vm9, %vm6329_vm9  ;;  %v20597_v0 = vld [vmem:[#allocation74_spill] sm:$0xff] }
 0x462   : > { %v7660_v62 = vsel %vm341_vm11, %v7239_v22, 0.0  ;;  %v6936_v15 = vsel %vm17378_vm6, %v454_v10, 0  ;;  %v7737_v21 = vsel %vm341_vm11, %v7275_v31, 0.0  ;;  %v7311_v34 = vunpack.c.l.bf16 %v7006_v4  ;;  %vm17434_vm15 = vmpackc.low %vm6400_vm5, %vm6400_vm5  ;;  %v20582_v10 = vld [vmem:[#allocation40_spill] sm:$0xff] }
 0x463   : > { %v7738_v9 = vadd.f32 %v7737_v21, %v7736_v53  ;;  %v6972_v38 = vsel %vm17390_vm13, %v490_v45, 0  ;;  %v7813_v5 = vadd.f32 %v7812_v24, %v7811_v18  ;;  %vm6401_vm14 = vcmp.eq.s32.totalorder %v15970_v39, 1  ;;  %vm17461_vm4 = vmpackc.low %vm6293_vm10, %vm6293_vm10  ;;  %v492_v53 = vld [vmem:[%s11729_s17 + $0x24c] sm:$0xf]  ;;  %v17478_v4 = vpop.permute.xlu1 %5953  ;;  %v17505_v12 = vpop.permute.xlu0 %6178  ;;  %v458_v24 = vld [vmem:[%s11729_s17 + $0x1c4] sm:$0xf] }
 0x464   : > { %v7585_v51 = vsel %vm341_vm11, %v15255_v32, 0.0  ;;  %v7661_v17 = vadd.f32 %v7660_v62, %v7659_v37  ;;  %v7739_v16 = vsel %vm341_vm11, %v7276_v23, 0.0  ;;  %v7312_v28 = vunpack.c.l.bf16 %v7007_v3  ;;  %vm17454_vm3 = vmpackc.low %vm6401_vm14, %vm6401_vm14  ;;  %v20585_v37 = vld [vmem:[#allocation99_spill] sm:$0xff]  ;;  %v419_v23 = vld [vmem:[%s11729_s17 + $0x128] sm:$0xf] }
 0x465   : > { %v7662_v47 = vsel %vm341_vm11, %v7240_v46, 0.0  ;;  %v7241_v56 = vunpack.c.l.bf16 %v6936_v15  ;;  %v6973_v32 = vsel %vm17412_vm0, %v491_v11, 0  ;;  %vm6366_vm12 = vcmp.eq.s32.totalorder %v20575_v19, 1  ;;  %v493_v15 = vld [vmem:[%s11729_s17 + $0x250] sm:$0xf]  ;;  %v20596_v19 = vld [vmem:[#allocation51_spill] sm:$0xff] }
 0x466   : > { %v6937_v60 = vsel %vm17420_vm8, %v455_v52, 0  ;;  %vm6330_vm7 = vcmp.eq.s32.totalorder %v20576_v44, 1  ;;  %v7277_v20 = vunpack.c.l.bf16 %v6972_v38  ;;  %v7814_v8 = vsel %vm341_vm11, %v7311_v34, 0.0  ;;  %vm17473_vm9 = vmpackc.low %vm6366_vm12, %vm6366_vm12  ;;  %v457_v34 = vld [vmem:[%s11729_s17 + $0x1c0] sm:$0xf] }
 0x467   : > { %v7740_v31 = vadd.f32 %v7739_v16, %v7738_v9  ;;  %vm6367_vm6 = vcmp.eq.s32.totalorder %v20581_v7, 1  ;;  %v7815_v13 = vadd.f32 %v7814_v8, %v7813_v5  ;;  %v7008_v39 = vsel %vm17434_vm15, %v526_v63, 0  ;;  %vm17486_vm13 = vmpackc.low %vm6330_vm7, %vm6330_vm7  ;;  %v528_v16 = vld [vmem:[%s11729_s17 + $0x2dc] sm:$0xf]  ;;  %v17529_v63 = vpop.permute.xlu1 %6067  ;;  %v529_v8 = vld [vmem:[%s11729_s17 + $0x2e0] sm:$0xf]  ;;  %v17557_v22 = vpop.permute.xlu0 %5956 }
 0x468   : > { %v7663_v58 = vadd.f32 %v7662_v47, %v7661_v17  ;;  %vm6331_vm2 = vcmp.eq.s32.totalorder %v20582_v10, 1  ;;  %v7278_v1 = vunpack.c.l.bf16 %v6973_v32  ;;  %v7816_v18 = vsel %vm341_vm11, %v7312_v28, 0.0  ;;  %vm17501_vm5 = vmpackc.low %vm6367_vm6, %vm6367_vm6 }
 0x469   : > { %v7586_v26 = vadd.f32 %v7585_v51, %v20585_v37  ;;  %v7242_v45 = vunpack.c.l.bf16 %v6937_v60  ;;  %v7009_v29 = vsel %vm17454_vm3, %v527_v14, 0  ;;  %vm6402_vm10 = vcmp.eq.s32.totalorder %v16010_v43, 1  ;;  %vm17511_vm0 = vmpackc.low %vm6331_vm2, %vm6331_vm2 }
 0x46a   : > { %v7587_v46 = vsel %vm341_vm11, %v17357_v40, 0.0  ;;  %v7664_v3 = vsel %vm341_vm11, %v7241_v56, 0.0  ;;  %v7741_v62 = vsel %vm341_vm11, %v7277_v20, 0.0  ;;  %v7313_v11 = vunpack.c.l.bf16 %v7008_v39  ;;  %vm17525_vm14 = vmpackc.low %vm6402_vm10, %vm6402_vm10  ;;  %v20607_v40 = vld [vmem:[#allocation52_spill] sm:$0xff] }
 0x46b   : > { %v7742_v52 = vadd.f32 %v7741_v62, %v7740_v31  ;;  %v6974_v35 = vsel %vm17473_vm9, %v492_v53, 0  ;;  %v7817_v9 = vadd.f32 %v7816_v18, %v7815_v13  ;;  %vm6403_vm8 = vcmp.eq.s32.totalorder %v16038_v55, 1  ;;  %vm17535_vm15 = vmpackc.low %vm6294_vm1, %vm6294_vm1  ;;  %v20600_v31 = vld [vmem:[#allocation50_spill] sm:$0xff]  ;;  %v494_v55 = vld [vmem:[%s11729_s17 + $0x254] sm:$0xf]  ;;  %v17593_v21 = vpop.permute.xlu1 %6181 }
 0x46c   : > { %v6901_v38 = vsel %vm17461_vm4, %v419_v23, 0  ;;  %v7665_v5 = vadd.f32 %v7664_v3, %v7663_v58  ;;  %v7743_v51 = vsel %vm341_vm11, %v7278_v1, 0.0  ;;  %v7314_v17 = vunpack.c.l.bf16 %v7009_v29  ;;  %vm17553_vm1 = vmpackc.low %vm6403_vm8, %vm6403_vm8  ;;  %v495_v3 = vld [vmem:[%s11729_s17 + $0x258] sm:$0xf]  ;;  %v20618_v62 = vld [vmem:[#allocation80_spill] sm:$0xff] }
 0x46d   : > { %v7666_v56 = vsel %vm341_vm11, %v7242_v45, 0.0  ;;  %v6938_v43 = vsel %vm17486_vm13, %v456_v33, 0  ;;  %v6975_v32 = vsel %vm17501_vm5, %v493_v15, 0  ;;  %vm6368_vm12 = vcmp.eq.s32.totalorder %v20596_v19, 1 }
 0x46e   : > { %v6939_v60 = vsel %vm17511_vm0, %v457_v34, 0  ;;  %vm6332_vm7 = vcmp.eq.s32.totalorder %v20597_v0, 1  ;;  %v7279_v44 = vunpack.c.l.bf16 %v6974_v35  ;;  %v7818_v20 = vsel %vm341_vm11, %v7313_v11, 0.0  ;;  %vm17566_vm4 = vmpackc.low %vm6368_vm12, %vm6368_vm12  ;;  %v17595_v11 = vpop.permute.xlu0 %6070 }
 0x46f   : > { %v7744_v61 = vadd.f32 %v7743_v51, %v7742_v52  ;;  %vm6369_vm3 = vcmp.eq.s32.totalorder %v20600_v31, 1  ;;  %v7819_v7 = vadd.f32 %v7818_v20, %v7817_v9  ;;  %v7010_v13 = vsel %vm17525_vm14, %v528_v16, 0  ;;  %vm17576_vm6 = vmpackc.low %vm6332_vm7, %vm6332_vm7  ;;  %v533_v51 = vld [vmem:[%s11729_s17 + $0x2f0] sm:$0xf] }
 0x470   : > { %v7206_v39 = vunpack.c.l.bf16 %v6901_v38  ;;  %v7243_v58 = vunpack.c.l.bf16 %v6938_v43  ;;  %v7280_v10 = vunpack.c.l.bf16 %v6975_v32  ;;  %v7820_v53 = vsel %vm341_vm11, %v7314_v17, 0.0  ;;  %vm17589_vm9 = vmpackc.low %vm6369_vm3, %vm6369_vm3  ;;  %v531_v32 = vld [vmem:[%s11729_s17 + $0x2e8] sm:$0xf] }
 0x471   : > { %v6902_v2 = vsel %vm17535_vm15, %v420_v42, 0  ;;  %v7667_v18 = vadd.f32 %v7666_v56, %v7665_v5  ;;  %v7011_v23 = vsel %vm17553_vm1, %v529_v8, 0  ;;  %vm6404_vm2 = vcmp.eq.s32.totalorder %v16049_v57, 1  ;;  %v530_v5 = vld [vmem:[%s11729_s17 + $0x2e4] sm:$0xf]  ;;  %v20610_v42 = vld [vmem:[#allocation78_spill] sm:$0xff] }
 0x472   : > { %v7588_v45 = vadd.f32 %v7587_v46, %v7586_v26  ;;  %v7244_v33 = vunpack.c.l.bf16 %v6939_v60  ;;  %v7745_v29 = vsel %vm341_vm11, %v7279_v44, 0.0  ;;  %v7315_v15 = vunpack.c.l.bf16 %v7010_v13  ;;  %vm17607_vm10 = vmpackc.low %vm6404_vm2, %vm6404_vm2  ;;  %v17626_v60 = vpop.permute.xlu1 %5959  ;;  %v17630_v8 = vpop.permute.xlu0 %6184  ;;  %v595_v13 = vld [vmem:[%s11729_s17 + $0x3e8] sm:$0xf] }
 0x473   : > { %v7746_v34 = vadd.f32 %v7745_v29, %v7744_v61  ;;  %v6976_v26 = vsel %vm17566_vm4, %v494_v55, 0  ;;  %v7821_v46 = vadd.f32 %v7820_v53, %v7819_v7  ;;  %vm6405_vm13 = vcmp.eq.s32.totalorder %v20607_v40, 1  ;;  %v496_v7 = vld [vmem:[%s11729_s17 + $0x25c] sm:$0xf]  ;;  %v532_v40 = vld [vmem:[%s11729_s17 + $0x2ec] sm:$0xf] }
 0x474   : > { %v7589_v52 = vsel %vm341_vm11, %v7206_v39, 0.0  ;;  %v7668_v35 = vsel %vm341_vm11, %v7243_v58, 0.0  ;;  %v7747_v9 = vsel %vm341_vm11, %v7280_v10, 0.0  ;;  %v7316_v38 = vunpack.c.l.bf16 %v7011_v23  ;;  %vm17622_vm0 = vmpackc.low %vm6405_vm13, %vm6405_vm13  ;;  %v20615_v58 = vld [vmem:[#allocation42_spill] sm:$0xff] }
 0x475   : > { %v7669_v17 = vadd.f32 %v7668_v35, %v7667_v18  ;;  %v6940_v16 = vsel %vm17576_vm6, %v458_v24, 0  ;;  %v6977_v28 = vsel %vm17589_vm9, %v495_v3, 0  ;;  %vm6370_vm5 = vcmp.eq.s32.totalorder %v20610_v42, 1  ;;  %v20616_v53 = vld [vmem:[#allocation30_spill] sm:$0xff] }
 0x476   : > { %v7207_v47 = vunpack.c.l.bf16 %v6902_v2  ;;  %v7670_v56 = vsel %vm341_vm11, %v7244_v33, 0.0  ;;  %v7281_v43 = vunpack.c.l.bf16 %v6976_v26  ;;  %v7822_v57 = vsel %vm341_vm11, %v7315_v15, 0.0  ;;  %vm17636_vm8 = vmpackc.low %vm6370_vm5, %vm6370_vm5  ;;  %v20617_v2 = vld [vmem:[#allocation45_spill] sm:$0xff]  ;;  %v17649_v33 = vpop.permute.xlu1 %6073  ;;  %v17661_v35 = vpop.permute.xlu0 %5962 }
 0x477   : > { %v7748_v0 = vadd.f32 %v7747_v9, %v7746_v34  ;;  %v7823_v44 = vadd.f32 %v7822_v57, %v7821_v46  ;;  %v7012_v20 = vsel %vm17607_vm10, %v530_v5, 0  ;;  %v7590_v14 = vadd.f32 %v7589_v52, %v7588_v45 }
 0x478   : > { %v7245_v61 = vunpack.c.l.bf16 %v6940_v16  ;;  %v7282_v31 = vunpack.c.l.bf16 %v6977_v28  ;;  %v7824_v39 = vsel %vm341_vm11, %v7316_v38, 0.0  ;;  %v7510_v10 = vsel %vm341_vm11, %v20615_v58, 0.0  ;;  %v20623_v16 = vld [vmem:[#allocation29_spill] sm:$0xff] }
 0x479   : > { %v7671_v55 = vadd.f32 %v7670_v56, %v7669_v17  ;;  %v7013_v1 = vsel %vm17622_vm0, %v531_v32, 0  ;;  %vm6406_vm14 = vcmp.eq.s32.totalorder %v20616_v53, 1  ;;  %v7511_v18 = vadd.f32 %v7510_v10, %v20617_v2  ;;  %v632_v32 = vld [vmem:[%s11729_s17 + $0x47c] sm:$0xf] }
 0x47a   : > { %v7591_v37 = vsel %vm341_vm11, %v7207_v47, 0.0  ;;  %v7749_v23 = vsel %vm341_vm11, %v7281_v43, 0.0  ;;  %v7317_v45 = vunpack.c.l.bf16 %v7012_v20  ;;  %v6978_v29 = vsel %vm17636_vm8, %v496_v7, 0  ;;  %vm17657_vm12 = vmpackc.low %vm6406_vm14, %vm6406_vm14  ;;  %v17671_v28 = vpop.permute.xlu1 %6187  ;;  %v534_v7 = vld [vmem:[%s11729_s17 + $0x2f4] sm:$0xf] }
 0x47b   : > { %v7750_v24 = vadd.f32 %v7749_v23, %v7748_v0  ;;  %v7825_v3 = vadd.f32 %v7824_v39, %v7823_v44  ;;  %vm6407_vm15 = vcmp.eq.s32.totalorder %v20618_v62, 1  ;;  %v7592_v15 = vadd.f32 %v7591_v37, %v7590_v14  ;;  %v17683_v0 = vpop.permute.xlu0 %6076  ;;  %v633_v23 = vld [vmem:[%s11729_s17 + $0x480] sm:$0xf] }
 0x47c   : > { %v7672_v34 = vsel %vm341_vm11, %v7245_v61, 0.0  ;;  %v7751_v26 = vsel %vm341_vm11, %v7282_v31, 0.0  ;;  %v7318_v46 = vunpack.c.l.bf16 %v7013_v1  ;;  %vm6506_vm7 = vcmp.eq.s32.totalorder %v17259_v48, 1  ;;  %vm17666_vm1 = vmpackc.low %vm6407_vm15, %vm6407_vm15 }
 0x47d   : > { %v7673_v9 = vadd.f32 %v7672_v34, %v7671_v55  ;;  %v7283_v38 = vunpack.c.l.bf16 %v6978_v29  ;;  %v7826_v5 = vsel %vm341_vm11, %v7317_v45, 0.0  ;;  %vm6408_vm3 = vcmp.eq.s32.totalorder %v20623_v16, 1  ;;  %vm17678_vm6 = vmpackc.low %vm6506_vm7, %vm6506_vm7  ;;  %v558_v55 = vld [vmem:[%s11729_s17 + $0x354] sm:$0xf] }
 0x47e   : > { %v7752_v42 = vadd.f32 %v7751_v26, %v7750_v24  ;;  %v7827_v47 = vadd.f32 %v7826_v5, %v7825_v3  ;;  %v7014_v56 = vsel %vm17657_vm12, %v532_v40, 0  ;;  %vm6469_vm4 = vcmp.eq.s32.totalorder %v17273_v49, 1  ;;  %vm17687_vm9 = vmpackc.low %vm6408_vm3, %vm6408_vm3  ;;  %v17710_v53 = vpop.permute.xlu1 %5965  ;;  %v596_v40 = vld [vmem:[%s11729_s17 + $0x3ec] sm:$0xf] }
 0x47f   : > { %v7512_v48 = vrot.slane %v7511_v18, 4  ;;  %v7593_v43 = vrot.slane %v7592_v15, 4  ;;  %v7828_v57 = vsel %vm341_vm11, %v7318_v46, 0.0  ;;  %vm6432_vm2 = vcmp.eq.s32.totalorder %v17327_v54, 1  ;;  %vm17698_vm10 = vmpackc.low %vm6469_vm4, %vm6469_vm4  ;;  %v17732_v3 = vpop.permute.xlu0 %6190 }
 0x480   : > { %v7674_v44 = vrot.slane %v7673_v9, 4  ;;  %v7015_v20 = vsel %vm17666_vm1, %v533_v51, 0  ;;  %vm6507_vm13 = vcmp.eq.s32.totalorder %v17351_v41, 1  ;;  %v7753_v61 = vsel %vm341_vm11, %v7283_v38, 0.0  ;;  %vm17705_vm5 = vmpackc.low %vm6432_vm2, %vm6432_vm2  ;;  %v559_v51 = vld [vmem:[%s11729_s17 + $0x358] sm:$0xf] }
 0x481   : > { %v7319_v31 = vunpack.c.l.bf16 %v7014_v56  ;;  %v7754_v39 = vadd.f32 %v7753_v61, %v7752_v42  ;;  %v7829_v58 = vadd.f32 %v7828_v57, %v7827_v47  ;;  %v7114_v10 = vsel %vm17678_vm6, %v632_v32, 0  ;;  %vm17720_vm8 = vmpackc.low %vm6507_vm13, %vm6507_vm13  ;;  %v634_v56 = vld [vmem:[%s11729_s17 + $0x484] sm:$0xf]  ;;  %v597_v61 = vld [vmem:[%s11729_s17 + $0x3f0] sm:$0xf] }
 0x482   : > { %vm6470_vm0 = vcmp.eq.s32.totalorder %v17395_v36, 1  ;;  %v17712_v49 = vadd.f32 %v7512_v48, %v7511_v18  ;;  %v17714_v2 = vadd.f32 %v7593_v43, %v7592_v15  ;;  %v7320_v37 = vunpack.c.l.bf16 %v7015_v20  ;;  %v17753_v36 = vpop.permute.xlu1 %6079 }
 0x483   : > { %vm6433_vm14 = vcmp.eq.s32.totalorder %v17401_v59, 1  ;;  %v17725_v24 = vadd.f32 %v7674_v44, %v7673_v9  ;;  %v7016_v18 = vsel %vm17687_vm9, %v534_v7, 0  ;;  %v7077_v29 = vsel %vm17698_vm10, %v595_v13, 0  ;;  %vm17740_vm12 = vmpackc.low %vm6470_vm0, %vm6470_vm0  ;;  %v17776_v48 = vpop.permute.xlu0 %5968 }
 0x484   : > { %vm6508_vm15 = vcmp.eq.s32.totalorder %v17438_v27, 1  ;;  %v7830_v41 = vsel %vm341_vm11, %v7319_v31, 0.0  ;;  %v7419_v62 = vunpack.c.l.bf16 %v7114_v10  ;;  %v7040_v15 = vsel %vm17705_vm5, %v558_v55, 0  ;;  %vm17748_vm1 = vmpackc.low %vm6433_vm14, %vm6433_vm14  ;;  %v560_v31 = vld [vmem:[%s11729_s17 + $0x35c] sm:$0xf] }
 0x485   : > { %vm6471_vm7 = vcmp.eq.s32.totalorder %v17444_v30, 1  ;;  %v7755_v34 = vrot.slane %v7754_v39, 4  ;;  %v7831_v26 = vadd.f32 %v7830_v41, %v7829_v58  ;;  %v7115_v46 = vsel %vm17720_vm8, %v633_v23, 0  ;;  %vm17760_vm4 = vmpackc.low %vm6508_vm15, %vm6508_vm15  ;;  %v635_v58 = vld [vmem:[%s11729_s17 + $0x488] sm:$0xf] }
 0x486   : > { %vm6434_vm3 = vcmp.eq.s32.totalorder %v17478_v4, 1  ;;  %v7832_v9 = vsel %vm341_vm11, %v7320_v37, 0.0  ;;  %v7321_v38 = vunpack.c.l.bf16 %v7016_v18  ;;  %v7382_v5 = vunpack.c.l.bf16 %v7077_v29  ;;  %vm17771_vm2 = vmpackc.low %vm6471_vm7, %vm6471_vm7  ;;  %v17803_v7 = vpop.permute.xlu1 %6193  ;;  %v598_v37 = vld [vmem:[%s11729_s17 + $0x3f4] sm:$0xf]  ;;  %v561_v23 = vld [vmem:[%s11729_s17 + $0x360] sm:$0xf] }
 0x487   : > { %vm6509_vm6 = vcmp.eq.s32.totalorder %v17505_v12, 1  ;;  %v7514_v16 = vrot.slane %v17712_v49, 2  ;;  %v7595_v42 = vrot.slane %v17714_v2, 2  ;;  %v7345_v47 = vunpack.c.l.bf16 %v7040_v15  ;;  %vm17784_vm13 = vmpackc.low %vm6434_vm3, %vm6434_vm3  ;;  %v17830_v45 = vpop.permute.xlu0 %6082 }
 0x488   : > { %vm6472_vm9 = vcmp.eq.s32.totalorder %v17529_v63, 1  ;;  %v8045_v43 = vsel %vm341_vm11, %v7419_v62, 0.0  ;;  %v7420_v57 = vunpack.c.l.bf16 %v7115_v46  ;;  %v7078_v32 = vsel %vm17740_vm12, %v596_v40, 0  ;;  %vm17799_vm5 = vmpackc.low %vm6509_vm6, %vm6509_vm6 }
 0x489   : > { %vm6435_vm10 = vcmp.eq.s32.totalorder %v17557_v22, 1  ;;  %v7676_v19 = vrot.slane %v17725_v24, 2  ;;  %v17790_v44 = vadd.f32 %v7755_v34, %v7754_v39  ;;  %v7833_v20 = vadd.f32 %v7832_v9, %v7831_v26  ;;  %vm17813_vm0 = vmpackc.low %vm6472_vm9, %vm6472_vm9  ;;  %v636_v26 = vld [vmem:[%s11729_s17 + $0x48c] sm:$0xf]  ;;  %v599_v9 = vld [vmem:[%s11729_s17 + $0x3f8] sm:$0xf] }
 0x48a   : > { %v7041_v14 = vsel %vm17748_vm1, %v559_v51, 0  ;;  %v7834_v13 = vsel %vm341_vm11, %v7321_v38, 0.0  ;;  %v7966_v54 = vsel %vm341_vm11, %v7382_v5, 0.0  ;;  %v7116_v39 = vsel %vm17760_vm4, %v634_v56, 0  ;;  %vm17825_vm14 = vmpackc.low %vm6435_vm10, %vm6435_vm10  ;;  %v562_v38 = vld [vmem:[%s11729_s17 + $0x364] sm:$0xf] }
 0x48b   : > { %vm6510_vm8 = vcmp.eq.s32.totalorder %v17593_v21, 1  ;;  %v8046_v10 = vadd.f32 %v8045_v43, %v17253_v50  ;;  %v7887_v55 = vsel %vm341_vm11, %v7345_v47, 0.0  ;;  %v7383_v1 = vunpack.c.l.bf16 %v7078_v32  ;;  %v17859_v21 = vpop.permute.xlu1 %5971  ;;  %v17874_v56 = vpop.permute.xlu0 %6196 }
 0x48c   : > { %vm6473_vm15 = vcmp.eq.s32.totalorder %v17595_v11, 1  ;;  %v8047_v18 = vsel %vm341_vm11, %v7420_v57, 0.0  ;;  %v7346_v50 = vunpack.c.l.bf16 %v7041_v14  ;;  %v7079_v29 = vsel %vm17771_vm2, %v597_v61, 0  ;;  %vm17844_vm7 = vmpackc.low %vm6510_vm8, %vm6510_vm8  ;;  %v637_v57 = vld [vmem:[%s11729_s17 + $0x490] sm:$0xf] }
 0x48d   : > { %vm6436_vm12 = vcmp.eq.s32.totalorder %v17626_v60, 1  ;;  %v7967_v22 = vadd.f32 %v7966_v54, %v17285_v6  ;;  %v7421_v41 = vunpack.c.l.bf16 %v7116_v39  ;;  %v7042_v62 = vsel %vm17784_vm13, %v560_v31, 0  ;;  %vm17854_vm1 = vmpackc.low %vm6473_vm15, %vm6473_vm15  ;;  %v600_v39 = vld [vmem:[%s11729_s17 + $0x3fc] sm:$0xf] }
 0x48e   : > { %v7117_v11 = vsel %vm17799_vm5, %v635_v58, 0  ;;  %v7888_v59 = vadd.f32 %v7887_v55, %v17308_v25  ;;  %v7080_v6 = vsel %vm17813_vm0, %v598_v37, 0  ;;  %v7043_v34 = vsel %vm17825_vm14, %v561_v23, 0  ;;  %vm17867_vm4 = vmpackc.low %vm6436_vm12, %vm6436_vm12 }
 0x48f   : > { %vm6511_vm3 = vcmp.eq.s32.totalorder %v17630_v8, 1  ;;  %v8048_v40 = vadd.f32 %v8047_v18, %v8046_v10  ;;  %v7968_v52 = vsel %vm341_vm11, %v7383_v1, 0.0  ;;  %v7384_v25 = vunpack.c.l.bf16 %v7079_v29  ;;  %v17908_v12 = vpop.permute.xlu1 %6085  ;;  %v563_v1 = vld [vmem:[%s11729_s17 + $0x368] sm:$0xf]  ;;  %v17922_v37 = vpop.permute.xlu0 %5974  ;;  %v601_v29 = vld [vmem:[%s11729_s17 + $0x400] sm:$0xf] }
 0x490   : > { %vm6474_vm6 = vcmp.eq.s32.totalorder %v17649_v33, 1  ;;  %v7889_v51 = vsel %vm341_vm11, %v7346_v50, 0.0  ;;  %v7347_v17 = vunpack.c.l.bf16 %v7042_v62  ;;  %v7422_v47 = vunpack.c.l.bf16 %v7117_v11  ;;  %vm17881_vm9 = vmpackc.low %vm6511_vm3, %vm6511_vm3  ;;  %v638_v50 = vld [vmem:[%s11729_s17 + $0x494] sm:$0xf] }
 0x491   : > { %vm6437_vm2 = vcmp.eq.s32.totalorder %v17661_v35, 1  ;;  %v8049_v27 = vsel %vm341_vm11, %v7421_v41, 0.0  ;;  %v7385_v43 = vunpack.c.l.bf16 %v7080_v6  ;;  %v7348_v60 = vunpack.c.l.bf16 %v7043_v34  ;;  %vm17892_vm10 = vmpackc.low %vm6474_vm6, %vm6474_vm6 }
 0x492   : > { %vm6512_vm13 = vcmp.eq.s32.totalorder %v17671_v28, 1  ;;  %v7118_v33 = vsel %vm17844_vm7, %v636_v26, 0  ;;  %v7081_v30 = vsel %vm17854_vm1, %v599_v9, 0  ;;  %v7044_v14 = vsel %vm17867_vm4, %v562_v38, 0  ;;  %vm17904_vm0 = vmpackc.low %vm6437_vm2, %vm6437_vm2  ;;  %v604_v26 = vld [vmem:[%s11729_s17 + $0x40c] sm:$0xf] }
 0x493   : > { %vm6475_vm5 = vcmp.eq.s32.totalorder %v17683_v0, 1  ;;  %v17897_v8 = vadd.f32 %v7834_v13, %v7833_v20  ;;  %v7969_v31 = vadd.f32 %v7968_v52, %v7967_v22  ;;  %v7890_v4 = vadd.f32 %v7889_v51, %v7888_v59  ;;  %vm17918_vm8 = vmpackc.low %vm6512_vm13, %vm6512_vm13  ;;  %v17942_v59 = vpop.permute.xlu1 %6199  ;;  %v603_v22 = vld [vmem:[%s11729_s17 + $0x408] sm:$0xf]  ;;  %v567_v9 = vld [vmem:[%s11729_s17 + $0x378] sm:$0xf] }
 0x494   : > { %v7970_v54 = vsel %vm341_vm11, %v7384_v25, 0.0  ;;  %v8050_v10 = vadd.f32 %v8049_v27, %v8048_v40  ;;  %v7891_v20 = vsel %vm341_vm11, %v7347_v17, 0.0  ;;  %v8051_v13 = vsel %vm341_vm11, %v7422_v47, 0.0  ;;  %vm17929_vm14 = vmpackc.low %vm6475_vm5, %vm6475_vm5  ;;  %v564_v25 = vld [vmem:[%s11729_s17 + $0x36c] sm:$0xf]  ;;  %v17961_v38 = vpop.permute.xlu0 %6088 }
 0x495   : > { %v7119_v55 = vsel %vm17881_vm9, %v637_v57, 0  ;;  %v7423_v23 = vunpack.c.l.bf16 %v7118_v33  ;;  %v7386_v63 = vunpack.c.l.bf16 %v7081_v30  ;;  %v7349_v18 = vunpack.c.l.bf16 %v7044_v14  ;;  %v639_v27 = vld [vmem:[%s11729_s17 + $0x498] sm:$0xf] }
 0x496   : > { %vm6438_vm15 = vcmp.eq.s32.totalorder %v17710_v53, 1  ;;  %v7971_v28 = vadd.f32 %v7970_v54, %v7969_v31  ;;  %v7972_v41 = vsel %vm341_vm11, %v7385_v43, 0.0  ;;  %v7893_v62 = vsel %vm341_vm11, %v7348_v60, 0.0  ;;  %v602_v43 = vld [vmem:[%s11729_s17 + $0x404] sm:$0xf] }
 0x497   : > { %vm6513_vm12 = vcmp.eq.s32.totalorder %v17732_v3, 1  ;;  %v7424_v11 = vunpack.c.l.bf16 %v7119_v55  ;;  %v7082_v15 = vsel %vm17892_vm10, %v600_v39, 0  ;;  %v7045_v0 = vsel %vm17904_vm0, %v563_v1, 0  ;;  %vm17948_vm1 = vmpackc.low %vm6438_vm15, %vm6438_vm15  ;;  %v565_v31 = vld [vmem:[%s11729_s17 + $0x370] sm:$0xf] }
 0x498   : > { %vm6476_vm7 = vcmp.eq.s32.totalorder %v17753_v36, 1  ;;  %v7892_v53 = vadd.f32 %v7891_v20, %v7890_v4  ;;  %v8052_v6 = vadd.f32 %v8051_v13, %v8050_v10  ;;  %v7120_v34 = vsel %vm17918_vm8, %v638_v50, 0  ;;  %vm17956_vm3 = vmpackc.low %vm6513_vm12, %vm6513_vm12  ;;  %v17983_v4 = vpop.permute.xlu1 %5977  ;;  %v642_v36 = vld [vmem:[%s11729_s17 + $0x4a4] sm:$0xf]  ;;  %v643_v55 = vld [vmem:[%s11729_s17 + $0x4a8] sm:$0xf] }
 0x499   : > { %v7083_v3 = vsel %vm17929_vm14, %v601_v29, 0  ;;  %v8053_v46 = vsel %vm341_vm11, %v7423_v23, 0.0  ;;  %v7974_v40 = vsel %vm341_vm11, %v7386_v63, 0.0  ;;  %v7895_v52 = vsel %vm341_vm11, %v7349_v18, 0.0  ;;  %vm17968_vm6 = vmpackc.low %vm6476_vm7, %vm6476_vm7  ;;  %v640_v63 = vld [vmem:[%s11729_s17 + $0x49c] sm:$0xf] }
 0x49a   : > { %vm6439_vm4 = vcmp.eq.s32.totalorder %v17776_v48, 1  ;;  %v7973_v5 = vadd.f32 %v7972_v41, %v7971_v28  ;;  %v7894_v51 = vadd.f32 %v7893_v62, %v7892_v53  ;;  %v7387_v17 = vunpack.c.l.bf16 %v7082_v15  ;;  %v17992_v48 = vpop.permute.xlu0 %6202  ;;  %v566_v28 = vld [vmem:[%s11729_s17 + $0x374] sm:$0xf] }
 0x49b   : > { %v7350_v47 = vunpack.c.l.bf16 %v7045_v0  ;;  %v8055_v57 = vsel %vm341_vm11, %v7424_v11, 0.0  ;;  %v7425_v32 = vunpack.c.l.bf16 %v7120_v34  ;;  %v7388_v33 = vunpack.c.l.bf16 %v7083_v3  ;;  %vm17978_vm9 = vmpackc.low %vm6439_vm4, %vm6439_vm4  ;;  %v641_v3 = vld [vmem:[%s11729_s17 + $0x4a0] sm:$0xf] }
 0x49c   : > { %vm6514_vm2 = vcmp.eq.s32.totalorder %v17803_v7, 1  ;;  %v8054_v30 = vadd.f32 %v8053_v46, %v8052_v6  ;;  %v7975_v14 = vadd.f32 %v7974_v40, %v7973_v5  ;;  %v7896_v61 = vadd.f32 %v7895_v52, %v7894_v51  ;;  %v570_v46 = vld [vmem:[%s11729_s17 + $0x384] sm:$0xf] }
 0x49d   : > { %vm6477_vm13 = vcmp.eq.s32.totalorder %v17830_v45, 1  ;;  %v7046_v54 = vsel %vm17948_vm1, %v564_v25, 0  ;;  %v7121_v39 = vsel %vm17956_vm3, %v639_v27, 0  ;;  %v7084_v58 = vsel %vm17968_vm6, %v602_v43, 0  ;;  %vm17999_vm5 = vmpackc.low %vm6514_vm2, %vm6514_vm2  ;;  %v6092_v45 = vpop.permute.xlu1 %6091 }
 0x49e   : > { %vm6440_vm10 = vcmp.eq.s32.totalorder %v17859_v21, 1  ;;  %v8056_v10 = vadd.f32 %v8055_v57, %v8054_v30  ;;  %v7976_v20 = vsel %vm341_vm11, %v7387_v17, 0.0  ;;  %v7897_v13 = vsel %vm341_vm11, %v7350_v47, 0.0  ;;  %vm18012_vm8 = vmpackc.low %vm6477_vm13, %vm6477_vm13 }
 0x49f   : > { %vm6515_vm0 = vcmp.eq.s32.totalorder %v17874_v56, 1  ;;  %v8057_v1 = vsel %vm341_vm11, %v7425_v32, 0.0  ;;  %v7978_v35 = vsel %vm341_vm11, %v7388_v33, 0.0  ;;  %v7047_v23 = vsel %vm17978_vm9, %v565_v31, 0  ;;  %vm18022_vm15 = vmpackc.low %vm6440_vm10, %vm6440_vm10  ;;  %v5981_v56 = vpop.permute.xlu0 %5980  ;;  %v645_v33 = vld [vmem:[%s11729_s17 + $0x4b0] sm:$0xf] }
 0x4a0   : > { %vm6478_vm14 = vcmp.eq.s32.totalorder %v17908_v12, 1  ;;  %v7351_v18 = vunpack.c.l.bf16 %v7046_v54  ;;  %v7426_v50 = vunpack.c.l.bf16 %v7121_v39  ;;  %v7389_v29 = vunpack.c.l.bf16 %v7084_v58  ;;  %vm18032_vm7 = vmpackc.low %vm6515_vm0, %vm6515_vm0  ;;  %v605_v54 = vld [vmem:[%s11729_s17 + $0x410] sm:$0xf]  ;;  %v644_v12 = vld [vmem:[%s11729_s17 + $0x4ac] sm:$0xf] }
 0x4a1   : > { %vm6441_vm12 = vcmp.eq.s32.totalorder %v17922_v37, 1  ;;  %v7757_v62 = vrot.slane %v17790_v44, 2  ;;  %v7836_v11 = vrot.slane %v17897_v8, 4  ;;  %v7977_v15 = vadd.f32 %v7976_v20, %v7975_v14  ;;  %vm18043_vm1 = vmpackc.low %vm6478_vm14, %vm6478_vm14  ;;  %v608_v39 = vld [vmem:[%s11729_s17 + $0x41c] sm:$0xf] }
 0x4a2   : > { %v7898_v0 = vadd.f32 %v7897_v13, %v7896_v61  ;;  %v8058_v53 = vadd.f32 %v8057_v1, %v8056_v10  ;;  %v7352_v6 = vunpack.c.l.bf16 %v7047_v23  ;;  %v7122_v34 = vsel %vm17999_vm5, %v640_v63, 0  ;;  %vm18056_vm4 = vmpackc.low %vm6441_vm12, %vm6441_vm12  ;;  %v568_v13 = vld [vmem:[%s11729_s17 + $0x37c] sm:$0xf] }
 0x4a3   : > { %vm6516_vm3 = vcmp.eq.s32.totalorder %v17942_v59, 1  ;;  %v7979_v40 = vadd.f32 %v7978_v35, %v7977_v15  ;;  %v7085_v52 = vsel %vm18012_vm8, %v603_v22, 0  ;;  %v7048_v25 = vsel %vm18022_vm15, %v566_v28, 0  ;;  %v569_v28 = vld [vmem:[%s11729_s17 + $0x380] sm:$0xf] }
 0x4a4   : > { %vm6479_vm6 = vcmp.eq.s32.totalorder %v17961_v38, 1  ;;  %v7899_v59 = vsel %vm341_vm11, %v7351_v18, 0.0  ;;  %v8059_v5 = vsel %vm341_vm11, %v7426_v50, 0.0  ;;  %v7980_v51 = vsel %vm341_vm11, %v7389_v29, 0.0  ;;  %vm18069_vm9 = vmpackc.low %vm6516_vm3, %vm6516_vm3  ;;  %v6206_v38 = vpop.permute.xlu1 %6205  ;;  %v6095_v30 = vpop.permute.xlu0 %6094 }
 0x4a5   : > { %vm6442_vm2 = vcmp.eq.s32.totalorder %v17983_v4, 1  ;;  %v7427_v17 = vunpack.c.l.bf16 %v7122_v34  ;;  %v7123_v37 = vsel %vm18032_vm7, %v641_v3, 0  ;;  %v7086_v47 = vsel %vm18043_vm1, %v604_v26, 0  ;;  %vm18077_vm10 = vmpackc.low %vm6479_vm6, %vm6479_vm6  ;;  %v606_v26 = vld [vmem:[%s11729_s17 + $0x414] sm:$0xf] }
 0x4a6   : > { %vm6517_vm13 = vcmp.eq.s32.totalorder %v17992_v48, 1  ;;  %v7901_v43 = vsel %vm341_vm11, %v7352_v6, 0.0  ;;  %v7390_v60 = vunpack.c.l.bf16 %v7085_v52  ;;  %v7353_v57 = vunpack.c.l.bf16 %v7048_v25  ;;  %vm18089_vm5 = vmpackc.low %vm6442_vm2, %vm6442_vm2 }
 0x4a7   : > { %v7049_v32 = vsel %vm18056_vm4, %v567_v9, 0  ;;  %v18082_v14 = vadd.f32 %v7836_v11, %v17897_v8  ;;  %v7900_v61 = vadd.f32 %v7899_v59, %v7898_v0  ;;  %v8060_v31 = vadd.f32 %v8059_v5, %v8058_v53  ;;  %vm18098_vm8 = vmpackc.low %vm6517_vm13, %vm6517_vm13  ;;  %v607_v59 = vld [vmem:[%s11729_s17 + $0x418] sm:$0xf] }
 0x4a8   : > { %vm6480_vm0 = vcmp.eq.s32.totalorder %v6092_v45, 1  ;;  %v7981_v58 = vadd.f32 %v7980_v51, %v7979_v40  ;;  %v7428_v10 = vunpack.c.l.bf16 %v7123_v37  ;;  %v7391_v20 = vunpack.c.l.bf16 %v7086_v47  ;;  %v5984_v23 = vpop.permute.xlu1 %5983 }
 0x4a9   : > { %vm6443_vm14 = vcmp.eq.s32.totalorder %v5981_v56, 1  ;;  %v7902_v4 = vadd.f32 %v7901_v43, %v7900_v61  ;;  %v8061_v1 = vsel %vm341_vm11, %v7427_v17, 0.0  ;;  %v7354_v35 = vunpack.c.l.bf16 %v7049_v32  ;;  %vm18109_vm12 = vmpackc.low %vm6480_vm0, %vm6480_vm0  ;;  %v571_v43 = vld [vmem:[%s11729_s17 + $0x388] sm:$0xf] }
 0x4aa   : > { %vm6518_vm15 = vcmp.eq.s32.totalorder %v6206_v38, 1  ;;  %v7982_v63 = vsel %vm341_vm11, %v7390_v60, 0.0  ;;  %v7903_v7 = vsel %vm341_vm11, %v7353_v57, 0.0  ;;  %v7124_v48 = vsel %vm18069_vm9, %v642_v36, 0  ;;  %vm18120_vm1 = vmpackc.low %vm6443_vm14, %vm6443_vm14  ;;  %v6209_v45 = vpop.permute.xlu0 %6208 }
 0x4ab   : > { %vm6444_vm7 = vcmp.eq.s32.totalorder %v5984_v23, 1  ;;  %v7087_v50 = vsel %vm18077_vm10, %v605_v54, 0  ;;  %v7050_v29 = vsel %vm18089_vm5, %v568_v13, 0  ;;  %v7125_v22 = vsel %vm18098_vm8, %v643_v55, 0  ;;  %vm18128_vm4 = vmpackc.low %vm6518_vm15, %vm6518_vm15  ;;  %v646_v23 = vld [vmem:[%s11729_s17 + $0x4b4] sm:$0xf] }
 0x4ac   : > { %vm6481_vm3 = vcmp.eq.s32.totalorder %v6095_v30, 1  ;;  %v8062_v11 = vadd.f32 %v8061_v1, %v8060_v31  ;;  %v8063_v15 = vsel %vm341_vm11, %v7428_v10, 0.0  ;;  %v7984_v0 = vsel %vm341_vm11, %v7391_v20, 0.0  ;;  %vm18137_vm2 = vmpackc.low %vm6444_vm7, %vm6444_vm7 }
 0x4ad   : > { %vm6519_vm6 = vcmp.eq.s32.totalorder %v6209_v45, 1  ;;  %v7983_v53 = vadd.f32 %v7982_v63, %v7981_v58  ;;  %v7904_v6 = vadd.f32 %v7903_v7, %v7902_v4  ;;  %v7905_v34 = vsel %vm341_vm11, %v7354_v35, 0.0  ;;  %vm18147_vm9 = vmpackc.low %vm6481_vm3, %vm6481_vm3 }
 0x4ae   : > { %v7429_v3 = vunpack.c.l.bf16 %v7124_v48  ;;  %v7392_v40 = vunpack.c.l.bf16 %v7087_v50  ;;  %v7355_v52 = vunpack.c.l.bf16 %v7050_v29  ;;  %v7430_v25 = vunpack.c.l.bf16 %v7125_v22  ;;  %v6098_v51 = vpop.permute.xlu1 %6097  ;;  %vm18154_vm13 = vmpackc.low %vm6519_vm6, %vm6519_vm6  ;;  %v609_v22 = vld [vmem:[%s11729_s17 + $0x420] sm:$0xf] }
 0x4af   : > { %v7051_v9 = vsel %vm18120_vm1, %v569_v28, 0  ;;  %v7838_v17 = vrot.slane %v18082_v14, 2  ;;  %v8064_v37 = vadd.f32 %v8063_v15, %v8062_v11  ;;  %v7985_v47 = vadd.f32 %v7984_v0, %v7983_v53  ;;  %v5987_v38 = vpop.permute.xlu0 %5986 }
 0x4b0   : > { %vm6482_vm10 = vcmp.eq.s32.totalorder %v6098_v51, 1  ;;  %v7906_v60 = vadd.f32 %v7905_v34, %v7904_v6  ;;  %v7088_v57 = vsel %vm18109_vm12, %v606_v26, 0  ;;  %v7052_v32 = vsel %vm18137_vm2, %v570_v46, 0  ;;  %v572_v46 = vld [vmem:[%s11729_s17 + $0x38c] sm:$0xf] }
 0x4b1   : > { %vm18164_vm5 = vmpackc.low %vm6482_vm10, %vm6482_vm10  ;;  %vm6445_vm0 = vcmp.eq.s32.totalorder %v5987_v38, 1  ;;  %v8065_v61 = vsel %vm341_vm11, %v7429_v3, 0.0  ;;  %v7356_v31 = vunpack.c.l.bf16 %v7051_v9  ;;  %v7126_v36 = vsel %vm18128_vm4, %v644_v12, 0  ;;  %v647_v9 = vld [vmem:[%s11729_s17 + $0x4b8] sm:$0xf] }
 0x4b2   : > { %v7089_v54 = vsel %vm18147_vm9, %v607_v59, 0  ;;  %vm18174_vm8 = vmpackc.low %vm6445_vm0, %vm6445_vm0  ;;  %v7986_v10 = vsel %vm341_vm11, %v7392_v40, 0.0  ;;  %v7907_v20 = vsel %vm341_vm11, %v7355_v52, 0.0  ;;  %v8067_v13 = vsel %vm341_vm11, %v7430_v25, 0.0  ;;  %v6212_v8 = vpop.permute.xlu1 %6211 }
 0x4b3   : > { %v7053_v55 = vsel %vm18174_vm8, %v571_v43, 0  ;;  %v7393_v4 = vunpack.c.l.bf16 %v7088_v57  ;;  %v7357_v1 = vunpack.c.l.bf16 %v7052_v32  ;;  %v7127_v35 = vsel %vm18154_vm13, %v645_v33, 0  ;;  %v610_v33 = vld [vmem:[%s11729_s17 + $0x424] sm:$0xf] }
 0x4b4   : > { %vm6520_vm14 = vcmp.eq.s32.totalorder %v6212_v8, 1  ;;  %v8066_v63 = vadd.f32 %v8065_v61, %v8064_v37  ;;  %v7431_v7 = vunpack.c.l.bf16 %v7126_v36  ;;  %v7394_v48 = vunpack.c.l.bf16 %v7089_v54  ;;  %v6101_v29 = vpop.permute.xlu0 %6100 }
 0x4b5   : > { %v7090_v18 = vsel %vm18164_vm5, %v608_v39, 0  ;;  %vm18188_vm15 = vmpackc.low %vm6520_vm14, %vm6520_vm14  ;;  %v7987_v28 = vadd.f32 %v7986_v10, %v7985_v47  ;;  %v7909_v41 = vsel %vm341_vm11, %v7356_v31, 0.0  ;;  %v7358_v45 = vunpack.c.l.bf16 %v7053_v55 }
 0x4b6   : > { %vm6483_vm12 = vcmp.eq.s32.totalorder %v6101_v29, 1  ;;  %v7908_v11 = vadd.f32 %v7907_v20, %v7906_v60  ;;  %v8068_v15 = vadd.f32 %v8067_v13, %v8066_v63  ;;  %v7432_v0 = vunpack.c.l.bf16 %v7127_v35  ;;  %v648_v20 = vld [vmem:[%s11729_s17 + $0x4bc] sm:$0xf]  ;;  %s8204_s17 = sshll.u32 %s297_s16, 4  ;;  %s18240_s17 = int_to_ptr.vmem [resolvable:$true] %s8204_s17 }
 0x4b7   : > { %v7128_v21 = vsel %vm18188_vm15, %v646_v23, 0  ;;  %vm6787_vm7 = vmpackc.low %vm6483_vm12, %vm6483_vm12  ;;  %v7988_v53 = vsel %vm341_vm11, %v7393_v4, 0.0  ;;  %v7911_v6 = vsel %vm341_vm11, %v7357_v1, 0.0  ;;  %v7395_v34 = vunpack.c.l.bf16 %v7090_v18  ;;  %v5990_v26 = vpop.permute.xlu1 %5989  ;;  %s8408_s21 = scalar_lea.vmem %s18240_s17, 128  ;;  %p8415_p2 = scmp.lt.s32.totalorder %s18240_s17, %s8413_s8 }
 0x4b8   : > { %v7091_v3 = vsel %vm6787_vm7, %v609_v22, 0  ;;  %v7910_v56 = vadd.f32 %v7909_v41, %v7908_v11  ;;  %v8069_v40 = vsel %vm341_vm11, %v7431_v7, 0.0  ;;  %v7990_v52 = vsel %vm341_vm11, %v7394_v48, 0.0  ;;  %p8409_p13 = scmp.ne.s32.totalorder %s18240_s17, %s8408_s21  ;;  %p8416_p3 = scmp.lt.s32.totalorder %s8414_s9, %s8408_s21 }
 0x4b9   : > { %vm6446_vm1 = vcmp.eq.s32.totalorder %v5990_v26, 1  ;;  %v6215_v25 = vpop.permute.xlu0 %6214  ;;  %v7913_v12 = vsel %vm341_vm11, %v7358_v45, 0.0  ;;  %v7433_v59 = vunpack.c.l.bf16 %v7128_v21  ;;  %v7396_v5 = vunpack.c.l.bf16 %v7091_v3 }
 0x4ba   : > { %vm6750_vm3 = vmpackc.low %vm6446_vm1, %vm6446_vm1  ;;  %vm6521_vm4 = vcmp.eq.s32.totalorder %v6215_v25, 1  ;;  %v7989_v51 = vadd.f32 %v7988_v53, %v7987_v28  ;;  %v7912_v37 = vadd.f32 %v7911_v6, %v7910_v56  ;;  %v8071_v47 = vsel %vm341_vm11, %v7432_v0, 0.0  ;;  %p8410_p0 = pnand %p8409_p13, %p8564_p4  ;;  %p8417_p5 = por %p8416_p3, %p8415_p2 }
 0x4bb   : > { %v7054_v27 = vsel %vm6750_vm3, %v572_v46, 0  ;;  %vm6825_vm6 = vmpackc.low %vm6521_vm4, %vm6521_vm4  ;;  %v8070_v38 = vadd.f32 %v8069_v40, %v8068_v15  ;;  %v7992_v43 = vsel %vm341_vm11, %v7395_v34, 0.0  ;;  %v8073_v54 = vsel %vm341_vm11, %v7433_v59, 0.0 }
 0x4bc   : > { %v7359_v60 = vunpack.c.l.bf16 %v7054_v27  ;;  %v7129_v57 = vsel %vm6825_vm6, %v647_v9, 0  ;;  %v6104_v32 = vpop.permute.xlu1 %6103  ;;  %v7991_v30 = vadd.f32 %v7990_v52, %v7989_v51  ;;  %v7914_v61 = vadd.f32 %v7913_v12, %v7912_v37  ;;  %p8411_p1 = pneg %p8410_p0 }
 0x4bd   : > { %v7434_v31 = vunpack.c.l.bf16 %v7129_v57  ;;  %vm6484_vm2 = vcmp.eq.s32.totalorder %v6104_v32, 1  ;;  %v8072_v36 = vadd.f32 %v8071_v47, %v8070_v38  ;;  %v7994_v39 = vsel %vm341_vm11, %v7396_v5, 0.0  ;;  %v7131_v32 = vld [vmem:[#allocation2] sm:$0xff] }
 0x4be   : > { %v7915_v58 = vsel %vm341_vm11, %v7359_v60, 0.0  ;;  %vm6788_vm9 = vmpackc.low %vm6484_vm2, %vm6484_vm2  ;;  %v6218_v10 = vpop.permute.xlu0 %6217  ;;  %v7993_v13 = vadd.f32 %v7992_v43, %v7991_v30  ;;  %v7596_v4 = vadd.f32 %v7595_v42, %v17714_v2  ;;  %v7677_v1 = vadd.f32 %v7676_v19, %v17725_v24  ;;  %p8418_p6 = pnand %p8417_p5, %p8411_p1 }
 0x4bf   : > { %v7916_v55 = vadd.f32 %v7915_v58, %v7914_v61  ;;  %v7092_v8 = vsel %vm6788_vm9, %v610_v33, 0  ;;  %vm6522_vm13 = vcmp.eq.s32.totalorder %v6218_v10, 1  ;;  %v8075_v35 = vsel %vm341_vm11, %v7434_v31, 0.0 }
 0x4c0   : > { %v7397_v23 = vunpack.c.l.bf16 %v7092_v8  ;;  %vm6826_vm10 = vmpackc.low %vm6522_vm13, %vm6522_vm13  ;;  %v8074_v63 = vadd.f32 %v8073_v54, %v8072_v36  ;;  %v7995_v7 = vadd.f32 %v7994_v39, %v7993_v13  ;;  %v7515_v50 = vadd.f32 %v7514_v16, %v17712_v49  ;;  %v8178_v36 = vpop.permute.xlu1 %8177  ;;  %v8323_v39 = vld [vmem:[%s18289_s4] ss:$0 sm:$0xff] }
 0x4c1   : > { %v7917_v48 = vrot.slane %v7916_v55, 4  ;;  %v7130_v18 = vsel %vm6826_vm10, %v648_v20, 0  ;;  %v7758_v2 = vadd.f32 %v7757_v62, %v17790_v44  ;;  %v7839_v24 = vadd.f32 %v7838_v17, %v18082_v14 }
 0x4c2   : > { %v7996_v42 = vsel %vm341_vm11, %v7397_v23, 0.0  ;;  %v7435_v29 = vunpack.c.l.bf16 %v7130_v18  ;;  %v8076_v22 = vadd.f32 %v8075_v35, %v8074_v63  ;;  %v7597_v41 = vrot.slane %v7596_v4, 1 }
 0x4c3   : > { %v7918_v19 = vadd.f32 %v7917_v48, %v7916_v55  ;;  %v7997_v28 = vadd.f32 %v7996_v42, %v7995_v7  ;;  %v7678_v11 = vrot.slane %v7677_v1, 1  ;;  %v7516_v0 = vrot.slane %v7515_v50, 1 }
 0x4c4   : > { %v8077_v45 = vsel %vm341_vm11, %v7435_v29, 0.0  ;;  %v7759_v21 = vrot.slane %v7758_v2, 1  ;;  %v7840_v44 = vrot.slane %v7839_v24, 1  ;;  %vm8093_vm5 = vcmask 1041409  }
 0x4c5   : > { %v7919_v15 = vrot.slane %v7918_v19, 2  ;;  %v7998_v49 = vrot.slane %v7997_v28, 4  ;;  %v8078_v16 = vadd.f32 %v8077_v45, %v8076_v22  ;;  %v7598_v34 = vadd.f32 %v7597_v41, %v7596_v4 }
 0x4c6   : > { %v7679_v3 = vadd.f32 %v7678_v11, %v7677_v1  ;;  %v7517_v46 = vadd.f32 %v7516_v0, %v7515_v50  ;;  %vm8095_vm0 = vcmask 1042434   ;;  %v7760_v56 = vadd.f32 %v7759_v21, %v7758_v2 }
 0x4c7   : > { %v7920_v62 = vadd.f32 %v7919_v15, %v7918_v19  ;;  %v7999_v53 = vadd.f32 %v7998_v49, %v7997_v28  ;;  %v8079_v6 = vrot.slane %v8078_v16, 4  ;;  %vm8097_vm8 = vcmask 1043459  }
 0x4c8   : > { %v7841_v40 = vadd.f32 %v7840_v44, %v7839_v24  ;;  %v8094_v9 = vsel %vm8093_vm5, %v7598_v34, %v7517_v46  ;;  %vm8099_vm14 = vcmask 1044484   ;;  %vm8101_vm15 = vcmask 1045509  }
 0x4c9   : > { %v7921_v14 = vrot.slane %v7920_v62, 1  ;;  %v8000_v17 = vrot.slane %v7999_v53, 2  ;;  %v8080_v26 = vadd.f32 %v8079_v6, %v8078_v16  ;;  %v8096_v59 = vsel %vm8095_vm0, %v7679_v3, %v8094_v9 }
 0x4ca   : > { %v8098_v37 = vsel %vm8097_vm8, %v7760_v56, %v8096_v59  ;;  %vm8103_vm12 = vcmask 1046534   ;;  %vm8105_vm7 = vcmask 1047559  }
 0x4cb   : > { %v8001_v52 = vadd.f32 %v8000_v17, %v7999_v53  ;;  %v8081_v25 = vrot.slane %v8080_v26, 2  ;;  %v7922_v12 = vadd.f32 %v7921_v14, %v7920_v62  ;;  %v8100_v47 = vsel %vm8099_vm14, %v7841_v40, %v8098_v37 }
 0x4cd   : > { %v8002_v5 = vrot.slane %v8001_v52, 1  ;;  %v8082_v51 = vadd.f32 %v8081_v25, %v8080_v26  ;;  %v8102_v43 = vsel %vm8101_vm15, %v7922_v12, %v8100_v47 }
 0x4cf   : > { %v8003_v27 = vadd.f32 %v8002_v5, %v8001_v52  ;;  %v8083_v38 = vrot.slane %v8082_v51, 1 }
 0x4d1   : > { %v8104_v60 = vsel %vm8103_vm12, %v8003_v27, %v8102_v43  ;;  %v8084_v57 = vadd.f32 %v8083_v38, %v8082_v51 }
 0x4d3   : > { %v8106_v33 = vsel %vm8105_vm7, %v8084_v57, %v8104_v60 }
 0x4d4   : > { %v8108_v30 = vadd.f32 %v8106_v33, %v7131_v32 }
 0x4d6   : > { %8109 = vst.msk [vmem:[#allocation2] sm:$0xff] %vm341_vm11, %v8108_v30 }
 0x4dd   : > { %v8113_v61 = vld [vmem:[#allocation2] sm:$0xff] }
 0x4de   : > { %v8114_v31 = vpack.c.bf16 %v8113_v61, %v8113_v61 }
 0x4e0   : > { %8336 = vmatmul.mubr.msk.bf16.vlgmr.msra.gmra.mrb[0].mxu0 %vm341_vm11, %v8114_v31 }
 0x5b3   : > { %v8168_v54 = vpop.f32.mrb[0].mxu0 }
 0x5b4   : > { %v8180_v58 = vmul.f32 %v8178_v36, %v8168_v54  ;;  %v8337_v10 = vpop.f32.mrb[1].mxu0 }
 0x5b5   : > { %v8171_v20 = vpop.f32.mrb[2].mxu0 }
 0x5b6   : > { %v8188_v13 = vadd.f32 %v8323_v39, %v8180_v58  ;;  %v8338_v55 = vpop.f32.mrb[3].mxu0 }
 0x5b8   : > { %8189 = vst [vmem:[%s297_s16] sm:$0xff] %v8188_v13 }
 0x5b9   : > { %8421 = shalt.err (!%p8418_p6)
}
 0x5ba   : > { %s8422_s10 = scalar_lea.hbm %s18238_s27, 128  ;;  %s8426_s13 = scalar_lea.hbm %s18290_s5, 256 }
 0x5bb   : > { %p8423_p7 = scmp.ne.s32.totalorder %s18238_s27, %s8422_s10  ;;  %p8427_p11 = scmp.lt.u32.totalorder %s18238_s27, %s18290_s5 }
 0x5bc   : > { %p8428_p12 = scmp.lt.u32.totalorder %s8426_s13, %s8422_s10  ;;  %p8430_p0 = scmp.lt.u32.totalorder %s8422_s10, %s18238_s27 }
 0x5bd   : > { %p8424_p9 = pnand %p8423_p7, %p8564_p4 }
 0x5be   : > { %p8429_p13 = por %p8428_p12, %p8427_p11 }
 0x5bf   : > { %p8425_p10 = pneg %p8424_p9 }
 0x5c0   : > { %p8431_p1 = por %p8430_p0, %p8429_p13 }
 0x5c2   : > { %p8432_p2 = pnand %p8431_p1, %p8425_p10 }
 0x5c4   : > { %8435 = shalt.err (!%p8432_p2)
}
 0x5c5   : > { %8341 = dma.vmem_to_hbm [thread:$0]  (%p8564_p4), %s18240_s17, 128, %s18238_s27, %s8191_s29  }
 0x5c6 PF: > { %p8347_p3 = scmp.ge.s32.totalorder %s8486_s23, 2  ;;  %s8216_s16 = sand.u32 1, %s8466_s18  }
 0x5c7   : > { %s8217_s24 = scalar_lea.sflag [#allocation4], %s8216_s16 }
 0x5c8   : > { %p8344_p5 = pnand %p8347_p3, %p8571_p8 }
 0x5ca   : > { %8461 = dma.done.wait (!%p8344_p5), %s8217_s24, 128  }
 0x5cb   : > { %8463 = vsyncadd (!%p8344_p5), %s8217_s24, 4294967168  ;;  %s18_s23 = sadd.s32 1, %s8486_s23   ;;  %s20712_s18 = smov %s8470_s19 }
 0x5cc   : > { %p15_p6 = scmp.ge.s32.totalorder %s18_s23, 4   ;;  %s20713_s19 = smov %s8474_s20 }
 0x5cd   : > { %s20714_s20 = smov %s8577_s6  ;;  %s20715_s21 = smov %s8482_s22 }
 0x5ce   : > { %s20716_s22 = smov %s20718_s26  ;;  %17 = sbr.rel (!%p15_p6) target bundleno = 4 (0x4), region = 89 }
 0x5d5   :  { %8222 = vsyncpa [#allocation4], 1 }
 0x5d6   :  { %8224 = vsyncpa [#allocation4 + $0x1], 1 }

</bundles_post_ra>
